<compile_context>
chip_gen: v6e
topology: v6e:2x2x1
jax: 0.10.0
libtpu: 0.0.40
codegen_flags: <defaults>
</compile_context>

<pallas_src>
import functools
from functools import lru_cache

import jax
import jax.numpy as jnp
from jax import lax
from jax.experimental import pallas as pl
from jax.experimental.pallas import tpu as pltpu

# -------------------- configuration (scaled-down widths) --------------------
WIDTH = 8          # torchvision stem width is 64
ASPP_CH = 32       # torchvision ASPP out_channels is 256
NUM_CLASSES = 21
ATROUS_RATES = (12, 24, 36)

_ACT = jnp.bfloat16            # activation / weight storage dtype (MXU-native)
_TM_MAX = 512                  # max lane-tile (spatial) per matmul block
_TK_MAX = 512                  # K tile when K is large
_K_FULL_MAX = 2048             # keep K untiled below this (fits VMEM easily)
_VMEM_LIMIT = 32 * 1024 * 1024

_CP_MM = pltpu.CompilerParams(dimension_semantics=("parallel", "arbitrary"),
                              vmem_limit_bytes=_VMEM_LIMIT)
_CP_PAR1 = pltpu.CompilerParams(dimension_semantics=("parallel",),
                                vmem_limit_bytes=_VMEM_LIMIT)
_CP_ARB1 = pltpu.CompilerParams(dimension_semantics=("arbitrary",),
                                vmem_limit_bytes=_VMEM_LIMIT)


def _round_up(a, b):
    return (a + b - 1) // b * b


# ====================== tiled matmul (conv engine) kernel ====================
# Computes out (Cout, M) = w (Cout, K) @ x (K, M) [+ bias] [+ residual] [relu]
# with the spatial dim M on the lane axis (lane-dense stores) and a float32
# VMEM accumulator across the K grid axis.

def _mm_kernel(w_ref, x_ref, *rest, relu, has_bias, has_res):
    pos = 0
    b_ref = None
    r_ref = None
    if has_bias:
        b_ref = rest[pos]; pos += 1
    if has_res:
        r_ref = rest[pos]; pos += 1
    o_ref = rest[pos]
    acc_ref = rest[pos + 1]

    k = pl.program_id(1)

    @pl.when(k == 0)
    def _():
        acc_ref[...] = jnp.zeros_like(acc_ref)

    acc_ref[...] += jnp.dot(w_ref[...], x_ref[...],
                            preferred_element_type=jnp.float32)

    @pl.when(k == pl.num_programs(1) - 1)
    def _():
        acc = acc_ref[...]
        if has_bias:
            acc = acc + b_ref[...]                      # (Cout,1) broadcast over lanes
        if has_res:
            acc = acc + r_ref[...].astype(jnp.float32)  # fused residual add
        if relu:
            acc = jnp.maximum(acc, 0.0)
        o_ref[...] = acc.astype(o_ref.dtype)


@lru_cache(maxsize=None)
def _mm_call(Cout, Kp, Mp, tk, tm, relu, has_bias, has_res):
    gm = Mp // tm
    gk = Kp // tk
    kern = functools.partial(_mm_kernel, relu=relu,
                             has_bias=has_bias, has_res=has_res)
    in_specs = [
        pl.BlockSpec((Cout, tk), lambda i, k: (0, k)),   # weights
        pl.BlockSpec((tk, tm), lambda i, k: (k, i)),     # activations (K, M)
    ]
    if has_bias:
        in_specs.append(pl.BlockSpec((Cout, 1), lambda i, k: (0, 0)))
    if has_res:
        in_specs.append(pl.BlockSpec((Cout, tm), lambda i, k: (0, i)))
    return pl.pallas_call(
        kern,
        grid=(gm, gk),
        in_specs=in_specs,
        out_specs=pl.BlockSpec((Cout, tm), lambda i, k: (0, i)),
        out_shape=jax.ShapeDtypeStruct((Cout, Mp), _ACT),
        scratch_shapes=[pltpu.VMEM((Cout, tm), jnp.float32)],
        compiler_params=_CP_MM,
    )


def matmul_T(wt, x, bias=None, residual=None, relu=False):
    """out (Cout, M) = wt (Cout, K) @ x (K, M) with fused bias/residual/ReLU."""
    Cout, K = wt.shape
    K2, M = x.shape
    assert K == K2

    # spatial (lane) tiling — always a multiple of 128 for lane-dense stores
    Mp128 = _round_up(M, 128)
    if Mp128 <= _TM_MAX:
        tm, Mp = Mp128, Mp128
    else:
        tm, Mp = _TM_MAX, _round_up(M, _TM_MAX)
    # reduction tiling
    if K <= _K_FULL_MAX:
        tk, Kp = K, K
    else:
        tk, Kp = _TK_MAX, _round_up(K, _TK_MAX)

    pk, pm = Kp - K, Mp - M
    if pk or pm:
        x = jnp.pad(x, ((0, pk), (0, pm)))
    if pk:
        wt = jnp.pad(wt, ((0, 0), (0, pk)))
    if pm and residual is not None:
        residual = jnp.pad(residual, ((0, 0), (0, pm)))

    call = _mm_call(int(Cout), int(Kp), int(Mp), int(tk), int(tm),
                    bool(relu), bias is not None, residual is not None)
    args = [wt, x]
    if bias is not None:
        args.append(bias)
    if residual is not None:
        args.append(residual)
    out = call(*args)
    return out[:, :M] if pm else out


# ===================== tiled 3x3/2 max-pool (9-way max) ======================

def _max9_kernel(*refs):
    o_ref = refs[-1]
    m = refs[0][...]
    for r in refs[1:-1]:
        m = jnp.maximum(m, r[...])
    o_ref[...] = m


@lru_cache(maxsize=None)
def _max9_call(C, Lp, tl):
    g = Lp // tl
    return pl.pallas_call(
        _max9_kernel,
        grid=(g,),
        in_specs=[pl.BlockSpec((C, tl), lambda i: (0, i)) for _ in range(9)],
        out_specs=pl.BlockSpec((C, tl), lambda i: (0, i)),
        out_shape=jax.ShapeDtypeStruct((C, Lp), _ACT),
        compiler_params=_CP_PAR1,
    )


def maxpool2d_3x3_s2_p1(x):
    """x: (C, N, H, W) bf16 -> (C, N, Ho, Wo)."""
    C, N, H, W = x.shape
    k, s, p = 3, 2, 1
    Ho = (H + 2 * p - k) // s + 1
    Wo = (W + 2 * p - k) // s + 1
    xp = jnp.pad(x, ((0, 0), (0, 0), (p, p), (p, p)),
                 constant_values=-jnp.inf)
    taps = []
    for ki in range(k):
        for kj in range(k):
            taps.append(
                lax.slice(xp, (0, 0, ki, kj),
                          (C, N, ki + (Ho - 1) * s + 1, kj + (Wo - 1) * s + 1),
                          (1, 1, s, s)).reshape(C, N * Ho * Wo))
    L = N * Ho * Wo
    tl = min(_TM_MAX, _round_up(L, 128))
    Lp = _round_up(L, tl)
    if Lp != L:
        taps = [jnp.pad(t, ((0, 0), (0, Lp - L))) for t in taps]
    out = _max9_call(int(C), int(Lp), int(tl))(*taps)
    return out[:, :L].reshape(C, N, Ho, Wo)


# ============ fused global-average-pool + 1x1 conv + BN + ReLU ===============

def _gap_conv_kernel(x_ref, w_ref, b_ref, o_ref, acc_ref, *, inv_hw):
    k = pl.program_id(0)

    @pl.when(k == 0)
    def _():
        acc_ref[...] = jnp.zeros_like(acc_ref)

    acc_ref[...] += jnp.sum(x_ref[...].astype(jnp.float32), axis=2)  # (C, N)

    @pl.when(k == pl.num_programs(0) - 1)
    def _():
        mean = acc_ref[...] * inv_hw                                  # (C, N)
        out = jnp.dot(w_ref[...].astype(jnp.float32), mean,
                      preferred_element_type=jnp.float32) + b_ref[...]
        o_ref[...] = jnp.maximum(out, 0.0).astype(o_ref.dtype)


@lru_cache(maxsize=None)
def _gap_conv_call(C, N, HWp, thw, Cout, inv_hw):
    g = HWp // thw
    kern = functools.partial(_gap_conv_kernel, inv_hw=inv_hw)
    return pl.pallas_call(
        kern,
        grid=(g,),
        in_specs=[pl.BlockSpec((C, N, thw), lambda k: (0, 0, k)),
                  pl.BlockSpec((Cout, C), lambda k: (0, 0)),
                  pl.BlockSpec((Cout, 1), lambda k: (0, 0))],
        out_specs=pl.BlockSpec((Cout, N), lambda k: (0, 0)),
        out_shape=jax.ShapeDtypeStruct((Cout, N), _ACT),
        scratch_shapes=[pltpu.VMEM((C, N), jnp.float32)],
        compiler_params=_CP_ARB1,
    )


def global_pool_conv(x, p):
    """AdaptiveAvgPool2d(1) + Conv1x1 + BN + ReLU fused.  x: (C, N, H, W)."""
    C, N, H, W = x.shape
    HW = H * W
    wt, b = p["wt"], p["b"]
    Cout = wt.shape[0]
    thw = min(_TM_MAX, _round_up(HW, 128))
    HWp = _round_up(HW, thw)
    xr = x.reshape(C, N, HW)
    if HWp != HW:
        xr = jnp.pad(xr, ((0, 0), (0, 0), (0, HWp - HW)))
    return _gap_conv_call(int(C), int(N), int(HWp), int(thw), int(Cout),
                          float(1.0 / HW))(xr, wt, b)   # (Cout, N)


# ========================= conv / resize (wrappers) ==========================

def conv2d_t(x, wt, b, *, ks, stride=1, padding=0, dilation=1,
             relu=False, residual=None):
    """Conv2d (folded BN) on CNHW activations via im2col + tiled Pallas matmul.

    x: (Cin, N, H, W); wt: (Cout, ks*ks*Cin); b: (Cout, 1) or None.
    residual: optional (Cout, N, Ho, Wo) fused into the epilogue (add then ReLU).
    """
    # TODO(synk): fold the ks*ks tap loop into the kernel's K reduction with
    # in-kernel windowed loads to avoid the ks^2-duplicated im2col HBM buffer.
    C, N, H, W = x.shape
    Cout = wt.shape[0]
    Ho = (H + 2 * padding - dilation * (ks - 1) - 1) // stride + 1
    Wo = (W + 2 * padding - dilation * (ks - 1) - 1) // stride + 1

    if ks == 1 and stride == 1 and padding == 0:
        xcol = x.reshape(C, N * H * W)
    else:
        xp = jnp.pad(x, ((0, 0), (0, 0), (padding, padding), (padding, padding)))
        patches = []
        for ki in range(ks):
            for kj in range(ks):
                h0 = ki * dilation
                w0 = kj * dilation
                patches.append(
                    lax.slice(xp, (0, 0, h0, w0),
                              (C, N, h0 + (Ho - 1) * stride + 1,
                               w0 + (Wo - 1) * stride + 1),
                              (1, 1, stride, stride)))
        xcol = jnp.concatenate(patches, axis=0).reshape(ks * ks * C, N * Ho * Wo)

    res2 = residual.reshape(Cout, N * Ho * Wo) if residual is not None else None
    out = matmul_T(wt, xcol, bias=b, residual=res2, relu=relu)
    return out.reshape(Cout, N, Ho, Wo)


def conv_unit(x, p, *, stride=1, padding=0, dilation=1, relu=False, residual=None):
    return conv2d_t(x, p["wt"], p["b"], ks=p["ks"], stride=stride, padding=padding,
                    dilation=dilation, relu=relu, residual=residual)


def _interp_matrix(out_size, in_size):
    """PyTorch bilinear, align_corners=False interpolation weights as a matrix."""
    if in_size == 1:
        return jnp.ones((out_size, 1), jnp.float32)
    scale = in_size / out_size
    src = (jnp.arange(out_size, dtype=jnp.float32) + 0.5) * scale - 0.5
    src = jnp.maximum(src, 0.0)
    i0 = jnp.clip(jnp.floor(src).astype(jnp.int32), 0, in_size - 1)
    i1 = jnp.minimum(i0 + 1, in_size - 1)
    w1 = src - i0.astype(jnp.float32)
    w0 = 1.0 - w1
    return (w0[:, None] * jax.nn.one_hot(i0, in_size, dtype=jnp.float32)
            + w1[:, None] * jax.nn.one_hot(i1, in_size, dtype=jnp.float32))


def bilinear_resize(x, Ho, Wo):
    """F.interpolate(mode='bilinear', align_corners=False) on CNHW via 2 matmuls."""
    C, N, Hi, Wi = x.shape
    if (Hi, Wi) == (Ho, Wo):
        return x
    if Hi == 1 and Wi == 1:
        return jnp.broadcast_to(x, (C, N, Ho, Wo))
    Rm = _interp_matrix(Ho, Hi).astype(_ACT)   # (Ho, Hi)
    Cm = _interp_matrix(Wo, Wi).astype(_ACT)   # (Wo, Wi)
    # rows
    xh = jnp.transpose(x, (2, 0, 1, 3)).reshape(Hi, C * N * Wi)
    yh = matmul_T(Rm, xh)                      # (Ho, C*N*Wi), no bias
    yh = yh.reshape(Ho, C, N, Wi)
    # cols
    xw = jnp.transpose(yh, (3, 1, 2, 0)).reshape(Wi, C * N * Ho)
    yw = matmul_T(Cm, xw)                      # (Wo, C*N*Ho), no bias
    yw = yw.reshape(Wo, C, N, Ho)
    return jnp.transpose(yw, (1, 2, 3, 0))     # (C, N, Ho, Wo)


# ====================== deterministic parameter setup =======================

class KeyGen:
    def __init__(self, seed):
        self._key = jax.random.PRNGKey(seed)

    def __call__(self):
        self._key, sub = jax.random.split(self._key)
        return sub


def _fold_bn(gamma, beta, mean, var, eps=1e-5):
    scale = gamma / jnp.sqrt(var + eps)
    bias = beta - mean * scale
    return scale, bias


def _to_wt(w, k, cin, cout):
    # (k,k,cin,cout) -> (cout, k*k*cin) with K ordered (tap-major, cin-minor)
    return jnp.transpose(w.reshape(k * k, cin, cout), (2, 0, 1)).reshape(cout, k * k * cin)


def make_conv_bn(kg, cin, cout, k):
    """Conv2d(bias=False) + BatchNorm (inference) folded into (wt, b)."""
    fan_in = cin * k * k
    w = jax.random.normal(kg(), (k, k, cin, cout), jnp.float32) / jnp.sqrt(float(fan_in))
    gamma = 1.0 + 0.1 * jax.random.normal(kg(), (cout,), jnp.float32)
    beta = 0.05 * jax.random.normal(kg(), (cout,), jnp.float32)
    mean = 0.05 * jax.random.normal(kg(), (cout,), jnp.float32)
    var = 1.0 + 0.1 * jnp.abs(jax.random.normal(kg(), (cout,), jnp.float32))
    scale, bias = _fold_bn(gamma, beta, mean, var)
    w = w * scale[None, None, None, :]
    return {"wt": _to_wt(w, k, cin, cout).astype(_ACT),
            "b": bias.reshape(cout, 1).astype(jnp.float32),
            "ks": k}


def make_conv_bias(kg, cin, cout, k):
    fan_in = cin * k * k
    w = jax.random.normal(kg(), (k, k, cin, cout), jnp.float32) / jnp.sqrt(float(fan_in))
    b = 0.05 * jax.random.normal(kg(), (cout,), jnp.float32)
    return {"wt": _to_wt(w, k, cin, cout).astype(_ACT),
            "b": b.reshape(cout, 1).astype(jnp.float32),
            "ks": k}


def _make_layer_params(kg, inplanes, planes, blocks, stride, dilate, dilation):
    previous_dilation = dilation
    if dilate:                      # torchvision replace_stride_with_dilation
        dilation *= stride
        stride = 1
    layer = []
    down = None
    if stride != 1 or inplanes != planes * 4:
        down = make_conv_bn(kg, inplanes, planes * 4, 1)
    layer.append({"conv1": make_conv_bn(kg, inplanes, planes, 1),
                  "conv2": make_conv_bn(kg, planes, planes, 3),
                  "conv3": make_conv_bn(kg, planes, planes * 4, 1),
                  "down": down, "stride": stride, "dilation": previous_dilation})
    inplanes = planes * 4
    for _ in range(1, blocks):
        layer.append({"conv1": make_conv_bn(kg, inplanes, planes, 1),
                      "conv2": make_conv_bn(kg, planes, planes, 3),
                      "conv3": make_conv_bn(kg, planes, planes * 4, 1),
                      "down": None, "stride": 1, "dilation": dilation})
    return layer, inplanes, dilation


def make_backbone_params(kg, width):
    params = {"stem": make_conv_bn(kg, 3, width, 7)}
    inplanes, dilation = width, 1
    layers = []
    cfg = [(width, 3, 1, False),        # layer1
           (2 * width, 4, 2, False),    # layer2
           (4 * width, 23, 2, True),    # layer3 (dilated)
           (8 * width, 3, 2, True)]     # layer4 (dilated)
    for planes, blocks, stride, dilate in cfg:
        layer, inplanes, dilation = _make_layer_params(
            kg, inplanes, planes, blocks, stride, dilate, dilation)
        layers.append(layer)
    params["layers"] = layers
    return params


def make_head_params(kg, in_ch, aspp_ch, num_classes):
    return {
        "aspp": {
            "b0": make_conv_bn(kg, in_ch, aspp_ch, 1),
            "rates": [make_conv_bn(kg, in_ch, aspp_ch, 3) for _ in ATROUS_RATES],
            "pool": make_conv_bn(kg, in_ch, aspp_ch, 1),
            "project": make_conv_bn(kg, (2 + len(ATROUS_RATES)) * aspp_ch, aspp_ch, 1),
        },
        "conv3x3": make_conv_bn(kg, aspp_ch, aspp_ch, 3),
        "cls": make_conv_bias(kg, aspp_ch, num_classes, 1),
    }


def make_deeplab_params(seed=0):
    kg = KeyGen(seed)
    backbone = make_backbone_params(kg, WIDTH)
    head = make_head_params(kg, 8 * WIDTH * 4, ASPP_CH, NUM_CLASSES)
    return {"backbone": backbone, "head": head}


# ============================== forward pass =================================

def bottleneck_forward(x, p):
    if p["down"] is not None:
        identity = conv_unit(x, p["down"], stride=p["stride"], relu=False)
    else:
        identity = x
    out = conv_unit(x, p["conv1"], relu=True)
    out = conv_unit(out, p["conv2"], stride=p["stride"], padding=p["dilation"],
                    dilation=p["dilation"], relu=True)
    # conv3 + BN + residual add + ReLU fused in one Pallas matmul epilogue
    out = conv_unit(out, p["conv3"], relu=True, residual=identity)
    return out


def backbone_forward(x, params):
    x = conv_unit(x, params["stem"], stride=2, padding=3, relu=True)
    x = maxpool2d_3x3_s2_p1(x)
    for layer in params["layers"]:
        for block in layer:
            x = bottleneck_forward(x, block)
    return x


def aspp_forward(x, p):
    C, N, H, W = x.shape
    branches = [conv_unit(x, p["b0"], relu=True)]
    for rate, cp in zip(ATROUS_RATES, p["rates"]):
        branches.append(conv_unit(x, cp, padding=rate, dilation=rate, relu=True))
    pooled = global_pool_conv(x, p["pool"])                       # (ASPP_CH, N)
    branches.append(jnp.broadcast_to(pooled.reshape(-1, N, 1, 1),
                                     (pooled.shape[0], N, H, W)))
    y = jnp.concatenate(branches, axis=0)                         # channel axis = 0
    y = conv_unit(y, p["project"], relu=True)
    # nn.Dropout(0.5) is identity at inference time.
    return y


def head_forward(x, p):
    y = aspp_forward(x, p["aspp"])
    y = conv_unit(y, p["conv3x3"], padding=1, relu=True)
    y = conv_unit(y, p["cls"], relu=False)
    return y


def deeplabv3_resnet101_forward(x_nchw, params):
    """torchvision DeepLabV3 forward: backbone -> classifier -> bilinear upsample."""
    _, _, H, W = x_nchw.shape
    # NCHW -> CNHW: channels on sublanes, flattened spatial on the lane axis.
    x = jnp.transpose(x_nchw, (1, 0, 2, 3)).astype(_ACT)
    feat = backbone_forward(x, params["backbone"])
    out = head_forward(feat, params["head"])
    out = bilinear_resize(out, H, W)                              # (21, N, H, W)
    out = jnp.transpose(out, (1, 0, 2, 3)).astype(jnp.float32)    # CNHW -> NCHW
    return {"out": out}


def end_module_forward(x):
    # TODO(synk): `end_module` is an arbitrary user-supplied module in the
    # PyTorch wrapper; it is treated as Identity here.
    return x


def resnet101_deeplabv3_forward(x_nchw, params, keyword="out"):
    output = deeplabv3_resnet101_forward(x_nchw, params)
    return end_module_forward(output[keyword])


# ================================== main =====================================

if __name__ == "__main__":
    params = make_deeplab_params(seed=0)
    x = jax.random.normal(jax.random.PRNGKey(0), (2, 3, 32, 32), jnp.float32)
    fwd = jax.jit(lambda inp: resnet101_deeplabv3_forward(inp, params))
    out = jax.block_until_ready(fwd(x))
    assert out.shape == (2, NUM_CLASSES, 32, 32), out.shape
    assert bool(jnp.all(jnp.isfinite(out)))
    print("KERNEL_OK")
</pallas_src>

<mosaic_0001>
module attributes {stable_mosaic.version = 11 : i64} {
  func.func @_mm_kernel(%arg0: i32, %arg1: i32, %arg2: memref<8x147xbf16, #tpu.memory_space<vmem>>, %arg3: memref<147x512xbf16, #tpu.memory_space<vmem>>, %arg4: memref<8x1xf32, #tpu.memory_space<vmem>>, %arg5: memref<8x512xbf16, #tpu.memory_space<vmem>>, %arg6: memref<8x512xf32, #tpu.memory_space<vmem>>) attributes {dimension_semantics = [#tpu.dimension_semantics<parallel>, #tpu.dimension_semantics<arbitrary>], iteration_bounds = array<i64: 1, 1>, scalar_prefetch = 0 : i64, scratch_operands = 1 : i64, tpu.core_type = #tpu.core_type<tc>, window_params = [{transform_indices = @transform_0, window_bounds = array<i64: 8, 147>}, {transform_indices = @transform_1, window_bounds = array<i64: 147, 512>}, {pipeline_mode = #tpu.pipeline_mode<synchronous>, transform_indices = @transform_2, window_bounds = array<i64: 8, 1>}, {transform_indices = @transform_3, window_bounds = array<i64: 8, 512>}]} {
    %c0_i32 = arith.constant 0 : i32
    %0 = arith.cmpi eq, %arg1, %c0_i32 : i32
    %1 = arith.extui %0 : i1 to i32
    %c0_i32_0 = arith.constant 0 : i32
    %2 = arith.cmpi ne, %1, %c0_i32_0 : i32
    scf.if %2 {
      %cst_10 = arith.constant 0.000000e+00 : f32
      %12 = vector.broadcast %cst_10 : f32 to vector<8x512xf32>
      %c0_11 = arith.constant 0 : index
      %c0_12 = arith.constant 0 : index
      %13 = vector.load %arg6[%c0_11, %c0_12] : memref<8x512xf32, #tpu.memory_space<vmem>>, vector<8x512xf32>
      tpu.vector_store %arg6[%c0_11, %c0_12], %12 {strides = array<i32>} : memref<8x512xf32, #tpu.memory_space<vmem>>, vector<8x512xf32>,
    } else {
    }
    %c0 = arith.constant 0 : index
    %c0_1 = arith.constant 0 : index
    %3 = vector.load %arg6[%c0, %c0_1] : memref<8x512xf32, #tpu.memory_space<vmem>>, vector<8x512xf32>
    %c0_2 = arith.constant 0 : index
    %c0_3 = arith.constant 0 : index
    %4 = vector.load %arg2[%c0_2, %c0_3] : memref<8x147xbf16, #tpu.memory_space<vmem>>, vector<8x147xbf16>
    %c0_4 = arith.constant 0 : index
    %c0_5 = arith.constant 0 : index
    %5 = vector.load %arg3[%c0_4, %c0_5] : memref<147x512xbf16, #tpu.memory_space<vmem>>, vector<147x512xbf16>
    %cst = arith.constant dense<0.000000e+00> : vector<8x512xf32>
    %6 = tpu.matmul %4, %5, %cst {dimension_numbers = #tpu.dot_dimension_numbers<[1], [0], [0], [1], [0, 0, 1, 1], [], []>} : vector<8x147xbf16>, vector<147x512xbf16>, vector<8x512xf32> -> vector<8x512xf32>
    %7 = arith.addf %3, %6 : vector<8x512xf32>
    %c0_6 = arith.constant 0 : index
    %c0_7 = arith.constant 0 : index
    %8 = vector.load %arg6[%c0_6, %c0_7] : memref<8x512xf32, #tpu.memory_space<vmem>>, vector<8x512xf32>
    tpu.vector_store %arg6[%c0_6, %c0_7], %7 {strides = array<i32>} : memref<8x512xf32, #tpu.memory_space<vmem>>, vector<8x512xf32>,
    %c0_i32_8 = arith.constant 0 : i32
    %9 = arith.cmpi eq, %arg1, %c0_i32_8 : i32
    %10 = arith.extui %9 : i1 to i32
    %c0_i32_9 = arith.constant 0 : i32
    %11 = arith.cmpi ne, %10, %c0_i32_9 : i32
    scf.if %11 {
      %c0_10 = arith.constant 0 : index
      %c0_11 = arith.constant 0 : index
      %12 = vector.load %arg6[%c0_10, %c0_11] : memref<8x512xf32, #tpu.memory_space<vmem>>, vector<8x512xf32>
      %c0_12 = arith.constant 0 : index
      %c0_13 = arith.constant 0 : index
      %13 = vector.load %arg4[%c0_12, %c0_13] : memref<8x1xf32, #tpu.memory_space<vmem>>, vector<8x1xf32>
      %14 = vector.broadcast %13 : vector<8x1xf32> to vector<8x512xf32>
      %15 = arith.addf %12, %14 : vector<8x512xf32>
      %cst_14 = arith.constant 0.000000e+00 : f32
      %16 = vector.broadcast %cst_14 : f32 to vector<8x512xf32>
      %17 = arith.maximumf %15, %16 : vector<8x512xf32>
      %18 = arith.truncf %17 : vector<8x512xf32> to vector<8x512xbf16>
      %c0_15 = arith.constant 0 : index
      %c0_16 = arith.constant 0 : index
      %19 = vector.load %arg5[%c0_15, %c0_16] : memref<8x512xbf16, #tpu.memory_space<vmem>>, vector<8x512xbf16>
      tpu.vector_store %arg5[%c0_15, %c0_16], %18 {strides = array<i32>} : memref<8x512xbf16, #tpu.memory_space<vmem>>, vector<8x512xbf16>,
    } else {
    }
    return
  }
  func.func @transform_0(%arg0: i32, %arg1: i32) -> (i32, i32) {
    %c0_i32 = arith.constant 0 : i32
    %c0_i32_0 = arith.constant 0 : i32
    return %c0_i32, %arg1 : i32, i32
  }
  func.func @transform_1(%arg0: i32, %arg1: i32) -> (i32, i32) {
    %c0_i32 = arith.constant 0 : i32
    return %arg1, %arg0 : i32, i32
  }
  func.func @transform_2(%arg0: i32, %arg1: i32) -> (i32, i32) {
    %c0_i32 = arith.constant 0 : i32
    %c0_i32_0 = arith.constant 0 : i32
    %c0_i32_1 = arith.constant 0 : i32
    return %c0_i32, %c0_i32_0 : i32, i32
  }
  func.func @transform_3(%arg0: i32, %arg1: i32) -> (i32, i32) {
    %c0_i32 = arith.constant 0 : i32
    %c0_i32_0 = arith.constant 0 : i32
    return %c0_i32, %arg0 : i32, i32
  }
}

module attributes {stable_mosaic.version = 11 : i64} {
  func.func @_mm_kernel(%arg0: i32, %arg1: i32, %arg2: memref<8x8xbf16, #tpu.memory_space<vmem>>, %arg3: memref<8x128xbf16, #tpu.memory_space<vmem>>, %arg4: memref<8x1xf32, #tpu.memory_space<vmem>>, %arg5: memref<8x128xbf16, #tpu.memory_space<vmem>>, %arg6: memref<8x128xf32, #tpu.memory_space<vmem>>) attributes {dimension_semantics = [#tpu.dimension_semantics<parallel>, #tpu.dimension_semantics<arbitrary>], iteration_bounds = array<i64: 1, 1>, scalar_prefetch = 0 : i64, scratch_operands = 1 : i64, tpu.core_type = #tpu.core_type<tc>, window_params = [{transform_indices = @transform_0, window_bounds = array<i64: 8, 8>}, {transform_indices = @transform_1, window_bounds = array<i64: 8, 128>}, {pipeline_mode = #tpu.pipeline_mode<synchronous>, transform_indices = @transform_2, window_bounds = array<i64: 8, 1>}, {transform_indices = @transform_3, window_bounds = array<i64: 8, 128>}]} {
    %c0_i32 = arith.constant 0 : i32
    %0 = arith.cmpi eq, %arg1, %c0_i32 : i32
    %1 = arith.extui %0 : i1 to i32
    %c0_i32_0 = arith.constant 0 : i32
    %2 = arith.cmpi ne, %1, %c0_i32_0 : i32
    scf.if %2 {
      %cst_10 = arith.constant 0.000000e+00 : f32
      %12 = vector.broadcast %cst_10 : f32 to vector<8x128xf32>
      %c0_11 = arith.constant 0 : index
      %c0_12 = arith.constant 0 : index
      %13 = vector.load %arg6[%c0_11, %c0_12] : memref<8x128xf32, #tpu.memory_space<vmem>>, vector<8x128xf32>
      tpu.vector_store %arg6[%c0_11, %c0_12], %12 {strides = array<i32>} : memref<8x128xf32, #tpu.memory_space<vmem>>, vector<8x128xf32>,
    } else {
    }
    %c0 = arith.constant 0 : index
    %c0_1 = arith.constant 0 : index
    %3 = vector.load %arg6[%c0, %c0_1] : memref<8x128xf32, #tpu.memory_space<vmem>>, vector<8x128xf32>
    %c0_2 = arith.constant 0 : index
    %c0_3 = arith.constant 0 : index
    %4 = vector.load %arg2[%c0_2, %c0_3] : memref<8x8xbf16, #tpu.memory_space<vmem>>, vector<8x8xbf16>
    %c0_4 = arith.constant 0 : index
    %c0_5 = arith.constant 0 : index
    %5 = vector.load %arg3[%c0_4, %c0_5] : memref<8x128xbf16, #tpu.memory_space<vmem>>, vector<8x128xbf16>
    %cst = arith.constant dense<0.000000e+00> : vector<8x128xf32>
    %6 = tpu.matmul %4, %5, %cst {dimension_numbers = #tpu.dot_dimension_numbers<[1], [0], [0], [1], [0, 0, 1, 1], [], []>} : vector<8x8xbf16>, vector<8x128xbf16>, vector<8x128xf32> -> vector<8x128xf32>
    %7 = arith.addf %3, %6 : vector<8x128xf32>
    %c0_6 = arith.constant 0 : index
    %c0_7 = arith.constant 0 : index
    %8 = vector.load %arg6[%c0_6, %c0_7] : memref<8x128xf32, #tpu.memory_space<vmem>>, vector<8x128xf32>
    tpu.vector_store %arg6[%c0_6, %c0_7], %7 {strides = array<i32>} : memref<8x128xf32, #tpu.memory_space<vmem>>, vector<8x128xf32>,
    %c0_i32_8 = arith.constant 0 : i32
    %9 = arith.cmpi eq, %arg1, %c0_i32_8 : i32
    %10 = arith.extui %9 : i1 to i32
    %c0_i32_9 = arith.constant 0 : i32
    %11 = arith.cmpi ne, %10, %c0_i32_9 : i32
    scf.if %11 {
      %c0_10 = arith.constant 0 : index
      %c0_11 = arith.constant 0 : index
      %12 = vector.load %arg6[%c0_10, %c0_11] : memref<8x128xf32, #tpu.memory_space<vmem>>, vector<8x128xf32>
      %c0_12 = arith.constant 0 : index
      %c0_13 = arith.constant 0 : index
      %13 = vector.load %arg4[%c0_12, %c0_13] : memref<8x1xf32, #tpu.memory_space<vmem>>, vector<8x1xf32>
      %14 = vector.broadcast %13 : vector<8x1xf32> to vector<8x128xf32>
      %15 = arith.addf %12, %14 : vector<8x128xf32>
      %cst_14 = arith.constant 0.000000e+00 : f32
      %16 = vector.broadcast %cst_14 : f32 to vector<8x128xf32>
      %17 = arith.maximumf %15, %16 : vector<8x128xf32>
      %18 = arith.truncf %17 : vector<8x128xf32> to vector<8x128xbf16>
      %c0_15 = arith.constant 0 : index
      %c0_16 = arith.constant 0 : index
      %19 = vector.load %arg5[%c0_15, %c0_16] : memref<8x128xbf16, #tpu.memory_space<vmem>>, vector<8x128xbf16>
      tpu.vector_store %arg5[%c0_15, %c0_16], %18 {strides = array<i32>} : memref<8x128xbf16, #tpu.memory_space<vmem>>, vector<8x128xbf16>,
    } else {
    }
    return
  }
  func.func @transform_0(%arg0: i32, %arg1: i32) -> (i32, i32) {
    %c0_i32 = arith.constant 0 : i32
    %c0_i32_0 = arith.constant 0 : i32
    return %c0_i32, %arg1 : i32, i32
  }
  func.func @transform_1(%arg0: i32, %arg1: i32) -> (i32, i32) {
    %c0_i32 = arith.constant 0 : i32
    return %arg1, %arg0 : i32, i32
  }
  func.func @transform_2(%arg0: i32, %arg1: i32) -> (i32, i32) {
    %c0_i32 = arith.constant 0 : i32
    %c0_i32_0 = arith.constant 0 : i32
    %c0_i32_1 = arith.constant 0 : i32
    return %c0_i32, %c0_i32_0 : i32, i32
  }
  func.func @transform_3(%arg0: i32, %arg1: i32) -> (i32, i32) {
    %c0_i32 = arith.constant 0 : i32
    %c0_i32_0 = arith.constant 0 : i32
    return %c0_i32, %arg0 : i32, i32
  }
}

module attributes {stable_mosaic.version = 11 : i64} {
  func.func @_max9_kernel(%arg0: i32, %arg1: memref<8x128xbf16, #tpu.memory_space<vmem>>, %arg2: memref<8x128xbf16, #tpu.memory_space<vmem>>, %arg3: memref<8x128xbf16, #tpu.memory_space<vmem>>, %arg4: memref<8x128xbf16, #tpu.memory_space<vmem>>, %arg5: memref<8x128xbf16, #tpu.memory_space<vmem>>, %arg6: memref<8x128xbf16, #tpu.memory_space<vmem>>, %arg7: memref<8x128xbf16, #tpu.memory_space<vmem>>, %arg8: memref<8x128xbf16, #tpu.memory_space<vmem>>, %arg9: memref<8x128xbf16, #tpu.memory_space<vmem>>, %arg10: memref<8x128xbf16, #tpu.memory_space<vmem>>) attributes {dimension_semantics = [#tpu.dimension_semantics<parallel>], iteration_bounds = array<i64: 1>, scalar_prefetch = 0 : i64, scratch_operands = 0 : i64, tpu.core_type = #tpu.core_type<tc>, window_params = [{transform_indices = @transform_0, window_bounds = array<i64: 8, 128>}, {transform_indices = @transform_1, window_bounds = array<i64: 8, 128>}, {transform_indices = @transform_2, window_bounds = array<i64: 8, 128>}, {transform_indices = @transform_3, window_bounds = array<i64: 8, 128>}, {transform_indices = @transform_4, window_bounds = array<i64: 8, 128>}, {transform_indices = @transform_5, window_bounds = array<i64: 8, 128>}, {transform_indices = @transform_6, window_bounds = array<i64: 8, 128>}, {transform_indices = @transform_7, window_bounds = array<i64: 8, 128>}, {transform_indices = @transform_8, window_bounds = array<i64: 8, 128>}, {transform_indices = @transform_9, window_bounds = array<i64: 8, 128>}]} {
    %c0 = arith.constant 0 : index
    %c0_0 = arith.constant 0 : index
    %0 = vector.load %arg1[%c0, %c0_0] : memref<8x128xbf16, #tpu.memory_space<vmem>>, vector<8x128xbf16>
    %c0_1 = arith.constant 0 : index
    %c0_2 = arith.constant 0 : index
    %1 = vector.load %arg2[%c0_1, %c0_2] : memref<8x128xbf16, #tpu.memory_space<vmem>>, vector<8x128xbf16>
    %2 = arith.maximumf %0, %1 : vector<8x128xbf16>
    %c0_3 = arith.constant 0 : index
    %c0_4 = arith.constant 0 : index
    %3 = vector.load %arg3[%c0_3, %c0_4] : memref<8x128xbf16, #tpu.memory_space<vmem>>, vector<8x128xbf16>
    %4 = arith.maximumf %2, %3 : vector<8x128xbf16>
    %c0_5 = arith.constant 0 : index
    %c0_6 = arith.constant 0 : index
    %5 = vector.load %arg4[%c0_5, %c0_6] : memref<8x128xbf16, #tpu.memory_space<vmem>>, vector<8x128xbf16>
    %6 = arith.maximumf %4, %5 : vector<8x128xbf16>
    %c0_7 = arith.constant 0 : index
    %c0_8 = arith.constant 0 : index
    %7 = vector.load %arg5[%c0_7, %c0_8] : memref<8x128xbf16, #tpu.memory_space<vmem>>, vector<8x128xbf16>
    %8 = arith.maximumf %6, %7 : vector<8x128xbf16>
    %c0_9 = arith.constant 0 : index
    %c0_10 = arith.constant 0 : index
    %9 = vector.load %arg6[%c0_9, %c0_10] : memref<8x128xbf16, #tpu.memory_space<vmem>>, vector<8x128xbf16>
    %10 = arith.maximumf %8, %9 : vector<8x128xbf16>
    %c0_11 = arith.constant 0 : index
    %c0_12 = arith.constant 0 : index
    %11 = vector.load %arg7[%c0_11, %c0_12] : memref<8x128xbf16, #tpu.memory_space<vmem>>, vector<8x128xbf16>
    %12 = arith.maximumf %10, %11 : vector<8x128xbf16>
    %c0_13 = arith.constant 0 : index
    %c0_14 = arith.constant 0 : index
    %13 = vector.load %arg8[%c0_13, %c0_14] : memref<8x128xbf16, #tpu.memory_space<vmem>>, vector<8x128xbf16>
    %14 = arith.maximumf %12, %13 : vector<8x128xbf16>
    %c0_15 = arith.constant 0 : index
    %c0_16 = arith.constant 0 : index
    %15 = vector.load %arg9[%c0_15, %c0_16] : memref<8x128xbf16, #tpu.memory_space<vmem>>, vector<8x128xbf16>
    %16 = arith.maximumf %14, %15 : vector<8x128xbf16>
    %c0_17 = arith.constant 0 : index
    %c0_18 = arith.constant 0 : index
    %17 = vector.load %arg10[%c0_17, %c0_18] : memref<8x128xbf16, #tpu.memory_space<vmem>>, vector<8x128xbf16>
    tpu.vector_store %arg10[%c0_17, %c0_18], %16 {strides = array<i32>} : memref<8x128xbf16, #tpu.memory_space<vmem>>, vector<8x128xbf16>,
    return
  }
  func.func @transform_0(%arg0: i32) -> (i32, i32) {
    %c0_i32 = arith.constant 0 : i32
    %c0_i32_0 = arith.constant 0 : i32
    return %c0_i32, %arg0 : i32, i32
  }
  func.func @transform_1(%arg0: i32) -> (i32, i32) {
    %c0_i32 = arith.constant 0 : i32
    %c0_i32_0 = arith.constant 0 : i32
    return %c0_i32, %arg0 : i32, i32
  }
  func.func @transform_2(%arg0: i32) -> (i32, i32) {
    %c0_i32 = arith.constant 0 : i32
    %c0_i32_0 = arith.constant 0 : i32
    return %c0_i32, %arg0 : i32, i32
  }
  func.func @transform_3(%arg0: i32) -> (i32, i32) {
    %c0_i32 = arith.constant 0 : i32
    %c0_i32_0 = arith.constant 0 : i32
    return %c0_i32, %arg0 : i32, i32
  }
  func.func @transform_4(%arg0: i32) -> (i32, i32) {
    %c0_i32 = arith.constant 0 : i32
    %c0_i32_0 = arith.constant 0 : i32
    return %c0_i32, %arg0 : i32, i32
  }
  func.func @transform_5(%arg0: i32) -> (i32, i32) {
    %c0_i32 = arith.constant 0 : i32
    %c0_i32_0 = arith.constant 0 : i32
    return %c0_i32, %arg0 : i32, i32
  }
  func.func @transform_6(%arg0: i32) -> (i32, i32) {
    %c0_i32 = arith.constant 0 : i32
    %c0_i32_0 = arith.constant 0 : i32
    return %c0_i32, %arg0 : i32, i32
  }
  func.func @transform_7(%arg0: i32) -> (i32, i32) {
    %c0_i32 = arith.constant 0 : i32
    %c0_i32_0 = arith.constant 0 : i32
    return %c0_i32, %arg0 : i32, i32
  }
  func.func @transform_8(%arg0: i32) -> (i32, i32) {
    %c0_i32 = arith.constant 0 : i32
    %c0_i32_0 = arith.constant 0 : i32
    return %c0_i32, %arg0 : i32, i32
  }
  func.func @transform_9(%arg0: i32) -> (i32, i32) {
    %c0_i32 = arith.constant 0 : i32
    %c0_i32_0 = arith.constant 0 : i32
    return %c0_i32, %arg0 : i32, i32
  }
}

module attributes {stable_mosaic.version = 11 : i64} {
  func.func @_mm_kernel(%arg0: i32, %arg1: i32, %arg2: memref<32x8xbf16, #tpu.memory_space<vmem>>, %arg3: memref<8x128xbf16, #tpu.memory_space<vmem>>, %arg4: memref<32x1xf32, #tpu.memory_space<vmem>>, %arg5: memref<32x128xbf16, #tpu.memory_space<vmem>>, %arg6: memref<32x128xf32, #tpu.memory_space<vmem>>) attributes {dimension_semantics = [#tpu.dimension_semantics<parallel>, #tpu.dimension_semantics<arbitrary>], iteration_bounds = array<i64: 1, 1>, scalar_prefetch = 0 : i64, scratch_operands = 1 : i64, tpu.core_type = #tpu.core_type<tc>, window_params = [{transform_indices = @transform_0, window_bounds = array<i64: 32, 8>}, {transform_indices = @transform_1, window_bounds = array<i64: 8, 128>}, {pipeline_mode = #tpu.pipeline_mode<synchronous>, transform_indices = @transform_2, window_bounds = array<i64: 32, 1>}, {transform_indices = @transform_3, window_bounds = array<i64: 32, 128>}]} {
    %c0_i32 = arith.constant 0 : i32
    %0 = arith.cmpi eq, %arg1, %c0_i32 : i32
    %1 = arith.extui %0 : i1 to i32
    %c0_i32_0 = arith.constant 0 : i32
    %2 = arith.cmpi ne, %1, %c0_i32_0 : i32
    scf.if %2 {
      %cst_10 = arith.constant 0.000000e+00 : f32
      %12 = vector.broadcast %cst_10 : f32 to vector<32x128xf32>
      %c0_11 = arith.constant 0 : index
      %c0_12 = arith.constant 0 : index
      %13 = vector.load %arg6[%c0_11, %c0_12] : memref<32x128xf32, #tpu.memory_space<vmem>>, vector<32x128xf32>
      tpu.vector_store %arg6[%c0_11, %c0_12], %12 {strides = array<i32>} : memref<32x128xf32, #tpu.memory_space<vmem>>, vector<32x128xf32>,
    } else {
    }
    %c0 = arith.constant 0 : index
    %c0_1 = arith.constant 0 : index
    %3 = vector.load %arg6[%c0, %c0_1] : memref<32x128xf32, #tpu.memory_space<vmem>>, vector<32x128xf32>
    %c0_2 = arith.constant 0 : index
    %c0_3 = arith.constant 0 : index
    %4 = vector.load %arg2[%c0_2, %c0_3] : memref<32x8xbf16, #tpu.memory_space<vmem>>, vector<32x8xbf16>
    %c0_4 = arith.constant 0 : index
    %c0_5 = arith.constant 0 : index
    %5 = vector.load %arg3[%c0_4, %c0_5] : memref<8x128xbf16, #tpu.memory_space<vmem>>, vector<8x128xbf16>
    %cst = arith.constant dense<0.000000e+00> : vector<32x128xf32>
    %6 = tpu.matmul %4, %5, %cst {dimension_numbers = #tpu.dot_dimension_numbers<[1], [0], [0], [1], [0, 0, 1, 1], [], []>} : vector<32x8xbf16>, vector<8x128xbf16>, vector<32x128xf32> -> vector<32x128xf32>
    %7 = arith.addf %3, %6 : vector<32x128xf32>
    %c0_6 = arith.constant 0 : index
    %c0_7 = arith.constant 0 : index
    %8 = vector.load %arg6[%c0_6, %c0_7] : memref<32x128xf32, #tpu.memory_space<vmem>>, vector<32x128xf32>
    tpu.vector_store %arg6[%c0_6, %c0_7], %7 {strides = array<i32>} : memref<32x128xf32, #tpu.memory_space<vmem>>, vector<32x128xf32>,
    %c0_i32_8 = arith.constant 0 : i32
    %9 = arith.cmpi eq, %arg1, %c0_i32_8 : i32
    %10 = arith.extui %9 : i1 to i32
    %c0_i32_9 = arith.constant 0 : i32
    %11 = arith.cmpi ne, %10, %c0_i32_9 : i32
    scf.if %11 {
      %c0_10 = arith.constant 0 : index
      %c0_11 = arith.constant 0 : index
      %12 = vector.load %arg6[%c0_10, %c0_11] : memref<32x128xf32, #tpu.memory_space<vmem>>, vector<32x128xf32>
      %c0_12 = arith.constant 0 : index
      %c0_13 = arith.constant 0 : index
      %13 = vector.load %arg4[%c0_12, %c0_13] : memref<32x1xf32, #tpu.memory_space<vmem>>, vector<32x1xf32>
      %14 = vector.broadcast %13 : vector<32x1xf32> to vector<32x128xf32>
      %15 = arith.addf %12, %14 : vector<32x128xf32>
      %16 = arith.truncf %15 : vector<32x128xf32> to vector<32x128xbf16>
      %c0_14 = arith.constant 0 : index
      %c0_15 = arith.constant 0 : index
      %17 = vector.load %arg5[%c0_14, %c0_15] : memref<32x128xbf16, #tpu.memory_space<vmem>>, vector<32x128xbf16>
      tpu.vector_store %arg5[%c0_14, %c0_15], %16 {strides = array<i32>} : memref<32x128xbf16, #tpu.memory_space<vmem>>, vector<32x128xbf16>,
    } else {
    }
    return
  }
  func.func @transform_0(%arg0: i32, %arg1: i32) -> (i32, i32) {
    %c0_i32 = arith.constant 0 : i32
    %c0_i32_0 = arith.constant 0 : i32
    return %c0_i32, %arg1 : i32, i32
  }
  func.func @transform_1(%arg0: i32, %arg1: i32) -> (i32, i32) {
    %c0_i32 = arith.constant 0 : i32
    return %arg1, %arg0 : i32, i32
  }
  func.func @transform_2(%arg0: i32, %arg1: i32) -> (i32, i32) {
    %c0_i32 = arith.constant 0 : i32
    %c0_i32_0 = arith.constant 0 : i32
    %c0_i32_1 = arith.constant 0 : i32
    return %c0_i32, %c0_i32_0 : i32, i32
  }
  func.func @transform_3(%arg0: i32, %arg1: i32) -> (i32, i32) {
    %c0_i32 = arith.constant 0 : i32
    %c0_i32_0 = arith.constant 0 : i32
    return %c0_i32, %arg0 : i32, i32
  }
}

module attributes {stable_mosaic.version = 11 : i64} {
  func.func @_mm_kernel(%arg0: i32, %arg1: i32, %arg2: memref<8x72xbf16, #tpu.memory_space<vmem>>, %arg3: memref<72x128xbf16, #tpu.memory_space<vmem>>, %arg4: memref<8x1xf32, #tpu.memory_space<vmem>>, %arg5: memref<8x128xbf16, #tpu.memory_space<vmem>>, %arg6: memref<8x128xf32, #tpu.memory_space<vmem>>) attributes {dimension_semantics = [#tpu.dimension_semantics<parallel>, #tpu.dimension_semantics<arbitrary>], iteration_bounds = array<i64: 1, 1>, scalar_prefetch = 0 : i64, scratch_operands = 1 : i64, tpu.core_type = #tpu.core_type<tc>, window_params = [{transform_indices = @transform_0, window_bounds = array<i64: 8, 72>}, {transform_indices = @transform_1, window_bounds = array<i64: 72, 128>}, {pipeline_mode = #tpu.pipeline_mode<synchronous>, transform_indices = @transform_2, window_bounds = array<i64: 8, 1>}, {transform_indices = @transform_3, window_bounds = array<i64: 8, 128>}]} {
    %c0_i32 = arith.constant 0 : i32
    %0 = arith.cmpi eq, %arg1, %c0_i32 : i32
    %1 = arith.extui %0 : i1 to i32
    %c0_i32_0 = arith.constant 0 : i32
    %2 = arith.cmpi ne, %1, %c0_i32_0 : i32
    scf.if %2 {
      %cst_10 = arith.constant 0.000000e+00 : f32
      %12 = vector.broadcast %cst_10 : f32 to vector<8x128xf32>
      %c0_11 = arith.constant 0 : index
      %c0_12 = arith.constant 0 : index
      %13 = vector.load %arg6[%c0_11, %c0_12] : memref<8x128xf32, #tpu.memory_space<vmem>>, vector<8x128xf32>
      tpu.vector_store %arg6[%c0_11, %c0_12], %12 {strides = array<i32>} : memref<8x128xf32, #tpu.memory_space<vmem>>, vector<8x128xf32>,
    } else {
    }
    %c0 = arith.constant 0 : index
    %c0_1 = arith.constant 0 : index
    %3 = vector.load %arg6[%c0, %c0_1] : memref<8x128xf32, #tpu.memory_space<vmem>>, vector<8x128xf32>
    %c0_2 = arith.constant 0 : index
    %c0_3 = arith.constant 0 : index
    %4 = vector.load %arg2[%c0_2, %c0_3] : memref<8x72xbf16, #tpu.memory_space<vmem>>, vector<8x72xbf16>
    %c0_4 = arith.constant 0 : index
    %c0_5 = arith.constant 0 : index
    %5 = vector.load %arg3[%c0_4, %c0_5] : memref<72x128xbf16, #tpu.memory_space<vmem>>, vector<72x128xbf16>
    %cst = arith.constant dense<0.000000e+00> : vector<8x128xf32>
    %6 = tpu.matmul %4, %5, %cst {dimension_numbers = #tpu.dot_dimension_numbers<[1], [0], [0], [1], [0, 0, 1, 1], [], []>} : vector<8x72xbf16>, vector<72x128xbf16>, vector<8x128xf32> -> vector<8x128xf32>
    %7 = arith.addf %3, %6 : vector<8x128xf32>
    %c0_6 = arith.constant 0 : index
    %c0_7 = arith.constant 0 : index
    %8 = vector.load %arg6[%c0_6, %c0_7] : memref<8x128xf32, #tpu.memory_space<vmem>>, vector<8x128xf32>
    tpu.vector_store %arg6[%c0_6, %c0_7], %7 {strides = array<i32>} : memref<8x128xf32, #tpu.memory_space<vmem>>, vector<8x128xf32>,
    %c0_i32_8 = arith.constant 0 : i32
    %9 = arith.cmpi eq, %arg1, %c0_i32_8 : i32
    %10 = arith.extui %9 : i1 to i32
    %c0_i32_9 = arith.constant 0 : i32
    %11 = arith.cmpi ne, %10, %c0_i32_9 : i32
    scf.if %11 {
      %c0_10 = arith.constant 0 : index
      %c0_11 = arith.constant 0 : index
      %12 = vector.load %arg6[%c0_10, %c0_11] : memref<8x128xf32, #tpu.memory_space<vmem>>, vector<8x128xf32>
      %c0_12 = arith.constant 0 : index
      %c0_13 = arith.constant 0 : index
      %13 = vector.load %arg4[%c0_12, %c0_13] : memref<8x1xf32, #tpu.memory_space<vmem>>, vector<8x1xf32>
      %14 = vector.broadcast %13 : vector<8x1xf32> to vector<8x128xf32>
      %15 = arith.addf %12, %14 : vector<8x128xf32>
      %cst_14 = arith.constant 0.000000e+00 : f32
      %16 = vector.broadcast %cst_14 : f32 to vector<8x128xf32>
      %17 = arith.maximumf %15, %16 : vector<8x128xf32>
      %18 = arith.truncf %17 : vector<8x128xf32> to vector<8x128xbf16>
      %c0_15 = arith.constant 0 : index
      %c0_16 = arith.constant 0 : index
      %19 = vector.load %arg5[%c0_15, %c0_16] : memref<8x128xbf16, #tpu.memory_space<vmem>>, vector<8x128xbf16>
      tpu.vector_store %arg5[%c0_15, %c0_16], %18 {strides = array<i32>} : memref<8x128xbf16, #tpu.memory_space<vmem>>, vector<8x128xbf16>,
    } else {
    }
    return
  }
  func.func @transform_0(%arg0: i32, %arg1: i32) -> (i32, i32) {
    %c0_i32 = arith.constant 0 : i32
    %c0_i32_0 = arith.constant 0 : i32
    return %c0_i32, %arg1 : i32, i32
  }
  func.func @transform_1(%arg0: i32, %arg1: i32) -> (i32, i32) {
    %c0_i32 = arith.constant 0 : i32
    return %arg1, %arg0 : i32, i32
  }
  func.func @transform_2(%arg0: i32, %arg1: i32) -> (i32, i32) {
    %c0_i32 = arith.constant 0 : i32
    %c0_i32_0 = arith.constant 0 : i32
    %c0_i32_1 = arith.constant 0 : i32
    return %c0_i32, %c0_i32_0 : i32, i32
  }
  func.func @transform_3(%arg0: i32, %arg1: i32) -> (i32, i32) {
    %c0_i32 = arith.constant 0 : i32
    %c0_i32_0 = arith.constant 0 : i32
    return %c0_i32, %arg0 : i32, i32
  }
}

module attributes {stable_mosaic.version = 11 : i64} {
  func.func @_mm_kernel(%arg0: i32, %arg1: i32, %arg2: memref<32x8xbf16, #tpu.memory_space<vmem>>, %arg3: memref<8x128xbf16, #tpu.memory_space<vmem>>, %arg4: memref<32x1xf32, #tpu.memory_space<vmem>>, %arg5: memref<32x128xbf16, #tpu.memory_space<vmem>>, %arg6: memref<32x128xbf16, #tpu.memory_space<vmem>>, %arg7: memref<32x128xf32, #tpu.memory_space<vmem>>) attributes {dimension_semantics = [#tpu.dimension_semantics<parallel>, #tpu.dimension_semantics<arbitrary>], iteration_bounds = array<i64: 1, 1>, scalar_prefetch = 0 : i64, scratch_operands = 1 : i64, tpu.core_type = #tpu.core_type<tc>, window_params = [{transform_indices = @transform_0, window_bounds = array<i64: 32, 8>}, {transform_indices = @transform_1, window_bounds = array<i64: 8, 128>}, {pipeline_mode = #tpu.pipeline_mode<synchronous>, transform_indices = @transform_2, window_bounds = array<i64: 32, 1>}, {transform_indices = @transform_3, window_bounds = array<i64: 32, 128>}, {transform_indices = @transform_4, window_bounds = array<i64: 32, 128>}]} {
    %c0_i32 = arith.constant 0 : i32
    %0 = arith.cmpi eq, %arg1, %c0_i32 : i32
    %1 = arith.extui %0 : i1 to i32
    %c0_i32_0 = arith.constant 0 : i32
    %2 = arith.cmpi ne, %1, %c0_i32_0 : i32
    scf.if %2 {
      %cst_10 = arith.constant 0.000000e+00 : f32
      %12 = vector.broadcast %cst_10 : f32 to vector<32x128xf32>
      %c0_11 = arith.constant 0 : index
      %c0_12 = arith.constant 0 : index
      %13 = vector.load %arg7[%c0_11, %c0_12] : memref<32x128xf32, #tpu.memory_space<vmem>>, vector<32x128xf32>
      tpu.vector_store %arg7[%c0_11, %c0_12], %12 {strides = array<i32>} : memref<32x128xf32, #tpu.memory_space<vmem>>, vector<32x128xf32>,
    } else {
    }
    %c0 = arith.constant 0 : index
    %c0_1 = arith.constant 0 : index
    %3 = vector.load %arg7[%c0, %c0_1] : memref<32x128xf32, #tpu.memory_space<vmem>>, vector<32x128xf32>
    %c0_2 = arith.constant 0 : index
    %c0_3 = arith.constant 0 : index
    %4 = vector.load %arg2[%c0_2, %c0_3] : memref<32x8xbf16, #tpu.memory_space<vmem>>, vector<32x8xbf16>
    %c0_4 = arith.constant 0 : index
    %c0_5 = arith.constant 0 : index
    %5 = vector.load %arg3[%c0_4, %c0_5] : memref<8x128xbf16, #tpu.memory_space<vmem>>, vector<8x128xbf16>
    %cst = arith.constant dense<0.000000e+00> : vector<32x128xf32>
    %6 = tpu.matmul %4, %5, %cst {dimension_numbers = #tpu.dot_dimension_numbers<[1], [0], [0], [1], [0, 0, 1, 1], [], []>} : vector<32x8xbf16>, vector<8x128xbf16>, vector<32x128xf32> -> vector<32x128xf32>
    %7 = arith.addf %3, %6 : vector<32x128xf32>
    %c0_6 = arith.constant 0 : index
    %c0_7 = arith.constant 0 : index
    %8 = vector.load %arg7[%c0_6, %c0_7] : memref<32x128xf32, #tpu.memory_space<vmem>>, vector<32x128xf32>
    tpu.vector_store %arg7[%c0_6, %c0_7], %7 {strides = array<i32>} : memref<32x128xf32, #tpu.memory_space<vmem>>, vector<32x128xf32>,
    %c0_i32_8 = arith.constant 0 : i32
    %9 = arith.cmpi eq, %arg1, %c0_i32_8 : i32
    %10 = arith.extui %9 : i1 to i32
    %c0_i32_9 = arith.constant 0 : i32
    %11 = arith.cmpi ne, %10, %c0_i32_9 : i32
    scf.if %11 {
      %c0_10 = arith.constant 0 : index
      %c0_11 = arith.constant 0 : index
      %12 = vector.load %arg7[%c0_10, %c0_11] : memref<32x128xf32, #tpu.memory_space<vmem>>, vector<32x128xf32>
      %c0_12 = arith.constant 0 : index
      %c0_13 = arith.constant 0 : index
      %13 = vector.load %arg4[%c0_12, %c0_13] : memref<32x1xf32, #tpu.memory_space<vmem>>, vector<32x1xf32>
      %14 = vector.broadcast %13 : vector<32x1xf32> to vector<32x128xf32>
      %15 = arith.addf %12, %14 : vector<32x128xf32>
      %c0_14 = arith.constant 0 : index
      %c0_15 = arith.constant 0 : index
      %16 = vector.load %arg5[%c0_14, %c0_15] : memref<32x128xbf16, #tpu.memory_space<vmem>>, vector<32x128xbf16>
      %17 = arith.extf %16 : vector<32x128xbf16> to vector<32x128xf32>
      %18 = arith.addf %15, %17 : vector<32x128xf32>
      %cst_16 = arith.constant 0.000000e+00 : f32
      %19 = vector.broadcast %cst_16 : f32 to vector<32x128xf32>
      %20 = arith.maximumf %18, %19 : vector<32x128xf32>
      %21 = arith.truncf %20 : vector<32x128xf32> to vector<32x128xbf16>
      %c0_17 = arith.constant 0 : index
      %c0_18 = arith.constant 0 : index
      %22 = vector.load %arg6[%c0_17, %c0_18] : memref<32x128xbf16, #tpu.memory_space<vmem>>, vector<32x128xbf16>
      tpu.vector_store %arg6[%c0_17, %c0_18], %21 {strides = array<i32>} : memref<32x128xbf16, #tpu.memory_space<vmem>>, vector<32x128xbf16>,
    } else {
    }
    return
  }
  func.func @transform_0(%arg0: i32, %arg1: i32) -> (i32, i32) {
    %c0_i32 = arith.constant 0 : i32
    %c0_i32_0 = arith.constant 0 : i32
    return %c0_i32, %arg1 : i32, i32
  }
  func.func @transform_1(%arg0: i32, %arg1: i32) -> (i32, i32) {
    %c0_i32 = arith.constant 0 : i32
    return %arg1, %arg0 : i32, i32
  }
  func.func @transform_2(%arg0: i32, %arg1: i32) -> (i32, i32) {
    %c0_i32 = arith.constant 0 : i32
    %c0_i32_0 = arith.constant 0 : i32
    %c0_i32_1 = arith.constant 0 : i32
    return %c0_i32, %c0_i32_0 : i32, i32
  }
  func.func @transform_3(%arg0: i32, %arg1: i32) -> (i32, i32) {
    %c0_i32 = arith.constant 0 : i32
    %c0_i32_0 = arith.constant 0 : i32
    return %c0_i32, %arg0 : i32, i32
  }
  func.func @transform_4(%arg0: i32, %arg1: i32) -> (i32, i32) {
    %c0_i32 = arith.constant 0 : i32
    %c0_i32_0 = arith.constant 0 : i32
    return %c0_i32, %arg0 : i32, i32
  }
}

module attributes {stable_mosaic.version = 11 : i64} {
  func.func @_mm_kernel(%arg0: i32, %arg1: i32, %arg2: memref<8x32xbf16, #tpu.memory_space<vmem>>, %arg3: memref<32x128xbf16, #tpu.memory_space<vmem>>, %arg4: memref<8x1xf32, #tpu.memory_space<vmem>>, %arg5: memref<8x128xbf16, #tpu.memory_space<vmem>>, %arg6: memref<8x128xf32, #tpu.memory_space<vmem>>) attributes {dimension_semantics = [#tpu.dimension_semantics<parallel>, #tpu.dimension_semantics<arbitrary>], iteration_bounds = array<i64: 1, 1>, scalar_prefetch = 0 : i64, scratch_operands = 1 : i64, tpu.core_type = #tpu.core_type<tc>, window_params = [{transform_indices = @transform_0, window_bounds = array<i64: 8, 32>}, {transform_indices = @transform_1, window_bounds = array<i64: 32, 128>}, {pipeline_mode = #tpu.pipeline_mode<synchronous>, transform_indices = @transform_2, window_bounds = array<i64: 8, 1>}, {transform_indices = @transform_3, window_bounds = array<i64: 8, 128>}]} {
    %c0_i32 = arith.constant 0 : i32
    %0 = arith.cmpi eq, %arg1, %c0_i32 : i32
    %1 = arith.extui %0 : i1 to i32
    %c0_i32_0 = arith.constant 0 : i32
    %2 = arith.cmpi ne, %1, %c0_i32_0 : i32
    scf.if %2 {
      %cst_10 = arith.constant 0.000000e+00 : f32
      %12 = vector.broadcast %cst_10 : f32 to vector<8x128xf32>
      %c0_11 = arith.constant 0 : index
      %c0_12 = arith.constant 0 : index
      %13 = vector.load %arg6[%c0_11, %c0_12] : memref<8x128xf32, #tpu.memory_space<vmem>>, vector<8x128xf32>
      tpu.vector_store %arg6[%c0_11, %c0_12], %12 {strides = array<i32>} : memref<8x128xf32, #tpu.memory_space<vmem>>, vector<8x128xf32>,
    } else {
    }
    %c0 = arith.constant 0 : index
    %c0_1 = arith.constant 0 : index
    %3 = vector.load %arg6[%c0, %c0_1] : memref<8x128xf32, #tpu.memory_space<vmem>>, vector<8x128xf32>
    %c0_2 = arith.constant 0 : index
    %c0_3 = arith.constant 0 : index
    %4 = vector.load %arg2[%c0_2, %c0_3] : memref<8x32xbf16, #tpu.memory_space<vmem>>, vector<8x32xbf16>
    %c0_4 = arith.constant 0 : index
    %c0_5 = arith.constant 0 : index
    %5 = vector.load %arg3[%c0_4, %c0_5] : memref<32x128xbf16, #tpu.memory_space<vmem>>, vector<32x128xbf16>
    %cst = arith.constant dense<0.000000e+00> : vector<8x128xf32>
    %6 = tpu.matmul %4, %5, %cst {dimension_numbers = #tpu.dot_dimension_numbers<[1], [0], [0], [1], [0, 0, 1, 1], [], []>} : vector<8x32xbf16>, vector<32x128xbf16>, vector<8x128xf32> -> vector<8x128xf32>
    %7 = arith.addf %3, %6 : vector<8x128xf32>
    %c0_6 = arith.constant 0 : index
    %c0_7 = arith.constant 0 : index
    %8 = vector.load %arg6[%c0_6, %c0_7] : memref<8x128xf32, #tpu.memory_space<vmem>>, vector<8x128xf32>
    tpu.vector_store %arg6[%c0_6, %c0_7], %7 {strides = array<i32>} : memref<8x128xf32, #tpu.memory_space<vmem>>, vector<8x128xf32>,
    %c0_i32_8 = arith.constant 0 : i32
    %9 = arith.cmpi eq, %arg1, %c0_i32_8 : i32
    %10 = arith.extui %9 : i1 to i32
    %c0_i32_9 = arith.constant 0 : i32
    %11 = arith.cmpi ne, %10, %c0_i32_9 : i32
    scf.if %11 {
      %c0_10 = arith.constant 0 : index
      %c0_11 = arith.constant 0 : index
      %12 = vector.load %arg6[%c0_10, %c0_11] : memref<8x128xf32, #tpu.memory_space<vmem>>, vector<8x128xf32>
      %c0_12 = arith.constant 0 : index
      %c0_13 = arith.constant 0 : index
      %13 = vector.load %arg4[%c0_12, %c0_13] : memref<8x1xf32, #tpu.memory_space<vmem>>, vector<8x1xf32>
      %14 = vector.broadcast %13 : vector<8x1xf32> to vector<8x128xf32>
      %15 = arith.addf %12, %14 : vector<8x128xf32>
      %cst_14 = arith.constant 0.000000e+00 : f32
      %16 = vector.broadcast %cst_14 : f32 to vector<8x128xf32>
      %17 = arith.maximumf %15, %16 : vector<8x128xf32>
      %18 = arith.truncf %17 : vector<8x128xf32> to vector<8x128xbf16>
      %c0_15 = arith.constant 0 : index
      %c0_16 = arith.constant 0 : index
      %19 = vector.load %arg5[%c0_15, %c0_16] : memref<8x128xbf16, #tpu.memory_space<vmem>>, vector<8x128xbf16>
      tpu.vector_store %arg5[%c0_15, %c0_16], %18 {strides = array<i32>} : memref<8x128xbf16, #tpu.memory_space<vmem>>, vector<8x128xbf16>,
    } else {
    }
    return
  }
  func.func @transform_0(%arg0: i32, %arg1: i32) -> (i32, i32) {
    %c0_i32 = arith.constant 0 : i32
    %c0_i32_0 = arith.constant 0 : i32
    return %c0_i32, %arg1 : i32, i32
  }
  func.func @transform_1(%arg0: i32, %arg1: i32) -> (i32, i32) {
    %c0_i32 = arith.constant 0 : i32
    return %arg1, %arg0 : i32, i32
  }
  func.func @transform_2(%arg0: i32, %arg1: i32) -> (i32, i32) {
    %c0_i32 = arith.constant 0 : i32
    %c0_i32_0 = arith.constant 0 : i32
    %c0_i32_1 = arith.constant 0 : i32
    return %c0_i32, %c0_i32_0 : i32, i32
  }
  func.func @transform_3(%arg0: i32, %arg1: i32) -> (i32, i32) {
    %c0_i32 = arith.constant 0 : i32
    %c0_i32_0 = arith.constant 0 : i32
    return %c0_i32, %arg0 : i32, i32
  }
}

module attributes {stable_mosaic.version = 11 : i64} {
  func.func @_mm_kernel(%arg0: i32, %arg1: i32, %arg2: memref<16x32xbf16, #tpu.memory_space<vmem>>, %arg3: memref<32x128xbf16, #tpu.memory_space<vmem>>, %arg4: memref<16x1xf32, #tpu.memory_space<vmem>>, %arg5: memref<16x128xbf16, #tpu.memory_space<vmem>>, %arg6: memref<16x128xf32, #tpu.memory_space<vmem>>) attributes {dimension_semantics = [#tpu.dimension_semantics<parallel>, #tpu.dimension_semantics<arbitrary>], iteration_bounds = array<i64: 1, 1>, scalar_prefetch = 0 : i64, scratch_operands = 1 : i64, tpu.core_type = #tpu.core_type<tc>, window_params = [{transform_indices = @transform_0, window_bounds = array<i64: 16, 32>}, {transform_indices = @transform_1, window_bounds = array<i64: 32, 128>}, {pipeline_mode = #tpu.pipeline_mode<synchronous>, transform_indices = @transform_2, window_bounds = array<i64: 16, 1>}, {transform_indices = @transform_3, window_bounds = array<i64: 16, 128>}]} {
    %c0_i32 = arith.constant 0 : i32
    %0 = arith.cmpi eq, %arg1, %c0_i32 : i32
    %1 = arith.extui %0 : i1 to i32
    %c0_i32_0 = arith.constant 0 : i32
    %2 = arith.cmpi ne, %1, %c0_i32_0 : i32
    scf.if %2 {
      %cst_10 = arith.constant 0.000000e+00 : f32
      %12 = vector.broadcast %cst_10 : f32 to vector<16x128xf32>
      %c0_11 = arith.constant 0 : index
      %c0_12 = arith.constant 0 : index
      %13 = vector.load %arg6[%c0_11, %c0_12] : memref<16x128xf32, #tpu.memory_space<vmem>>, vector<16x128xf32>
      tpu.vector_store %arg6[%c0_11, %c0_12], %12 {strides = array<i32>} : memref<16x128xf32, #tpu.memory_space<vmem>>, vector<16x128xf32>,
    } else {
    }
    %c0 = arith.constant 0 : index
    %c0_1 = arith.constant 0 : index
    %3 = vector.load %arg6[%c0, %c0_1] : memref<16x128xf32, #tpu.memory_space<vmem>>, vector<16x128xf32>
    %c0_2 = arith.constant 0 : index
    %c0_3 = arith.constant 0 : index
    %4 = vector.load %arg2[%c0_2, %c0_3] : memref<16x32xbf16, #tpu.memory_space<vmem>>, vector<16x32xbf16>
    %c0_4 = arith.constant 0 : index
    %c0_5 = arith.constant 0 : index
    %5 = vector.load %arg3[%c0_4, %c0_5] : memref<32x128xbf16, #tpu.memory_space<vmem>>, vector<32x128xbf16>
    %cst = arith.constant dense<0.000000e+00> : vector<16x128xf32>
    %6 = tpu.matmul %4, %5, %cst {dimension_numbers = #tpu.dot_dimension_numbers<[1], [0], [0], [1], [0, 0, 1, 1], [], []>} : vector<16x32xbf16>, vector<32x128xbf16>, vector<16x128xf32> -> vector<16x128xf32>
    %7 = arith.addf %3, %6 : vector<16x128xf32>
    %c0_6 = arith.constant 0 : index
    %c0_7 = arith.constant 0 : index
    %8 = vector.load %arg6[%c0_6, %c0_7] : memref<16x128xf32, #tpu.memory_space<vmem>>, vector<16x128xf32>
    tpu.vector_store %arg6[%c0_6, %c0_7], %7 {strides = array<i32>} : memref<16x128xf32, #tpu.memory_space<vmem>>, vector<16x128xf32>,
    %c0_i32_8 = arith.constant 0 : i32
    %9 = arith.cmpi eq, %arg1, %c0_i32_8 : i32
    %10 = arith.extui %9 : i1 to i32
    %c0_i32_9 = arith.constant 0 : i32
    %11 = arith.cmpi ne, %10, %c0_i32_9 : i32
    scf.if %11 {
      %c0_10 = arith.constant 0 : index
      %c0_11 = arith.constant 0 : index
      %12 = vector.load %arg6[%c0_10, %c0_11] : memref<16x128xf32, #tpu.memory_space<vmem>>, vector<16x128xf32>
      %c0_12 = arith.constant 0 : index
      %c0_13 = arith.constant 0 : index
      %13 = vector.load %arg4[%c0_12, %c0_13] : memref<16x1xf32, #tpu.memory_space<vmem>>, vector<16x1xf32>
      %14 = vector.broadcast %13 : vector<16x1xf32> to vector<16x128xf32>
      %15 = arith.addf %12, %14 : vector<16x128xf32>
      %cst_14 = arith.constant 0.000000e+00 : f32
      %16 = vector.broadcast %cst_14 : f32 to vector<16x128xf32>
      %17 = arith.maximumf %15, %16 : vector<16x128xf32>
      %18 = arith.truncf %17 : vector<16x128xf32> to vector<16x128xbf16>
      %c0_15 = arith.constant 0 : index
      %c0_16 = arith.constant 0 : index
      %19 = vector.load %arg5[%c0_15, %c0_16] : memref<16x128xbf16, #tpu.memory_space<vmem>>, vector<16x128xbf16>
      tpu.vector_store %arg5[%c0_15, %c0_16], %18 {strides = array<i32>} : memref<16x128xbf16, #tpu.memory_space<vmem>>, vector<16x128xbf16>,
    } else {
    }
    return
  }
  func.func @transform_0(%arg0: i32, %arg1: i32) -> (i32, i32) {
    %c0_i32 = arith.constant 0 : i32
    %c0_i32_0 = arith.constant 0 : i32
    return %c0_i32, %arg1 : i32, i32
  }
  func.func @transform_1(%arg0: i32, %arg1: i32) -> (i32, i32) {
    %c0_i32 = arith.constant 0 : i32
    return %arg1, %arg0 : i32, i32
  }
  func.func @transform_2(%arg0: i32, %arg1: i32) -> (i32, i32) {
    %c0_i32 = arith.constant 0 : i32
    %c0_i32_0 = arith.constant 0 : i32
    %c0_i32_1 = arith.constant 0 : i32
    return %c0_i32, %c0_i32_0 : i32, i32
  }
  func.func @transform_3(%arg0: i32, %arg1: i32) -> (i32, i32) {
    %c0_i32 = arith.constant 0 : i32
    %c0_i32_0 = arith.constant 0 : i32
    return %c0_i32, %arg0 : i32, i32
  }
}

module attributes {stable_mosaic.version = 11 : i64} {
  func.func @_mm_kernel(%arg0: i32, %arg1: i32, %arg2: memref<16x144xbf16, #tpu.memory_space<vmem>>, %arg3: memref<144x128xbf16, #tpu.memory_space<vmem>>, %arg4: memref<16x1xf32, #tpu.memory_space<vmem>>, %arg5: memref<16x128xbf16, #tpu.memory_space<vmem>>, %arg6: memref<16x128xf32, #tpu.memory_space<vmem>>) attributes {dimension_semantics = [#tpu.dimension_semantics<parallel>, #tpu.dimension_semantics<arbitrary>], iteration_bounds = array<i64: 1, 1>, scalar_prefetch = 0 : i64, scratch_operands = 1 : i64, tpu.core_type = #tpu.core_type<tc>, window_params = [{transform_indices = @transform_0, window_bounds = array<i64: 16, 144>}, {transform_indices = @transform_1, window_bounds = array<i64: 144, 128>}, {pipeline_mode = #tpu.pipeline_mode<synchronous>, transform_indices = @transform_2, window_bounds = array<i64: 16, 1>}, {transform_indices = @transform_3, window_bounds = array<i64: 16, 128>}]} {
    %c0_i32 = arith.constant 0 : i32
    %0 = arith.cmpi eq, %arg1, %c0_i32 : i32
    %1 = arith.extui %0 : i1 to i32
    %c0_i32_0 = arith.constant 0 : i32
    %2 = arith.cmpi ne, %1, %c0_i32_0 : i32
    scf.if %2 {
      %cst_10 = arith.constant 0.000000e+00 : f32
      %12 = vector.broadcast %cst_10 : f32 to vector<16x128xf32>
      %c0_11 = arith.constant 0 : index
      %c0_12 = arith.constant 0 : index
      %13 = vector.load %arg6[%c0_11, %c0_12] : memref<16x128xf32, #tpu.memory_space<vmem>>, vector<16x128xf32>
      tpu.vector_store %arg6[%c0_11, %c0_12], %12 {strides = array<i32>} : memref<16x128xf32, #tpu.memory_space<vmem>>, vector<16x128xf32>,
    } else {
    }
    %c0 = arith.constant 0 : index
    %c0_1 = arith.constant 0 : index
    %3 = vector.load %arg6[%c0, %c0_1] : memref<16x128xf32, #tpu.memory_space<vmem>>, vector<16x128xf32>
    %c0_2 = arith.constant 0 : index
    %c0_3 = arith.constant 0 : index
    %4 = vector.load %arg2[%c0_2, %c0_3] : memref<16x144xbf16, #tpu.memory_space<vmem>>, vector<16x144xbf16>
    %c0_4 = arith.constant 0 : index
    %c0_5 = arith.constant 0 : index
    %5 = vector.load %arg3[%c0_4, %c0_5] : memref<144x128xbf16, #tpu.memory_space<vmem>>, vector<144x128xbf16>
    %cst = arith.constant dense<0.000000e+00> : vector<16x128xf32>
    %6 = tpu.matmul %4, %5, %cst {dimension_numbers = #tpu.dot_dimension_numbers<[1], [0], [0], [1], [0, 0, 1, 1], [], []>} : vector<16x144xbf16>, vector<144x128xbf16>, vector<16x128xf32> -> vector<16x128xf32>
    %7 = arith.addf %3, %6 : vector<16x128xf32>
    %c0_6 = arith.constant 0 : index
    %c0_7 = arith.constant 0 : index
    %8 = vector.load %arg6[%c0_6, %c0_7] : memref<16x128xf32, #tpu.memory_space<vmem>>, vector<16x128xf32>
    tpu.vector_store %arg6[%c0_6, %c0_7], %7 {strides = array<i32>} : memref<16x128xf32, #tpu.memory_space<vmem>>, vector<16x128xf32>,
    %c0_i32_8 = arith.constant 0 : i32
    %9 = arith.cmpi eq, %arg1, %c0_i32_8 : i32
    %10 = arith.extui %9 : i1 to i32
    %c0_i32_9 = arith.constant 0 : i32
    %11 = arith.cmpi ne, %10, %c0_i32_9 : i32
    scf.if %11 {
      %c0_10 = arith.constant 0 : index
      %c0_11 = arith.constant 0 : index
      %12 = vector.load %arg6[%c0_10, %c0_11] : memref<16x128xf32, #tpu.memory_space<vmem>>, vector<16x128xf32>
      %c0_12 = arith.constant 0 : index
      %c0_13 = arith.constant 0 : index
      %13 = vector.load %arg4[%c0_12, %c0_13] : memref<16x1xf32, #tpu.memory_space<vmem>>, vector<16x1xf32>
      %14 = vector.broadcast %13 : vector<16x1xf32> to vector<16x128xf32>
      %15 = arith.addf %12, %14 : vector<16x128xf32>
      %cst_14 = arith.constant 0.000000e+00 : f32
      %16 = vector.broadcast %cst_14 : f32 to vector<16x128xf32>
      %17 = arith.maximumf %15, %16 : vector<16x128xf32>
      %18 = arith.truncf %17 : vector<16x128xf32> to vector<16x128xbf16>
      %c0_15 = arith.constant 0 : index
      %c0_16 = arith.constant 0 : index
      %19 = vector.load %arg5[%c0_15, %c0_16] : memref<16x128xbf16, #tpu.memory_space<vmem>>, vector<16x128xbf16>
      tpu.vector_store %arg5[%c0_15, %c0_16], %18 {strides = array<i32>} : memref<16x128xbf16, #tpu.memory_space<vmem>>, vector<16x128xbf16>,
    } else {
    }
    return
  }
  func.func @transform_0(%arg0: i32, %arg1: i32) -> (i32, i32) {
    %c0_i32 = arith.constant 0 : i32
    %c0_i32_0 = arith.constant 0 : i32
    return %c0_i32, %arg1 : i32, i32
  }
  func.func @transform_1(%arg0: i32, %arg1: i32) -> (i32, i32) {
    %c0_i32 = arith.constant 0 : i32
    return %arg1, %arg0 : i32, i32
  }
  func.func @transform_2(%arg0: i32, %arg1: i32) -> (i32, i32) {
    %c0_i32 = arith.constant 0 : i32
    %c0_i32_0 = arith.constant 0 : i32
    %c0_i32_1 = arith.constant 0 : i32
    return %c0_i32, %c0_i32_0 : i32, i32
  }
  func.func @transform_3(%arg0: i32, %arg1: i32) -> (i32, i32) {
    %c0_i32 = arith.constant 0 : i32
    %c0_i32_0 = arith.constant 0 : i32
    return %c0_i32, %arg0 : i32, i32
  }
}

module attributes {stable_mosaic.version = 11 : i64} {
  func.func @_mm_kernel(%arg0: i32, %arg1: i32, %arg2: memref<64x16xbf16, #tpu.memory_space<vmem>>, %arg3: memref<16x128xbf16, #tpu.memory_space<vmem>>, %arg4: memref<64x1xf32, #tpu.memory_space<vmem>>, %arg5: memref<64x128xbf16, #tpu.memory_space<vmem>>, %arg6: memref<64x128xbf16, #tpu.memory_space<vmem>>, %arg7: memref<64x128xf32, #tpu.memory_space<vmem>>) attributes {dimension_semantics = [#tpu.dimension_semantics<parallel>, #tpu.dimension_semantics<arbitrary>], iteration_bounds = array<i64: 1, 1>, scalar_prefetch = 0 : i64, scratch_operands = 1 : i64, tpu.core_type = #tpu.core_type<tc>, window_params = [{transform_indices = @transform_0, window_bounds = array<i64: 64, 16>}, {transform_indices = @transform_1, window_bounds = array<i64: 16, 128>}, {pipeline_mode = #tpu.pipeline_mode<synchronous>, transform_indices = @transform_2, window_bounds = array<i64: 64, 1>}, {transform_indices = @transform_3, window_bounds = array<i64: 64, 128>}, {transform_indices = @transform_4, window_bounds = array<i64: 64, 128>}]} {
    %c0_i32 = arith.constant 0 : i32
    %0 = arith.cmpi eq, %arg1, %c0_i32 : i32
    %1 = arith.extui %0 : i1 to i32
    %c0_i32_0 = arith.constant 0 : i32
    %2 = arith.cmpi ne, %1, %c0_i32_0 : i32
    scf.if %2 {
      %cst_10 = arith.constant 0.000000e+00 : f32
      %12 = vector.broadcast %cst_10 : f32 to vector<64x128xf32>
      %c0_11 = arith.constant 0 : index
      %c0_12 = arith.constant 0 : index
      %13 = vector.load %arg7[%c0_11, %c0_12] : memref<64x128xf32, #tpu.memory_space<vmem>>, vector<64x128xf32>
      tpu.vector_store %arg7[%c0_11, %c0_12], %12 {strides = array<i32>} : memref<64x128xf32, #tpu.memory_space<vmem>>, vector<64x128xf32>,
    } else {
    }
    %c0 = arith.constant 0 : index
    %c0_1 = arith.constant 0 : index
    %3 = vector.load %arg7[%c0, %c0_1] : memref<64x128xf32, #tpu.memory_space<vmem>>, vector<64x128xf32>
    %c0_2 = arith.constant 0 : index
    %c0_3 = arith.constant 0 : index
    %4 = vector.load %arg2[%c0_2, %c0_3] : memref<64x16xbf16, #tpu.memory_space<vmem>>, vector<64x16xbf16>
    %c0_4 = arith.constant 0 : index
    %c0_5 = arith.constant 0 : index
    %5 = vector.load %arg3[%c0_4, %c0_5] : memref<16x128xbf16, #tpu.memory_space<vmem>>, vector<16x128xbf16>
    %cst = arith.constant dense<0.000000e+00> : vector<64x128xf32>
    %6 = tpu.matmul %4, %5, %cst {dimension_numbers = #tpu.dot_dimension_numbers<[1], [0], [0], [1], [0, 0, 1, 1], [], []>} : vector<64x16xbf16>, vector<16x128xbf16>, vector<64x128xf32> -> vector<64x128xf32>
    %7 = arith.addf %3, %6 : vector<64x128xf32>
    %c0_6 = arith.constant 0 : index
    %c0_7 = arith.constant 0 : index
    %8 = vector.load %arg7[%c0_6, %c0_7] : memref<64x128xf32, #tpu.memory_space<vmem>>, vector<64x128xf32>
    tpu.vector_store %arg7[%c0_6, %c0_7], %7 {strides = array<i32>} : memref<64x128xf32, #tpu.memory_space<vmem>>, vector<64x128xf32>,
    %c0_i32_8 = arith.constant 0 : i32
    %9 = arith.cmpi eq, %arg1, %c0_i32_8 : i32
    %10 = arith.extui %9 : i1 to i32
    %c0_i32_9 = arith.constant 0 : i32
    %11 = arith.cmpi ne, %10, %c0_i32_9 : i32
    scf.if %11 {
      %c0_10 = arith.constant 0 : index
      %c0_11 = arith.constant 0 : index
      %12 = vector.load %arg7[%c0_10, %c0_11] : memref<64x128xf32, #tpu.memory_space<vmem>>, vector<64x128xf32>
      %c0_12 = arith.constant 0 : index
      %c0_13 = arith.constant 0 : index
      %13 = vector.load %arg4[%c0_12, %c0_13] : memref<64x1xf32, #tpu.memory_space<vmem>>, vector<64x1xf32>
      %14 = vector.broadcast %13 : vector<64x1xf32> to vector<64x128xf32>
      %15 = arith.addf %12, %14 : vector<64x128xf32>
      %c0_14 = arith.constant 0 : index
      %c0_15 = arith.constant 0 : index
      %16 = vector.load %arg5[%c0_14, %c0_15] : memref<64x128xbf16, #tpu.memory_space<vmem>>, vector<64x128xbf16>
      %17 = arith.extf %16 : vector<64x128xbf16> to vector<64x128xf32>
      %18 = arith.addf %15, %17 : vector<64x128xf32>
      %cst_16 = arith.constant 0.000000e+00 : f32
      %19 = vector.broadcast %cst_16 : f32 to vector<64x128xf32>
      %20 = arith.maximumf %18, %19 : vector<64x128xf32>
      %21 = arith.truncf %20 : vector<64x128xf32> to vector<64x128xbf16>
      %c0_17 = arith.constant 0 : index
      %c0_18 = arith.constant 0 : index
      %22 = vector.load %arg6[%c0_17, %c0_18] : memref<64x128xbf16, #tpu.memory_space<vmem>>, vector<64x128xbf16>
      tpu.vector_store %arg6[%c0_17, %c0_18], %21 {strides = array<i32>} : memref<64x128xbf16, #tpu.memory_space<vmem>>, vector<64x128xbf16>,
    } else {
    }
    return
  }
  func.func @transform_0(%arg0: i32, %arg1: i32) -> (i32, i32) {
    %c0_i32 = arith.constant 0 : i32
    %c0_i32_0 = arith.constant 0 : i32
    return %c0_i32, %arg1 : i32, i32
  }
  func.func @transform_1(%arg0: i32, %arg1: i32) -> (i32, i32) {
    %c0_i32 = arith.constant 0 : i32
    return %arg1, %arg0 : i32, i32
  }
  func.func @transform_2(%arg0: i32, %arg1: i32) -> (i32, i32) {
    %c0_i32 = arith.constant 0 : i32
    %c0_i32_0 = arith.constant 0 : i32
    %c0_i32_1 = arith.constant 0 : i32
    return %c0_i32, %c0_i32_0 : i32, i32
  }
  func.func @transform_3(%arg0: i32, %arg1: i32) -> (i32, i32) {
    %c0_i32 = arith.constant 0 : i32
    %c0_i32_0 = arith.constant 0 : i32
    return %c0_i32, %arg0 : i32, i32
  }
  func.func @transform_4(%arg0: i32, %arg1: i32) -> (i32, i32) {
    %c0_i32 = arith.constant 0 : i32
    %c0_i32_0 = arith.constant 0 : i32
    return %c0_i32, %arg0 : i32, i32
  }
}

module attributes {stable_mosaic.version = 11 : i64} {
  func.func @_mm_kernel(%arg0: i32, %arg1: i32, %arg2: memref<16x64xbf16, #tpu.memory_space<vmem>>, %arg3: memref<64x128xbf16, #tpu.memory_space<vmem>>, %arg4: memref<16x1xf32, #tpu.memory_space<vmem>>, %arg5: memref<16x128xbf16, #tpu.memory_space<vmem>>, %arg6: memref<16x128xf32, #tpu.memory_space<vmem>>) attributes {dimension_semantics = [#tpu.dimension_semantics<parallel>, #tpu.dimension_semantics<arbitrary>], iteration_bounds = array<i64: 1, 1>, scalar_prefetch = 0 : i64, scratch_operands = 1 : i64, tpu.core_type = #tpu.core_type<tc>, window_params = [{transform_indices = @transform_0, window_bounds = array<i64: 16, 64>}, {transform_indices = @transform_1, window_bounds = array<i64: 64, 128>}, {pipeline_mode = #tpu.pipeline_mode<synchronous>, transform_indices = @transform_2, window_bounds = array<i64: 16, 1>}, {transform_indices = @transform_3, window_bounds = array<i64: 16, 128>}]} {
    %c0_i32 = arith.constant 0 : i32
    %0 = arith.cmpi eq, %arg1, %c0_i32 : i32
    %1 = arith.extui %0 : i1 to i32
    %c0_i32_0 = arith.constant 0 : i32
    %2 = arith.cmpi ne, %1, %c0_i32_0 : i32
    scf.if %2 {
      %cst_10 = arith.constant 0.000000e+00 : f32
      %12 = vector.broadcast %cst_10 : f32 to vector<16x128xf32>
      %c0_11 = arith.constant 0 : index
      %c0_12 = arith.constant 0 : index
      %13 = vector.load %arg6[%c0_11, %c0_12] : memref<16x128xf32, #tpu.memory_space<vmem>>, vector<16x128xf32>
      tpu.vector_store %arg6[%c0_11, %c0_12], %12 {strides = array<i32>} : memref<16x128xf32, #tpu.memory_space<vmem>>, vector<16x128xf32>,
    } else {
    }
    %c0 = arith.constant 0 : index
    %c0_1 = arith.constant 0 : index
    %3 = vector.load %arg6[%c0, %c0_1] : memref<16x128xf32, #tpu.memory_space<vmem>>, vector<16x128xf32>
    %c0_2 = arith.constant 0 : index
    %c0_3 = arith.constant 0 : index
    %4 = vector.load %arg2[%c0_2, %c0_3] : memref<16x64xbf16, #tpu.memory_space<vmem>>, vector<16x64xbf16>
    %c0_4 = arith.constant 0 : index
    %c0_5 = arith.constant 0 : index
    %5 = vector.load %arg3[%c0_4, %c0_5] : memref<64x128xbf16, #tpu.memory_space<vmem>>, vector<64x128xbf16>
    %cst = arith.constant dense<0.000000e+00> : vector<16x128xf32>
    %6 = tpu.matmul %4, %5, %cst {dimension_numbers = #tpu.dot_dimension_numbers<[1], [0], [0], [1], [0, 0, 1, 1], [], []>} : vector<16x64xbf16>, vector<64x128xbf16>, vector<16x128xf32> -> vector<16x128xf32>
    %7 = arith.addf %3, %6 : vector<16x128xf32>
    %c0_6 = arith.constant 0 : index
    %c0_7 = arith.constant 0 : index
    %8 = vector.load %arg6[%c0_6, %c0_7] : memref<16x128xf32, #tpu.memory_space<vmem>>, vector<16x128xf32>
    tpu.vector_store %arg6[%c0_6, %c0_7], %7 {strides = array<i32>} : memref<16x128xf32, #tpu.memory_space<vmem>>, vector<16x128xf32>,
    %c0_i32_8 = arith.constant 0 : i32
    %9 = arith.cmpi eq, %arg1, %c0_i32_8 : i32
    %10 = arith.extui %9 : i1 to i32
    %c0_i32_9 = arith.constant 0 : i32
    %11 = arith.cmpi ne, %10, %c0_i32_9 : i32
    scf.if %11 {
      %c0_10 = arith.constant 0 : index
      %c0_11 = arith.constant 0 : index
      %12 = vector.load %arg6[%c0_10, %c0_11] : memref<16x128xf32, #tpu.memory_space<vmem>>, vector<16x128xf32>
      %c0_12 = arith.constant 0 : index
      %c0_13 = arith.constant 0 : index
      %13 = vector.load %arg4[%c0_12, %c0_13] : memref<16x1xf32, #tpu.memory_space<vmem>>, vector<16x1xf32>
      %14 = vector.broadcast %13 : vector<16x1xf32> to vector<16x128xf32>
      %15 = arith.addf %12, %14 : vector<16x128xf32>
      %cst_14 = arith.constant 0.000000e+00 : f32
      %16 = vector.broadcast %cst_14 : f32 to vector<16x128xf32>
      %17 = arith.maximumf %15, %16 : vector<16x128xf32>
      %18 = arith.truncf %17 : vector<16x128xf32> to vector<16x128xbf16>
      %c0_15 = arith.constant 0 : index
      %c0_16 = arith.constant 0 : index
      %19 = vector.load %arg5[%c0_15, %c0_16] : memref<16x128xbf16, #tpu.memory_space<vmem>>, vector<16x128xbf16>
      tpu.vector_store %arg5[%c0_15, %c0_16], %18 {strides = array<i32>} : memref<16x128xbf16, #tpu.memory_space<vmem>>, vector<16x128xbf16>,
    } else {
    }
    return
  }
  func.func @transform_0(%arg0: i32, %arg1: i32) -> (i32, i32) {
    %c0_i32 = arith.constant 0 : i32
    %c0_i32_0 = arith.constant 0 : i32
    return %c0_i32, %arg1 : i32, i32
  }
  func.func @transform_1(%arg0: i32, %arg1: i32) -> (i32, i32) {
    %c0_i32 = arith.constant 0 : i32
    return %arg1, %arg0 : i32, i32
  }
  func.func @transform_2(%arg0: i32, %arg1: i32) -> (i32, i32) {
    %c0_i32 = arith.constant 0 : i32
    %c0_i32_0 = arith.constant 0 : i32
    %c0_i32_1 = arith.constant 0 : i32
    return %c0_i32, %c0_i32_0 : i32, i32
  }
  func.func @transform_3(%arg0: i32, %arg1: i32) -> (i32, i32) {
    %c0_i32 = arith.constant 0 : i32
    %c0_i32_0 = arith.constant 0 : i32
    return %c0_i32, %arg0 : i32, i32
  }
}

module attributes {stable_mosaic.version = 11 : i64} {
  func.func @_mm_kernel(%arg0: i32, %arg1: i32, %arg2: memref<64x32xbf16, #tpu.memory_space<vmem>>, %arg3: memref<32x128xbf16, #tpu.memory_space<vmem>>, %arg4: memref<64x1xf32, #tpu.memory_space<vmem>>, %arg5: memref<64x128xbf16, #tpu.memory_space<vmem>>, %arg6: memref<64x128xf32, #tpu.memory_space<vmem>>) attributes {dimension_semantics = [#tpu.dimension_semantics<parallel>, #tpu.dimension_semantics<arbitrary>], iteration_bounds = array<i64: 1, 1>, scalar_prefetch = 0 : i64, scratch_operands = 1 : i64, tpu.core_type = #tpu.core_type<tc>, window_params = [{transform_indices = @transform_0, window_bounds = array<i64: 64, 32>}, {transform_indices = @transform_1, window_bounds = array<i64: 32, 128>}, {pipeline_mode = #tpu.pipeline_mode<synchronous>, transform_indices = @transform_2, window_bounds = array<i64: 64, 1>}, {transform_indices = @transform_3, window_bounds = array<i64: 64, 128>}]} {
    %c0_i32 = arith.constant 0 : i32
    %0 = arith.cmpi eq, %arg1, %c0_i32 : i32
    %1 = arith.extui %0 : i1 to i32
    %c0_i32_0 = arith.constant 0 : i32
    %2 = arith.cmpi ne, %1, %c0_i32_0 : i32
    scf.if %2 {
      %cst_10 = arith.constant 0.000000e+00 : f32
      %12 = vector.broadcast %cst_10 : f32 to vector<64x128xf32>
      %c0_11 = arith.constant 0 : index
      %c0_12 = arith.constant 0 : index
      %13 = vector.load %arg6[%c0_11, %c0_12] : memref<64x128xf32, #tpu.memory_space<vmem>>, vector<64x128xf32>
      tpu.vector_store %arg6[%c0_11, %c0_12], %12 {strides = array<i32>} : memref<64x128xf32, #tpu.memory_space<vmem>>, vector<64x128xf32>,
    } else {
    }
    %c0 = arith.constant 0 : index
    %c0_1 = arith.constant 0 : index
    %3 = vector.load %arg6[%c0, %c0_1] : memref<64x128xf32, #tpu.memory_space<vmem>>, vector<64x128xf32>
    %c0_2 = arith.constant 0 : index
    %c0_3 = arith.constant 0 : index
    %4 = vector.load %arg2[%c0_2, %c0_3] : memref<64x32xbf16, #tpu.memory_space<vmem>>, vector<64x32xbf16>
    %c0_4 = arith.constant 0 : index
    %c0_5 = arith.constant 0 : index
    %5 = vector.load %arg3[%c0_4, %c0_5] : memref<32x128xbf16, #tpu.memory_space<vmem>>, vector<32x128xbf16>
    %cst = arith.constant dense<0.000000e+00> : vector<64x128xf32>
    %6 = tpu.matmul %4, %5, %cst {dimension_numbers = #tpu.dot_dimension_numbers<[1], [0], [0], [1], [0, 0, 1, 1], [], []>} : vector<64x32xbf16>, vector<32x128xbf16>, vector<64x128xf32> -> vector<64x128xf32>
    %7 = arith.addf %3, %6 : vector<64x128xf32>
    %c0_6 = arith.constant 0 : index
    %c0_7 = arith.constant 0 : index
    %8 = vector.load %arg6[%c0_6, %c0_7] : memref<64x128xf32, #tpu.memory_space<vmem>>, vector<64x128xf32>
    tpu.vector_store %arg6[%c0_6, %c0_7], %7 {strides = array<i32>} : memref<64x128xf32, #tpu.memory_space<vmem>>, vector<64x128xf32>,
    %c0_i32_8 = arith.constant 0 : i32
    %9 = arith.cmpi eq, %arg1, %c0_i32_8 : i32
    %10 = arith.extui %9 : i1 to i32
    %c0_i32_9 = arith.constant 0 : i32
    %11 = arith.cmpi ne, %10, %c0_i32_9 : i32
    scf.if %11 {
      %c0_10 = arith.constant 0 : index
      %c0_11 = arith.constant 0 : index
      %12 = vector.load %arg6[%c0_10, %c0_11] : memref<64x128xf32, #tpu.memory_space<vmem>>, vector<64x128xf32>
      %c0_12 = arith.constant 0 : index
      %c0_13 = arith.constant 0 : index
      %13 = vector.load %arg4[%c0_12, %c0_13] : memref<64x1xf32, #tpu.memory_space<vmem>>, vector<64x1xf32>
      %14 = vector.broadcast %13 : vector<64x1xf32> to vector<64x128xf32>
      %15 = arith.addf %12, %14 : vector<64x128xf32>
      %16 = arith.truncf %15 : vector<64x128xf32> to vector<64x128xbf16>
      %c0_14 = arith.constant 0 : index
      %c0_15 = arith.constant 0 : index
      %17 = vector.load %arg5[%c0_14, %c0_15] : memref<64x128xbf16, #tpu.memory_space<vmem>>, vector<64x128xbf16>
      tpu.vector_store %arg5[%c0_14, %c0_15], %16 {strides = array<i32>} : memref<64x128xbf16, #tpu.memory_space<vmem>>, vector<64x128xbf16>,
    } else {
    }
    return
  }
  func.func @transform_0(%arg0: i32, %arg1: i32) -> (i32, i32) {
    %c0_i32 = arith.constant 0 : i32
    %c0_i32_0 = arith.constant 0 : i32
    return %c0_i32, %arg1 : i32, i32
  }
  func.func @transform_1(%arg0: i32, %arg1: i32) -> (i32, i32) {
    %c0_i32 = arith.constant 0 : i32
    return %arg1, %arg0 : i32, i32
  }
  func.func @transform_2(%arg0: i32, %arg1: i32) -> (i32, i32) {
    %c0_i32 = arith.constant 0 : i32
    %c0_i32_0 = arith.constant 0 : i32
    %c0_i32_1 = arith.constant 0 : i32
    return %c0_i32, %c0_i32_0 : i32, i32
  }
  func.func @transform_3(%arg0: i32, %arg1: i32) -> (i32, i32) {
    %c0_i32 = arith.constant 0 : i32
    %c0_i32_0 = arith.constant 0 : i32
    return %c0_i32, %arg0 : i32, i32
  }
}

module attributes {stable_mosaic.version = 11 : i64} {
  func.func @_mm_kernel(%arg0: i32, %arg1: i32, %arg2: memref<32x64xbf16, #tpu.memory_space<vmem>>, %arg3: memref<64x128xbf16, #tpu.memory_space<vmem>>, %arg4: memref<32x1xf32, #tpu.memory_space<vmem>>, %arg5: memref<32x128xbf16, #tpu.memory_space<vmem>>, %arg6: memref<32x128xf32, #tpu.memory_space<vmem>>) attributes {dimension_semantics = [#tpu.dimension_semantics<parallel>, #tpu.dimension_semantics<arbitrary>], iteration_bounds = array<i64: 1, 1>, scalar_prefetch = 0 : i64, scratch_operands = 1 : i64, tpu.core_type = #tpu.core_type<tc>, window_params = [{transform_indices = @transform_0, window_bounds = array<i64: 32, 64>}, {transform_indices = @transform_1, window_bounds = array<i64: 64, 128>}, {pipeline_mode = #tpu.pipeline_mode<synchronous>, transform_indices = @transform_2, window_bounds = array<i64: 32, 1>}, {transform_indices = @transform_3, window_bounds = array<i64: 32, 128>}]} {
    %c0_i32 = arith.constant 0 : i32
    %0 = arith.cmpi eq, %arg1, %c0_i32 : i32
    %1 = arith.extui %0 : i1 to i32
    %c0_i32_0 = arith.constant 0 : i32
    %2 = arith.cmpi ne, %1, %c0_i32_0 : i32
    scf.if %2 {
      %cst_10 = arith.constant 0.000000e+00 : f32
      %12 = vector.broadcast %cst_10 : f32 to vector<32x128xf32>
      %c0_11 = arith.constant 0 : index
      %c0_12 = arith.constant 0 : index
      %13 = vector.load %arg6[%c0_11, %c0_12] : memref<32x128xf32, #tpu.memory_space<vmem>>, vector<32x128xf32>
      tpu.vector_store %arg6[%c0_11, %c0_12], %12 {strides = array<i32>} : memref<32x128xf32, #tpu.memory_space<vmem>>, vector<32x128xf32>,
    } else {
    }
    %c0 = arith.constant 0 : index
    %c0_1 = arith.constant 0 : index
    %3 = vector.load %arg6[%c0, %c0_1] : memref<32x128xf32, #tpu.memory_space<vmem>>, vector<32x128xf32>
    %c0_2 = arith.constant 0 : index
    %c0_3 = arith.constant 0 : index
    %4 = vector.load %arg2[%c0_2, %c0_3] : memref<32x64xbf16, #tpu.memory_space<vmem>>, vector<32x64xbf16>
    %c0_4 = arith.constant 0 : index
    %c0_5 = arith.constant 0 : index
    %5 = vector.load %arg3[%c0_4, %c0_5] : memref<64x128xbf16, #tpu.memory_space<vmem>>, vector<64x128xbf16>
    %cst = arith.constant dense<0.000000e+00> : vector<32x128xf32>
    %6 = tpu.matmul %4, %5, %cst {dimension_numbers = #tpu.dot_dimension_numbers<[1], [0], [0], [1], [0, 0, 1, 1], [], []>} : vector<32x64xbf16>, vector<64x128xbf16>, vector<32x128xf32> -> vector<32x128xf32>
    %7 = arith.addf %3, %6 : vector<32x128xf32>
    %c0_6 = arith.constant 0 : index
    %c0_7 = arith.constant 0 : index
    %8 = vector.load %arg6[%c0_6, %c0_7] : memref<32x128xf32, #tpu.memory_space<vmem>>, vector<32x128xf32>
    tpu.vector_store %arg6[%c0_6, %c0_7], %7 {strides = array<i32>} : memref<32x128xf32, #tpu.memory_space<vmem>>, vector<32x128xf32>,
    %c0_i32_8 = arith.constant 0 : i32
    %9 = arith.cmpi eq, %arg1, %c0_i32_8 : i32
    %10 = arith.extui %9 : i1 to i32
    %c0_i32_9 = arith.constant 0 : i32
    %11 = arith.cmpi ne, %10, %c0_i32_9 : i32
    scf.if %11 {
      %c0_10 = arith.constant 0 : index
      %c0_11 = arith.constant 0 : index
      %12 = vector.load %arg6[%c0_10, %c0_11] : memref<32x128xf32, #tpu.memory_space<vmem>>, vector<32x128xf32>
      %c0_12 = arith.constant 0 : index
      %c0_13 = arith.constant 0 : index
      %13 = vector.load %arg4[%c0_12, %c0_13] : memref<32x1xf32, #tpu.memory_space<vmem>>, vector<32x1xf32>
      %14 = vector.broadcast %13 : vector<32x1xf32> to vector<32x128xf32>
      %15 = arith.addf %12, %14 : vector<32x128xf32>
      %cst_14 = arith.constant 0.000000e+00 : f32
      %16 = vector.broadcast %cst_14 : f32 to vector<32x128xf32>
      %17 = arith.maximumf %15, %16 : vector<32x128xf32>
      %18 = arith.truncf %17 : vector<32x128xf32> to vector<32x128xbf16>
      %c0_15 = arith.constant 0 : index
      %c0_16 = arith.constant 0 : index
      %19 = vector.load %arg5[%c0_15, %c0_16] : memref<32x128xbf16, #tpu.memory_space<vmem>>, vector<32x128xbf16>
      tpu.vector_store %arg5[%c0_15, %c0_16], %18 {strides = array<i32>} : memref<32x128xbf16, #tpu.memory_space<vmem>>, vector<32x128xbf16>,
    } else {
    }
    return
  }
  func.func @transform_0(%arg0: i32, %arg1: i32) -> (i32, i32) {
    %c0_i32 = arith.constant 0 : i32
    %c0_i32_0 = arith.constant 0 : i32
    return %c0_i32, %arg1 : i32, i32
  }
  func.func @transform_1(%arg0: i32, %arg1: i32) -> (i32, i32) {
    %c0_i32 = arith.constant 0 : i32
    return %arg1, %arg0 : i32, i32
  }
  func.func @transform_2(%arg0: i32, %arg1: i32) -> (i32, i32) {
    %c0_i32 = arith.constant 0 : i32
    %c0_i32_0 = arith.constant 0 : i32
    %c0_i32_1 = arith.constant 0 : i32
    return %c0_i32, %c0_i32_0 : i32, i32
  }
  func.func @transform_3(%arg0: i32, %arg1: i32) -> (i32, i32) {
    %c0_i32 = arith.constant 0 : i32
    %c0_i32_0 = arith.constant 0 : i32
    return %c0_i32, %arg0 : i32, i32
  }
}

module attributes {stable_mosaic.version = 11 : i64} {
  func.func @_mm_kernel(%arg0: i32, %arg1: i32, %arg2: memref<32x288xbf16, #tpu.memory_space<vmem>>, %arg3: memref<288x128xbf16, #tpu.memory_space<vmem>>, %arg4: memref<32x1xf32, #tpu.memory_space<vmem>>, %arg5: memref<32x128xbf16, #tpu.memory_space<vmem>>, %arg6: memref<32x128xf32, #tpu.memory_space<vmem>>) attributes {dimension_semantics = [#tpu.dimension_semantics<parallel>, #tpu.dimension_semantics<arbitrary>], iteration_bounds = array<i64: 1, 1>, scalar_prefetch = 0 : i64, scratch_operands = 1 : i64, tpu.core_type = #tpu.core_type<tc>, window_params = [{transform_indices = @transform_0, window_bounds = array<i64: 32, 288>}, {transform_indices = @transform_1, window_bounds = array<i64: 288, 128>}, {pipeline_mode = #tpu.pipeline_mode<synchronous>, transform_indices = @transform_2, window_bounds = array<i64: 32, 1>}, {transform_indices = @transform_3, window_bounds = array<i64: 32, 128>}]} {
    %c0_i32 = arith.constant 0 : i32
    %0 = arith.cmpi eq, %arg1, %c0_i32 : i32
    %1 = arith.extui %0 : i1 to i32
    %c0_i32_0 = arith.constant 0 : i32
    %2 = arith.cmpi ne, %1, %c0_i32_0 : i32
    scf.if %2 {
      %cst_10 = arith.constant 0.000000e+00 : f32
      %12 = vector.broadcast %cst_10 : f32 to vector<32x128xf32>
      %c0_11 = arith.constant 0 : index
      %c0_12 = arith.constant 0 : index
      %13 = vector.load %arg6[%c0_11, %c0_12] : memref<32x128xf32, #tpu.memory_space<vmem>>, vector<32x128xf32>
      tpu.vector_store %arg6[%c0_11, %c0_12], %12 {strides = array<i32>} : memref<32x128xf32, #tpu.memory_space<vmem>>, vector<32x128xf32>,
    } else {
    }
    %c0 = arith.constant 0 : index
    %c0_1 = arith.constant 0 : index
    %3 = vector.load %arg6[%c0, %c0_1] : memref<32x128xf32, #tpu.memory_space<vmem>>, vector<32x128xf32>
    %c0_2 = arith.constant 0 : index
    %c0_3 = arith.constant 0 : index
    %4 = vector.load %arg2[%c0_2, %c0_3] : memref<32x288xbf16, #tpu.memory_space<vmem>>, vector<32x288xbf16>
    %c0_4 = arith.constant 0 : index
    %c0_5 = arith.constant 0 : index
    %5 = vector.load %arg3[%c0_4, %c0_5] : memref<288x128xbf16, #tpu.memory_space<vmem>>, vector<288x128xbf16>
    %cst = arith.constant dense<0.000000e+00> : vector<32x128xf32>
    %6 = tpu.matmul %4, %5, %cst {dimension_numbers = #tpu.dot_dimension_numbers<[1], [0], [0], [1], [0, 0, 1, 1], [], []>} : vector<32x288xbf16>, vector<288x128xbf16>, vector<32x128xf32> -> vector<32x128xf32>
    %7 = arith.addf %3, %6 : vector<32x128xf32>
    %c0_6 = arith.constant 0 : index
    %c0_7 = arith.constant 0 : index
    %8 = vector.load %arg6[%c0_6, %c0_7] : memref<32x128xf32, #tpu.memory_space<vmem>>, vector<32x128xf32>
    tpu.vector_store %arg6[%c0_6, %c0_7], %7 {strides = array<i32>} : memref<32x128xf32, #tpu.memory_space<vmem>>, vector<32x128xf32>,
    %c0_i32_8 = arith.constant 0 : i32
    %9 = arith.cmpi eq, %arg1, %c0_i32_8 : i32
    %10 = arith.extui %9 : i1 to i32
    %c0_i32_9 = arith.constant 0 : i32
    %11 = arith.cmpi ne, %10, %c0_i32_9 : i32
    scf.if %11 {
      %c0_10 = arith.constant 0 : index
      %c0_11 = arith.constant 0 : index
      %12 = vector.load %arg6[%c0_10, %c0_11] : memref<32x128xf32, #tpu.memory_space<vmem>>, vector<32x128xf32>
      %c0_12 = arith.constant 0 : index
      %c0_13 = arith.constant 0 : index
      %13 = vector.load %arg4[%c0_12, %c0_13] : memref<32x1xf32, #tpu.memory_space<vmem>>, vector<32x1xf32>
      %14 = vector.broadcast %13 : vector<32x1xf32> to vector<32x128xf32>
      %15 = arith.addf %12, %14 : vector<32x128xf32>
      %cst_14 = arith.constant 0.000000e+00 : f32
      %16 = vector.broadcast %cst_14 : f32 to vector<32x128xf32>
      %17 = arith.maximumf %15, %16 : vector<32x128xf32>
      %18 = arith.truncf %17 : vector<32x128xf32> to vector<32x128xbf16>
      %c0_15 = arith.constant 0 : index
      %c0_16 = arith.constant 0 : index
      %19 = vector.load %arg5[%c0_15, %c0_16] : memref<32x128xbf16, #tpu.memory_space<vmem>>, vector<32x128xbf16>
      tpu.vector_store %arg5[%c0_15, %c0_16], %18 {strides = array<i32>} : memref<32x128xbf16, #tpu.memory_space<vmem>>, vector<32x128xbf16>,
    } else {
    }
    return
  }
  func.func @transform_0(%arg0: i32, %arg1: i32) -> (i32, i32) {
    %c0_i32 = arith.constant 0 : i32
    %c0_i32_0 = arith.constant 0 : i32
    return %c0_i32, %arg1 : i32, i32
  }
  func.func @transform_1(%arg0: i32, %arg1: i32) -> (i32, i32) {
    %c0_i32 = arith.constant 0 : i32
    return %arg1, %arg0 : i32, i32
  }
  func.func @transform_2(%arg0: i32, %arg1: i32) -> (i32, i32) {
    %c0_i32 = arith.constant 0 : i32
    %c0_i32_0 = arith.constant 0 : i32
    %c0_i32_1 = arith.constant 0 : i32
    return %c0_i32, %c0_i32_0 : i32, i32
  }
  func.func @transform_3(%arg0: i32, %arg1: i32) -> (i32, i32) {
    %c0_i32 = arith.constant 0 : i32
    %c0_i32_0 = arith.constant 0 : i32
    return %c0_i32, %arg0 : i32, i32
  }
}

module attributes {stable_mosaic.version = 11 : i64} {
  func.func @_mm_kernel(%arg0: i32, %arg1: i32, %arg2: memref<128x32xbf16, #tpu.memory_space<vmem>>, %arg3: memref<32x128xbf16, #tpu.memory_space<vmem>>, %arg4: memref<128x1xf32, #tpu.memory_space<vmem>>, %arg5: memref<128x128xbf16, #tpu.memory_space<vmem>>, %arg6: memref<128x128xbf16, #tpu.memory_space<vmem>>, %arg7: memref<128x128xf32, #tpu.memory_space<vmem>>) attributes {dimension_semantics = [#tpu.dimension_semantics<parallel>, #tpu.dimension_semantics<arbitrary>], iteration_bounds = array<i64: 1, 1>, scalar_prefetch = 0 : i64, scratch_operands = 1 : i64, tpu.core_type = #tpu.core_type<tc>, window_params = [{transform_indices = @transform_0, window_bounds = array<i64: 128, 32>}, {transform_indices = @transform_1, window_bounds = array<i64: 32, 128>}, {pipeline_mode = #tpu.pipeline_mode<synchronous>, transform_indices = @transform_2, window_bounds = array<i64: 128, 1>}, {transform_indices = @transform_3, window_bounds = array<i64: 128, 128>}, {transform_indices = @transform_4, window_bounds = array<i64: 128, 128>}]} {
    %c0_i32 = arith.constant 0 : i32
    %0 = arith.cmpi eq, %arg1, %c0_i32 : i32
    %1 = arith.extui %0 : i1 to i32
    %c0_i32_0 = arith.constant 0 : i32
    %2 = arith.cmpi ne, %1, %c0_i32_0 : i32
    scf.if %2 {
      %cst_10 = arith.constant 0.000000e+00 : f32
      %12 = vector.broadcast %cst_10 : f32 to vector<128x128xf32>
      %c0_11 = arith.constant 0 : index
      %c0_12 = arith.constant 0 : index
      %13 = vector.load %arg7[%c0_11, %c0_12] : memref<128x128xf32, #tpu.memory_space<vmem>>, vector<128x128xf32>
      tpu.vector_store %arg7[%c0_11, %c0_12], %12 {strides = array<i32>} : memref<128x128xf32, #tpu.memory_space<vmem>>, vector<128x128xf32>,
    } else {
    }
    %c0 = arith.constant 0 : index
    %c0_1 = arith.constant 0 : index
    %3 = vector.load %arg7[%c0, %c0_1] : memref<128x128xf32, #tpu.memory_space<vmem>>, vector<128x128xf32>
    %c0_2 = arith.constant 0 : index
    %c0_3 = arith.constant 0 : index
    %4 = vector.load %arg2[%c0_2, %c0_3] : memref<128x32xbf16, #tpu.memory_space<vmem>>, vector<128x32xbf16>
    %c0_4 = arith.constant 0 : index
    %c0_5 = arith.constant 0 : index
    %5 = vector.load %arg3[%c0_4, %c0_5] : memref<32x128xbf16, #tpu.memory_space<vmem>>, vector<32x128xbf16>
    %cst = arith.constant dense<0.000000e+00> : vector<128x128xf32>
    %6 = tpu.matmul %4, %5, %cst {dimension_numbers = #tpu.dot_dimension_numbers<[1], [0], [0], [1], [0, 0, 1, 1], [], []>} : vector<128x32xbf16>, vector<32x128xbf16>, vector<128x128xf32> -> vector<128x128xf32>
    %7 = arith.addf %3, %6 : vector<128x128xf32>
    %c0_6 = arith.constant 0 : index
    %c0_7 = arith.constant 0 : index
    %8 = vector.load %arg7[%c0_6, %c0_7] : memref<128x128xf32, #tpu.memory_space<vmem>>, vector<128x128xf32>
    tpu.vector_store %arg7[%c0_6, %c0_7], %7 {strides = array<i32>} : memref<128x128xf32, #tpu.memory_space<vmem>>, vector<128x128xf32>,
    %c0_i32_8 = arith.constant 0 : i32
    %9 = arith.cmpi eq, %arg1, %c0_i32_8 : i32
    %10 = arith.extui %9 : i1 to i32
    %c0_i32_9 = arith.constant 0 : i32
    %11 = arith.cmpi ne, %10, %c0_i32_9 : i32
    scf.if %11 {
      %c0_10 = arith.constant 0 : index
      %c0_11 = arith.constant 0 : index
      %12 = vector.load %arg7[%c0_10, %c0_11] : memref<128x128xf32, #tpu.memory_space<vmem>>, vector<128x128xf32>
      %c0_12 = arith.constant 0 : index
      %c0_13 = arith.constant 0 : index
      %13 = vector.load %arg4[%c0_12, %c0_13] : memref<128x1xf32, #tpu.memory_space<vmem>>, vector<128x1xf32>
      %14 = vector.broadcast %13 : vector<128x1xf32> to vector<128x128xf32>
      %15 = arith.addf %12, %14 : vector<128x128xf32>
      %c0_14 = arith.constant 0 : index
      %c0_15 = arith.constant 0 : index
      %16 = vector.load %arg5[%c0_14, %c0_15] : memref<128x128xbf16, #tpu.memory_space<vmem>>, vector<128x128xbf16>
      %17 = arith.extf %16 : vector<128x128xbf16> to vector<128x128xf32>
      %18 = arith.addf %15, %17 : vector<128x128xf32>
      %cst_16 = arith.constant 0.000000e+00 : f32
      %19 = vector.broadcast %cst_16 : f32 to vector<128x128xf32>
      %20 = arith.maximumf %18, %19 : vector<128x128xf32>
      %21 = arith.truncf %20 : vector<128x128xf32> to vector<128x128xbf16>
      %c0_17 = arith.constant 0 : index
      %c0_18 = arith.constant 0 : index
      %22 = vector.load %arg6[%c0_17, %c0_18] : memref<128x128xbf16, #tpu.memory_space<vmem>>, vector<128x128xbf16>
      tpu.vector_store %arg6[%c0_17, %c0_18], %21 {strides = array<i32>} : memref<128x128xbf16, #tpu.memory_space<vmem>>, vector<128x128xbf16>,
    } else {
    }
    return
  }
  func.func @transform_0(%arg0: i32, %arg1: i32) -> (i32, i32) {
    %c0_i32 = arith.constant 0 : i32
    %c0_i32_0 = arith.constant 0 : i32
    return %c0_i32, %arg1 : i32, i32
  }
  func.func @transform_1(%arg0: i32, %arg1: i32) -> (i32, i32) {
    %c0_i32 = arith.constant 0 : i32
    return %arg1, %arg0 : i32, i32
  }
  func.func @transform_2(%arg0: i32, %arg1: i32) -> (i32, i32) {
    %c0_i32 = arith.constant 0 : i32
    %c0_i32_0 = arith.constant 0 : i32
    %c0_i32_1 = arith.constant 0 : i32
    return %c0_i32, %c0_i32_0 : i32, i32
  }
  func.func @transform_3(%arg0: i32, %arg1: i32) -> (i32, i32) {
    %c0_i32 = arith.constant 0 : i32
    %c0_i32_0 = arith.constant 0 : i32
    return %c0_i32, %arg0 : i32, i32
  }
  func.func @transform_4(%arg0: i32, %arg1: i32) -> (i32, i32) {
    %c0_i32 = arith.constant 0 : i32
    %c0_i32_0 = arith.constant 0 : i32
    return %c0_i32, %arg0 : i32, i32
  }
}

module attributes {stable_mosaic.version = 11 : i64} {
  func.func @_mm_kernel(%arg0: i32, %arg1: i32, %arg2: memref<128x64xbf16, #tpu.memory_space<vmem>>, %arg3: memref<64x128xbf16, #tpu.memory_space<vmem>>, %arg4: memref<128x1xf32, #tpu.memory_space<vmem>>, %arg5: memref<128x128xbf16, #tpu.memory_space<vmem>>, %arg6: memref<128x128xf32, #tpu.memory_space<vmem>>) attributes {dimension_semantics = [#tpu.dimension_semantics<parallel>, #tpu.dimension_semantics<arbitrary>], iteration_bounds = array<i64: 1, 1>, scalar_prefetch = 0 : i64, scratch_operands = 1 : i64, tpu.core_type = #tpu.core_type<tc>, window_params = [{transform_indices = @transform_0, window_bounds = array<i64: 128, 64>}, {transform_indices = @transform_1, window_bounds = array<i64: 64, 128>}, {pipeline_mode = #tpu.pipeline_mode<synchronous>, transform_indices = @transform_2, window_bounds = array<i64: 128, 1>}, {transform_indices = @transform_3, window_bounds = array<i64: 128, 128>}]} {
    %c0_i32 = arith.constant 0 : i32
    %0 = arith.cmpi eq, %arg1, %c0_i32 : i32
    %1 = arith.extui %0 : i1 to i32
    %c0_i32_0 = arith.constant 0 : i32
    %2 = arith.cmpi ne, %1, %c0_i32_0 : i32
    scf.if %2 {
      %cst_10 = arith.constant 0.000000e+00 : f32
      %12 = vector.broadcast %cst_10 : f32 to vector<128x128xf32>
      %c0_11 = arith.constant 0 : index
      %c0_12 = arith.constant 0 : index
      %13 = vector.load %arg6[%c0_11, %c0_12] : memref<128x128xf32, #tpu.memory_space<vmem>>, vector<128x128xf32>
      tpu.vector_store %arg6[%c0_11, %c0_12], %12 {strides = array<i32>} : memref<128x128xf32, #tpu.memory_space<vmem>>, vector<128x128xf32>,
    } else {
    }
    %c0 = arith.constant 0 : index
    %c0_1 = arith.constant 0 : index
    %3 = vector.load %arg6[%c0, %c0_1] : memref<128x128xf32, #tpu.memory_space<vmem>>, vector<128x128xf32>
    %c0_2 = arith.constant 0 : index
    %c0_3 = arith.constant 0 : index
    %4 = vector.load %arg2[%c0_2, %c0_3] : memref<128x64xbf16, #tpu.memory_space<vmem>>, vector<128x64xbf16>
    %c0_4 = arith.constant 0 : index
    %c0_5 = arith.constant 0 : index
    %5 = vector.load %arg3[%c0_4, %c0_5] : memref<64x128xbf16, #tpu.memory_space<vmem>>, vector<64x128xbf16>
    %cst = arith.constant dense<0.000000e+00> : vector<128x128xf32>
    %6 = tpu.matmul %4, %5, %cst {dimension_numbers = #tpu.dot_dimension_numbers<[1], [0], [0], [1], [0, 0, 1, 1], [], []>} : vector<128x64xbf16>, vector<64x128xbf16>, vector<128x128xf32> -> vector<128x128xf32>
    %7 = arith.addf %3, %6 : vector<128x128xf32>
    %c0_6 = arith.constant 0 : index
    %c0_7 = arith.constant 0 : index
    %8 = vector.load %arg6[%c0_6, %c0_7] : memref<128x128xf32, #tpu.memory_space<vmem>>, vector<128x128xf32>
    tpu.vector_store %arg6[%c0_6, %c0_7], %7 {strides = array<i32>} : memref<128x128xf32, #tpu.memory_space<vmem>>, vector<128x128xf32>,
    %c0_i32_8 = arith.constant 0 : i32
    %9 = arith.cmpi eq, %arg1, %c0_i32_8 : i32
    %10 = arith.extui %9 : i1 to i32
    %c0_i32_9 = arith.constant 0 : i32
    %11 = arith.cmpi ne, %10, %c0_i32_9 : i32
    scf.if %11 {
      %c0_10 = arith.constant 0 : index
      %c0_11 = arith.constant 0 : index
      %12 = vector.load %arg6[%c0_10, %c0_11] : memref<128x128xf32, #tpu.memory_space<vmem>>, vector<128x128xf32>
      %c0_12 = arith.constant 0 : index
      %c0_13 = arith.constant 0 : index
      %13 = vector.load %arg4[%c0_12, %c0_13] : memref<128x1xf32, #tpu.memory_space<vmem>>, vector<128x1xf32>
      %14 = vector.broadcast %13 : vector<128x1xf32> to vector<128x128xf32>
      %15 = arith.addf %12, %14 : vector<128x128xf32>
      %16 = arith.truncf %15 : vector<128x128xf32> to vector<128x128xbf16>
      %c0_14 = arith.constant 0 : index
      %c0_15 = arith.constant 0 : index
      %17 = vector.load %arg5[%c0_14, %c0_15] : memref<128x128xbf16, #tpu.memory_space<vmem>>, vector<128x128xbf16>
      tpu.vector_store %arg5[%c0_14, %c0_15], %16 {strides = array<i32>} : memref<128x128xbf16, #tpu.memory_space<vmem>>, vector<128x128xbf16>,
    } else {
    }
    return
  }
  func.func @transform_0(%arg0: i32, %arg1: i32) -> (i32, i32) {
    %c0_i32 = arith.constant 0 : i32
    %c0_i32_0 = arith.constant 0 : i32
    return %c0_i32, %arg1 : i32, i32
  }
  func.func @transform_1(%arg0: i32, %arg1: i32) -> (i32, i32) {
    %c0_i32 = arith.constant 0 : i32
    return %arg1, %arg0 : i32, i32
  }
  func.func @transform_2(%arg0: i32, %arg1: i32) -> (i32, i32) {
    %c0_i32 = arith.constant 0 : i32
    %c0_i32_0 = arith.constant 0 : i32
    %c0_i32_1 = arith.constant 0 : i32
    return %c0_i32, %c0_i32_0 : i32, i32
  }
  func.func @transform_3(%arg0: i32, %arg1: i32) -> (i32, i32) {
    %c0_i32 = arith.constant 0 : i32
    %c0_i32_0 = arith.constant 0 : i32
    return %c0_i32, %arg0 : i32, i32
  }
}

module attributes {stable_mosaic.version = 11 : i64} {
  func.func @_mm_kernel(%arg0: i32, %arg1: i32, %arg2: memref<32x128xbf16, #tpu.memory_space<vmem>>, %arg3: memref<128x128xbf16, #tpu.memory_space<vmem>>, %arg4: memref<32x1xf32, #tpu.memory_space<vmem>>, %arg5: memref<32x128xbf16, #tpu.memory_space<vmem>>, %arg6: memref<32x128xf32, #tpu.memory_space<vmem>>) attributes {dimension_semantics = [#tpu.dimension_semantics<parallel>, #tpu.dimension_semantics<arbitrary>], iteration_bounds = array<i64: 1, 1>, scalar_prefetch = 0 : i64, scratch_operands = 1 : i64, tpu.core_type = #tpu.core_type<tc>, window_params = [{transform_indices = @transform_0, window_bounds = array<i64: 32, 128>}, {transform_indices = @transform_1, window_bounds = array<i64: 128, 128>}, {pipeline_mode = #tpu.pipeline_mode<synchronous>, transform_indices = @transform_2, window_bounds = array<i64: 32, 1>}, {transform_indices = @transform_3, window_bounds = array<i64: 32, 128>}]} {
    %c0_i32 = arith.constant 0 : i32
    %0 = arith.cmpi eq, %arg1, %c0_i32 : i32
    %1 = arith.extui %0 : i1 to i32
    %c0_i32_0 = arith.constant 0 : i32
    %2 = arith.cmpi ne, %1, %c0_i32_0 : i32
    scf.if %2 {
      %cst_10 = arith.constant 0.000000e+00 : f32
      %12 = vector.broadcast %cst_10 : f32 to vector<32x128xf32>
      %c0_11 = arith.constant 0 : index
      %c0_12 = arith.constant 0 : index
      %13 = vector.load %arg6[%c0_11, %c0_12] : memref<32x128xf32, #tpu.memory_space<vmem>>, vector<32x128xf32>
      tpu.vector_store %arg6[%c0_11, %c0_12], %12 {strides = array<i32>} : memref<32x128xf32, #tpu.memory_space<vmem>>, vector<32x128xf32>,
    } else {
    }
    %c0 = arith.constant 0 : index
    %c0_1 = arith.constant 0 : index
    %3 = vector.load %arg6[%c0, %c0_1] : memref<32x128xf32, #tpu.memory_space<vmem>>, vector<32x128xf32>
    %c0_2 = arith.constant 0 : index
    %c0_3 = arith.constant 0 : index
    %4 = vector.load %arg2[%c0_2, %c0_3] : memref<32x128xbf16, #tpu.memory_space<vmem>>, vector<32x128xbf16>
    %c0_4 = arith.constant 0 : index
    %c0_5 = arith.constant 0 : index
    %5 = vector.load %arg3[%c0_4, %c0_5] : memref<128x128xbf16, #tpu.memory_space<vmem>>, vector<128x128xbf16>
    %cst = arith.constant dense<0.000000e+00> : vector<32x128xf32>
    %6 = tpu.matmul %4, %5, %cst {dimension_numbers = #tpu.dot_dimension_numbers<[1], [0], [0], [1], [0, 0, 1, 1], [], []>} : vector<32x128xbf16>, vector<128x128xbf16>, vector<32x128xf32> -> vector<32x128xf32>
    %7 = arith.addf %3, %6 : vector<32x128xf32>
    %c0_6 = arith.constant 0 : index
    %c0_7 = arith.constant 0 : index
    %8 = vector.load %arg6[%c0_6, %c0_7] : memref<32x128xf32, #tpu.memory_space<vmem>>, vector<32x128xf32>
    tpu.vector_store %arg6[%c0_6, %c0_7], %7 {strides = array<i32>} : memref<32x128xf32, #tpu.memory_space<vmem>>, vector<32x128xf32>,
    %c0_i32_8 = arith.constant 0 : i32
    %9 = arith.cmpi eq, %arg1, %c0_i32_8 : i32
    %10 = arith.extui %9 : i1 to i32
    %c0_i32_9 = arith.constant 0 : i32
    %11 = arith.cmpi ne, %10, %c0_i32_9 : i32
    scf.if %11 {
      %c0_10 = arith.constant 0 : index
      %c0_11 = arith.constant 0 : index
      %12 = vector.load %arg6[%c0_10, %c0_11] : memref<32x128xf32, #tpu.memory_space<vmem>>, vector<32x128xf32>
      %c0_12 = arith.constant 0 : index
      %c0_13 = arith.constant 0 : index
      %13 = vector.load %arg4[%c0_12, %c0_13] : memref<32x1xf32, #tpu.memory_space<vmem>>, vector<32x1xf32>
      %14 = vector.broadcast %13 : vector<32x1xf32> to vector<32x128xf32>
      %15 = arith.addf %12, %14 : vector<32x128xf32>
      %cst_14 = arith.constant 0.000000e+00 : f32
      %16 = vector.broadcast %cst_14 : f32 to vector<32x128xf32>
      %17 = arith.maximumf %15, %16 : vector<32x128xf32>
      %18 = arith.truncf %17 : vector<32x128xf32> to vector<32x128xbf16>
      %c0_15 = arith.constant 0 : index
      %c0_16 = arith.constant 0 : index
      %19 = vector.load %arg5[%c0_15, %c0_16] : memref<32x128xbf16, #tpu.memory_space<vmem>>, vector<32x128xbf16>
      tpu.vector_store %arg5[%c0_15, %c0_16], %18 {strides = array<i32>} : memref<32x128xbf16, #tpu.memory_space<vmem>>, vector<32x128xbf16>,
    } else {
    }
    return
  }
  func.func @transform_0(%arg0: i32, %arg1: i32) -> (i32, i32) {
    %c0_i32 = arith.constant 0 : i32
    %c0_i32_0 = arith.constant 0 : i32
    return %c0_i32, %arg1 : i32, i32
  }
  func.func @transform_1(%arg0: i32, %arg1: i32) -> (i32, i32) {
    %c0_i32 = arith.constant 0 : i32
    return %arg1, %arg0 : i32, i32
  }
  func.func @transform_2(%arg0: i32, %arg1: i32) -> (i32, i32) {
    %c0_i32 = arith.constant 0 : i32
    %c0_i32_0 = arith.constant 0 : i32
    %c0_i32_1 = arith.constant 0 : i32
    return %c0_i32, %c0_i32_0 : i32, i32
  }
  func.func @transform_3(%arg0: i32, %arg1: i32) -> (i32, i32) {
    %c0_i32 = arith.constant 0 : i32
    %c0_i32_0 = arith.constant 0 : i32
    return %c0_i32, %arg0 : i32, i32
  }
}

module attributes {stable_mosaic.version = 11 : i64} {
  func.func @_mm_kernel(%arg0: i32, %arg1: i32, %arg2: memref<64x128xbf16, #tpu.memory_space<vmem>>, %arg3: memref<128x128xbf16, #tpu.memory_space<vmem>>, %arg4: memref<64x1xf32, #tpu.memory_space<vmem>>, %arg5: memref<64x128xbf16, #tpu.memory_space<vmem>>, %arg6: memref<64x128xf32, #tpu.memory_space<vmem>>) attributes {dimension_semantics = [#tpu.dimension_semantics<parallel>, #tpu.dimension_semantics<arbitrary>], iteration_bounds = array<i64: 1, 1>, scalar_prefetch = 0 : i64, scratch_operands = 1 : i64, tpu.core_type = #tpu.core_type<tc>, window_params = [{transform_indices = @transform_0, window_bounds = array<i64: 64, 128>}, {transform_indices = @transform_1, window_bounds = array<i64: 128, 128>}, {pipeline_mode = #tpu.pipeline_mode<synchronous>, transform_indices = @transform_2, window_bounds = array<i64: 64, 1>}, {transform_indices = @transform_3, window_bounds = array<i64: 64, 128>}]} {
    %c0_i32 = arith.constant 0 : i32
    %0 = arith.cmpi eq, %arg1, %c0_i32 : i32
    %1 = arith.extui %0 : i1 to i32
    %c0_i32_0 = arith.constant 0 : i32
    %2 = arith.cmpi ne, %1, %c0_i32_0 : i32
    scf.if %2 {
      %cst_10 = arith.constant 0.000000e+00 : f32
      %12 = vector.broadcast %cst_10 : f32 to vector<64x128xf32>
      %c0_11 = arith.constant 0 : index
      %c0_12 = arith.constant 0 : index
      %13 = vector.load %arg6[%c0_11, %c0_12] : memref<64x128xf32, #tpu.memory_space<vmem>>, vector<64x128xf32>
      tpu.vector_store %arg6[%c0_11, %c0_12], %12 {strides = array<i32>} : memref<64x128xf32, #tpu.memory_space<vmem>>, vector<64x128xf32>,
    } else {
    }
    %c0 = arith.constant 0 : index
    %c0_1 = arith.constant 0 : index
    %3 = vector.load %arg6[%c0, %c0_1] : memref<64x128xf32, #tpu.memory_space<vmem>>, vector<64x128xf32>
    %c0_2 = arith.constant 0 : index
    %c0_3 = arith.constant 0 : index
    %4 = vector.load %arg2[%c0_2, %c0_3] : memref<64x128xbf16, #tpu.memory_space<vmem>>, vector<64x128xbf16>
    %c0_4 = arith.constant 0 : index
    %c0_5 = arith.constant 0 : index
    %5 = vector.load %arg3[%c0_4, %c0_5] : memref<128x128xbf16, #tpu.memory_space<vmem>>, vector<128x128xbf16>
    %cst = arith.constant dense<0.000000e+00> : vector<64x128xf32>
    %6 = tpu.matmul %4, %5, %cst {dimension_numbers = #tpu.dot_dimension_numbers<[1], [0], [0], [1], [0, 0, 1, 1], [], []>} : vector<64x128xbf16>, vector<128x128xbf16>, vector<64x128xf32> -> vector<64x128xf32>
    %7 = arith.addf %3, %6 : vector<64x128xf32>
    %c0_6 = arith.constant 0 : index
    %c0_7 = arith.constant 0 : index
    %8 = vector.load %arg6[%c0_6, %c0_7] : memref<64x128xf32, #tpu.memory_space<vmem>>, vector<64x128xf32>
    tpu.vector_store %arg6[%c0_6, %c0_7], %7 {strides = array<i32>} : memref<64x128xf32, #tpu.memory_space<vmem>>, vector<64x128xf32>,
    %c0_i32_8 = arith.constant 0 : i32
    %9 = arith.cmpi eq, %arg1, %c0_i32_8 : i32
    %10 = arith.extui %9 : i1 to i32
    %c0_i32_9 = arith.constant 0 : i32
    %11 = arith.cmpi ne, %10, %c0_i32_9 : i32
    scf.if %11 {
      %c0_10 = arith.constant 0 : index
      %c0_11 = arith.constant 0 : index
      %12 = vector.load %arg6[%c0_10, %c0_11] : memref<64x128xf32, #tpu.memory_space<vmem>>, vector<64x128xf32>
      %c0_12 = arith.constant 0 : index
      %c0_13 = arith.constant 0 : index
      %13 = vector.load %arg4[%c0_12, %c0_13] : memref<64x1xf32, #tpu.memory_space<vmem>>, vector<64x1xf32>
      %14 = vector.broadcast %13 : vector<64x1xf32> to vector<64x128xf32>
      %15 = arith.addf %12, %14 : vector<64x128xf32>
      %cst_14 = arith.constant 0.000000e+00 : f32
      %16 = vector.broadcast %cst_14 : f32 to vector<64x128xf32>
      %17 = arith.maximumf %15, %16 : vector<64x128xf32>
      %18 = arith.truncf %17 : vector<64x128xf32> to vector<64x128xbf16>
      %c0_15 = arith.constant 0 : index
      %c0_16 = arith.constant 0 : index
      %19 = vector.load %arg5[%c0_15, %c0_16] : memref<64x128xbf16, #tpu.memory_space<vmem>>, vector<64x128xbf16>
      tpu.vector_store %arg5[%c0_15, %c0_16], %18 {strides = array<i32>} : memref<64x128xbf16, #tpu.memory_space<vmem>>, vector<64x128xbf16>,
    } else {
    }
    return
  }
  func.func @transform_0(%arg0: i32, %arg1: i32) -> (i32, i32) {
    %c0_i32 = arith.constant 0 : i32
    %c0_i32_0 = arith.constant 0 : i32
    return %c0_i32, %arg1 : i32, i32
  }
  func.func @transform_1(%arg0: i32, %arg1: i32) -> (i32, i32) {
    %c0_i32 = arith.constant 0 : i32
    return %arg1, %arg0 : i32, i32
  }
  func.func @transform_2(%arg0: i32, %arg1: i32) -> (i32, i32) {
    %c0_i32 = arith.constant 0 : i32
    %c0_i32_0 = arith.constant 0 : i32
    %c0_i32_1 = arith.constant 0 : i32
    return %c0_i32, %c0_i32_0 : i32, i32
  }
  func.func @transform_3(%arg0: i32, %arg1: i32) -> (i32, i32) {
    %c0_i32 = arith.constant 0 : i32
    %c0_i32_0 = arith.constant 0 : i32
    return %c0_i32, %arg0 : i32, i32
  }
}

module attributes {stable_mosaic.version = 11 : i64} {
  func.func @_mm_kernel(%arg0: i32, %arg1: i32, %arg2: memref<256x128xbf16, #tpu.memory_space<vmem>>, %arg3: memref<128x128xbf16, #tpu.memory_space<vmem>>, %arg4: memref<256x1xf32, #tpu.memory_space<vmem>>, %arg5: memref<256x128xbf16, #tpu.memory_space<vmem>>, %arg6: memref<256x128xf32, #tpu.memory_space<vmem>>) attributes {dimension_semantics = [#tpu.dimension_semantics<parallel>, #tpu.dimension_semantics<arbitrary>], iteration_bounds = array<i64: 1, 1>, scalar_prefetch = 0 : i64, scratch_operands = 1 : i64, tpu.core_type = #tpu.core_type<tc>, window_params = [{transform_indices = @transform_0, window_bounds = array<i64: 256, 128>}, {transform_indices = @transform_1, window_bounds = array<i64: 128, 128>}, {pipeline_mode = #tpu.pipeline_mode<synchronous>, transform_indices = @transform_2, window_bounds = array<i64: 256, 1>}, {transform_indices = @transform_3, window_bounds = array<i64: 256, 128>}]} {
    %c0_i32 = arith.constant 0 : i32
    %0 = arith.cmpi eq, %arg1, %c0_i32 : i32
    %1 = arith.extui %0 : i1 to i32
    %c0_i32_0 = arith.constant 0 : i32
    %2 = arith.cmpi ne, %1, %c0_i32_0 : i32
    scf.if %2 {
      %cst_10 = arith.constant 0.000000e+00 : f32
      %12 = vector.broadcast %cst_10 : f32 to vector<256x128xf32>
      %c0_11 = arith.constant 0 : index
      %c0_12 = arith.constant 0 : index
      %13 = vector.load %arg6[%c0_11, %c0_12] : memref<256x128xf32, #tpu.memory_space<vmem>>, vector<256x128xf32>
      tpu.vector_store %arg6[%c0_11, %c0_12], %12 {strides = array<i32>} : memref<256x128xf32, #tpu.memory_space<vmem>>, vector<256x128xf32>,
    } else {
    }
    %c0 = arith.constant 0 : index
    %c0_1 = arith.constant 0 : index
    %3 = vector.load %arg6[%c0, %c0_1] : memref<256x128xf32, #tpu.memory_space<vmem>>, vector<256x128xf32>
    %c0_2 = arith.constant 0 : index
    %c0_3 = arith.constant 0 : index
    %4 = vector.load %arg2[%c0_2, %c0_3] : memref<256x128xbf16, #tpu.memory_space<vmem>>, vector<256x128xbf16>
    %c0_4 = arith.constant 0 : index
    %c0_5 = arith.constant 0 : index
    %5 = vector.load %arg3[%c0_4, %c0_5] : memref<128x128xbf16, #tpu.memory_space<vmem>>, vector<128x128xbf16>
    %cst = arith.constant dense<0.000000e+00> : vector<256x128xf32>
    %6 = tpu.matmul %4, %5, %cst {dimension_numbers = #tpu.dot_dimension_numbers<[1], [0], [0], [1], [0, 0, 1, 1], [], []>} : vector<256x128xbf16>, vector<128x128xbf16>, vector<256x128xf32> -> vector<256x128xf32>
    %7 = arith.addf %3, %6 : vector<256x128xf32>
    %c0_6 = arith.constant 0 : index
    %c0_7 = arith.constant 0 : index
    %8 = vector.load %arg6[%c0_6, %c0_7] : memref<256x128xf32, #tpu.memory_space<vmem>>, vector<256x128xf32>
    tpu.vector_store %arg6[%c0_6, %c0_7], %7 {strides = array<i32>} : memref<256x128xf32, #tpu.memory_space<vmem>>, vector<256x128xf32>,
    %c0_i32_8 = arith.constant 0 : i32
    %9 = arith.cmpi eq, %arg1, %c0_i32_8 : i32
    %10 = arith.extui %9 : i1 to i32
    %c0_i32_9 = arith.constant 0 : i32
    %11 = arith.cmpi ne, %10, %c0_i32_9 : i32
    scf.if %11 {
      %c0_10 = arith.constant 0 : index
      %c0_11 = arith.constant 0 : index
      %12 = vector.load %arg6[%c0_10, %c0_11] : memref<256x128xf32, #tpu.memory_space<vmem>>, vector<256x128xf32>
      %c0_12 = arith.constant 0 : index
      %c0_13 = arith.constant 0 : index
      %13 = vector.load %arg4[%c0_12, %c0_13] : memref<256x1xf32, #tpu.memory_space<vmem>>, vector<256x1xf32>
      %14 = vector.broadcast %13 : vector<256x1xf32> to vector<256x128xf32>
      %15 = arith.addf %12, %14 : vector<256x128xf32>
      %16 = arith.truncf %15 : vector<256x128xf32> to vector<256x128xbf16>
      %c0_14 = arith.constant 0 : index
      %c0_15 = arith.constant 0 : index
      %17 = vector.load %arg5[%c0_14, %c0_15] : memref<256x128xbf16, #tpu.memory_space<vmem>>, vector<256x128xbf16>
      tpu.vector_store %arg5[%c0_14, %c0_15], %16 {strides = array<i32>} : memref<256x128xbf16, #tpu.memory_space<vmem>>, vector<256x128xbf16>,
    } else {
    }
    return
  }
  func.func @transform_0(%arg0: i32, %arg1: i32) -> (i32, i32) {
    %c0_i32 = arith.constant 0 : i32
    %c0_i32_0 = arith.constant 0 : i32
    return %c0_i32, %arg1 : i32, i32
  }
  func.func @transform_1(%arg0: i32, %arg1: i32) -> (i32, i32) {
    %c0_i32 = arith.constant 0 : i32
    return %arg1, %arg0 : i32, i32
  }
  func.func @transform_2(%arg0: i32, %arg1: i32) -> (i32, i32) {
    %c0_i32 = arith.constant 0 : i32
    %c0_i32_0 = arith.constant 0 : i32
    %c0_i32_1 = arith.constant 0 : i32
    return %c0_i32, %c0_i32_0 : i32, i32
  }
  func.func @transform_3(%arg0: i32, %arg1: i32) -> (i32, i32) {
    %c0_i32 = arith.constant 0 : i32
    %c0_i32_0 = arith.constant 0 : i32
    return %c0_i32, %arg0 : i32, i32
  }
}

module attributes {stable_mosaic.version = 11 : i64} {
  func.func @_mm_kernel(%arg0: i32, %arg1: i32, %arg2: memref<64x576xbf16, #tpu.memory_space<vmem>>, %arg3: memref<576x128xbf16, #tpu.memory_space<vmem>>, %arg4: memref<64x1xf32, #tpu.memory_space<vmem>>, %arg5: memref<64x128xbf16, #tpu.memory_space<vmem>>, %arg6: memref<64x128xf32, #tpu.memory_space<vmem>>) attributes {dimension_semantics = [#tpu.dimension_semantics<parallel>, #tpu.dimension_semantics<arbitrary>], iteration_bounds = array<i64: 1, 1>, scalar_prefetch = 0 : i64, scratch_operands = 1 : i64, tpu.core_type = #tpu.core_type<tc>, window_params = [{transform_indices = @transform_0, window_bounds = array<i64: 64, 576>}, {transform_indices = @transform_1, window_bounds = array<i64: 576, 128>}, {pipeline_mode = #tpu.pipeline_mode<synchronous>, transform_indices = @transform_2, window_bounds = array<i64: 64, 1>}, {transform_indices = @transform_3, window_bounds = array<i64: 64, 128>}]} {
    %c0_i32 = arith.constant 0 : i32
    %0 = arith.cmpi eq, %arg1, %c0_i32 : i32
    %1 = arith.extui %0 : i1 to i32
    %c0_i32_0 = arith.constant 0 : i32
    %2 = arith.cmpi ne, %1, %c0_i32_0 : i32
    scf.if %2 {
      %cst_10 = arith.constant 0.000000e+00 : f32
      %12 = vector.broadcast %cst_10 : f32 to vector<64x128xf32>
      %c0_11 = arith.constant 0 : index
      %c0_12 = arith.constant 0 : index
      %13 = vector.load %arg6[%c0_11, %c0_12] : memref<64x128xf32, #tpu.memory_space<vmem>>, vector<64x128xf32>
      tpu.vector_store %arg6[%c0_11, %c0_12], %12 {strides = array<i32>} : memref<64x128xf32, #tpu.memory_space<vmem>>, vector<64x128xf32>,
    } else {
    }
    %c0 = arith.constant 0 : index
    %c0_1 = arith.constant 0 : index
    %3 = vector.load %arg6[%c0, %c0_1] : memref<64x128xf32, #tpu.memory_space<vmem>>, vector<64x128xf32>
    %c0_2 = arith.constant 0 : index
    %c0_3 = arith.constant 0 : index
    %4 = vector.load %arg2[%c0_2, %c0_3] : memref<64x576xbf16, #tpu.memory_space<vmem>>, vector<64x576xbf16>
    %c0_4 = arith.constant 0 : index
    %c0_5 = arith.constant 0 : index
    %5 = vector.load %arg3[%c0_4, %c0_5] : memref<576x128xbf16, #tpu.memory_space<vmem>>, vector<576x128xbf16>
    %cst = arith.constant dense<0.000000e+00> : vector<64x128xf32>
    %6 = tpu.matmul %4, %5, %cst {dimension_numbers = #tpu.dot_dimension_numbers<[1], [0], [0], [1], [0, 0, 1, 1], [], []>} : vector<64x576xbf16>, vector<576x128xbf16>, vector<64x128xf32> -> vector<64x128xf32>
    %7 = arith.addf %3, %6 : vector<64x128xf32>
    %c0_6 = arith.constant 0 : index
    %c0_7 = arith.constant 0 : index
    %8 = vector.load %arg6[%c0_6, %c0_7] : memref<64x128xf32, #tpu.memory_space<vmem>>, vector<64x128xf32>
    tpu.vector_store %arg6[%c0_6, %c0_7], %7 {strides = array<i32>} : memref<64x128xf32, #tpu.memory_space<vmem>>, vector<64x128xf32>,
    %c0_i32_8 = arith.constant 0 : i32
    %9 = arith.cmpi eq, %arg1, %c0_i32_8 : i32
    %10 = arith.extui %9 : i1 to i32
    %c0_i32_9 = arith.constant 0 : i32
    %11 = arith.cmpi ne, %10, %c0_i32_9 : i32
    scf.if %11 {
      %c0_10 = arith.constant 0 : index
      %c0_11 = arith.constant 0 : index
      %12 = vector.load %arg6[%c0_10, %c0_11] : memref<64x128xf32, #tpu.memory_space<vmem>>, vector<64x128xf32>
      %c0_12 = arith.constant 0 : index
      %c0_13 = arith.constant 0 : index
      %13 = vector.load %arg4[%c0_12, %c0_13] : memref<64x1xf32, #tpu.memory_space<vmem>>, vector<64x1xf32>
      %14 = vector.broadcast %13 : vector<64x1xf32> to vector<64x128xf32>
      %15 = arith.addf %12, %14 : vector<64x128xf32>
      %cst_14 = arith.constant 0.000000e+00 : f32
      %16 = vector.broadcast %cst_14 : f32 to vector<64x128xf32>
      %17 = arith.maximumf %15, %16 : vector<64x128xf32>
      %18 = arith.truncf %17 : vector<64x128xf32> to vector<64x128xbf16>
      %c0_15 = arith.constant 0 : index
      %c0_16 = arith.constant 0 : index
      %19 = vector.load %arg5[%c0_15, %c0_16] : memref<64x128xbf16, #tpu.memory_space<vmem>>, vector<64x128xbf16>
      tpu.vector_store %arg5[%c0_15, %c0_16], %18 {strides = array<i32>} : memref<64x128xbf16, #tpu.memory_space<vmem>>, vector<64x128xbf16>,
    } else {
    }
    return
  }
  func.func @transform_0(%arg0: i32, %arg1: i32) -> (i32, i32) {
    %c0_i32 = arith.constant 0 : i32
    %c0_i32_0 = arith.constant 0 : i32
    return %c0_i32, %arg1 : i32, i32
  }
  func.func @transform_1(%arg0: i32, %arg1: i32) -> (i32, i32) {
    %c0_i32 = arith.constant 0 : i32
    return %arg1, %arg0 : i32, i32
  }
  func.func @transform_2(%arg0: i32, %arg1: i32) -> (i32, i32) {
    %c0_i32 = arith.constant 0 : i32
    %c0_i32_0 = arith.constant 0 : i32
    %c0_i32_1 = arith.constant 0 : i32
    return %c0_i32, %c0_i32_0 : i32, i32
  }
  func.func @transform_3(%arg0: i32, %arg1: i32) -> (i32, i32) {
    %c0_i32 = arith.constant 0 : i32
    %c0_i32_0 = arith.constant 0 : i32
    return %c0_i32, %arg0 : i32, i32
  }
}

module attributes {stable_mosaic.version = 11 : i64} {
  func.func @_mm_kernel(%arg0: i32, %arg1: i32, %arg2: memref<64x256xbf16, #tpu.memory_space<vmem>>, %arg3: memref<256x128xbf16, #tpu.memory_space<vmem>>, %arg4: memref<64x1xf32, #tpu.memory_space<vmem>>, %arg5: memref<64x128xbf16, #tpu.memory_space<vmem>>, %arg6: memref<64x128xf32, #tpu.memory_space<vmem>>) attributes {dimension_semantics = [#tpu.dimension_semantics<parallel>, #tpu.dimension_semantics<arbitrary>], iteration_bounds = array<i64: 1, 1>, scalar_prefetch = 0 : i64, scratch_operands = 1 : i64, tpu.core_type = #tpu.core_type<tc>, window_params = [{transform_indices = @transform_0, window_bounds = array<i64: 64, 256>}, {transform_indices = @transform_1, window_bounds = array<i64: 256, 128>}, {pipeline_mode = #tpu.pipeline_mode<synchronous>, transform_indices = @transform_2, window_bounds = array<i64: 64, 1>}, {transform_indices = @transform_3, window_bounds = array<i64: 64, 128>}]} {
    %c0_i32 = arith.constant 0 : i32
    %0 = arith.cmpi eq, %arg1, %c0_i32 : i32
    %1 = arith.extui %0 : i1 to i32
    %c0_i32_0 = arith.constant 0 : i32
    %2 = arith.cmpi ne, %1, %c0_i32_0 : i32
    scf.if %2 {
      %cst_10 = arith.constant 0.000000e+00 : f32
      %12 = vector.broadcast %cst_10 : f32 to vector<64x128xf32>
      %c0_11 = arith.constant 0 : index
      %c0_12 = arith.constant 0 : index
      %13 = vector.load %arg6[%c0_11, %c0_12] : memref<64x128xf32, #tpu.memory_space<vmem>>, vector<64x128xf32>
      tpu.vector_store %arg6[%c0_11, %c0_12], %12 {strides = array<i32>} : memref<64x128xf32, #tpu.memory_space<vmem>>, vector<64x128xf32>,
    } else {
    }
    %c0 = arith.constant 0 : index
    %c0_1 = arith.constant 0 : index
    %3 = vector.load %arg6[%c0, %c0_1] : memref<64x128xf32, #tpu.memory_space<vmem>>, vector<64x128xf32>
    %c0_2 = arith.constant 0 : index
    %c0_3 = arith.constant 0 : index
    %4 = vector.load %arg2[%c0_2, %c0_3] : memref<64x256xbf16, #tpu.memory_space<vmem>>, vector<64x256xbf16>
    %c0_4 = arith.constant 0 : index
    %c0_5 = arith.constant 0 : index
    %5 = vector.load %arg3[%c0_4, %c0_5] : memref<256x128xbf16, #tpu.memory_space<vmem>>, vector<256x128xbf16>
    %cst = arith.constant dense<0.000000e+00> : vector<64x128xf32>
    %6 = tpu.matmul %4, %5, %cst {dimension_numbers = #tpu.dot_dimension_numbers<[1], [0], [0], [1], [0, 0, 1, 1], [], []>} : vector<64x256xbf16>, vector<256x128xbf16>, vector<64x128xf32> -> vector<64x128xf32>
    %7 = arith.addf %3, %6 : vector<64x128xf32>
    %c0_6 = arith.constant 0 : index
    %c0_7 = arith.constant 0 : index
    %8 = vector.load %arg6[%c0_6, %c0_7] : memref<64x128xf32, #tpu.memory_space<vmem>>, vector<64x128xf32>
    tpu.vector_store %arg6[%c0_6, %c0_7], %7 {strides = array<i32>} : memref<64x128xf32, #tpu.memory_space<vmem>>, vector<64x128xf32>,
    %c0_i32_8 = arith.constant 0 : i32
    %9 = arith.cmpi eq, %arg1, %c0_i32_8 : i32
    %10 = arith.extui %9 : i1 to i32
    %c0_i32_9 = arith.constant 0 : i32
    %11 = arith.cmpi ne, %10, %c0_i32_9 : i32
    scf.if %11 {
      %c0_10 = arith.constant 0 : index
      %c0_11 = arith.constant 0 : index
      %12 = vector.load %arg6[%c0_10, %c0_11] : memref<64x128xf32, #tpu.memory_space<vmem>>, vector<64x128xf32>
      %c0_12 = arith.constant 0 : index
      %c0_13 = arith.constant 0 : index
      %13 = vector.load %arg4[%c0_12, %c0_13] : memref<64x1xf32, #tpu.memory_space<vmem>>, vector<64x1xf32>
      %14 = vector.broadcast %13 : vector<64x1xf32> to vector<64x128xf32>
      %15 = arith.addf %12, %14 : vector<64x128xf32>
      %cst_14 = arith.constant 0.000000e+00 : f32
      %16 = vector.broadcast %cst_14 : f32 to vector<64x128xf32>
      %17 = arith.maximumf %15, %16 : vector<64x128xf32>
      %18 = arith.truncf %17 : vector<64x128xf32> to vector<64x128xbf16>
      %c0_15 = arith.constant 0 : index
      %c0_16 = arith.constant 0 : index
      %19 = vector.load %arg5[%c0_15, %c0_16] : memref<64x128xbf16, #tpu.memory_space<vmem>>, vector<64x128xbf16>
      tpu.vector_store %arg5[%c0_15, %c0_16], %18 {strides = array<i32>} : memref<64x128xbf16, #tpu.memory_space<vmem>>, vector<64x128xbf16>,
    } else {
    }
    return
  }
  func.func @transform_0(%arg0: i32, %arg1: i32) -> (i32, i32) {
    %c0_i32 = arith.constant 0 : i32
    %c0_i32_0 = arith.constant 0 : i32
    return %c0_i32, %arg1 : i32, i32
  }
  func.func @transform_1(%arg0: i32, %arg1: i32) -> (i32, i32) {
    %c0_i32 = arith.constant 0 : i32
    return %arg1, %arg0 : i32, i32
  }
  func.func @transform_2(%arg0: i32, %arg1: i32) -> (i32, i32) {
    %c0_i32 = arith.constant 0 : i32
    %c0_i32_0 = arith.constant 0 : i32
    %c0_i32_1 = arith.constant 0 : i32
    return %c0_i32, %c0_i32_0 : i32, i32
  }
  func.func @transform_3(%arg0: i32, %arg1: i32) -> (i32, i32) {
    %c0_i32 = arith.constant 0 : i32
    %c0_i32_0 = arith.constant 0 : i32
    return %c0_i32, %arg0 : i32, i32
  }
}

module attributes {stable_mosaic.version = 11 : i64} {
  func.func @_mm_kernel(%arg0: i32, %arg1: i32, %arg2: memref<256x64xbf16, #tpu.memory_space<vmem>>, %arg3: memref<64x128xbf16, #tpu.memory_space<vmem>>, %arg4: memref<256x1xf32, #tpu.memory_space<vmem>>, %arg5: memref<256x128xbf16, #tpu.memory_space<vmem>>, %arg6: memref<256x128xbf16, #tpu.memory_space<vmem>>, %arg7: memref<256x128xf32, #tpu.memory_space<vmem>>) attributes {dimension_semantics = [#tpu.dimension_semantics<parallel>, #tpu.dimension_semantics<arbitrary>], iteration_bounds = array<i64: 1, 1>, scalar_prefetch = 0 : i64, scratch_operands = 1 : i64, tpu.core_type = #tpu.core_type<tc>, window_params = [{transform_indices = @transform_0, window_bounds = array<i64: 256, 64>}, {transform_indices = @transform_1, window_bounds = array<i64: 64, 128>}, {pipeline_mode = #tpu.pipeline_mode<synchronous>, transform_indices = @transform_2, window_bounds = array<i64: 256, 1>}, {transform_indices = @transform_3, window_bounds = array<i64: 256, 128>}, {transform_indices = @transform_4, window_bounds = array<i64: 256, 128>}]} {
    %c0_i32 = arith.constant 0 : i32
    %0 = arith.cmpi eq, %arg1, %c0_i32 : i32
    %1 = arith.extui %0 : i1 to i32
    %c0_i32_0 = arith.constant 0 : i32
    %2 = arith.cmpi ne, %1, %c0_i32_0 : i32
    scf.if %2 {
      %cst_10 = arith.constant 0.000000e+00 : f32
      %12 = vector.broadcast %cst_10 : f32 to vector<256x128xf32>
      %c0_11 = arith.constant 0 : index
      %c0_12 = arith.constant 0 : index
      %13 = vector.load %arg7[%c0_11, %c0_12] : memref<256x128xf32, #tpu.memory_space<vmem>>, vector<256x128xf32>
      tpu.vector_store %arg7[%c0_11, %c0_12], %12 {strides = array<i32>} : memref<256x128xf32, #tpu.memory_space<vmem>>, vector<256x128xf32>,
    } else {
    }
    %c0 = arith.constant 0 : index
    %c0_1 = arith.constant 0 : index
    %3 = vector.load %arg7[%c0, %c0_1] : memref<256x128xf32, #tpu.memory_space<vmem>>, vector<256x128xf32>
    %c0_2 = arith.constant 0 : index
    %c0_3 = arith.constant 0 : index
    %4 = vector.load %arg2[%c0_2, %c0_3] : memref<256x64xbf16, #tpu.memory_space<vmem>>, vector<256x64xbf16>
    %c0_4 = arith.constant 0 : index
    %c0_5 = arith.constant 0 : index
    %5 = vector.load %arg3[%c0_4, %c0_5] : memref<64x128xbf16, #tpu.memory_space<vmem>>, vector<64x128xbf16>
    %cst = arith.constant dense<0.000000e+00> : vector<256x128xf32>
    %6 = tpu.matmul %4, %5, %cst {dimension_numbers = #tpu.dot_dimension_numbers<[1], [0], [0], [1], [0, 0, 1, 1], [], []>} : vector<256x64xbf16>, vector<64x128xbf16>, vector<256x128xf32> -> vector<256x128xf32>
    %7 = arith.addf %3, %6 : vector<256x128xf32>
    %c0_6 = arith.constant 0 : index
    %c0_7 = arith.constant 0 : index
    %8 = vector.load %arg7[%c0_6, %c0_7] : memref<256x128xf32, #tpu.memory_space<vmem>>, vector<256x128xf32>
    tpu.vector_store %arg7[%c0_6, %c0_7], %7 {strides = array<i32>} : memref<256x128xf32, #tpu.memory_space<vmem>>, vector<256x128xf32>,
    %c0_i32_8 = arith.constant 0 : i32
    %9 = arith.cmpi eq, %arg1, %c0_i32_8 : i32
    %10 = arith.extui %9 : i1 to i32
    %c0_i32_9 = arith.constant 0 : i32
    %11 = arith.cmpi ne, %10, %c0_i32_9 : i32
    scf.if %11 {
      %c0_10 = arith.constant 0 : index
      %c0_11 = arith.constant 0 : index
      %12 = vector.load %arg7[%c0_10, %c0_11] : memref<256x128xf32, #tpu.memory_space<vmem>>, vector<256x128xf32>
      %c0_12 = arith.constant 0 : index
      %c0_13 = arith.constant 0 : index
      %13 = vector.load %arg4[%c0_12, %c0_13] : memref<256x1xf32, #tpu.memory_space<vmem>>, vector<256x1xf32>
      %14 = vector.broadcast %13 : vector<256x1xf32> to vector<256x128xf32>
      %15 = arith.addf %12, %14 : vector<256x128xf32>
      %c0_14 = arith.constant 0 : index
      %c0_15 = arith.constant 0 : index
      %16 = vector.load %arg5[%c0_14, %c0_15] : memref<256x128xbf16, #tpu.memory_space<vmem>>, vector<256x128xbf16>
      %17 = arith.extf %16 : vector<256x128xbf16> to vector<256x128xf32>
      %18 = arith.addf %15, %17 : vector<256x128xf32>
      %cst_16 = arith.constant 0.000000e+00 : f32
      %19 = vector.broadcast %cst_16 : f32 to vector<256x128xf32>
      %20 = arith.maximumf %18, %19 : vector<256x128xf32>
      %21 = arith.truncf %20 : vector<256x128xf32> to vector<256x128xbf16>
      %c0_17 = arith.constant 0 : index
      %c0_18 = arith.constant 0 : index
      %22 = vector.load %arg6[%c0_17, %c0_18] : memref<256x128xbf16, #tpu.memory_space<vmem>>, vector<256x128xbf16>
      tpu.vector_store %arg6[%c0_17, %c0_18], %21 {strides = array<i32>} : memref<256x128xbf16, #tpu.memory_space<vmem>>, vector<256x128xbf16>,
    } else {
    }
    return
  }
  func.func @transform_0(%arg0: i32, %arg1: i32) -> (i32, i32) {
    %c0_i32 = arith.constant 0 : i32
    %c0_i32_0 = arith.constant 0 : i32
    return %c0_i32, %arg1 : i32, i32
  }
  func.func @transform_1(%arg0: i32, %arg1: i32) -> (i32, i32) {
    %c0_i32 = arith.constant 0 : i32
    return %arg1, %arg0 : i32, i32
  }
  func.func @transform_2(%arg0: i32, %arg1: i32) -> (i32, i32) {
    %c0_i32 = arith.constant 0 : i32
    %c0_i32_0 = arith.constant 0 : i32
    %c0_i32_1 = arith.constant 0 : i32
    return %c0_i32, %c0_i32_0 : i32, i32
  }
  func.func @transform_3(%arg0: i32, %arg1: i32) -> (i32, i32) {
    %c0_i32 = arith.constant 0 : i32
    %c0_i32_0 = arith.constant 0 : i32
    return %c0_i32, %arg0 : i32, i32
  }
  func.func @transform_4(%arg0: i32, %arg1: i32) -> (i32, i32) {
    %c0_i32 = arith.constant 0 : i32
    %c0_i32_0 = arith.constant 0 : i32
    return %c0_i32, %arg0 : i32, i32
  }
}

module attributes {stable_mosaic.version = 11 : i64} {
  func.func @_mm_kernel(%arg0: i32, %arg1: i32, %arg2: memref<32x512xbf16, #tpu.memory_space<vmem>>, %arg3: memref<512x128xbf16, #tpu.memory_space<vmem>>, %arg4: memref<32x1xf32, #tpu.memory_space<vmem>>, %arg5: memref<32x128xbf16, #tpu.memory_space<vmem>>, %arg6: memref<32x128xf32, #tpu.memory_space<vmem>>) attributes {dimension_semantics = [#tpu.dimension_semantics<parallel>, #tpu.dimension_semantics<arbitrary>], iteration_bounds = array<i64: 1, 5>, scalar_prefetch = 0 : i64, scratch_operands = 1 : i64, tpu.core_type = #tpu.core_type<tc>, window_params = [{transform_indices = @transform_0, window_bounds = array<i64: 32, 512>}, {transform_indices = @transform_1, window_bounds = array<i64: 512, 128>}, {pipeline_mode = #tpu.pipeline_mode<synchronous>, transform_indices = @transform_2, window_bounds = array<i64: 32, 1>}, {transform_indices = @transform_3, window_bounds = array<i64: 32, 128>}]} {
    %c0_i32 = arith.constant 0 : i32
    %0 = arith.cmpi eq, %arg1, %c0_i32 : i32
    %1 = arith.extui %0 : i1 to i32
    %c0_i32_0 = arith.constant 0 : i32
    %2 = arith.cmpi ne, %1, %c0_i32_0 : i32
    scf.if %2 {
      %cst_9 = arith.constant 0.000000e+00 : f32
      %12 = vector.broadcast %cst_9 : f32 to vector<32x128xf32>
      %c0_10 = arith.constant 0 : index
      %c0_11 = arith.constant 0 : index
      %13 = vector.load %arg6[%c0_10, %c0_11] : memref<32x128xf32, #tpu.memory_space<vmem>>, vector<32x128xf32>
      tpu.vector_store %arg6[%c0_10, %c0_11], %12 {strides = array<i32>} : memref<32x128xf32, #tpu.memory_space<vmem>>, vector<32x128xf32>,
    } else {
    }
    %c0 = arith.constant 0 : index
    %c0_1 = arith.constant 0 : index
    %3 = vector.load %arg6[%c0, %c0_1] : memref<32x128xf32, #tpu.memory_space<vmem>>, vector<32x128xf32>
    %c0_2 = arith.constant 0 : index
    %c0_3 = arith.constant 0 : index
    %4 = vector.load %arg2[%c0_2, %c0_3] : memref<32x512xbf16, #tpu.memory_space<vmem>>, vector<32x512xbf16>
    %c0_4 = arith.constant 0 : index
    %c0_5 = arith.constant 0 : index
    %5 = vector.load %arg3[%c0_4, %c0_5] : memref<512x128xbf16, #tpu.memory_space<vmem>>, vector<512x128xbf16>
    %cst = arith.constant dense<0.000000e+00> : vector<32x128xf32>
    %6 = tpu.matmul %4, %5, %cst {dimension_numbers = #tpu.dot_dimension_numbers<[1], [0], [0], [1], [0, 0, 1, 1], [], []>} : vector<32x512xbf16>, vector<512x128xbf16>, vector<32x128xf32> -> vector<32x128xf32>
    %7 = arith.addf %3, %6 : vector<32x128xf32>
    %c0_6 = arith.constant 0 : index
    %c0_7 = arith.constant 0 : index
    %8 = vector.load %arg6[%c0_6, %c0_7] : memref<32x128xf32, #tpu.memory_space<vmem>>, vector<32x128xf32>
    tpu.vector_store %arg6[%c0_6, %c0_7], %7 {strides = array<i32>} : memref<32x128xf32, #tpu.memory_space<vmem>>, vector<32x128xf32>,
    %c4_i32 = arith.constant 4 : i32
    %9 = arith.cmpi eq, %arg1, %c4_i32 : i32
    %10 = arith.extui %9 : i1 to i32
    %c0_i32_8 = arith.constant 0 : i32
    %11 = arith.cmpi ne, %10, %c0_i32_8 : i32
    scf.if %11 {
      %c0_9 = arith.constant 0 : index
      %c0_10 = arith.constant 0 : index
      %12 = vector.load %arg6[%c0_9, %c0_10] : memref<32x128xf32, #tpu.memory_space<vmem>>, vector<32x128xf32>
      %c0_11 = arith.constant 0 : index
      %c0_12 = arith.constant 0 : index
      %13 = vector.load %arg4[%c0_11, %c0_12] : memref<32x1xf32, #tpu.memory_space<vmem>>, vector<32x1xf32>
      %14 = vector.broadcast %13 : vector<32x1xf32> to vector<32x128xf32>
      %15 = arith.addf %12, %14 : vector<32x128xf32>
      %cst_13 = arith.constant 0.000000e+00 : f32
      %16 = vector.broadcast %cst_13 : f32 to vector<32x128xf32>
      %17 = arith.maximumf %15, %16 : vector<32x128xf32>
      %18 = arith.truncf %17 : vector<32x128xf32> to vector<32x128xbf16>
      %c0_14 = arith.constant 0 : index
      %c0_15 = arith.constant 0 : index
      %19 = vector.load %arg5[%c0_14, %c0_15] : memref<32x128xbf16, #tpu.memory_space<vmem>>, vector<32x128xbf16>
      tpu.vector_store %arg5[%c0_14, %c0_15], %18 {strides = array<i32>} : memref<32x128xbf16, #tpu.memory_space<vmem>>, vector<32x128xbf16>,
    } else {
    }
    return
  }
  func.func @transform_0(%arg0: i32, %arg1: i32) -> (i32, i32) {
    %c0_i32 = arith.constant 0 : i32
    %c0_i32_0 = arith.constant 0 : i32
    return %c0_i32, %arg1 : i32, i32
  }
  func.func @transform_1(%arg0: i32, %arg1: i32) -> (i32, i32) {
    %c0_i32 = arith.constant 0 : i32
    return %arg1, %arg0 : i32, i32
  }
  func.func @transform_2(%arg0: i32, %arg1: i32) -> (i32, i32) {
    %c0_i32 = arith.constant 0 : i32
    %c0_i32_0 = arith.constant 0 : i32
    %c0_i32_1 = arith.constant 0 : i32
    return %c0_i32, %c0_i32_0 : i32, i32
  }
  func.func @transform_3(%arg0: i32, %arg1: i32) -> (i32, i32) {
    %c0_i32 = arith.constant 0 : i32
    %c0_i32_0 = arith.constant 0 : i32
    return %c0_i32, %arg0 : i32, i32
  }
}

module attributes {stable_mosaic.version = 11 : i64} {
  func.func @_mm_kernel(%arg0: i32, %arg1: i32, %arg2: memref<32x256xbf16, #tpu.memory_space<vmem>>, %arg3: memref<256x128xbf16, #tpu.memory_space<vmem>>, %arg4: memref<32x1xf32, #tpu.memory_space<vmem>>, %arg5: memref<32x128xbf16, #tpu.memory_space<vmem>>, %arg6: memref<32x128xf32, #tpu.memory_space<vmem>>) attributes {dimension_semantics = [#tpu.dimension_semantics<parallel>, #tpu.dimension_semantics<arbitrary>], iteration_bounds = array<i64: 1, 1>, scalar_prefetch = 0 : i64, scratch_operands = 1 : i64, tpu.core_type = #tpu.core_type<tc>, window_params = [{transform_indices = @transform_0, window_bounds = array<i64: 32, 256>}, {transform_indices = @transform_1, window_bounds = array<i64: 256, 128>}, {pipeline_mode = #tpu.pipeline_mode<synchronous>, transform_indices = @transform_2, window_bounds = array<i64: 32, 1>}, {transform_indices = @transform_3, window_bounds = array<i64: 32, 128>}]} {
    %c0_i32 = arith.constant 0 : i32
    %0 = arith.cmpi eq, %arg1, %c0_i32 : i32
    %1 = arith.extui %0 : i1 to i32
    %c0_i32_0 = arith.constant 0 : i32
    %2 = arith.cmpi ne, %1, %c0_i32_0 : i32
    scf.if %2 {
      %cst_10 = arith.constant 0.000000e+00 : f32
      %12 = vector.broadcast %cst_10 : f32 to vector<32x128xf32>
      %c0_11 = arith.constant 0 : index
      %c0_12 = arith.constant 0 : index
      %13 = vector.load %arg6[%c0_11, %c0_12] : memref<32x128xf32, #tpu.memory_space<vmem>>, vector<32x128xf32>
      tpu.vector_store %arg6[%c0_11, %c0_12], %12 {strides = array<i32>} : memref<32x128xf32, #tpu.memory_space<vmem>>, vector<32x128xf32>,
    } else {
    }
    %c0 = arith.constant 0 : index
    %c0_1 = arith.constant 0 : index
    %3 = vector.load %arg6[%c0, %c0_1] : memref<32x128xf32, #tpu.memory_space<vmem>>, vector<32x128xf32>
    %c0_2 = arith.constant 0 : index
    %c0_3 = arith.constant 0 : index
    %4 = vector.load %arg2[%c0_2, %c0_3] : memref<32x256xbf16, #tpu.memory_space<vmem>>, vector<32x256xbf16>
    %c0_4 = arith.constant 0 : index
    %c0_5 = arith.constant 0 : index
    %5 = vector.load %arg3[%c0_4, %c0_5] : memref<256x128xbf16, #tpu.memory_space<vmem>>, vector<256x128xbf16>
    %cst = arith.constant dense<0.000000e+00> : vector<32x128xf32>
    %6 = tpu.matmul %4, %5, %cst {dimension_numbers = #tpu.dot_dimension_numbers<[1], [0], [0], [1], [0, 0, 1, 1], [], []>} : vector<32x256xbf16>, vector<256x128xbf16>, vector<32x128xf32> -> vector<32x128xf32>
    %7 = arith.addf %3, %6 : vector<32x128xf32>
    %c0_6 = arith.constant 0 : index
    %c0_7 = arith.constant 0 : index
    %8 = vector.load %arg6[%c0_6, %c0_7] : memref<32x128xf32, #tpu.memory_space<vmem>>, vector<32x128xf32>
    tpu.vector_store %arg6[%c0_6, %c0_7], %7 {strides = array<i32>} : memref<32x128xf32, #tpu.memory_space<vmem>>, vector<32x128xf32>,
    %c0_i32_8 = arith.constant 0 : i32
    %9 = arith.cmpi eq, %arg1, %c0_i32_8 : i32
    %10 = arith.extui %9 : i1 to i32
    %c0_i32_9 = arith.constant 0 : i32
    %11 = arith.cmpi ne, %10, %c0_i32_9 : i32
    scf.if %11 {
      %c0_10 = arith.constant 0 : index
      %c0_11 = arith.constant 0 : index
      %12 = vector.load %arg6[%c0_10, %c0_11] : memref<32x128xf32, #tpu.memory_space<vmem>>, vector<32x128xf32>
      %c0_12 = arith.constant 0 : index
      %c0_13 = arith.constant 0 : index
      %13 = vector.load %arg4[%c0_12, %c0_13] : memref<32x1xf32, #tpu.memory_space<vmem>>, vector<32x1xf32>
      %14 = vector.broadcast %13 : vector<32x1xf32> to vector<32x128xf32>
      %15 = arith.addf %12, %14 : vector<32x128xf32>
      %cst_14 = arith.constant 0.000000e+00 : f32
      %16 = vector.broadcast %cst_14 : f32 to vector<32x128xf32>
      %17 = arith.maximumf %15, %16 : vector<32x128xf32>
      %18 = arith.truncf %17 : vector<32x128xf32> to vector<32x128xbf16>
      %c0_15 = arith.constant 0 : index
      %c0_16 = arith.constant 0 : index
      %19 = vector.load %arg5[%c0_15, %c0_16] : memref<32x128xbf16, #tpu.memory_space<vmem>>, vector<32x128xbf16>
      tpu.vector_store %arg5[%c0_15, %c0_16], %18 {strides = array<i32>} : memref<32x128xbf16, #tpu.memory_space<vmem>>, vector<32x128xbf16>,
    } else {
    }
    return
  }
  func.func @transform_0(%arg0: i32, %arg1: i32) -> (i32, i32) {
    %c0_i32 = arith.constant 0 : i32
    %c0_i32_0 = arith.constant 0 : i32
    return %c0_i32, %arg1 : i32, i32
  }
  func.func @transform_1(%arg0: i32, %arg1: i32) -> (i32, i32) {
    %c0_i32 = arith.constant 0 : i32
    return %arg1, %arg0 : i32, i32
  }
  func.func @transform_2(%arg0: i32, %arg1: i32) -> (i32, i32) {
    %c0_i32 = arith.constant 0 : i32
    %c0_i32_0 = arith.constant 0 : i32
    %c0_i32_1 = arith.constant 0 : i32
    return %c0_i32, %c0_i32_0 : i32, i32
  }
  func.func @transform_3(%arg0: i32, %arg1: i32) -> (i32, i32) {
    %c0_i32 = arith.constant 0 : i32
    %c0_i32_0 = arith.constant 0 : i32
    return %c0_i32, %arg0 : i32, i32
  }
}

module attributes {stable_mosaic.version = 11 : i64} {
  func.func @_gap_conv_kernel(%arg0: i32, %arg1: memref<256x2x128xbf16, #tpu.memory_space<vmem>>, %arg2: memref<32x256xbf16, #tpu.memory_space<vmem>>, %arg3: memref<32x1xf32, #tpu.memory_space<vmem>>, %arg4: memref<32x2xbf16, #tpu.memory_space<vmem>>, %arg5: memref<256x2xf32, #tpu.memory_space<vmem>>) attributes {dimension_semantics = [#tpu.dimension_semantics<arbitrary>], iteration_bounds = array<i64: 1>, scalar_prefetch = 0 : i64, scratch_operands = 1 : i64, tpu.core_type = #tpu.core_type<tc>, window_params = [{transform_indices = @transform_0, window_bounds = array<i64: 256, 2, 128>}, {pipeline_mode = #tpu.pipeline_mode<synchronous>, transform_indices = @transform_1, window_bounds = array<i64: 32, 256>}, {pipeline_mode = #tpu.pipeline_mode<synchronous>, transform_indices = @transform_2, window_bounds = array<i64: 32, 1>}, {pipeline_mode = #tpu.pipeline_mode<synchronous>, transform_indices = @transform_3, window_bounds = array<i64: 32, 2>}]} {
    %c0_i32 = arith.constant 0 : i32
    %0 = arith.cmpi eq, %arg0, %c0_i32 : i32
    %1 = arith.extui %0 : i1 to i32
    %c0_i32_0 = arith.constant 0 : i32
    %2 = arith.cmpi ne, %1, %c0_i32_0 : i32
    scf.if %2 {
      %cst_9 = arith.constant 0.000000e+00 : f32
      %12 = vector.broadcast %cst_9 : f32 to vector<256x2xf32>
      %c0_10 = arith.constant 0 : index
      %c0_11 = arith.constant 0 : index
      %13 = vector.load %arg5[%c0_10, %c0_11] : memref<256x2xf32, #tpu.memory_space<vmem>>, vector<256x2xf32>
      tpu.vector_store %arg5[%c0_10, %c0_11], %12 {strides = array<i32>} : memref<256x2xf32, #tpu.memory_space<vmem>>, vector<256x2xf32>,
    } else {
    }
    %c0 = arith.constant 0 : index
    %c0_1 = arith.constant 0 : index
    %3 = vector.load %arg5[%c0, %c0_1] : memref<256x2xf32, #tpu.memory_space<vmem>>, vector<256x2xf32>
    %c0_2 = arith.constant 0 : index
    %c0_3 = arith.constant 0 : index
    %c0_4 = arith.constant 0 : index
    %4 = vector.load %arg1[%c0_2, %c0_3, %c0_4] : memref<256x2x128xbf16, #tpu.memory_space<vmem>>, vector<256x2x128xbf16>
    %5 = arith.extf %4 : vector<256x2x128xbf16> to vector<256x2x128xf32>
    %cst = arith.constant dense<0.000000e+00> : vector<256x2xf32>
    %6 = vector.multi_reduction <add>, %5, %cst [2] : vector<256x2x128xf32> to vector<256x2xf32>
    %7 = arith.addf %3, %6 : vector<256x2xf32>
    %c0_5 = arith.constant 0 : index
    %c0_6 = arith.constant 0 : index
    %8 = vector.load %arg5[%c0_5, %c0_6] : memref<256x2xf32, #tpu.memory_space<vmem>>, vector<256x2xf32>
    tpu.vector_store %arg5[%c0_5, %c0_6], %7 {strides = array<i32>} : memref<256x2xf32, #tpu.memory_space<vmem>>, vector<256x2xf32>,
    %c0_i32_7 = arith.constant 0 : i32
    %9 = arith.cmpi eq, %arg0, %c0_i32_7 : i32
    %10 = arith.extui %9 : i1 to i32
    %c0_i32_8 = arith.constant 0 : i32
    %11 = arith.cmpi ne, %10, %c0_i32_8 : i32
    scf.if %11 {
      %c0_9 = arith.constant 0 : index
      %c0_10 = arith.constant 0 : index
      %12 = vector.load %arg5[%c0_9, %c0_10] : memref<256x2xf32, #tpu.memory_space<vmem>>, vector<256x2xf32>
      %cst_11 = arith.constant 6.250000e-02 : f32
      %13 = vector.broadcast %cst_11 : f32 to vector<256x2xf32>
      %14 = arith.mulf %12, %13 : vector<256x2xf32>
      %c0_12 = arith.constant 0 : index
      %c0_13 = arith.constant 0 : index
      %15 = vector.load %arg2[%c0_12, %c0_13] : memref<32x256xbf16, #tpu.memory_space<vmem>>, vector<32x256xbf16>
      %16 = arith.extf %15 : vector<32x256xbf16> to vector<32x256xf32>
      %cst_14 = arith.constant dense<0.000000e+00> : vector<32x2xf32>
      %17 = tpu.matmul %16, %14, %cst_14 {dimension_numbers = #tpu.dot_dimension_numbers<[1], [0], [0], [1], [0, 0, 1, 1], [], []>} : vector<32x256xf32>, vector<256x2xf32>, vector<32x2xf32> -> vector<32x2xf32>
      %c0_15 = arith.constant 0 : index
      %c0_16 = arith.constant 0 : index
      %18 = vector.load %arg3[%c0_15, %c0_16] : memref<32x1xf32, #tpu.memory_space<vmem>>, vector<32x1xf32>
      %19 = vector.broadcast %18 : vector<32x1xf32> to vector<32x2xf32>
      %20 = arith.addf %17, %19 : vector<32x2xf32>
      %cst_17 = arith.constant 0.000000e+00 : f32
      %21 = vector.broadcast %cst_17 : f32 to vector<32x2xf32>
      %22 = arith.maximumf %20, %21 : vector<32x2xf32>
      %23 = arith.truncf %22 : vector<32x2xf32> to vector<32x2xbf16>
      %c0_18 = arith.constant 0 : index
      %c0_19 = arith.constant 0 : index
      %24 = vector.load %arg4[%c0_18, %c0_19] : memref<32x2xbf16, #tpu.memory_space<vmem>>, vector<32x2xbf16>
      tpu.vector_store %arg4[%c0_18, %c0_19], %23 {strides = array<i32>} : memref<32x2xbf16, #tpu.memory_space<vmem>>, vector<32x2xbf16>,
    } else {
    }
    return
  }
  func.func @transform_0(%arg0: i32) -> (i32, i32, i32) {
    %c0_i32 = arith.constant 0 : i32
    %c0_i32_0 = arith.constant 0 : i32
    %c0_i32_1 = arith.constant 0 : i32
    return %c0_i32, %c0_i32_0, %arg0 : i32, i32, i32
  }
  func.func @transform_1(%arg0: i32) -> (i32, i32) {
    %c0_i32 = arith.constant 0 : i32
    %c0_i32_0 = arith.constant 0 : i32
    %c0_i32_1 = arith.constant 0 : i32
    return %c0_i32, %c0_i32_0 : i32, i32
  }
  func.func @transform_2(%arg0: i32) -> (i32, i32) {
    %c0_i32 = arith.constant 0 : i32
    %c0_i32_0 = arith.constant 0 : i32
    %c0_i32_1 = arith.constant 0 : i32
    return %c0_i32, %c0_i32_0 : i32, i32
  }
  func.func @transform_3(%arg0: i32) -> (i32, i32) {
    %c0_i32 = arith.constant 0 : i32
    %c0_i32_0 = arith.constant 0 : i32
    %c0_i32_1 = arith.constant 0 : i32
    return %c0_i32, %c0_i32_0 : i32, i32
  }
}

module attributes {stable_mosaic.version = 11 : i64} {
  func.func @_mm_kernel(%arg0: i32, %arg1: i32, %arg2: memref<21x32xbf16, #tpu.memory_space<vmem>>, %arg3: memref<32x128xbf16, #tpu.memory_space<vmem>>, %arg4: memref<21x1xf32, #tpu.memory_space<vmem>>, %arg5: memref<21x128xbf16, #tpu.memory_space<vmem>>, %arg6: memref<21x128xf32, #tpu.memory_space<vmem>>) attributes {dimension_semantics = [#tpu.dimension_semantics<parallel>, #tpu.dimension_semantics<arbitrary>], iteration_bounds = array<i64: 1, 1>, scalar_prefetch = 0 : i64, scratch_operands = 1 : i64, tpu.core_type = #tpu.core_type<tc>, window_params = [{transform_indices = @transform_0, window_bounds = array<i64: 21, 32>}, {transform_indices = @transform_1, window_bounds = array<i64: 32, 128>}, {pipeline_mode = #tpu.pipeline_mode<synchronous>, transform_indices = @transform_2, window_bounds = array<i64: 21, 1>}, {transform_indices = @transform_3, window_bounds = array<i64: 21, 128>}]} {
    %c0_i32 = arith.constant 0 : i32
    %0 = arith.cmpi eq, %arg1, %c0_i32 : i32
    %1 = arith.extui %0 : i1 to i32
    %c0_i32_0 = arith.constant 0 : i32
    %2 = arith.cmpi ne, %1, %c0_i32_0 : i32
    scf.if %2 {
      %cst_10 = arith.constant 0.000000e+00 : f32
      %12 = vector.broadcast %cst_10 : f32 to vector<21x128xf32>
      %c0_11 = arith.constant 0 : index
      %c0_12 = arith.constant 0 : index
      %13 = vector.load %arg6[%c0_11, %c0_12] : memref<21x128xf32, #tpu.memory_space<vmem>>, vector<21x128xf32>
      tpu.vector_store %arg6[%c0_11, %c0_12], %12 {strides = array<i32>} : memref<21x128xf32, #tpu.memory_space<vmem>>, vector<21x128xf32>,
    } else {
    }
    %c0 = arith.constant 0 : index
    %c0_1 = arith.constant 0 : index
    %3 = vector.load %arg6[%c0, %c0_1] : memref<21x128xf32, #tpu.memory_space<vmem>>, vector<21x128xf32>
    %c0_2 = arith.constant 0 : index
    %c0_3 = arith.constant 0 : index
    %4 = vector.load %arg2[%c0_2, %c0_3] : memref<21x32xbf16, #tpu.memory_space<vmem>>, vector<21x32xbf16>
    %c0_4 = arith.constant 0 : index
    %c0_5 = arith.constant 0 : index
    %5 = vector.load %arg3[%c0_4, %c0_5] : memref<32x128xbf16, #tpu.memory_space<vmem>>, vector<32x128xbf16>
    %cst = arith.constant dense<0.000000e+00> : vector<21x128xf32>
    %6 = tpu.matmul %4, %5, %cst {dimension_numbers = #tpu.dot_dimension_numbers<[1], [0], [0], [1], [0, 0, 1, 1], [], []>} : vector<21x32xbf16>, vector<32x128xbf16>, vector<21x128xf32> -> vector<21x128xf32>
    %7 = arith.addf %3, %6 : vector<21x128xf32>
    %c0_6 = arith.constant 0 : index
    %c0_7 = arith.constant 0 : index
    %8 = vector.load %arg6[%c0_6, %c0_7] : memref<21x128xf32, #tpu.memory_space<vmem>>, vector<21x128xf32>
    tpu.vector_store %arg6[%c0_6, %c0_7], %7 {strides = array<i32>} : memref<21x128xf32, #tpu.memory_space<vmem>>, vector<21x128xf32>,
    %c0_i32_8 = arith.constant 0 : i32
    %9 = arith.cmpi eq, %arg1, %c0_i32_8 : i32
    %10 = arith.extui %9 : i1 to i32
    %c0_i32_9 = arith.constant 0 : i32
    %11 = arith.cmpi ne, %10, %c0_i32_9 : i32
    scf.if %11 {
      %c0_10 = arith.constant 0 : index
      %c0_11 = arith.constant 0 : index
      %12 = vector.load %arg6[%c0_10, %c0_11] : memref<21x128xf32, #tpu.memory_space<vmem>>, vector<21x128xf32>
      %c0_12 = arith.constant 0 : index
      %c0_13 = arith.constant 0 : index
      %13 = vector.load %arg4[%c0_12, %c0_13] : memref<21x1xf32, #tpu.memory_space<vmem>>, vector<21x1xf32>
      %14 = vector.broadcast %13 : vector<21x1xf32> to vector<21x128xf32>
      %15 = arith.addf %12, %14 : vector<21x128xf32>
      %16 = arith.truncf %15 : vector<21x128xf32> to vector<21x128xbf16>
      %c0_14 = arith.constant 0 : index
      %c0_15 = arith.constant 0 : index
      %17 = vector.load %arg5[%c0_14, %c0_15] : memref<21x128xbf16, #tpu.memory_space<vmem>>, vector<21x128xbf16>
      tpu.vector_store %arg5[%c0_14, %c0_15], %16 {strides = array<i32>} : memref<21x128xbf16, #tpu.memory_space<vmem>>, vector<21x128xbf16>,
    } else {
    }
    return
  }
  func.func @transform_0(%arg0: i32, %arg1: i32) -> (i32, i32) {
    %c0_i32 = arith.constant 0 : i32
    %c0_i32_0 = arith.constant 0 : i32
    return %c0_i32, %arg1 : i32, i32
  }
  func.func @transform_1(%arg0: i32, %arg1: i32) -> (i32, i32) {
    %c0_i32 = arith.constant 0 : i32
    return %arg1, %arg0 : i32, i32
  }
  func.func @transform_2(%arg0: i32, %arg1: i32) -> (i32, i32) {
    %c0_i32 = arith.constant 0 : i32
    %c0_i32_0 = arith.constant 0 : i32
    %c0_i32_1 = arith.constant 0 : i32
    return %c0_i32, %c0_i32_0 : i32, i32
  }
  func.func @transform_3(%arg0: i32, %arg1: i32) -> (i32, i32) {
    %c0_i32 = arith.constant 0 : i32
    %c0_i32_0 = arith.constant 0 : i32
    return %c0_i32, %arg0 : i32, i32
  }
}

module attributes {stable_mosaic.version = 11 : i64} {
  func.func @_mm_kernel(%arg0: i32, %arg1: i32, %arg2: memref<32x160xbf16, #tpu.memory_space<vmem>>, %arg3: memref<160x128xbf16, #tpu.memory_space<vmem>>, %arg4: memref<32x1xf32, #tpu.memory_space<vmem>>, %arg5: memref<32x128xbf16, #tpu.memory_space<vmem>>, %arg6: memref<32x128xf32, #tpu.memory_space<vmem>>) attributes {dimension_semantics = [#tpu.dimension_semantics<parallel>, #tpu.dimension_semantics<arbitrary>], iteration_bounds = array<i64: 1, 1>, scalar_prefetch = 0 : i64, scratch_operands = 1 : i64, tpu.core_type = #tpu.core_type<tc>, window_params = [{transform_indices = @transform_0, window_bounds = array<i64: 32, 160>}, {transform_indices = @transform_1, window_bounds = array<i64: 160, 128>}, {pipeline_mode = #tpu.pipeline_mode<synchronous>, transform_indices = @transform_2, window_bounds = array<i64: 32, 1>}, {transform_indices = @transform_3, window_bounds = array<i64: 32, 128>}]} {
    %c0_i32 = arith.constant 0 : i32
    %0 = arith.cmpi eq, %arg1, %c0_i32 : i32
    %1 = arith.extui %0 : i1 to i32
    %c0_i32_0 = arith.constant 0 : i32
    %2 = arith.cmpi ne, %1, %c0_i32_0 : i32
    scf.if %2 {
      %cst_10 = arith.constant 0.000000e+00 : f32
      %12 = vector.broadcast %cst_10 : f32 to vector<32x128xf32>
      %c0_11 = arith.constant 0 : index
      %c0_12 = arith.constant 0 : index
      %13 = vector.load %arg6[%c0_11, %c0_12] : memref<32x128xf32, #tpu.memory_space<vmem>>, vector<32x128xf32>
      tpu.vector_store %arg6[%c0_11, %c0_12], %12 {strides = array<i32>} : memref<32x128xf32, #tpu.memory_space<vmem>>, vector<32x128xf32>,
    } else {
    }
    %c0 = arith.constant 0 : index
    %c0_1 = arith.constant 0 : index
    %3 = vector.load %arg6[%c0, %c0_1] : memref<32x128xf32, #tpu.memory_space<vmem>>, vector<32x128xf32>
    %c0_2 = arith.constant 0 : index
    %c0_3 = arith.constant 0 : index
    %4 = vector.load %arg2[%c0_2, %c0_3] : memref<32x160xbf16, #tpu.memory_space<vmem>>, vector<32x160xbf16>
    %c0_4 = arith.constant 0 : index
    %c0_5 = arith.constant 0 : index
    %5 = vector.load %arg3[%c0_4, %c0_5] : memref<160x128xbf16, #tpu.memory_space<vmem>>, vector<160x128xbf16>
    %cst = arith.constant dense<0.000000e+00> : vector<32x128xf32>
    %6 = tpu.matmul %4, %5, %cst {dimension_numbers = #tpu.dot_dimension_numbers<[1], [0], [0], [1], [0, 0, 1, 1], [], []>} : vector<32x160xbf16>, vector<160x128xbf16>, vector<32x128xf32> -> vector<32x128xf32>
    %7 = arith.addf %3, %6 : vector<32x128xf32>
    %c0_6 = arith.constant 0 : index
    %c0_7 = arith.constant 0 : index
    %8 = vector.load %arg6[%c0_6, %c0_7] : memref<32x128xf32, #tpu.memory_space<vmem>>, vector<32x128xf32>
    tpu.vector_store %arg6[%c0_6, %c0_7], %7 {strides = array<i32>} : memref<32x128xf32, #tpu.memory_space<vmem>>, vector<32x128xf32>,
    %c0_i32_8 = arith.constant 0 : i32
    %9 = arith.cmpi eq, %arg1, %c0_i32_8 : i32
    %10 = arith.extui %9 : i1 to i32
    %c0_i32_9 = arith.constant 0 : i32
    %11 = arith.cmpi ne, %10, %c0_i32_9 : i32
    scf.if %11 {
      %c0_10 = arith.constant 0 : index
      %c0_11 = arith.constant 0 : index
      %12 = vector.load %arg6[%c0_10, %c0_11] : memref<32x128xf32, #tpu.memory_space<vmem>>, vector<32x128xf32>
      %c0_12 = arith.constant 0 : index
      %c0_13 = arith.constant 0 : index
      %13 = vector.load %arg4[%c0_12, %c0_13] : memref<32x1xf32, #tpu.memory_space<vmem>>, vector<32x1xf32>
      %14 = vector.broadcast %13 : vector<32x1xf32> to vector<32x128xf32>
      %15 = arith.addf %12, %14 : vector<32x128xf32>
      %cst_14 = arith.constant 0.000000e+00 : f32
      %16 = vector.broadcast %cst_14 : f32 to vector<32x128xf32>
      %17 = arith.maximumf %15, %16 : vector<32x128xf32>
      %18 = arith.truncf %17 : vector<32x128xf32> to vector<32x128xbf16>
      %c0_15 = arith.constant 0 : index
      %c0_16 = arith.constant 0 : index
      %19 = vector.load %arg5[%c0_15, %c0_16] : memref<32x128xbf16, #tpu.memory_space<vmem>>, vector<32x128xbf16>
      tpu.vector_store %arg5[%c0_15, %c0_16], %18 {strides = array<i32>} : memref<32x128xbf16, #tpu.memory_space<vmem>>, vector<32x128xbf16>,
    } else {
    }
    return
  }
  func.func @transform_0(%arg0: i32, %arg1: i32) -> (i32, i32) {
    %c0_i32 = arith.constant 0 : i32
    %c0_i32_0 = arith.constant 0 : i32
    return %c0_i32, %arg1 : i32, i32
  }
  func.func @transform_1(%arg0: i32, %arg1: i32) -> (i32, i32) {
    %c0_i32 = arith.constant 0 : i32
    return %arg1, %arg0 : i32, i32
  }
  func.func @transform_2(%arg0: i32, %arg1: i32) -> (i32, i32) {
    %c0_i32 = arith.constant 0 : i32
    %c0_i32_0 = arith.constant 0 : i32
    %c0_i32_1 = arith.constant 0 : i32
    return %c0_i32, %c0_i32_0 : i32, i32
  }
  func.func @transform_3(%arg0: i32, %arg1: i32) -> (i32, i32) {
    %c0_i32 = arith.constant 0 : i32
    %c0_i32_0 = arith.constant 0 : i32
    return %c0_i32, %arg0 : i32, i32
  }
}

module attributes {stable_mosaic.version = 11 : i64} {
  func.func @_mm_kernel(%arg0: i32, %arg1: i32, %arg2: memref<32x4xbf16, #tpu.memory_space<vmem>>, %arg3: memref<4x256xbf16, #tpu.memory_space<vmem>>, %arg4: memref<32x256xbf16, #tpu.memory_space<vmem>>, %arg5: memref<32x256xf32, #tpu.memory_space<vmem>>) attributes {dimension_semantics = [#tpu.dimension_semantics<parallel>, #tpu.dimension_semantics<arbitrary>], iteration_bounds = array<i64: 1, 1>, scalar_prefetch = 0 : i64, scratch_operands = 1 : i64, tpu.core_type = #tpu.core_type<tc>, window_params = [{transform_indices = @transform_0, window_bounds = array<i64: 32, 4>}, {transform_indices = @transform_1, window_bounds = array<i64: 4, 256>}, {transform_indices = @transform_2, window_bounds = array<i64: 32, 256>}]} {
    %c0_i32 = arith.constant 0 : i32
    %0 = arith.cmpi eq, %arg1, %c0_i32 : i32
    %1 = arith.extui %0 : i1 to i32
    %c0_i32_0 = arith.constant 0 : i32
    %2 = arith.cmpi ne, %1, %c0_i32_0 : i32
    scf.if %2 {
      %cst_10 = arith.constant 0.000000e+00 : f32
      %12 = vector.broadcast %cst_10 : f32 to vector<32x256xf32>
      %c0_11 = arith.constant 0 : index
      %c0_12 = arith.constant 0 : index
      %13 = vector.load %arg5[%c0_11, %c0_12] : memref<32x256xf32, #tpu.memory_space<vmem>>, vector<32x256xf32>
      tpu.vector_store %arg5[%c0_11, %c0_12], %12 {strides = array<i32>} : memref<32x256xf32, #tpu.memory_space<vmem>>, vector<32x256xf32>,
    } else {
    }
    %c0 = arith.constant 0 : index
    %c0_1 = arith.constant 0 : index
    %3 = vector.load %arg5[%c0, %c0_1] : memref<32x256xf32, #tpu.memory_space<vmem>>, vector<32x256xf32>
    %c0_2 = arith.constant 0 : index
    %c0_3 = arith.constant 0 : index
    %4 = vector.load %arg2[%c0_2, %c0_3] : memref<32x4xbf16, #tpu.memory_space<vmem>>, vector<32x4xbf16>
    %c0_4 = arith.constant 0 : index
    %c0_5 = arith.constant 0 : index
    %5 = vector.load %arg3[%c0_4, %c0_5] : memref<4x256xbf16, #tpu.memory_space<vmem>>, vector<4x256xbf16>
    %cst = arith.constant dense<0.000000e+00> : vector<32x256xf32>
    %6 = tpu.matmul %4, %5, %cst {dimension_numbers = #tpu.dot_dimension_numbers<[1], [0], [0], [1], [0, 0, 1, 1], [], []>} : vector<32x4xbf16>, vector<4x256xbf16>, vector<32x256xf32> -> vector<32x256xf32>
    %7 = arith.addf %3, %6 : vector<32x256xf32>
    %c0_6 = arith.constant 0 : index
    %c0_7 = arith.constant 0 : index
    %8 = vector.load %arg5[%c0_6, %c0_7] : memref<32x256xf32, #tpu.memory_space<vmem>>, vector<32x256xf32>
    tpu.vector_store %arg5[%c0_6, %c0_7], %7 {strides = array<i32>} : memref<32x256xf32, #tpu.memory_space<vmem>>, vector<32x256xf32>,
    %c0_i32_8 = arith.constant 0 : i32
    %9 = arith.cmpi eq, %arg1, %c0_i32_8 : i32
    %10 = arith.extui %9 : i1 to i32
    %c0_i32_9 = arith.constant 0 : i32
    %11 = arith.cmpi ne, %10, %c0_i32_9 : i32
    scf.if %11 {
      %c0_10 = arith.constant 0 : index
      %c0_11 = arith.constant 0 : index
      %12 = vector.load %arg5[%c0_10, %c0_11] : memref<32x256xf32, #tpu.memory_space<vmem>>, vector<32x256xf32>
      %13 = arith.truncf %12 : vector<32x256xf32> to vector<32x256xbf16>
      %c0_12 = arith.constant 0 : index
      %c0_13 = arith.constant 0 : index
      %14 = vector.load %arg4[%c0_12, %c0_13] : memref<32x256xbf16, #tpu.memory_space<vmem>>, vector<32x256xbf16>
      tpu.vector_store %arg4[%c0_12, %c0_13], %13 {strides = array<i32>} : memref<32x256xbf16, #tpu.memory_space<vmem>>, vector<32x256xbf16>,
    } else {
    }
    return
  }
  func.func @transform_0(%arg0: i32, %arg1: i32) -> (i32, i32) {
    %c0_i32 = arith.constant 0 : i32
    %c0_i32_0 = arith.constant 0 : i32
    return %c0_i32, %arg1 : i32, i32
  }
  func.func @transform_1(%arg0: i32, %arg1: i32) -> (i32, i32) {
    %c0_i32 = arith.constant 0 : i32
    return %arg1, %arg0 : i32, i32
  }
  func.func @transform_2(%arg0: i32, %arg1: i32) -> (i32, i32) {
    %c0_i32 = arith.constant 0 : i32
    %c0_i32_0 = arith.constant 0 : i32
    return %c0_i32, %arg0 : i32, i32
  }
}

module attributes {stable_mosaic.version = 11 : i64} {
  func.func @_mm_kernel(%arg0: i32, %arg1: i32, %arg2: memref<32x4xbf16, #tpu.memory_space<vmem>>, %arg3: memref<4x512xbf16, #tpu.memory_space<vmem>>, %arg4: memref<32x512xbf16, #tpu.memory_space<vmem>>, %arg5: memref<32x512xf32, #tpu.memory_space<vmem>>) attributes {dimension_semantics = [#tpu.dimension_semantics<parallel>, #tpu.dimension_semantics<arbitrary>], iteration_bounds = array<i64: 3, 1>, scalar_prefetch = 0 : i64, scratch_operands = 1 : i64, tpu.core_type = #tpu.core_type<tc>, window_params = [{transform_indices = @transform_0, window_bounds = array<i64: 32, 4>}, {transform_indices = @transform_1, window_bounds = array<i64: 4, 512>}, {transform_indices = @transform_2, window_bounds = array<i64: 32, 512>}]} {
    %c0_i32 = arith.constant 0 : i32
    %0 = arith.cmpi eq, %arg1, %c0_i32 : i32
    %1 = arith.extui %0 : i1 to i32
    %c0_i32_0 = arith.constant 0 : i32
    %2 = arith.cmpi ne, %1, %c0_i32_0 : i32
    scf.if %2 {
      %cst_10 = arith.constant 0.000000e+00 : f32
      %12 = vector.broadcast %cst_10 : f32 to vector<32x512xf32>
      %c0_11 = arith.constant 0 : index
      %c0_12 = arith.constant 0 : index
      %13 = vector.load %arg5[%c0_11, %c0_12] : memref<32x512xf32, #tpu.memory_space<vmem>>, vector<32x512xf32>
      tpu.vector_store %arg5[%c0_11, %c0_12], %12 {strides = array<i32>} : memref<32x512xf32, #tpu.memory_space<vmem>>, vector<32x512xf32>,
    } else {
    }
    %c0 = arith.constant 0 : index
    %c0_1 = arith.constant 0 : index
    %3 = vector.load %arg5[%c0, %c0_1] : memref<32x512xf32, #tpu.memory_space<vmem>>, vector<32x512xf32>
    %c0_2 = arith.constant 0 : index
    %c0_3 = arith.constant 0 : index
    %4 = vector.load %arg2[%c0_2, %c0_3] : memref<32x4xbf16, #tpu.memory_space<vmem>>, vector<32x4xbf16>
    %c0_4 = arith.constant 0 : index
    %c0_5 = arith.constant 0 : index
    %5 = vector.load %arg3[%c0_4, %c0_5] : memref<4x512xbf16, #tpu.memory_space<vmem>>, vector<4x512xbf16>
    %cst = arith.constant dense<0.000000e+00> : vector<32x512xf32>
    %6 = tpu.matmul %4, %5, %cst {dimension_numbers = #tpu.dot_dimension_numbers<[1], [0], [0], [1], [0, 0, 1, 1], [], []>} : vector<32x4xbf16>, vector<4x512xbf16>, vector<32x512xf32> -> vector<32x512xf32>
    %7 = arith.addf %3, %6 : vector<32x512xf32>
    %c0_6 = arith.constant 0 : index
    %c0_7 = arith.constant 0 : index
    %8 = vector.load %arg5[%c0_6, %c0_7] : memref<32x512xf32, #tpu.memory_space<vmem>>, vector<32x512xf32>
    tpu.vector_store %arg5[%c0_6, %c0_7], %7 {strides = array<i32>} : memref<32x512xf32, #tpu.memory_space<vmem>>, vector<32x512xf32>,
    %c0_i32_8 = arith.constant 0 : i32
    %9 = arith.cmpi eq, %arg1, %c0_i32_8 : i32
    %10 = arith.extui %9 : i1 to i32
    %c0_i32_9 = arith.constant 0 : i32
    %11 = arith.cmpi ne, %10, %c0_i32_9 : i32
    scf.if %11 {
      %c0_10 = arith.constant 0 : index
      %c0_11 = arith.constant 0 : index
      %12 = vector.load %arg5[%c0_10, %c0_11] : memref<32x512xf32, #tpu.memory_space<vmem>>, vector<32x512xf32>
      %13 = arith.truncf %12 : vector<32x512xf32> to vector<32x512xbf16>
      %c0_12 = arith.constant 0 : index
      %c0_13 = arith.constant 0 : index
      %14 = vector.load %arg4[%c0_12, %c0_13] : memref<32x512xbf16, #tpu.memory_space<vmem>>, vector<32x512xbf16>
      tpu.vector_store %arg4[%c0_12, %c0_13], %13 {strides = array<i32>} : memref<32x512xbf16, #tpu.memory_space<vmem>>, vector<32x512xbf16>,
    } else {
    }
    return
  }
  func.func @transform_0(%arg0: i32, %arg1: i32) -> (i32, i32) {
    %c0_i32 = arith.constant 0 : i32
    %c0_i32_0 = arith.constant 0 : i32
    return %c0_i32, %arg1 : i32, i32
  }
  func.func @transform_1(%arg0: i32, %arg1: i32) -> (i32, i32) {
    %c0_i32 = arith.constant 0 : i32
    return %arg1, %arg0 : i32, i32
  }
  func.func @transform_2(%arg0: i32, %arg1: i32) -> (i32, i32) {
    %c0_i32 = arith.constant 0 : i32
    %c0_i32_0 = arith.constant 0 : i32
    return %c0_i32, %arg0 : i32, i32
  }
}

</mosaic_0001>

<bundles_post_ra>
// kernel: _lambda_.118
= control target key start
LH: loop header
LB: loop body
LE: loop exit
PB: predicated region body
PF: predicated region fallthrough
CT: control target
= control target key end

     0   :  { %vm27_vm0 = vcmask 1043456   ;;  %v104_v0 = vmov 0.0   ;;  %vm105_vm1 = vmmov 0   ;;  %v106_v4 = vmov 0   ;;  %s139_s1 = inlined_call_operand.vmem [shape: bf16[8,128], index: 1, kind: input, shape index: {}]   ;;  %s140_s0 = inlined_call_operand.vmem [shape: bf16[8,8], index: 0, kind: input, shape index: {}]   ;;  %s141_s2 = inlined_call_operand.vmem [shape: f32[8,1], index: 2, kind: input, shape index: {}]   ;;  %s142_s3 = inlined_call_operand.vmem [shape: bf16[8,128], index: 3, kind: output, shape index: {}]  }
   0x1   :  { %94 = vmatprep.subr.bf16.mxu0 %v104_v0  ;;  %v22_v1 = vld [vmem:[%s139_s1] sm:$0xf]  ;;  %96 = vmatprep.mubr.msk.bf16.mxu0 %vm105_vm1, %v104_v0  ;;  %vm23_vm2 = vcmask 64512  }
   0x2   :  { %v77_v2 = vld [vmem:[%s141_s2] sm:$0xff]  ;;  %v29_v3 = vsel %vm27_vm0, %v22_v1, 0  ;;  %103 = vset.pattern.permute.xlu0 %v106_v4 }
   0x3   :  { %95 = vmatpush3.bf16.msra.mxu0 %v29_v3  ;;  %v21_v5 = vld [vmem:[%s140_s0] sm:$0xf]  ;;  %80 = vperm.xlu0 %103, %v77_v2  }
   0x6   :  { %97 = vmatmul.mubr.msk.bf16.vlgmr.msra.gmra.mxu0 %vm23_vm2, %v21_v5 }
  0x7e   :  { %v81_v6 = vpop.permute.xlu0 %80 }
  0xc6   :  { %v65_v7 = vpop.f32.mrf.mxu0 }
  0xc7   :  { %v83_v8 = vadd.f32 %v81_v6, %v65_v7 }
  0xc8   :  { %v98_v9 = vpop.f32.mrf.mxu0 }
  0xc9   :  { %v84_v10 = vmax.f32 %v83_v8, 0.0 }
  0xca   :  { %v68_v11 = vpop.f32.mrf.mxu0 }
  0xcb   :  { %v85_v12 = vpack.c.bf16 %v84_v10, %v84_v10 }
  0xcc   :  { %v99_v13 = vpop.f32.mrf.mxu0 }
  0xcd   :  { %86 = vst [vmem:[%s142_s3] sm:$0xf] %v85_v12 }

// kernel: _lambda_.115
= control target key start
LH: loop header
LB: loop body
LE: loop exit
PB: predicated region body
PF: predicated region fallthrough
CT: control target
= control target key end

     0   :  { %v526_v2 = vmov 0   ;;  %vm266_vm0 = vcmask 1040384   ;;  %vm267_vm1 = vcmask 1041408   ;;  %v527_v29 = vmov 65535   ;;  %s675_s1 = inlined_call_operand.vmem [shape: bf16[147,512], index: 1, kind: input, shape index: {}]   ;;  %s676_s0 = inlined_call_operand.vmem [shape: bf16[8,147], index: 0, kind: input, shape index: {}]   ;;  %s677_s2 = inlined_call_operand.vmem [shape: f32[8,1], index: 2, kind: input, shape index: {}]   ;;  %s678_s3 = inlined_call_operand.vmem [shape: bf16[8,512], index: 3, kind: output, shape index: {}]  }
   0x1   :  { %v466_v0 = vld [vmem:[%s675_s1 + $0xe4] ss:$16 sps:$4 sm:$0xff]   ;;  %v468_v1 = vld [vmem:[%s675_s1 + $0xec] ss:$16 sps:$4 sm:$0xff]   ;;  %465 = vset.pattern.permute.xlu0 %v526_v2  ;;  %v470_v3 = vld [vmem:[%s675_s1 + $0xe0] ss:$16 sps:$4 sm:$0xff]  }
   0x2   :  { %282 = vmatprep.subr.bf16.mxu0 %v466_v0  ;;  %v471_v4 = vld [vmem:[%s675_s1 + $0xe8] ss:$16 sps:$4 sm:$0xff]   ;;  %323 = vmatprep.subr.bf16.mxu1 %v468_v1  ;;  %v472_v5 = vld [vmem:[%s675_s1 + $0xc4] ss:$16 sps:$4 sm:$0xff]   ;;  %v474_v6 = vld [vmem:[%s675_s1 + $0xcc] ss:$16 sps:$4 sm:$0xff]  }
   0x3   :  { %283 = vmatpush1.bf16.msra.mxu0 %v470_v3  ;;  %324 = vmatpush1.bf16.msra.mxu1 %v471_v4  ;;  %v476_v7 = vld [vmem:[%s675_s1 + $0xc0] ss:$16 sps:$4 sm:$0xff]   ;;  %v477_v8 = vld [vmem:[%s675_s1 + $0xc8] ss:$16 sps:$4 sm:$0xff]   ;;  %v478_v9 = vld [vmem:[%s675_s1 + $0xa4] ss:$16 sps:$4 sm:$0xff]  }
   0x4   :  { %284 = vmatprep.subr.bf16.mxu0 %v472_v5  ;;  %325 = vmatprep.subr.bf16.mxu1 %v474_v6  ;;  %v480_v10 = vld [vmem:[%s675_s1 + $0xac] ss:$16 sps:$4 sm:$0xff]   ;;  %v482_v11 = vld [vmem:[%s675_s1 + $0xa0] ss:$16 sps:$4 sm:$0xff]   ;;  %v483_v12 = vld [vmem:[%s675_s1 + $0xa8] ss:$16 sps:$4 sm:$0xff]  }
   0x5   :  { %v484_v13 = vld [vmem:[%s675_s1 + $0x84] ss:$16 sps:$4 sm:$0xff]   ;;  %v486_v14 = vld [vmem:[%s675_s1 + $0x8c] ss:$16 sps:$4 sm:$0xff]   ;;  %v488_v15 = vld [vmem:[%s675_s1 + $0x80] ss:$16 sps:$4 sm:$0xff]  }
   0x6   :  { %v489_v16 = vld [vmem:[%s675_s1 + $0x88] ss:$16 sps:$4 sm:$0xff]   ;;  %v490_v17 = vld [vmem:[%s675_s1 + $0x64] ss:$16 sps:$4 sm:$0xff]   ;;  %v492_v18 = vld [vmem:[%s675_s1 + $0x6c] ss:$16 sps:$4 sm:$0xff]  }
   0x7   :  { %285 = vmatpush1.bf16.msra.mxu0 %v476_v7  ;;  %326 = vmatpush1.bf16.msra.mxu1 %v477_v8  ;;  %v494_v19 = vld [vmem:[%s675_s1 + $0x60] ss:$16 sps:$4 sm:$0xff]   ;;  %v495_v20 = vld [vmem:[%s675_s1 + $0x68] ss:$16 sps:$4 sm:$0xff]   ;;  %v496_v21 = vld [vmem:[%s675_s1 + $0x44] ss:$16 sps:$4 sm:$0xff]  }
   0x8   :  { %286 = vmatprep.subr.bf16.mxu0 %v478_v9  ;;  %327 = vmatprep.subr.bf16.mxu1 %v480_v10  ;;  %v498_v22 = vld [vmem:[%s675_s1 + $0x4c] ss:$16 sps:$4 sm:$0xff]   ;;  %v500_v23 = vld [vmem:[%s675_s1 + $0x40] ss:$16 sps:$4 sm:$0xff]   ;;  %v501_v24 = vld [vmem:[%s675_s1 + $0x48] ss:$16 sps:$4 sm:$0xff]  }
   0x9   :  { %v502_v25 = vld [vmem:[%s675_s1 + $0x24] ss:$16 sps:$4 sm:$0xff]   ;;  %v504_v26 = vld [vmem:[%s675_s1 + $0x2c] ss:$16 sps:$4 sm:$0xff]   ;;  %v268_v30 = vsel %vm266_vm0, 4294967295, %v527_v29  ;;  %vm262_vm2 = vcmask 154624  }
   0xa   :  { %v64_v27 = vld [vmem:[%s675_s1 + $0x120] sm:$0x33]  ;;  %v65_v28 = vld [vmem:[%s675_s1 + $0x128] sm:$0x33]  ;;  %v269_v40 = vsel %vm267_vm1, %v268_v30, 0 }
   0xb   :  { %287 = vmatpush1.bf16.msra.mxu0 %v482_v11  ;;  %328 = vmatpush1.bf16.msra.mxu1 %v483_v12  ;;  %v506_v31 = vld [vmem:[%s675_s1 + $0x20] ss:$16 sps:$4 sm:$0xff]   ;;  %v507_v32 = vld [vmem:[%s675_s1 + $0x28] ss:$16 sps:$4 sm:$0xff]   ;;  %v508_v34 = vld [vmem:[%s675_s1 + $0x4] ss:$16 sps:$4 sm:$0xff]   ;;  %v454_v36 = vcombine.high %v64_v27, %v64_v27  ;;  %v456_v37 = vcombine.high %v65_v28, %v65_v28  ;;  %v453_v43 = vcombine.low %v64_v27, %v64_v27 }
   0xc   :  { %288 = vmatprep.subr.bf16.mxu0 %v484_v13  ;;  %329 = vmatprep.subr.bf16.mxu1 %v486_v14  ;;  %v27_v33 = vld [vmem:[%s676_s0] sm:$0xff]  ;;  %v510_v35 = vld [vmem:[%s675_s1 + $0xc] ss:$16 sps:$4 sm:$0xff]   ;;  %v513_v42 = vld [vmem:[%s675_s1 + $0x8] ss:$16 sps:$4 sm:$0xff]   ;;  %v455_v44 = vcombine.low %v65_v28, %v65_v28 }
   0xd   :  { %v416_v38 = vcombine.high %v27_v33, %v27_v33  ;;  %v379_v39 = vld [vmem:[%s677_s2] sm:$0xff]  ;;  %v274_v45 = vand.u32 %v454_v36, %v269_v40  ;;  %v280_v46 = vand.u32 %v456_v37, %v269_v40  ;;  %v271_v47 = vand.u32 %v453_v43, %v269_v40  ;;  %v520_v50 = vld [vmem:[%s675_s1 + $0x10c] ss:$16 sps:$4 sm:$0xff]   ;;  %v523_v52 = vld [vmem:[%s675_s1 + $0x108] ss:$16 sps:$4 sm:$0xff]  }
   0xe   :  { %382 = vperm.xlu0 %465, %v379_v39   ;;  %v512_v41 = vld [vmem:[%s675_s1] ss:$16 sps:$4 sm:$0xff]   ;;  %v277_v48 = vand.u32 %v455_v44, %v269_v40  ;;  %v518_v49 = vld [vmem:[%s675_s1 + $0x104] ss:$16 sps:$4 sm:$0xff]   ;;  %v415_v53 = vcombine.low %v27_v33, %v27_v33 }
   0xf   :  { %289 = vmatpush1.bf16.msra.mxu0 %v488_v15  ;;  %330 = vmatpush1.bf16.msra.mxu1 %v489_v16  ;;  %v522_v51 = vld [vmem:[%s675_s1 + $0x100] ss:$16 sps:$4 sm:$0xff]  }
  0x10   :  { %290 = vmatprep.subr.bf16.mxu0 %v490_v17  ;;  %331 = vmatprep.subr.bf16.mxu1 %v492_v18 }
  0x11   :  { %457 = vmatprep.mubr.msk.bf16.mxu0 %vm262_vm2, %v416_v38  ;;  %458 = vmatprep.mubr.msk.bf16.mxu1 %vm262_vm2, %v416_v38 }
  0x13   :  { %291 = vmatpush1.bf16.msra.mxu0 %v494_v19  ;;  %332 = vmatpush1.bf16.msra.mxu1 %v495_v20 }
  0x14   :  { %292 = vmatprep.subr.bf16.mxu0 %v496_v21  ;;  %333 = vmatprep.subr.bf16.mxu1 %v498_v22 }
  0x17   :  { %293 = vmatpush1.bf16.msra.mxu0 %v500_v23  ;;  %334 = vmatpush1.bf16.msra.mxu1 %v501_v24 }
  0x18   :  { %294 = vmatprep.subr.bf16.mxu0 %v502_v25  ;;  %335 = vmatprep.subr.bf16.mxu1 %v504_v26 }
  0x1b   :  { %295 = vmatpush1.bf16.msra.mxu0 %v506_v31  ;;  %336 = vmatpush1.bf16.msra.mxu1 %v507_v32 }
  0x1c   :  { %296 = vmatprep.subr.bf16.mxu0 %v508_v34  ;;  %337 = vmatprep.subr.bf16.mxu1 %v510_v35 }
  0x1f   :  { %297 = vmatpush1.bf16.msra.mxu0 %v512_v41  ;;  %338 = vmatpush1.bf16.msra.mxu1 %v513_v42 }
  0x20   :  { %310 = vmatprep.subr.bf16.mxu0 %v274_v45  ;;  %351 = vmatprep.subr.bf16.mxu1 %v280_v46 }
  0x23   :  { %311 = vmatpush2.bf16.msra.mxu0 %v271_v47  ;;  %352 = vmatpush2.bf16.msra.mxu1 %v277_v48 }
  0x24   :  { %312 = vmatprep.subr.bf16.mxu0 %v518_v49  ;;  %353 = vmatprep.subr.bf16.mxu1 %v520_v50 }
  0x27   :  { %313 = vmatpush2.bf16.msra.mxu0 %v522_v51  ;;  %354 = vmatpush2.bf16.msra.mxu1 %v523_v52 }
  0x2a   :  { %315 = vmatmul.mubr.bf16.vlgmr.msra.gmra.mxu0 %v415_v53  ;;  %356 = vmatmul.mubr.bf16.vlgmr.msra.gmra.mxu1 %v415_v53 }
  0x89   :  { %v383_v54 = vpop.permute.xlu0 %382 }
  0xea   :  { %v316_v55 = vpop.f32.mrf.mxu0  ;;  %v357_v56 = vpop.f32.mrf.mxu1 }
  0xeb   :  { %v385_v57 = vadd.f32 %v383_v54, %v316_v55  ;;  %v387_v58 = vadd.f32 %v383_v54, %v357_v56 }
  0xec   :  { %v318_v59 = vpop.f32.mrf.mxu0  ;;  %v359_v60 = vpop.f32.mrf.mxu1 }
  0xed   :  { %v386_v61 = vadd.f32 %v383_v54, %v318_v59  ;;  %v388_v62 = vadd.f32 %v383_v54, %v359_v60  ;;  %v389_v1 = vmax.f32 %v385_v57, 0.0  ;;  %v391_v2 = vmax.f32 %v387_v58, 0.0 }
  0xee   :  { %v320_v63 = vpop.f32.mrf.mxu0  ;;  %v361_v0 = vpop.f32.mrf.mxu1 }
  0xef   :  { %v390_v3 = vmax.f32 %v386_v61, 0.0  ;;  %v392_v4 = vmax.f32 %v388_v62, 0.0 }
  0xf0   :  { %v321_v5 = vpop.f32.mrf.mxu0  ;;  %v362_v6 = vpop.f32.mrf.mxu1 }
  0xf1   :  { %v461_v7 = vpack.c.bf16 %v390_v3, %v389_v1  ;;  %v462_v8 = vpack.c.bf16 %v392_v4, %v391_v2 }
  0xf3   :  { %409 = vst [vmem:[%s678_s3] sm:$0xff] %v461_v7  ;;  %410 = vst [vmem:[%s678_s3 + $0x8] sm:$0xff] %v462_v8 }

// kernel: _lambda_.116
= control target key start
LH: loop header
LB: loop body
LE: loop exit
PB: predicated region body
PF: predicated region fallthrough
CT: control target
= control target key end

     0   :  { %s134_s0 = inlined_call_operand.vmem [shape: bf16[8,128], index: 0, kind: input, shape index: {}]   ;;  %s135_s1 = inlined_call_operand.vmem [shape: bf16[8,128], index: 1, kind: input, shape index: {}]   ;;  %s136_s2 = inlined_call_operand.vmem [shape: bf16[8,128], index: 2, kind: input, shape index: {}]   ;;  %s137_s3 = inlined_call_operand.vmem [shape: bf16[8,128], index: 3, kind: input, shape index: {}]   ;;  %s138_s4 = inlined_call_operand.vmem [shape: bf16[8,128], index: 4, kind: input, shape index: {}]   ;;  %s139_s5 = inlined_call_operand.vmem [shape: bf16[8,128], index: 5, kind: input, shape index: {}]   ;;  %s140_s6 = inlined_call_operand.vmem [shape: bf16[8,128], index: 6, kind: input, shape index: {}]   ;;  %s141_s7 = inlined_call_operand.vmem [shape: bf16[8,128], index: 7, kind: input, shape index: {}]   ;;  %s142_s8 = inlined_call_operand.vmem [shape: bf16[8,128], index: 8, kind: input, shape index: {}]   ;;  %s143_s9 = inlined_call_operand.vmem [shape: bf16[8,128], index: 9, kind: output, shape index: {}]  }
   0x1   :  { %v32_v0 = vld [vmem:[%s134_s0] sm:$0xf] }
   0x2   :  { %v33_v1 = vld [vmem:[%s135_s1] sm:$0xf] }
   0x3   :  { %v35_v2 = vld [vmem:[%s136_s2] sm:$0xf]  ;;  %v34_v3 = vmax.bf16 %v33_v1, %v32_v0 }
   0x4   :  { %v37_v4 = vld [vmem:[%s137_s3] sm:$0xf] }
   0x5   :  { %v36_v5 = vmax.bf16 %v35_v2, %v34_v3  ;;  %v39_v6 = vld [vmem:[%s138_s4] sm:$0xf] }
   0x6   :  { %v41_v8 = vld [vmem:[%s139_s5] sm:$0xf] }
   0x7   :  { %v38_v7 = vmax.bf16 %v37_v4, %v36_v5  ;;  %v43_v10 = vld [vmem:[%s140_s6] sm:$0xf] }
   0x8   :  { %v45_v12 = vld [vmem:[%s141_s7] sm:$0xf] }
   0x9   :  { %v40_v9 = vmax.bf16 %v39_v6, %v38_v7  ;;  %v47_v14 = vld [vmem:[%s142_s8] sm:$0xf] }
   0xb   :  { %v42_v11 = vmax.bf16 %v41_v8, %v40_v9 }
   0xd   :  { %v44_v13 = vmax.bf16 %v43_v10, %v42_v11 }
   0xf   :  { %v46_v15 = vmax.bf16 %v45_v12, %v44_v13 }
  0x11   :  { %v48_v16 = vmax.bf16 %v47_v14, %v46_v15 }
  0x13   :  { %49 = vst [vmem:[%s143_s9] sm:$0xf] %v48_v16 }

// kernel: _lambda_.117
= control target key start
LH: loop header
LB: loop body
LE: loop exit
PB: predicated region body
PF: predicated region fallthrough
CT: control target
= control target key end

     0   :  { %vm49_vm0 = vcmask 1043456   ;;  %vm42_vm1 = vcmask 64512   ;;  %v207_v1 = vmov 0   ;;  %s257_s1 = inlined_call_operand.vmem [shape: bf16[8,128], index: 1, kind: input, shape index: {}]   ;;  %s258_s0 = inlined_call_operand.vmem [shape: bf16[32,8], index: 0, kind: input, shape index: {}]   ;;  %s259_s2 = inlined_call_operand.vmem [shape: f32[32,1], index: 2, kind: input, shape index: {}]   ;;  %s260_s3 = inlined_call_operand.vmem [shape: bf16[32,128], index: 3, kind: output, shape index: {}]  }
   0x1   :  { %v31_v0 = vld [vmem:[%s257_s1] sm:$0xf]  ;;  %204 = vset.pattern.permute.xlu1 %v207_v1  ;;  %203 = vset.pattern.permute.xlu0 %v207_v1  ;;  %v206_v4 = vld [vmem:[%s258_s0 + $0x8] sm:$0xff]   ;;  %v119_v5 = vld [vmem:[%s259_s2 + $0x10] sm:$0xff] }
   0x2   :  { %201 = vmatprep.subr.msk.bf16.mxu0 %vm49_vm0, %v31_v0  ;;  %v51_v2 = vsel %vm49_vm0, %v31_v0, 0  ;;  %v205_v3 = vld [vmem:[%s258_s0] sm:$0xff]   ;;  %133 = vperm.xlu1 %204, %v119_v5   ;;  %v120_v7 = vld [vmem:[%s259_s2 + $0x18] sm:$0xff]  ;;  %v118_v8 = vld [vmem:[%s259_s2 + $0x8] sm:$0xff] }
   0x3   :  { %196 = vmatpush3.bf16.msra.mxu0 %v51_v2  ;;  %v117_v6 = vld [vmem:[%s259_s2] sm:$0xff]  ;;  %197 = vmatprep.mubr.msk.bf16.mxu0 %vm42_vm1, %v205_v3 }
   0x4   :  { %123 = vperm.xlu0 %203, %v117_v6  }
   0x6   :  { %198 = vmatmul.mubr.msk.bf16.vlgmr.msra.gmra.mxu0 %vm42_vm1, %v206_v4  ;;  %138 = vperm.xlu1 %204, %v120_v7  }
   0x8   :  { %128 = vperm.xlu0 %203, %v118_v8  }
  0x7d   :  { %v134_v9 = vpop.permute.xlu1 %133 }
  0x7f   :  { %v124_v10 = vpop.permute.xlu0 %123 }
  0x81   :  { %v139_v13 = vpop.permute.xlu1 %138 }
  0x83   :  { %v129_v17 = vpop.permute.xlu0 %128 }
  0xc6   :  { %v199_v11 = vpop.f32.mrf.mxu0 }
  0xc7   :  { %v143_v15 = vadd.f32 %v199_v11, %v134_v9 }
  0xc8   :  { %v87_v12 = vpop.f32.mrf.mxu0 }
  0xc9   :  { %v141_v19 = vadd.f32 %v124_v10, %v87_v12 }
  0xca   :  { %v200_v14 = vpop.f32.mrf.mxu0 }
  0xcb   :  { %v144_v16 = vadd.f32 %v200_v14, %v139_v13 }
  0xcc   :  { %v90_v18 = vpop.f32.mrf.mxu0 }
  0xcd   :  { %v189_v20 = vpack.c.bf16 %v144_v16, %v143_v15  ;;  %v142_v21 = vadd.f32 %v129_v17, %v90_v18 }
  0xcf   :  { %191 = vst [vmem:[%s260_s3 + $0x8] sm:$0xff] %v189_v20   ;;  %v184_v22 = vpack.c.bf16 %v142_v21, %v141_v19 }
  0xd1   :  { %185 = vst [vmem:[%s260_s3] sm:$0xff] %v184_v22  }

// kernel: _lambda_.119
= control target key start
LH: loop header
LB: loop body
LE: loop exit
PB: predicated region body
PF: predicated region fallthrough
CT: control target
= control target key end

     0   :  { %vm62_vm0 = vcmask 1043456   ;;  %v161_v0 = vmov 0.0   ;;  %vm162_vm1 = vmmov 0   ;;  %v163_v3 = vmov 0   ;;  %s208_s1 = inlined_call_operand.vmem [shape: bf16[72,128], index: 1, kind: input, shape index: {}]   ;;  %s209_s2 = inlined_call_operand.vmem [shape: f32[8,1], index: 2, kind: input, shape index: {}]   ;;  %s210_s0 = inlined_call_operand.vmem [shape: bf16[8,72], index: 0, kind: input, shape index: {}]   ;;  %s211_s3 = inlined_call_operand.vmem [shape: bf16[8,128], index: 3, kind: output, shape index: {}]  }
   0x1   :  { %138 = vmatprep.subr.bf16.mxu0 %v161_v0  ;;  %v156_v1 = vld [vmem:[%s208_s1 + $0x20] ss:$0 sps:$4 sm:$0xff]   ;;  %148 = vmatprep.mubr.msk.bf16.mxu0 %vm162_vm1, %v161_v0  ;;  %v157_v4 = vld [vmem:[%s208_s1 + $0x18] sm:$0xff]   ;;  %v158_v6 = vld [vmem:[%s208_s1 + $0x10] sm:$0xff]   ;;  %vm58_vm2 = vcmask 588800  }
   0x2   :  { %v64_v2 = vsel %vm62_vm0, %v156_v1, 0  ;;  %155 = vset.pattern.permute.xlu0 %v163_v3  ;;  %v112_v5 = vld [vmem:[%s209_s2] sm:$0xff]  ;;  %v159_v7 = vld [vmem:[%s208_s1 + $0x8] sm:$0xff]  }
   0x3   :  { %139 = vmatpush3.bf16.msra.mxu0 %v64_v2  ;;  %115 = vperm.xlu0 %155, %v112_v5   ;;  %v160_v8 = vld [vmem:[%s208_s1] sm:$0xff]  }
   0x4   :  { %140 = vmatprep.subr.bf16.mxu0 %v161_v0  ;;  %v21_v9 = vld [vmem:[%s210_s0] sm:$0xf] }
   0x7   :  { %141 = vmatpush3.bf16.msra.mxu0 %v157_v4 }
   0x8   :  { %142 = vmatprep.subr.bf16.mxu0 %v161_v0 }
   0xb   :  { %143 = vmatpush3.bf16.msra.mxu0 %v158_v6 }
   0xc   :  { %144 = vmatprep.subr.bf16.mxu0 %v161_v0 }
   0xf   :  { %145 = vmatpush3.bf16.msra.mxu0 %v159_v7 }
  0x10   :  { %146 = vmatprep.subr.bf16.mxu0 %v161_v0 }
  0x13   :  { %147 = vmatpush3.bf16.msra.mxu0 %v160_v8 }
  0x16   :  { %149 = vmatmul.mubr.msk.bf16.vlgmr.msra.gmra.mxu0 %vm58_vm2, %v21_v9 }
  0x7e   :  { %v116_v10 = vpop.permute.xlu0 %115 }
  0xd6   :  { %v100_v11 = vpop.f32.mrf.mxu0 }
  0xd7   :  { %v118_v12 = vadd.f32 %v116_v10, %v100_v11 }
  0xd8   :  { %v150_v13 = vpop.f32.mrf.mxu0 }
  0xd9   :  { %v119_v14 = vmax.f32 %v118_v12, 0.0 }
  0xda   :  { %v103_v15 = vpop.f32.mrf.mxu0 }
  0xdb   :  { %v120_v16 = vpack.c.bf16 %v119_v14, %v119_v14 }
  0xdc   :  { %v151_v17 = vpop.f32.mrf.mxu0 }
  0xdd   :  { %121 = vst [vmem:[%s211_s3] sm:$0xf] %v120_v16 }

// kernel: _lambda_.121
= control target key start
LH: loop header
LB: loop body
LE: loop exit
PB: predicated region body
PF: predicated region fallthrough
CT: control target
= control target key end

     0   :  { %v122_v0 = vmov 0.0   ;;  %vm123_vm0 = vmmov 0   ;;  %v124_v2 = vmov 0   ;;  %vm38_vm1 = vcmask 261120   ;;  %s160_s1 = inlined_call_operand.vmem [shape: bf16[32,128], index: 1, kind: input, shape index: {}]   ;;  %s161_s2 = inlined_call_operand.vmem [shape: f32[8,1], index: 2, kind: input, shape index: {}]   ;;  %s162_s0 = inlined_call_operand.vmem [shape: bf16[8,32], index: 0, kind: input, shape index: {}]   ;;  %s163_s3 = inlined_call_operand.vmem [shape: bf16[8,128], index: 3, kind: output, shape index: {}]  }
   0x1   :  { %108 = vmatprep.subr.bf16.mxu0 %v122_v0  ;;  %v120_v1 = vld [vmem:[%s160_s1 + $0x8] sm:$0xff]   ;;  %112 = vmatprep.mubr.msk.bf16.mxu0 %vm123_vm0, %v122_v0  ;;  %v121_v3 = vld [vmem:[%s160_s1] sm:$0xff]  }
   0x2   :  { %119 = vset.pattern.permute.xlu0 %v124_v2  ;;  %109 = vmatpush3.bf16.msra.mxu0 %v120_v1  ;;  %v88_v4 = vld [vmem:[%s161_s2] sm:$0xff] }
   0x3   :  { %110 = vmatprep.subr.bf16.mxu0 %v122_v0  ;;  %91 = vperm.xlu0 %119, %v88_v4   ;;  %v21_v5 = vld [vmem:[%s162_s0] sm:$0xf] }
   0x6   :  { %111 = vmatpush3.bf16.msra.mxu0 %v121_v3 }
   0x9   :  { %113 = vmatmul.mubr.msk.bf16.vlgmr.msra.gmra.mxu0 %vm38_vm1, %v21_v5 }
  0x7e   :  { %v92_v6 = vpop.permute.xlu0 %91 }
  0xc9   :  { %v76_v7 = vpop.f32.mrf.mxu0 }
  0xca   :  { %v94_v8 = vadd.f32 %v92_v6, %v76_v7 }
  0xcb   :  { %v114_v9 = vpop.f32.mrf.mxu0 }
  0xcc   :  { %v95_v10 = vmax.f32 %v94_v8, 0.0 }
  0xcd   :  { %v79_v11 = vpop.f32.mrf.mxu0 }
  0xce   :  { %v96_v12 = vpack.c.bf16 %v95_v10, %v95_v10 }
  0xcf   :  { %v115_v13 = vpop.f32.mrf.mxu0 }
  0xd0   :  { %97 = vst [vmem:[%s163_s3] sm:$0xf] %v96_v12 }

// kernel: _lambda_.120
= control target key start
LH: loop header
LB: loop body
LE: loop exit
PB: predicated region body
PF: predicated region fallthrough
CT: control target
= control target key end

     0   :  { %vm52_vm0 = vcmask 1043456   ;;  %vm45_vm1 = vcmask 64512   ;;  %v235_v1 = vmov 0   ;;  %s296_s1 = inlined_call_operand.vmem [shape: bf16[8,128], index: 1, kind: input, shape index: {}]   ;;  %s297_s0 = inlined_call_operand.vmem [shape: bf16[32,8], index: 0, kind: input, shape index: {}]   ;;  %s298_s2 = inlined_call_operand.vmem [shape: f32[32,1], index: 2, kind: input, shape index: {}]   ;;  %s299_s3 = inlined_call_operand.vmem [shape: bf16[32,128], index: 3, kind: input, shape index: {}]   ;;  %s300_s4 = inlined_call_operand.vmem [shape: bf16[32,128], index: 4, kind: output, shape index: {}]  }
   0x1   :  { %v34_v0 = vld [vmem:[%s296_s1] sm:$0xf]  ;;  %232 = vset.pattern.permute.xlu1 %v235_v1  ;;  %231 = vset.pattern.permute.xlu0 %v235_v1  ;;  %v234_v4 = vld [vmem:[%s297_s0 + $0x8] sm:$0xff]   ;;  %v122_v5 = vld [vmem:[%s298_s2 + $0x10] sm:$0xff] }
   0x2   :  { %229 = vmatprep.subr.msk.bf16.mxu0 %vm52_vm0, %v34_v0  ;;  %v54_v2 = vsel %vm52_vm0, %v34_v0, 0  ;;  %v233_v3 = vld [vmem:[%s297_s0] sm:$0xff]   ;;  %136 = vperm.xlu1 %232, %v122_v5   ;;  %v123_v7 = vld [vmem:[%s298_s2 + $0x18] sm:$0xff]  ;;  %v121_v8 = vld [vmem:[%s298_s2 + $0x8] sm:$0xff] }
   0x3   :  { %224 = vmatpush3.bf16.msra.mxu0 %v54_v2  ;;  %v120_v6 = vld [vmem:[%s298_s2] sm:$0xff]  ;;  %225 = vmatprep.mubr.msk.bf16.mxu0 %vm45_vm1, %v233_v3  ;;  %v218_v10 = vld [vmem:[%s299_s3 + $0x8] sm:$0xff]  }
   0x4   :  { %126 = vperm.xlu0 %231, %v120_v6   ;;  %v201_v13 = vld [vmem:[%s299_s3] sm:$0xff]   ;;  %v206_v15 = vunpack.c.l.bf16 %v218_v10  ;;  %v207_v19 = vunpack.c.h.bf16 %v218_v10 }
   0x5   :  { %v202_v18 = vunpack.c.l.bf16 %v201_v13  ;;  %v203_v24 = vunpack.c.h.bf16 %v201_v13 }
   0x6   :  { %226 = vmatmul.mubr.msk.bf16.vlgmr.msra.gmra.mxu0 %vm45_vm1, %v234_v4  ;;  %141 = vperm.xlu1 %232, %v123_v7  }
   0x8   :  { %131 = vperm.xlu0 %231, %v121_v8  }
  0x7d   :  { %v137_v9 = vpop.permute.xlu1 %136 }
  0x7f   :  { %v127_v11 = vpop.permute.xlu0 %126 }
  0x81   :  { %v142_v20 = vpop.permute.xlu1 %141 }
  0x83   :  { %v132_v25 = vpop.permute.xlu0 %131 }
  0xc6   :  { %v227_v12 = vpop.f32.mrf.mxu0 }
  0xc7   :  { %v146_v14 = vadd.f32 %v227_v12, %v137_v9 }
  0xc8   :  { %v90_v16 = vpop.f32.mrf.mxu0 }
  0xc9   :  { %v144_v17 = vadd.f32 %v127_v11, %v90_v16  ;;  %v158_v22 = vadd.f32 %v206_v15, %v146_v14 }
  0xca   :  { %v228_v21 = vpop.f32.mrf.mxu0 }
  0xcb   :  { %v147_v23 = vadd.f32 %v228_v21, %v142_v20  ;;  %v156_v27 = vadd.f32 %v202_v18, %v144_v17  ;;  %v162_v30 = vmax.f32 %v158_v22, 0.0 }
  0xcc   :  { %v93_v26 = vpop.f32.mrf.mxu0 }
  0xcd   :  { %v159_v28 = vadd.f32 %v207_v19, %v147_v23  ;;  %v145_v29 = vadd.f32 %v132_v25, %v93_v26  ;;  %v160_v33 = vmax.f32 %v156_v27, 0.0 }
  0xcf   :  { %v163_v31 = vmax.f32 %v159_v28, 0.0  ;;  %v157_v32 = vadd.f32 %v203_v24, %v145_v29 }
  0xd1   :  { %v216_v34 = vpack.c.bf16 %v163_v31, %v162_v30  ;;  %v161_v35 = vmax.f32 %v157_v32, 0.0 }
  0xd3   :  { %219 = vst [vmem:[%s300_s4 + $0x8] sm:$0xff] %v216_v34   ;;  %v211_v36 = vpack.c.bf16 %v161_v35, %v160_v33 }
  0xd5   :  { %212 = vst [vmem:[%s300_s4] sm:$0xff] %v211_v36  }

// kernel: _lambda_.128
= control target key start
LH: loop header
LB: loop body
LE: loop exit
PB: predicated region body
PF: predicated region fallthrough
CT: control target
= control target key end

     0   :  { %v161_v0 = vmov 0.0   ;;  %vm162_vm0 = vmmov 0   ;;  %v163_v2 = vmov 0   ;;  %vm46_vm1 = vcmask 261120   ;;  %s202_s1 = inlined_call_operand.vmem [shape: bf16[32,128], index: 1, kind: input, shape index: {}]   ;;  %s203_s2 = inlined_call_operand.vmem [shape: f32[16,1], index: 2, kind: input, shape index: {}]   ;;  %s204_s0 = inlined_call_operand.vmem [shape: bf16[16,32], index: 0, kind: input, shape index: {}]   ;;  %s205_s3 = inlined_call_operand.vmem [shape: bf16[16,128], index: 3, kind: output, shape index: {}]  }
   0x1   :  { %146 = vmatprep.subr.bf16.mxu0 %v161_v0  ;;  %v158_v1 = vld [vmem:[%s202_s1 + $0x8] sm:$0xff]   ;;  %150 = vmatprep.mubr.msk.bf16.mxu0 %vm162_vm0, %v161_v0  ;;  %v159_v3 = vld [vmem:[%s202_s1] sm:$0xff]  }
   0x2   :  { %157 = vset.pattern.permute.xlu0 %v163_v2  ;;  %147 = vmatpush3.bf16.msra.mxu0 %v158_v1  ;;  %v100_v4 = vld [vmem:[%s203_s2] sm:$0xff]  ;;  %v101_v6 = vld [vmem:[%s203_s2 + $0x8] sm:$0xff] }
   0x3   :  { %148 = vmatprep.subr.bf16.mxu0 %v161_v0  ;;  %104 = vperm.xlu0 %157, %v100_v4   ;;  %v160_v5 = vld [vmem:[%s204_s0] sm:$0xff]  }
   0x6   :  { %149 = vmatpush3.bf16.msra.mxu0 %v159_v3 }
   0x7   :  { %109 = vperm.xlu0 %157, %v101_v6  }
   0x9   :  { %151 = vmatmul.mubr.msk.bf16.vlgmr.msra.gmra.mxu0 %vm46_vm1, %v160_v5 }
  0x7e   :  { %v105_v7 = vpop.permute.xlu0 %104 }
  0x82   :  { %v110_v11 = vpop.permute.xlu0 %109 }
  0xc9   :  { %v84_v8 = vpop.f32.mrf.mxu0 }
  0xca   :  { %v112_v10 = vadd.f32 %v105_v7, %v84_v8 }
  0xcb   :  { %v152_v9 = vpop.f32.mrf.mxu0 }
  0xcc   :  { %v114_v15 = vmax.f32 %v112_v10, 0.0 }
  0xcd   :  { %v87_v12 = vpop.f32.mrf.mxu0 }
  0xce   :  { %v113_v13 = vadd.f32 %v110_v11, %v87_v12 }
  0xcf   :  { %v153_v14 = vpop.f32.mrf.mxu0 }
  0xd0   :  { %v115_v16 = vmax.f32 %v113_v13, 0.0 }
  0xd2   :  { %v141_v17 = vpack.c.bf16 %v115_v16, %v114_v15 }
  0xd4   :  { %142 = vst [vmem:[%s205_s3] sm:$0xff] %v141_v17  }

// kernel: _lambda_.129
= control target key start
LH: loop header
LB: loop body
LE: loop exit
PB: predicated region body
PF: predicated region fallthrough
CT: control target
= control target key end

     0   :  { %v225_v0 = vmov 0   ;;  %vm106_vm0 = vcmask 130048   ;;  %s288_s1 = inlined_call_operand.vmem [shape: bf16[144,128], index: 1, kind: input, shape index: {}]   ;;  %s289_s0 = inlined_call_operand.vmem [shape: bf16[16,144], index: 0, kind: input, shape index: {}]   ;;  %s290_s2 = inlined_call_operand.vmem [shape: f32[16,1], index: 2, kind: input, shape index: {}]   ;;  %s291_s3 = inlined_call_operand.vmem [shape: bf16[16,128], index: 3, kind: output, shape index: {}]  }
   0x1   :  { %110 = vmatprep.subr.bf16.mxu0 %v225_v0  ;;  %v213_v1 = vld [vmem:[%s288_s1 + $0x38] sm:$0xff]   ;;  %212 = vset.pattern.permute.xlu0 %v225_v0  ;;  %v214_v2 = vld [vmem:[%s288_s1 + $0x30] sm:$0xff]   ;;  %v215_v3 = vld [vmem:[%s288_s1 + $0x28] sm:$0xff]  }
   0x2   :  { %111 = vmatpush1.bf16.msra.mxu0 %v213_v1  ;;  %v216_v4 = vld [vmem:[%s288_s1 + $0x20] sm:$0xff]   ;;  %v161_v7 = vld [vmem:[%s290_s2 + $0x8] sm:$0xff]  ;;  %v217_v8 = vld [vmem:[%s288_s1 + $0x18] sm:$0xff]  }
   0x3   :  { %112 = vmatprep.subr.bf16.mxu0 %v225_v0  ;;  %v224_v5 = vld [vmem:[%s289_s0 + $0x4] ss:$8 sps:$4 sm:$0xff]   ;;  %v218_v9 = vld [vmem:[%s288_s1 + $0x10] sm:$0xff]   ;;  %v222_v13 = vld [vmem:[%s289_s0] ss:$8 sps:$4 sm:$0xff]  }
   0x4   :  { %v160_v6 = vld [vmem:[%s290_s2] sm:$0xff]  ;;  %201 = vmatprep.mubr.msk.bf16.mxu0 %vm106_vm0, %v224_v5  ;;  %v219_v10 = vld [vmem:[%s288_s1 + $0x8] sm:$0xff]  }
   0x5   :  { %164 = vperm.xlu0 %212, %v160_v6   ;;  %v220_v11 = vld [vmem:[%s288_s1] sm:$0xff]  }
   0x6   :  { %113 = vmatpush1.bf16.msra.mxu0 %v214_v2  ;;  %v221_v12 = vld [vmem:[%s288_s1 + $0x40] sm:$0xff]  }
   0x7   :  { %114 = vmatprep.subr.bf16.mxu0 %v225_v0 }
   0x9   :  { %169 = vperm.xlu0 %212, %v161_v7  }
   0xa   :  { %115 = vmatpush1.bf16.msra.mxu0 %v215_v3 }
   0xb   :  { %116 = vmatprep.subr.bf16.mxu0 %v225_v0 }
   0xe   :  { %117 = vmatpush1.bf16.msra.mxu0 %v216_v4 }
   0xf   :  { %118 = vmatprep.subr.bf16.mxu0 %v225_v0 }
  0x12   :  { %119 = vmatpush1.bf16.msra.mxu0 %v217_v8 }
  0x13   :  { %120 = vmatprep.subr.bf16.mxu0 %v225_v0 }
  0x16   :  { %121 = vmatpush1.bf16.msra.mxu0 %v218_v9 }
  0x17   :  { %122 = vmatprep.subr.bf16.mxu0 %v225_v0 }
  0x1a   :  { %123 = vmatpush1.bf16.msra.mxu0 %v219_v10 }
  0x1b   :  { %124 = vmatprep.subr.bf16.mxu0 %v225_v0 }
  0x1e   :  { %125 = vmatpush1.bf16.msra.mxu0 %v220_v11 }
  0x1f   :  { %140 = vmatprep.subr.bf16.mxu0 %v225_v0 }
  0x22   :  { %141 = vmatpush2.bf16.msra.mxu0 %v221_v12 }
  0x25   :  { %143 = vmatmul.mubr.bf16.vlgmr.msra.gmra.mxu0 %v222_v13 }
  0x80   :  { %v165_v14 = vpop.permute.xlu0 %164 }
  0x84   :  { %v170_v18 = vpop.permute.xlu0 %169 }
  0xe5   :  { %v144_v15 = vpop.f32.mrf.mxu0 }
  0xe6   :  { %v172_v17 = vadd.f32 %v165_v14, %v144_v15 }
  0xe7   :  { %v146_v16 = vpop.f32.mrf.mxu0 }
  0xe8   :  { %v174_v22 = vmax.f32 %v172_v17, 0.0 }
  0xe9   :  { %v147_v19 = vpop.f32.mrf.mxu0 }
  0xea   :  { %v173_v20 = vadd.f32 %v170_v18, %v147_v19 }
  0xeb   :  { %v149_v21 = vpop.f32.mrf.mxu0 }
  0xec   :  { %v175_v23 = vmax.f32 %v173_v20, 0.0 }
  0xee   :  { %v209_v24 = vpack.c.bf16 %v175_v23, %v174_v22 }
  0xf0   :  { %210 = vst [vmem:[%s291_s3] sm:$0xff] %v209_v24  }

// kernel: _lambda_.131
= control target key start
LH: loop header
LB: loop body
LE: loop exit
PB: predicated region body
PF: predicated region fallthrough
CT: control target
= control target key end

     0   :  { %v187_v0 = vmov 0.0   ;;  %vm188_vm0 = vmmov 0   ;;  %v189_v2 = vmov 0   ;;  %vm62_vm1 = vcmask 523264   ;;  %s234_s1 = inlined_call_operand.vmem [shape: bf16[64,128], index: 1, kind: input, shape index: {}]   ;;  %s235_s2 = inlined_call_operand.vmem [shape: f32[16,1], index: 2, kind: input, shape index: {}]   ;;  %s236_s0 = inlined_call_operand.vmem [shape: bf16[16,64], index: 0, kind: input, shape index: {}]   ;;  %s237_s3 = inlined_call_operand.vmem [shape: bf16[16,128], index: 3, kind: output, shape index: {}]  }
   0x1   :  { %166 = vmatprep.subr.bf16.mxu0 %v187_v0  ;;  %v182_v1 = vld [vmem:[%s234_s1 + $0x18] sm:$0xff]   ;;  %174 = vmatprep.mubr.msk.bf16.mxu0 %vm188_vm0, %v187_v0  ;;  %v183_v3 = vld [vmem:[%s234_s1 + $0x10] sm:$0xff]   ;;  %v116_v4 = vld [vmem:[%s235_s2] sm:$0xff] }
   0x2   :  { %181 = vset.pattern.permute.xlu0 %v189_v2  ;;  %167 = vmatpush3.bf16.msra.mxu0 %v182_v1  ;;  %v184_v5 = vld [vmem:[%s234_s1 + $0x8] sm:$0xff]   ;;  %v185_v7 = vld [vmem:[%s234_s1] sm:$0xff]  }
   0x3   :  { %168 = vmatprep.subr.bf16.mxu0 %v187_v0  ;;  %120 = vperm.xlu0 %181, %v116_v4   ;;  %v117_v6 = vld [vmem:[%s235_s2 + $0x8] sm:$0xff]  ;;  %v186_v8 = vld [vmem:[%s236_s0] sm:$0xff]  }
   0x6   :  { %169 = vmatpush3.bf16.msra.mxu0 %v183_v3 }
   0x7   :  { %170 = vmatprep.subr.bf16.mxu0 %v187_v0  ;;  %125 = vperm.xlu0 %181, %v117_v6  }
   0xa   :  { %171 = vmatpush3.bf16.msra.mxu0 %v184_v5 }
   0xb   :  { %172 = vmatprep.subr.bf16.mxu0 %v187_v0 }
   0xe   :  { %173 = vmatpush3.bf16.msra.mxu0 %v185_v7 }
  0x11   :  { %175 = vmatmul.mubr.msk.bf16.vlgmr.msra.gmra.mxu0 %vm62_vm1, %v186_v8 }
  0x7e   :  { %v121_v9 = vpop.permute.xlu0 %120 }
  0x82   :  { %v126_v13 = vpop.permute.xlu0 %125 }
  0xd1   :  { %v100_v10 = vpop.f32.mrf.mxu0 }
  0xd2   :  { %v128_v12 = vadd.f32 %v121_v9, %v100_v10 }
  0xd3   :  { %v176_v11 = vpop.f32.mrf.mxu0 }
  0xd4   :  { %v130_v17 = vmax.f32 %v128_v12, 0.0 }
  0xd5   :  { %v103_v14 = vpop.f32.mrf.mxu0 }
  0xd6   :  { %v129_v15 = vadd.f32 %v126_v13, %v103_v14 }
  0xd7   :  { %v177_v16 = vpop.f32.mrf.mxu0 }
  0xd8   :  { %v131_v18 = vmax.f32 %v129_v15, 0.0 }
  0xda   :  { %v159_v19 = vpack.c.bf16 %v131_v18, %v130_v17 }
  0xdc   :  { %160 = vst [vmem:[%s237_s3] sm:$0xff] %v159_v19  }

// kernel: _lambda_.130
= control target key start
LH: loop header
LB: loop body
LE: loop exit
PB: predicated region body
PF: predicated region fallthrough
CT: control target
= control target key end

     0   :  { %v403_v1 = vmov 0   ;;  %vm74_vm0 = vcmask 130048   ;;  %s492_s1 = inlined_call_operand.vmem [shape: bf16[16,128], index: 1, kind: input, shape index: {}]   ;;  %s493_s0 = inlined_call_operand.vmem [shape: bf16[64,16], index: 0, kind: input, shape index: {}]   ;;  %s494_s2 = inlined_call_operand.vmem [shape: f32[64,1], index: 2, kind: input, shape index: {}]   ;;  %s495_s3 = inlined_call_operand.vmem [shape: bf16[64,128], index: 3, kind: input, shape index: {}]   ;;  %s496_s4 = inlined_call_operand.vmem [shape: bf16[64,128], index: 4, kind: output, shape index: {}]  }
   0x1   :  { %v398_v0 = vld [vmem:[%s492_s1] sm:$0xff]   ;;  %397 = vset.pattern.permute.xlu1 %v403_v1  ;;  %396 = vset.pattern.permute.xlu0 %v403_v1  ;;  %v400_v3 = vld [vmem:[%s493_s0 + $0x10] sm:$0xff]   ;;  %v401_v4 = vld [vmem:[%s493_s0 + $0x8] sm:$0xff]  }
   0x2   :  { %v399_v2 = vld [vmem:[%s493_s0] sm:$0xff]   ;;  %383 = vmatprep.subr.bf16.mxu0 %v398_v0  ;;  %393 = vmatprep.subr.bf16.mxu1 %v398_v0  ;;  %v402_v5 = vld [vmem:[%s493_s0 + $0x18] sm:$0xff]   ;;  %v181_v6 = vld [vmem:[%s494_s2 + $0x10] sm:$0xff] }
   0x3   :  { %384 = vmatpush3.bf16.msra.mxu0 %v398_v0  ;;  %394 = vmatpush3.bf16.msra.mxu1 %v398_v0  ;;  %v179_v7 = vld [vmem:[%s494_s2] sm:$0xff]  ;;  %v182_v8 = vld [vmem:[%s494_s2 + $0x18] sm:$0xff]  ;;  %v180_v9 = vld [vmem:[%s494_s2 + $0x8] sm:$0xff] }
   0x4   :  { %385 = vmatprep.mubr.msk.bf16.mxu0 %vm74_vm0, %v399_v2  ;;  %389 = vmatprep.mubr.msk.bf16.mxu1 %vm74_vm0, %v400_v3  ;;  %v184_v10 = vld [vmem:[%s494_s2 + $0x28] sm:$0xff]  ;;  %v183_v11 = vld [vmem:[%s494_s2 + $0x20] sm:$0xff]  ;;  %v186_v12 = vld [vmem:[%s494_s2 + $0x38] sm:$0xff] }
   0x5   :  { %199 = vperm.xlu1 %397, %v181_v6   ;;  %189 = vperm.xlu0 %396, %v179_v7   ;;  %v185_v13 = vld [vmem:[%s494_s2 + $0x30] sm:$0xff]  ;;  %v372_v20 = vld [vmem:[%s495_s3 + $0x8] sm:$0xff]   ;;  %v374_v21 = vld [vmem:[%s495_s3 + $0x18] sm:$0xff]  }
   0x6   :  { %386 = vmatmul.mubr.msk.bf16.vlgmr.msra.gmra.mxu0 %vm74_vm0, %v401_v4  ;;  %390 = vmatmul.mubr.msk.bf16.vlgmr.msra.gmra.mxu1 %vm74_vm0, %v402_v5  ;;  %v337_v24 = vld [vmem:[%s495_s3] sm:$0xff]   ;;  %v373_v25 = vld [vmem:[%s495_s3 + $0x10] sm:$0xff]   ;;  %v342_v28 = vunpack.c.l.bf16 %v372_v20  ;;  %v350_v30 = vunpack.c.l.bf16 %v374_v21  ;;  %v343_v38 = vunpack.c.h.bf16 %v372_v20  ;;  %v351_v40 = vunpack.c.h.bf16 %v374_v21 }
   0x7   :  { %v338_v34 = vunpack.c.l.bf16 %v337_v24  ;;  %v346_v36 = vunpack.c.l.bf16 %v373_v25  ;;  %v339_v42 = vunpack.c.h.bf16 %v337_v24  ;;  %v347_v43 = vunpack.c.h.bf16 %v373_v25 }
   0x9   :  { %204 = vperm.xlu1 %397, %v182_v8   ;;  %194 = vperm.xlu0 %396, %v180_v9  }
   0xd   :  { %214 = vperm.xlu1 %397, %v184_v10   ;;  %209 = vperm.xlu0 %396, %v183_v11  }
  0x11   :  { %224 = vperm.xlu1 %397, %v186_v12   ;;  %219 = vperm.xlu0 %396, %v185_v13  }
  0x80   :  { %v190_v14 = vpop.permute.xlu0 %189  ;;  %v200_v15 = vpop.permute.xlu1 %199 }
  0x84   :  { %v195_v16 = vpop.permute.xlu0 %194  ;;  %v205_v17 = vpop.permute.xlu1 %204 }
  0x88   :  { %v210_v18 = vpop.permute.xlu0 %209  ;;  %v215_v19 = vpop.permute.xlu1 %214 }
  0x8c   :  { %v220_v26 = vpop.permute.xlu0 %219  ;;  %v225_v41 = vpop.permute.xlu1 %224 }
  0xc6   :  { %v387_v22 = vpop.f32.mrf.mxu0  ;;  %v391_v23 = vpop.f32.mrf.mxu1 }
  0xc7   :  { %v229_v27 = vadd.f32 %v387_v22, %v200_v15  ;;  %v233_v29 = vadd.f32 %v391_v23, %v220_v26 }
  0xc8   :  { %v121_v31 = vpop.f32.mrf.mxu0  ;;  %v137_v32 = vpop.f32.mrf.mxu1 }
  0xc9   :  { %v227_v33 = vadd.f32 %v190_v14, %v121_v31  ;;  %v231_v35 = vadd.f32 %v210_v18, %v137_v32  ;;  %v253_v44 = vadd.f32 %v342_v28, %v229_v27  ;;  %v257_v45 = vadd.f32 %v350_v30, %v233_v29 }
  0xca   :  { %v388_v37 = vpop.f32.mrf.mxu0  ;;  %v392_v39 = vpop.f32.mrf.mxu1 }
  0xcb   :  { %v230_v46 = vadd.f32 %v388_v37, %v205_v17  ;;  %v234_v47 = vadd.f32 %v392_v39, %v225_v41  ;;  %v251_v50 = vadd.f32 %v338_v34, %v227_v33  ;;  %v255_v51 = vadd.f32 %v346_v36, %v231_v35 }
  0xcc   :  { %v124_v48 = vpop.f32.mrf.mxu0  ;;  %v140_v49 = vpop.f32.mrf.mxu1  ;;  %v261_v58 = vmax.f32 %v253_v44, 0.0  ;;  %v265_v59 = vmax.f32 %v257_v45, 0.0 }
  0xcd   :  { %v228_v52 = vadd.f32 %v195_v16, %v124_v48  ;;  %v232_v53 = vadd.f32 %v215_v19, %v140_v49  ;;  %v254_v54 = vadd.f32 %v343_v38, %v230_v46  ;;  %v258_v55 = vadd.f32 %v351_v40, %v234_v47 }
  0xce   :  { %v259_v62 = vmax.f32 %v251_v50, 0.0  ;;  %v263_v63 = vmax.f32 %v255_v51, 0.0 }
  0xcf   :  { %v252_v56 = vadd.f32 %v339_v42, %v228_v52  ;;  %v256_v57 = vadd.f32 %v347_v43, %v232_v53  ;;  %v262_v60 = vmax.f32 %v254_v54, 0.0  ;;  %v266_v61 = vmax.f32 %v258_v55, 0.0 }
  0xd1   :  { %v260_v0 = vmax.f32 %v252_v56, 0.0  ;;  %v264_v1 = vmax.f32 %v256_v57, 0.0  ;;  %v360_v2 = vpack.c.bf16 %v262_v60, %v261_v58  ;;  %v370_v3 = vpack.c.bf16 %v266_v61, %v265_v59 }
  0xd3   :  { %v355_v4 = vpack.c.bf16 %v260_v0, %v259_v62  ;;  %v365_v5 = vpack.c.bf16 %v264_v1, %v263_v63  ;;  %375 = vst [vmem:[%s496_s4 + $0x8] sm:$0xff] %v360_v2   ;;  %377 = vst [vmem:[%s496_s4 + $0x18] sm:$0xff] %v370_v3  }
  0xd5   :  { %356 = vst [vmem:[%s496_s4] sm:$0xff] %v355_v4   ;;  %376 = vst [vmem:[%s496_s4 + $0x10] sm:$0xff] %v365_v5  }

// kernel: _lambda_.127
= control target key start
LH: loop header
LB: loop body
LE: loop exit
PB: predicated region body
PF: predicated region fallthrough
CT: control target
= control target key end

     0   :  { %v364_v1 = vmov 0   ;;  %vm79_vm0 = vcmask 261120   ;;  %s443_s1 = inlined_call_operand.vmem [shape: bf16[32,128], index: 1, kind: input, shape index: {}]   ;;  %s444_s0 = inlined_call_operand.vmem [shape: bf16[64,32], index: 0, kind: input, shape index: {}]   ;;  %s445_s2 = inlined_call_operand.vmem [shape: f32[64,1], index: 2, kind: input, shape index: {}]   ;;  %s446_s3 = inlined_call_operand.vmem [shape: bf16[64,128], index: 3, kind: output, shape index: {}]  }
   0x1   :  { %v358_v0 = vld [vmem:[%s443_s1 + $0x8] sm:$0xff]   ;;  %357 = vset.pattern.permute.xlu1 %v364_v1  ;;  %356 = vset.pattern.permute.xlu0 %v364_v1  ;;  %v359_v2 = vld [vmem:[%s443_s1] sm:$0xff]   ;;  %v361_v4 = vld [vmem:[%s444_s0 + $0x10] sm:$0xff]  }
   0x2   :  { %339 = vmatprep.subr.bf16.mxu0 %v358_v0  ;;  %351 = vmatprep.subr.bf16.mxu1 %v358_v0  ;;  %v360_v3 = vld [vmem:[%s444_s0] sm:$0xff]   ;;  %v362_v5 = vld [vmem:[%s444_s0 + $0x8] sm:$0xff]   ;;  %v363_v6 = vld [vmem:[%s444_s0 + $0x18] sm:$0xff]  }
   0x3   :  { %340 = vmatpush3.bf16.msra.mxu0 %v358_v0  ;;  %353 = vmatpush3.bf16.msra.mxu1 %v358_v0  ;;  %v186_v7 = vld [vmem:[%s445_s2 + $0x10] sm:$0xff]  ;;  %v184_v8 = vld [vmem:[%s445_s2] sm:$0xff]  ;;  %v187_v9 = vld [vmem:[%s445_s2 + $0x18] sm:$0xff] }
   0x4   :  { %341 = vmatprep.subr.bf16.mxu0 %v359_v2  ;;  %352 = vmatprep.subr.bf16.mxu1 %v359_v2  ;;  %v185_v10 = vld [vmem:[%s445_s2 + $0x8] sm:$0xff]  ;;  %v188_v12 = vld [vmem:[%s445_s2 + $0x20] sm:$0xff]  ;;  %v191_v13 = vld [vmem:[%s445_s2 + $0x38] sm:$0xff] }
   0x5   :  { %343 = vmatprep.mubr.msk.bf16.mxu0 %vm79_vm0, %v360_v3  ;;  %347 = vmatprep.mubr.msk.bf16.mxu1 %vm79_vm0, %v361_v4  ;;  %v189_v11 = vld [vmem:[%s445_s2 + $0x28] sm:$0xff]  ;;  %v190_v14 = vld [vmem:[%s445_s2 + $0x30] sm:$0xff] }
   0x6   :  { %204 = vperm.xlu1 %357, %v186_v7   ;;  %194 = vperm.xlu0 %356, %v184_v8  }
   0x7   :  { %342 = vmatpush3.bf16.msra.mxu0 %v359_v2  ;;  %354 = vmatpush3.bf16.msra.mxu1 %v359_v2 }
   0xa   :  { %344 = vmatmul.mubr.msk.bf16.vlgmr.msra.gmra.mxu0 %vm79_vm0, %v362_v5  ;;  %348 = vmatmul.mubr.msk.bf16.vlgmr.msra.gmra.mxu1 %vm79_vm0, %v363_v6 }
   0xb   :  { %209 = vperm.xlu1 %357, %v187_v9   ;;  %199 = vperm.xlu0 %356, %v185_v10  }
   0xf   :  { %219 = vperm.xlu1 %357, %v189_v11   ;;  %214 = vperm.xlu0 %356, %v188_v12  }
  0x13   :  { %229 = vperm.xlu1 %357, %v191_v13   ;;  %224 = vperm.xlu0 %356, %v190_v14  }
  0x81   :  { %v205_v15 = vpop.permute.xlu1 %204  ;;  %v195_v16 = vpop.permute.xlu0 %194 }
  0x86   :  { %v210_v17 = vpop.permute.xlu1 %209  ;;  %v200_v18 = vpop.permute.xlu0 %199 }
  0x8a   :  { %v220_v19 = vpop.permute.xlu1 %219  ;;  %v215_v20 = vpop.permute.xlu0 %214 }
  0x8e   :  { %v230_v25 = vpop.permute.xlu1 %229  ;;  %v225_v26 = vpop.permute.xlu0 %224 }
  0xca   :  { %v345_v21 = vpop.f32.mrf.mxu0  ;;  %v349_v22 = vpop.f32.mrf.mxu1 }
  0xcb   :  { %v234_v29 = vadd.f32 %v345_v21, %v205_v15  ;;  %v238_v30 = vadd.f32 %v349_v22, %v225_v26 }
  0xcc   :  { %v126_v23 = vpop.f32.mrf.mxu0  ;;  %v142_v24 = vpop.f32.mrf.mxu1 }
  0xcd   :  { %v232_v33 = vadd.f32 %v195_v16, %v126_v23  ;;  %v236_v34 = vadd.f32 %v215_v20, %v142_v24 }
  0xce   :  { %v346_v27 = vpop.f32.mrf.mxu0  ;;  %v350_v28 = vpop.f32.mrf.mxu1 }
  0xcf   :  { %v235_v31 = vadd.f32 %v346_v27, %v210_v17  ;;  %v239_v32 = vadd.f32 %v350_v28, %v230_v25 }
  0xd0   :  { %v129_v35 = vpop.f32.mrf.mxu0  ;;  %v145_v36 = vpop.f32.mrf.mxu1 }
  0xd1   :  { %v318_v37 = vpack.c.bf16 %v235_v31, %v234_v29  ;;  %v328_v38 = vpack.c.bf16 %v239_v32, %v238_v30  ;;  %v233_v39 = vadd.f32 %v200_v18, %v129_v35  ;;  %v237_v40 = vadd.f32 %v220_v19, %v145_v36 }
  0xd3   :  { %330 = vst [vmem:[%s446_s3 + $0x8] sm:$0xff] %v318_v37   ;;  %332 = vst [vmem:[%s446_s3 + $0x18] sm:$0xff] %v328_v38   ;;  %v313_v41 = vpack.c.bf16 %v233_v39, %v232_v33  ;;  %v323_v42 = vpack.c.bf16 %v237_v40, %v236_v34 }
  0xd5   :  { %314 = vst [vmem:[%s446_s3] sm:$0xff] %v313_v41   ;;  %331 = vst [vmem:[%s446_s3 + $0x10] sm:$0xff] %v323_v42  }

// kernel: _lambda_.141
= control target key start
LH: loop header
LB: loop body
LE: loop exit
PB: predicated region body
PF: predicated region fallthrough
CT: control target
= control target key end

     0   :  { %v254_v1 = vmov 0   ;;  %vm73_vm0 = vcmask 523264   ;;  %s313_s1 = inlined_call_operand.vmem [shape: bf16[64,128], index: 1, kind: input, shape index: {}]   ;;  %s314_s0 = inlined_call_operand.vmem [shape: bf16[32,64], index: 0, kind: input, shape index: {}]   ;;  %s315_s2 = inlined_call_operand.vmem [shape: f32[32,1], index: 2, kind: input, shape index: {}]   ;;  %s316_s3 = inlined_call_operand.vmem [shape: bf16[32,128], index: 3, kind: output, shape index: {}]  }
   0x1   :  { %v248_v0 = vld [vmem:[%s313_s1 + $0x18] sm:$0xff]   ;;  %247 = vset.pattern.permute.xlu1 %v254_v1  ;;  %246 = vset.pattern.permute.xlu0 %v254_v1  ;;  %v249_v2 = vld [vmem:[%s313_s1 + $0x10] sm:$0xff]   ;;  %v250_v3 = vld [vmem:[%s313_s1 + $0x8] sm:$0xff]  }
   0x2   :  { %233 = vmatprep.subr.bf16.mxu0 %v248_v0  ;;  %v252_v4 = vld [vmem:[%s314_s0] sm:$0xff]   ;;  %v146_v5 = vld [vmem:[%s315_s2 + $0x10] sm:$0xff]  ;;  %v147_v8 = vld [vmem:[%s315_s2 + $0x18] sm:$0xff] }
   0x3   :  { %234 = vmatpush3.bf16.msra.mxu0 %v248_v0  ;;  %241 = vmatprep.mubr.msk.bf16.mxu0 %vm73_vm0, %v252_v4  ;;  %v144_v6 = vld [vmem:[%s315_s2] sm:$0xff]  ;;  %v145_v9 = vld [vmem:[%s315_s2 + $0x8] sm:$0xff] }
   0x4   :  { %235 = vmatprep.subr.bf16.mxu0 %v249_v2  ;;  %160 = vperm.xlu1 %247, %v146_v5   ;;  %v251_v7 = vld [vmem:[%s313_s1] sm:$0xff]   ;;  %v253_v10 = vld [vmem:[%s314_s0 + $0x8] sm:$0xff]  }
   0x5   :  { %150 = vperm.xlu0 %246, %v144_v6  }
   0x7   :  { %236 = vmatpush3.bf16.msra.mxu0 %v249_v2 }
   0x8   :  { %237 = vmatprep.subr.bf16.mxu0 %v250_v3  ;;  %165 = vperm.xlu1 %247, %v147_v8  }
   0x9   :  { %155 = vperm.xlu0 %246, %v145_v9  }
   0xb   :  { %238 = vmatpush3.bf16.msra.mxu0 %v250_v3 }
   0xc   :  { %239 = vmatprep.subr.bf16.mxu0 %v251_v7 }
   0xf   :  { %240 = vmatpush3.bf16.msra.mxu0 %v251_v7 }
  0x12   :  { %242 = vmatmul.mubr.msk.bf16.vlgmr.msra.gmra.mxu0 %vm73_vm0, %v253_v10 }
  0x7f   :  { %v161_v11 = vpop.permute.xlu1 %160 }
  0x80   :  { %v151_v12 = vpop.permute.xlu0 %150 }
  0x83   :  { %v166_v16 = vpop.permute.xlu1 %165 }
  0x84   :  { %v156_v20 = vpop.permute.xlu0 %155 }
  0xd2   :  { %v243_v13 = vpop.f32.mrf.mxu0 }
  0xd3   :  { %v170_v15 = vadd.f32 %v243_v13, %v161_v11 }
  0xd4   :  { %v114_v14 = vpop.f32.mrf.mxu0 }
  0xd5   :  { %v168_v18 = vadd.f32 %v151_v12, %v114_v14  ;;  %v174_v22 = vmax.f32 %v170_v15, 0.0 }
  0xd6   :  { %v244_v17 = vpop.f32.mrf.mxu0 }
  0xd7   :  { %v171_v19 = vadd.f32 %v244_v17, %v166_v16  ;;  %v172_v25 = vmax.f32 %v168_v18, 0.0 }
  0xd8   :  { %v117_v21 = vpop.f32.mrf.mxu0 }
  0xd9   :  { %v175_v23 = vmax.f32 %v171_v19, 0.0  ;;  %v169_v24 = vadd.f32 %v156_v20, %v117_v21 }
  0xdb   :  { %v224_v26 = vpack.c.bf16 %v175_v23, %v174_v22  ;;  %v173_v27 = vmax.f32 %v169_v24, 0.0 }
  0xdd   :  { %226 = vst [vmem:[%s316_s3 + $0x8] sm:$0xff] %v224_v26   ;;  %v219_v28 = vpack.c.bf16 %v173_v27, %v172_v25 }
  0xdf   :  { %220 = vst [vmem:[%s316_s3] sm:$0xff] %v219_v28  }

// kernel: _lambda_.142
= control target key start
LH: loop header
LB: loop body
LE: loop exit
PB: predicated region body
PF: predicated region fallthrough
CT: control target
= control target key end

     0   :  { %v499_v1 = vmov 0   ;;  %vm209_vm0 = vcmask 261120   ;;  %s612_s1 = inlined_call_operand.vmem [shape: bf16[288,128], index: 1, kind: input, shape index: {}]   ;;  %s613_s0 = inlined_call_operand.vmem [shape: bf16[32,288], index: 0, kind: input, shape index: {}]   ;;  %s614_s2 = inlined_call_operand.vmem [shape: f32[32,1], index: 2, kind: input, shape index: {}]   ;;  %s615_s3 = inlined_call_operand.vmem [shape: bf16[32,128], index: 3, kind: output, shape index: {}]  }
   0x1   :  { %v473_v0 = vld [vmem:[%s612_s1 + $0x78] sm:$0xff]   ;;  %471 = vset.pattern.permute.xlu0 %v499_v1  ;;  %472 = vset.pattern.permute.xlu1 %v499_v1  ;;  %v475_v3 = vld [vmem:[%s612_s1 + $0x70] sm:$0xff]   ;;  %v477_v5 = vld [vmem:[%s612_s1 + $0x68] sm:$0xff]  }
   0x2   :  { %v474_v2 = vld [vmem:[%s612_s1 + $0x38] sm:$0xff]   ;;  %430 = vmatprep.subr.bf16.mxu0 %v473_v0  ;;  %v476_v4 = vld [vmem:[%s612_s1 + $0x30] sm:$0xff]   ;;  %v478_v6 = vld [vmem:[%s612_s1 + $0x28] sm:$0xff]  }
   0x3   :  { %431 = vmatpush3.bf16.msra.mxu0 %v474_v2  ;;  %v479_v7 = vld [vmem:[%s612_s1 + $0x60] sm:$0xff]   ;;  %v481_v9 = vld [vmem:[%s612_s1 + $0x58] sm:$0xff]   ;;  %v487_v10 = vld [vmem:[%s612_s1 + $0x88] sm:$0xff]  }
   0x4   :  { %432 = vmatprep.subr.bf16.mxu0 %v475_v3  ;;  %v480_v8 = vld [vmem:[%s612_s1 + $0x20] sm:$0xff]   ;;  %v482_v11 = vld [vmem:[%s612_s1 + $0x18] sm:$0xff]   ;;  %v483_v12 = vld [vmem:[%s612_s1 + $0x50] sm:$0xff]   ;;  %462 = vmatprep.subr.bf16.mxu1 %v487_v10 }
   0x5   :  { %v484_v13 = vld [vmem:[%s612_s1 + $0x10] sm:$0xff]   ;;  %463 = vmatpush3.bf16.msra.mxu1 %v487_v10  ;;  %v490_v14 = vld [vmem:[%s612_s1 + $0x80] sm:$0xff]   ;;  %v485_v15 = vld [vmem:[%s612_s1 + $0x48] sm:$0xff]  }
   0x6   :  { %464 = vmatprep.subr.bf16.mxu1 %v490_v14  ;;  %v493_v16 = vld [vmem:[%s613_s0 + $0x4] ss:$12 sps:$4 sm:$0xff]   ;;  %v494_v17 = vld [vmem:[%s613_s0 + $0x8] ss:$12 sps:$4 sm:$0xff]   ;;  %v495_v18 = vld [vmem:[%s613_s0 + $0x20] ss:$12 sps:$4 sm:$0xff]  }
   0x7   :  { %433 = vmatpush3.bf16.msra.mxu0 %v476_v4  ;;  %248 = vmatprep.mubr.bf16.mxu0 %v493_v16  ;;  %v329_v19 = vld [vmem:[%s614_s2] sm:$0xff]  ;;  %v486_v20 = vld [vmem:[%s612_s1 + $0x8] sm:$0xff]   ;;  %v331_v21 = vld [vmem:[%s614_s2 + $0x10] sm:$0xff] }
   0x8   :  { %434 = vmatprep.subr.bf16.mxu0 %v477_v5  ;;  %466 = vmatprep.mubr.msk.bf16.mxu1 %vm209_vm0, %v494_v17  ;;  %v488_v22 = vld [vmem:[%s612_s1 + $0x40] sm:$0xff]   ;;  %v330_v23 = vld [vmem:[%s614_s2 + $0x8] sm:$0xff]  ;;  %v332_v24 = vld [vmem:[%s614_s2 + $0x18] sm:$0xff] }
   0x9   :  { %465 = vmatpush3.bf16.msra.mxu1 %v490_v14  ;;  %335 = vperm.xlu0 %471, %v329_v19   ;;  %v489_v25 = vld [vmem:[%s612_s1] sm:$0xff]   ;;  %v496_v27 = vld [vmem:[%s613_s0 + $0x1c] ss:$12 sps:$4 sm:$0xff]  }
   0xa   :  { %345 = vperm.xlu1 %472, %v331_v21   ;;  %v491_v26 = vld [vmem:[%s613_s0] ss:$12 sps:$4 sm:$0xff]   ;;  %v498_v28 = vld [vmem:[%s613_s0 + $0x18] ss:$12 sps:$4 sm:$0xff]  }
   0xb   :  { %435 = vmatpush3.bf16.msra.mxu0 %v478_v6 }
   0xc   :  { %436 = vmatprep.subr.bf16.mxu0 %v479_v7  ;;  %467 = vmatmul.mubr.msk.bf16.vlgmr.msra.gmra.mxu1 %vm209_vm0, %v495_v18 }
   0xd   :  { %340 = vperm.xlu0 %471, %v330_v23  }
   0xe   :  { %350 = vperm.xlu1 %472, %v332_v24  }
   0xf   :  { %437 = vmatpush3.bf16.msra.mxu0 %v480_v8 }
  0x10   :  { %438 = vmatprep.subr.bf16.mxu0 %v481_v9 }
  0x13   :  { %439 = vmatpush3.bf16.msra.mxu0 %v482_v11 }
  0x14   :  { %440 = vmatprep.subr.bf16.mxu0 %v483_v12 }
  0x17   :  { %441 = vmatpush3.bf16.msra.mxu0 %v484_v13 }
  0x18   :  { %442 = vmatprep.subr.bf16.mxu0 %v485_v15 }
  0x1b   :  { %443 = vmatpush3.bf16.msra.mxu0 %v486_v20 }
  0x1c   :  { %444 = vmatprep.subr.bf16.mxu0 %v488_v22 }
  0x1f   :  { %445 = vmatpush3.bf16.msra.mxu0 %v489_v25 }
  0x22   :  { %249 = vmatmul.mubr.bf16.vlgmr.msra.gmra.mxu0 %v491_v26 }
  0x23   :  { %256 = vmatprep.mubr.bf16.mxu0 %v496_v27 }
  0x2a   :  { %257 = vmatmul.mubr.bf16.gmra.mxu0 %v498_v28 }
  0x84   :  { %v336_v32 = vpop.permute.xlu0 %335 }
  0x85   :  { %v346_v48 = vpop.permute.xlu1 %345 }
  0x88   :  { %v341_v42 = vpop.permute.xlu0 %340 }
  0x89   :  { %v351_v58 = vpop.permute.xlu1 %350 }
  0xcc   :  { %v468_v29 = vpop.f32.mrf.mxu1 }
  0xce   :  { %v299_v30 = vpop.f32.mrf.mxu1 }
  0xd0   :  { %v469_v34 = vpop.f32.mrf.mxu1 }
  0xd2   :  { %v302_v39 = vpop.f32.mrf.mxu1 }
  0xe2   :  { %v446_v31 = vpop.f32.mrf.mxu0 }
  0xe4   :  { %v447_v33 = vpop.f32.mrf.mxu0 }
  0xe5   :  { %v448_v35 = vadd.f32 %v447_v33, %v446_v31 }
  0xe6   :  { %v449_v36 = vpop.f32.mrf.mxu0 }
  0xe7   :  { %v300_v37 = vadd.f32 %v448_v35, %v299_v30 }
  0xe8   :  { %v450_v38 = vpop.f32.mrf.mxu0 }
  0xe9   :  { %v451_v40 = vadd.f32 %v450_v38, %v449_v36  ;;  %v353_v43 = vadd.f32 %v336_v32, %v300_v37 }
  0xea   :  { %v452_v41 = vpop.f32.mrf.mxu0 }
  0xeb   :  { %v303_v44 = vadd.f32 %v451_v40, %v302_v39  ;;  %v357_v50 = vmax.f32 %v353_v43, 0.0 }
  0xec   :  { %v453_v45 = vpop.f32.mrf.mxu0 }
  0xed   :  { %v354_v46 = vadd.f32 %v341_v42, %v303_v44  ;;  %v454_v47 = vadd.f32 %v453_v45, %v452_v41 }
  0xee   :  { %v455_v49 = vpop.f32.mrf.mxu0 }
  0xef   :  { %v358_v51 = vmax.f32 %v354_v46, 0.0  ;;  %v308_v52 = vadd.f32 %v468_v29, %v454_v47 }
  0xf0   :  { %v456_v53 = vpop.f32.mrf.mxu0 }
  0xf1   :  { %v422_v54 = vpack.c.bf16 %v358_v51, %v357_v50  ;;  %v457_v55 = vadd.f32 %v456_v53, %v455_v49  ;;  %v355_v56 = vadd.f32 %v346_v48, %v308_v52 }
  0xf3   :  { %423 = vst [vmem:[%s615_s3] sm:$0xff] %v422_v54   ;;  %v311_v57 = vadd.f32 %v469_v34, %v457_v55  ;;  %v359_v60 = vmax.f32 %v355_v56, 0.0 }
  0xf5   :  { %v356_v59 = vadd.f32 %v351_v58, %v311_v57 }
  0xf7   :  { %v360_v61 = vmax.f32 %v356_v59, 0.0 }
  0xf9   :  { %v427_v62 = vpack.c.bf16 %v360_v61, %v359_v60 }
  0xfb   :  { %429 = vst [vmem:[%s615_s3 + $0x8] sm:$0xff] %v427_v62  }

// kernel: _lambda_.144
= control target key start
LH: loop header
LB: loop body
LE: loop exit
PB: predicated region body
PF: predicated region fallthrough
CT: control target
= control target key end

     0   :  { %v299_v1 = vmov 0   ;;  %s368_s1 = inlined_call_operand.vmem [shape: bf16[128,128], index: 1, kind: input, shape index: {}]   ;;  %s369_s0 = inlined_call_operand.vmem [shape: bf16[32,128], index: 0, kind: input, shape index: {}]   ;;  %s370_s2 = inlined_call_operand.vmem [shape: f32[32,1], index: 2, kind: input, shape index: {}]   ;;  %s371_s3 = inlined_call_operand.vmem [shape: bf16[32,128], index: 3, kind: output, shape index: {}]  }
   0x1   :  { %v289_v0 = vld [vmem:[%s368_s1 + $0x38] sm:$0xff]   ;;  %288 = vset.pattern.permute.xlu1 %v299_v1  ;;  %287 = vset.pattern.permute.xlu0 %v299_v1  ;;  %v290_v2 = vld [vmem:[%s368_s1 + $0x30] sm:$0xff]   ;;  %v291_v3 = vld [vmem:[%s368_s1 + $0x28] sm:$0xff]  }
   0x2   :  { %266 = vmatprep.subr.bf16.mxu0 %v289_v0  ;;  %v292_v4 = vld [vmem:[%s368_s1 + $0x20] sm:$0xff]   ;;  %v173_v6 = vld [vmem:[%s370_s2 + $0x10] sm:$0xff]  ;;  %v293_v8 = vld [vmem:[%s368_s1 + $0x18] sm:$0xff]  }
   0x3   :  { %267 = vmatpush3.bf16.msra.mxu0 %v289_v0  ;;  %v297_v5 = vld [vmem:[%s369_s0] sm:$0xff]   ;;  %187 = vperm.xlu1 %288, %v173_v6   ;;  %v174_v9 = vld [vmem:[%s370_s2 + $0x18] sm:$0xff]  ;;  %v172_v10 = vld [vmem:[%s370_s2 + $0x8] sm:$0xff] }
   0x4   :  { %268 = vmatprep.subr.bf16.mxu0 %v290_v2  ;;  %282 = vmatprep.mubr.bf16.mxu0 %v297_v5  ;;  %v171_v7 = vld [vmem:[%s370_s2] sm:$0xff]  ;;  %v294_v11 = vld [vmem:[%s368_s1 + $0x10] sm:$0xff]   ;;  %v295_v12 = vld [vmem:[%s368_s1 + $0x8] sm:$0xff]  }
   0x5   :  { %177 = vperm.xlu0 %287, %v171_v7   ;;  %v296_v13 = vld [vmem:[%s368_s1] sm:$0xff]   ;;  %v298_v14 = vld [vmem:[%s369_s0 + $0x8] sm:$0xff]  }
   0x7   :  { %269 = vmatpush3.bf16.msra.mxu0 %v290_v2  ;;  %192 = vperm.xlu1 %288, %v174_v9  }
   0x8   :  { %270 = vmatprep.subr.bf16.mxu0 %v291_v3 }
   0x9   :  { %182 = vperm.xlu0 %287, %v172_v10  }
   0xb   :  { %271 = vmatpush3.bf16.msra.mxu0 %v291_v3 }
   0xc   :  { %272 = vmatprep.subr.bf16.mxu0 %v292_v4 }
   0xf   :  { %273 = vmatpush3.bf16.msra.mxu0 %v292_v4 }
  0x10   :  { %274 = vmatprep.subr.bf16.mxu0 %v293_v8 }
  0x13   :  { %275 = vmatpush3.bf16.msra.mxu0 %v293_v8 }
  0x14   :  { %276 = vmatprep.subr.bf16.mxu0 %v294_v11 }
  0x17   :  { %277 = vmatpush3.bf16.msra.mxu0 %v294_v11 }
  0x18   :  { %278 = vmatprep.subr.bf16.mxu0 %v295_v12 }
  0x1b   :  { %279 = vmatpush3.bf16.msra.mxu0 %v295_v12 }
  0x1c   :  { %280 = vmatprep.subr.bf16.mxu0 %v296_v13 }
  0x1f   :  { %281 = vmatpush3.bf16.msra.mxu0 %v296_v13 }
  0x22   :  { %283 = vmatmul.mubr.bf16.vlgmr.msra.gmra.mxu0 %v298_v14 }
  0x7e   :  { %v188_v15 = vpop.permute.xlu1 %187 }
  0x80   :  { %v178_v16 = vpop.permute.xlu0 %177 }
  0x82   :  { %v193_v20 = vpop.permute.xlu1 %192 }
  0x84   :  { %v183_v24 = vpop.permute.xlu0 %182 }
  0xe2   :  { %v284_v17 = vpop.f32.mrf.mxu0 }
  0xe3   :  { %v197_v19 = vadd.f32 %v284_v17, %v188_v15 }
  0xe4   :  { %v141_v18 = vpop.f32.mrf.mxu0 }
  0xe5   :  { %v195_v22 = vadd.f32 %v178_v16, %v141_v18  ;;  %v201_v26 = vmax.f32 %v197_v19, 0.0 }
  0xe6   :  { %v285_v21 = vpop.f32.mrf.mxu0 }
  0xe7   :  { %v198_v23 = vadd.f32 %v285_v21, %v193_v20  ;;  %v199_v29 = vmax.f32 %v195_v22, 0.0 }
  0xe8   :  { %v144_v25 = vpop.f32.mrf.mxu0 }
  0xe9   :  { %v202_v27 = vmax.f32 %v198_v23, 0.0  ;;  %v196_v28 = vadd.f32 %v183_v24, %v144_v25 }
  0xeb   :  { %v253_v30 = vpack.c.bf16 %v202_v27, %v201_v26  ;;  %v200_v31 = vmax.f32 %v196_v28, 0.0 }
  0xed   :  { %255 = vst [vmem:[%s371_s3 + $0x8] sm:$0xff] %v253_v30   ;;  %v248_v32 = vpack.c.bf16 %v200_v31, %v199_v29 }
  0xef   :  { %249 = vst [vmem:[%s371_s3] sm:$0xff] %v248_v32  }

// kernel: _lambda_.143
= control target key start
LH: loop header
LB: loop body
LE: loop exit
PB: predicated region body
PF: predicated region fallthrough
CT: control target
= control target key end

     0   :  { %v742_v1 = vmov 0   ;;  %vm126_vm0 = vcmask 261120   ;;  %s927_s1 = inlined_call_operand.vmem [shape: bf16[32,128], index: 1, kind: input, shape index: {}]   ;;  %s928_s0 = inlined_call_operand.vmem [shape: bf16[128,32], index: 0, kind: input, shape index: {}]   ;;  %s929_s2 = inlined_call_operand.vmem [shape: f32[128,1], index: 2, kind: input, shape index: {}]   ;;  %s930_s3 = inlined_call_operand.vmem [shape: bf16[128,128], index: 3, kind: input, shape index: {}]   ;;  %s931_s4 = inlined_call_operand.vmem [shape: bf16[128,128], index: 4, kind: output, shape index: {}]  }
   0x1   :  { %v732_v0 = vld [vmem:[%s927_s1 + $0x8] sm:$0xff]   ;;  %731 = vset.pattern.permute.xlu1 %v742_v1  ;;  %730 = vset.pattern.permute.xlu0 %v742_v1  ;;  %v733_v2 = vld [vmem:[%s927_s1] sm:$0xff]   ;;  %v738_v7 = vld [vmem:[%s928_s0 + $0x10] sm:$0xff]  }
   0x2   :  { %705 = vmatprep.subr.bf16.mxu0 %v732_v0  ;;  %725 = vmatprep.subr.bf16.mxu1 %v732_v0  ;;  %v734_v3 = vld [vmem:[%s928_s0] sm:$0xff]   ;;  %v736_v5 = vld [vmem:[%s928_s0 + $0x8] sm:$0xff]   ;;  %v739_v8 = vld [vmem:[%s928_s0 + $0x30] sm:$0xff]  }
   0x3   :  { %706 = vmatpush3.bf16.msra.mxu0 %v732_v0  ;;  %727 = vmatpush3.bf16.msra.mxu1 %v732_v0  ;;  %v735_v4 = vld [vmem:[%s928_s0 + $0x20] sm:$0xff]   ;;  %v737_v6 = vld [vmem:[%s928_s0 + $0x28] sm:$0xff]   ;;  %v301_v9 = vld [vmem:[%s929_s2 + $0x10] sm:$0xff] }
   0x4   :  { %707 = vmatprep.subr.bf16.mxu0 %v733_v2  ;;  %726 = vmatprep.subr.bf16.mxu1 %v733_v2  ;;  %v299_v10 = vld [vmem:[%s929_s2] sm:$0xff]  ;;  %v302_v11 = vld [vmem:[%s929_s2 + $0x18] sm:$0xff]  ;;  %v300_v12 = vld [vmem:[%s929_s2 + $0x8] sm:$0xff] }
   0x5   :  { %709 = vmatprep.mubr.msk.bf16.mxu0 %vm126_vm0, %v734_v3  ;;  %717 = vmatprep.mubr.msk.bf16.mxu1 %vm126_vm0, %v735_v4  ;;  %v740_v13 = vld [vmem:[%s928_s0 + $0x18] sm:$0xff]   ;;  %v304_v15 = vld [vmem:[%s929_s2 + $0x28] sm:$0xff]  ;;  %v303_v16 = vld [vmem:[%s929_s2 + $0x20] sm:$0xff] }
   0x6   :  { %327 = vperm.xlu1 %731, %v301_v9   ;;  %317 = vperm.xlu0 %730, %v299_v10   ;;  %v741_v14 = vld [vmem:[%s928_s0 + $0x38] sm:$0xff]   ;;  %v305_v18 = vld [vmem:[%s929_s2 + $0x30] sm:$0xff]  ;;  %v308_v19 = vld [vmem:[%s929_s2 + $0x48] sm:$0xff] }
   0x7   :  { %708 = vmatpush3.bf16.msra.mxu0 %v733_v2  ;;  %728 = vmatpush3.bf16.msra.mxu1 %v733_v2  ;;  %v306_v17 = vld [vmem:[%s929_s2 + $0x38] sm:$0xff]  ;;  %v307_v20 = vld [vmem:[%s929_s2 + $0x40] sm:$0xff]  ;;  %v309_v22 = vld [vmem:[%s929_s2 + $0x50] sm:$0xff] }
   0x8   :  { %v310_v21 = vld [vmem:[%s929_s2 + $0x58] sm:$0xff]  ;;  %v312_v23 = vld [vmem:[%s929_s2 + $0x68] sm:$0xff]  ;;  %v311_v24 = vld [vmem:[%s929_s2 + $0x60] sm:$0xff] }
   0x9   :  { %v314_v25 = vld [vmem:[%s929_s2 + $0x78] sm:$0xff]  ;;  %v313_v26 = vld [vmem:[%s929_s2 + $0x70] sm:$0xff]  ;;  %v681_v38 = vld [vmem:[%s930_s3 + $0x8] sm:$0xff]  }
   0xa   :  { %710 = vmatmul.mubr.msk.bf16.vlgmr.msra.gmra.mxu0 %vm126_vm0, %v736_v5  ;;  %718 = vmatmul.mubr.msk.bf16.vlgmr.msra.gmra.mxu1 %vm126_vm0, %v737_v6  ;;  %v685_v39 = vld [vmem:[%s930_s3 + $0x28] sm:$0xff]   ;;  %v610_v42 = vld [vmem:[%s930_s3] sm:$0xff]   ;;  %v615_v46 = vunpack.c.l.bf16 %v681_v38  ;;  %v875_v51 = vld [vmem:[%s930_s3 + $0x18] sm:$0xff]   ;;  %v616_v61 = vunpack.c.h.bf16 %v681_v38 }
   0xb   :  { %713 = vmatprep.mubr.msk.bf16.mxu0 %vm126_vm0, %v738_v7  ;;  %721 = vmatprep.mubr.msk.bf16.mxu1 %vm126_vm0, %v739_v8  ;;  %v684_v43 = vld [vmem:[%s930_s3 + $0x20] sm:$0xff]   ;;  %v631_v48 = vunpack.c.l.bf16 %v685_v39  ;;  %v880_v52 = vld [vmem:[%s930_s3 + $0x38] sm:$0xff]   ;;  %v611_v55 = vunpack.c.l.bf16 %v610_v42  ;;  %v885_v58 = vld [vmem:[%s930_s3 + $0x10] sm:$0xff]   ;;  %v632_v63 = vunpack.c.h.bf16 %v685_v39  ;;  %v612_v0 = vunpack.c.h.bf16 %v610_v42 }
   0xc   :  { %332 = vperm.xlu1 %731, %v302_v11   ;;  %322 = vperm.xlu0 %730, %v300_v12   ;;  %v627_v57 = vunpack.c.l.bf16 %v684_v43  ;;  %v890_v59 = vld [vmem:[%s930_s3 + $0x30] sm:$0xff]   ;;  %v628_v1 = vunpack.c.h.bf16 %v684_v43  ;;  %v623_v4 = vunpack.c.l.bf16 %v875_v51  ;;  %v639_v5 = vunpack.c.l.bf16 %v880_v52 }
   0xd   :  { %v619_v10 = vunpack.c.l.bf16 %v885_v58  ;;  %v635_v11 = vunpack.c.l.bf16 %v890_v59 }
  0x10   :  { %342 = vperm.xlu1 %731, %v304_v15   ;;  %337 = vperm.xlu0 %730, %v303_v16  }
  0x12   :  { %714 = vmatmul.mubr.msk.bf16.gmra.mxu0 %vm126_vm0, %v740_v13  ;;  %722 = vmatmul.mubr.msk.bf16.gmra.mxu1 %vm126_vm0, %v741_v14 }
  0x14   :  { %352 = vperm.xlu1 %731, %v306_v17   ;;  %347 = vperm.xlu0 %730, %v305_v18  }
  0x18   :  { %362 = vperm.xlu1 %731, %v308_v19   ;;  %357 = vperm.xlu0 %730, %v307_v20  }
  0x1c   :  { %372 = vperm.xlu1 %731, %v310_v21   ;;  %367 = vperm.xlu0 %730, %v309_v22   ;;  %v624_v21 = vunpack.c.h.bf16 %v875_v51  ;;  %v640_v22 = vunpack.c.h.bf16 %v880_v52  ;;  %v620_v51 = vunpack.c.h.bf16 %v885_v58 }
  0x20   :  { %382 = vperm.xlu1 %731, %v312_v23   ;;  %377 = vperm.xlu0 %730, %v311_v24  }
  0x24   :  { %392 = vperm.xlu1 %731, %v314_v25   ;;  %387 = vperm.xlu0 %730, %v313_v26  }
  0x81   :  { %v318_v27 = vpop.permute.xlu0 %317  ;;  %v328_v28 = vpop.permute.xlu1 %327 }
  0x87   :  { %v323_v29 = vpop.permute.xlu0 %322  ;;  %v333_v30 = vpop.permute.xlu1 %332 }
  0x8b   :  { %v854_v31 = vpop.permute.xlu0 %337  ;;  %v856_v32 = vpop.permute.xlu1 %342 }
  0x8f   :  { %v348_v33 = vpop.permute.xlu0 %347  ;;  %v858_v34 = vpop.permute.xlu1 %352 }
  0x93   :  { %v358_v35 = vpop.permute.xlu0 %357  ;;  %v363_v36 = vpop.permute.xlu1 %362 }
  0x97   :  { %v368_v37 = vpop.permute.xlu0 %367  ;;  %v373_v44 = vpop.permute.xlu1 %372 }
  0x9b   :  { %v378_v53 = vpop.permute.xlu0 %377  ;;  %v383_v12 = vpop.permute.xlu1 %382 }
  0x9f   :  { %v388_v23 = vpop.permute.xlu0 %387 }
  0xca   :  { %v711_v40 = vpop.f32.mrf.mxu0  ;;  %v719_v41 = vpop.f32.mrf.mxu1 }
  0xcb   :  { %v397_v45 = vadd.f32 %v711_v40, %v328_v28  ;;  %v405_v47 = vadd.f32 %v719_v41, %v368_v37 }
  0xcc   :  { %v185_v49 = vpop.f32.mrf.mxu0  ;;  %v217_v50 = vpop.f32.mrf.mxu1 }
  0xcd   :  { %v395_v54 = vadd.f32 %v318_v27, %v185_v49  ;;  %v403_v56 = vadd.f32 %v358_v35, %v217_v50  ;;  %v445_v2 = vadd.f32 %v615_v46, %v397_v45  ;;  %v453_v3 = vadd.f32 %v631_v48, %v405_v47  ;;  %v393_v48 = vpop.permute.xlu1 %392 }
  0xce   :  { %v712_v60 = vpop.f32.mrf.mxu0  ;;  %v720_v62 = vpop.f32.mrf.mxu1 }
  0xcf   :  { %v398_v6 = vadd.f32 %v712_v60, %v333_v30  ;;  %v406_v7 = vadd.f32 %v720_v62, %v373_v44  ;;  %v443_v13 = vadd.f32 %v611_v55, %v395_v54  ;;  %v451_v14 = vadd.f32 %v627_v57, %v403_v56 }
  0xd0   :  { %v188_v8 = vpop.f32.mrf.mxu0  ;;  %v220_v9 = vpop.f32.mrf.mxu1  ;;  %v461_v24 = vmax.f32 %v445_v2, 0.0  ;;  %v469_v25 = vmax.f32 %v453_v3, 0.0 }
  0xd1   :  { %v396_v15 = vadd.f32 %v323_v29, %v188_v8  ;;  %v404_v16 = vadd.f32 %v363_v36, %v220_v9  ;;  %v446_v17 = vadd.f32 %v616_v61, %v398_v6  ;;  %v454_v18 = vadd.f32 %v632_v63, %v406_v7 }
  0xd2   :  { %v715_v19 = vpop.f32.mrf.mxu0  ;;  %v723_v20 = vpop.f32.mrf.mxu1  ;;  %v459_v36 = vmax.f32 %v443_v13, 0.0  ;;  %v467_v39 = vmax.f32 %v451_v14, 0.0 }
  0xd3   :  { %v444_v26 = vadd.f32 %v612_v0, %v396_v15  ;;  %v452_v27 = vadd.f32 %v628_v1, %v404_v16  ;;  %v462_v28 = vmax.f32 %v446_v17, 0.0  ;;  %v470_v30 = vmax.f32 %v454_v18, 0.0 }
  0xd4   :  { %v401_v35 = vadd.f32 %v715_v19, %v348_v33  ;;  %v409_v37 = vadd.f32 %v723_v20, %v388_v23  ;;  %v201_v38 = vpop.f32.mrf.mxu0  ;;  %v233_v29 = vpop.f32.mrf.mxu1  ;;  %v636_v33 = vunpack.c.h.bf16 %v890_v59 }
  0xd5   :  { %v460_v40 = vmax.f32 %v444_v26, 0.0  ;;  %v468_v41 = vmax.f32 %v452_v27, 0.0  ;;  %v649_v42 = vpack.c.bf16 %v462_v28, %v461_v24  ;;  %v669_v43 = vpack.c.bf16 %v470_v30, %v469_v25 }
  0xd6   :  { %v399_v44 = vadd.f32 %v854_v31, %v201_v38  ;;  %v407_v45 = vadd.f32 %v378_v53, %v233_v29  ;;  %v716_v46 = vpop.f32.mrf.mxu0  ;;  %v724_v47 = vpop.f32.mrf.mxu1  ;;  %v449_v52 = vadd.f32 %v623_v4, %v401_v35  ;;  %v457_v31 = vadd.f32 %v639_v5, %v409_v37 }
  0xd7   :  { %v644_v49 = vpack.c.bf16 %v460_v40, %v459_v36  ;;  %v664_v50 = vpack.c.bf16 %v468_v41, %v467_v39  ;;  %688 = vst [vmem:[%s931_s4 + $0x8] sm:$0xff] %v649_v42   ;;  %692 = vst [vmem:[%s931_s4 + $0x28] sm:$0xff] %v669_v43   ;;  %v402_v53 = vadd.f32 %v716_v46, %v858_v34 }
  0xd8   :  { %v410_v54 = vadd.f32 %v724_v47, %v393_v48  ;;  %v204_v55 = vpop.f32.mrf.mxu0  ;;  %v236_v56 = vpop.f32.mrf.mxu1  ;;  %v447_v57 = vadd.f32 %v619_v10, %v399_v44  ;;  %v455_v58 = vadd.f32 %v635_v11, %v407_v45  ;;  %v465_v0 = vmax.f32 %v449_v52, 0.0 }
  0xd9   :  { %645 = vst [vmem:[%s931_s4] sm:$0xff] %v644_v49   ;;  %691 = vst [vmem:[%s931_s4 + $0x20] sm:$0xff] %v664_v50   ;;  %v400_v59 = vadd.f32 %v856_v32, %v204_v55  ;;  %v408_v60 = vadd.f32 %v383_v12, %v236_v56  ;;  %v450_v61 = vadd.f32 %v624_v21, %v402_v53  ;;  %v473_v1 = vmax.f32 %v457_v31, 0.0 }
  0xda   :  { %v458_v62 = vadd.f32 %v640_v22, %v410_v54  ;;  %v463_v4 = vmax.f32 %v447_v57, 0.0  ;;  %v471_v5 = vmax.f32 %v455_v58, 0.0 }
  0xdb   :  { %v448_v63 = vadd.f32 %v620_v51, %v400_v59  ;;  %v456_v34 = vadd.f32 %v636_v33, %v408_v60  ;;  %v466_v2 = vmax.f32 %v450_v61, 0.0 }
  0xdc   :  { %v474_v3 = vmax.f32 %v458_v62, 0.0 }
  0xdd   :  { %v464_v6 = vmax.f32 %v448_v63, 0.0  ;;  %v472_v7 = vmax.f32 %v456_v34, 0.0  ;;  %v659_v8 = vpack.c.bf16 %v466_v2, %v465_v0 }
  0xde   :  { %v679_v9 = vpack.c.bf16 %v474_v3, %v473_v1 }
  0xdf   :  { %v654_v13 = vpack.c.bf16 %v464_v6, %v463_v4  ;;  %v674_v10 = vpack.c.bf16 %v472_v7, %v471_v5  ;;  %690 = vst [vmem:[%s931_s4 + $0x18] sm:$0xff] %v659_v8  }
  0xe0   :  { %694 = vst [vmem:[%s931_s4 + $0x38] sm:$0xff] %v679_v9  }
  0xe1   :  { %689 = vst [vmem:[%s931_s4 + $0x10] sm:$0xff] %v654_v13   ;;  %693 = vst [vmem:[%s931_s4 + $0x30] sm:$0xff] %v674_v10  }

// kernel: _lambda_.140
= control target key start
LH: loop header
LB: loop body
LE: loop exit
PB: predicated region body
PF: predicated region fallthrough
CT: control target
= control target key end

     0   :  { %v666_v1 = vmov 0   ;;  %vm139_vm0 = vcmask 523264   ;;  %s803_s1 = inlined_call_operand.vmem [shape: bf16[64,128], index: 1, kind: input, shape index: {}]   ;;  %s804_s0 = inlined_call_operand.vmem [shape: bf16[128,64], index: 0, kind: input, shape index: {}]   ;;  %s805_s2 = inlined_call_operand.vmem [shape: f32[128,1], index: 2, kind: input, shape index: {}]   ;;  %s806_s3 = inlined_call_operand.vmem [shape: bf16[128,128], index: 3, kind: output, shape index: {}]  }
   0x1   :  { %v654_v0 = vld [vmem:[%s803_s1 + $0x18] sm:$0xff]   ;;  %653 = vset.pattern.permute.xlu1 %v666_v1  ;;  %652 = vset.pattern.permute.xlu0 %v666_v1  ;;  %v655_v2 = vld [vmem:[%s803_s1 + $0x10] sm:$0xff]   ;;  %v656_v3 = vld [vmem:[%s803_s1 + $0x8] sm:$0xff]  }
   0x2   :  { %619 = vmatprep.subr.bf16.mxu0 %v654_v0  ;;  %643 = vmatprep.subr.bf16.mxu1 %v654_v0  ;;  %v658_v4 = vld [vmem:[%s804_s0] sm:$0xff]   ;;  %v314_v7 = vld [vmem:[%s805_s2 + $0x10] sm:$0xff]  ;;  %v660_v9 = vld [vmem:[%s804_s0 + $0x8] sm:$0xff]  }
   0x3   :  { %620 = vmatpush3.bf16.msra.mxu0 %v654_v0  ;;  %647 = vmatpush3.bf16.msra.mxu1 %v654_v0  ;;  %v659_v5 = vld [vmem:[%s804_s0 + $0x20] sm:$0xff]   ;;  %v661_v10 = vld [vmem:[%s804_s0 + $0x28] sm:$0xff]   ;;  %v315_v11 = vld [vmem:[%s805_s2 + $0x18] sm:$0xff] }
   0x4   :  { %621 = vmatprep.subr.bf16.mxu0 %v655_v2  ;;  %644 = vmatprep.subr.bf16.mxu1 %v655_v2  ;;  %v657_v6 = vld [vmem:[%s803_s1] sm:$0xff]   ;;  %v313_v12 = vld [vmem:[%s805_s2 + $0x8] sm:$0xff]  ;;  %v662_v13 = vld [vmem:[%s804_s0 + $0x10] sm:$0xff]  }
   0x5   :  { %627 = vmatprep.mubr.msk.bf16.mxu0 %vm139_vm0, %v658_v4  ;;  %635 = vmatprep.mubr.msk.bf16.mxu1 %vm139_vm0, %v659_v5  ;;  %v312_v8 = vld [vmem:[%s805_s2] sm:$0xff]  ;;  %v663_v14 = vld [vmem:[%s804_s0 + $0x30] sm:$0xff]   ;;  %v317_v15 = vld [vmem:[%s805_s2 + $0x28] sm:$0xff] }
   0x6   :  { %340 = vperm.xlu1 %653, %v314_v7   ;;  %330 = vperm.xlu0 %652, %v312_v8   ;;  %v316_v16 = vld [vmem:[%s805_s2 + $0x20] sm:$0xff]  ;;  %v664_v17 = vld [vmem:[%s804_s0 + $0x18] sm:$0xff]   ;;  %v318_v20 = vld [vmem:[%s805_s2 + $0x30] sm:$0xff] }
   0x7   :  { %622 = vmatpush3.bf16.msra.mxu0 %v655_v2  ;;  %648 = vmatpush3.bf16.msra.mxu1 %v655_v2  ;;  %v665_v18 = vld [vmem:[%s804_s0 + $0x38] sm:$0xff]   ;;  %v321_v21 = vld [vmem:[%s805_s2 + $0x48] sm:$0xff]  ;;  %v320_v22 = vld [vmem:[%s805_s2 + $0x40] sm:$0xff] }
   0x8   :  { %623 = vmatprep.subr.bf16.mxu0 %v656_v3  ;;  %645 = vmatprep.subr.bf16.mxu1 %v656_v3  ;;  %v319_v19 = vld [vmem:[%s805_s2 + $0x38] sm:$0xff]  ;;  %v322_v24 = vld [vmem:[%s805_s2 + $0x50] sm:$0xff]  ;;  %v325_v25 = vld [vmem:[%s805_s2 + $0x68] sm:$0xff] }
   0x9   :  { %v323_v23 = vld [vmem:[%s805_s2 + $0x58] sm:$0xff]  ;;  %v324_v26 = vld [vmem:[%s805_s2 + $0x60] sm:$0xff]  ;;  %v326_v28 = vld [vmem:[%s805_s2 + $0x70] sm:$0xff] }
   0xa   :  { %345 = vperm.xlu1 %653, %v315_v11   ;;  %335 = vperm.xlu0 %652, %v313_v12   ;;  %v327_v27 = vld [vmem:[%s805_s2 + $0x78] sm:$0xff] }
   0xb   :  { %624 = vmatpush3.bf16.msra.mxu0 %v656_v3  ;;  %649 = vmatpush3.bf16.msra.mxu1 %v656_v3 }
   0xc   :  { %625 = vmatprep.subr.bf16.mxu0 %v657_v6  ;;  %646 = vmatprep.subr.bf16.mxu1 %v657_v6 }
   0xe   :  { %355 = vperm.xlu1 %653, %v317_v15   ;;  %350 = vperm.xlu0 %652, %v316_v16  }
   0xf   :  { %626 = vmatpush3.bf16.msra.mxu0 %v657_v6  ;;  %650 = vmatpush3.bf16.msra.mxu1 %v657_v6 }
  0x12   :  { %628 = vmatmul.mubr.msk.bf16.vlgmr.msra.gmra.mxu0 %vm139_vm0, %v660_v9  ;;  %636 = vmatmul.mubr.msk.bf16.vlgmr.msra.gmra.mxu1 %vm139_vm0, %v661_v10 }
  0x13   :  { %631 = vmatprep.mubr.msk.bf16.mxu0 %vm139_vm0, %v662_v13  ;;  %639 = vmatprep.mubr.msk.bf16.mxu1 %vm139_vm0, %v663_v14 }
  0x14   :  { %365 = vperm.xlu1 %653, %v319_v19   ;;  %360 = vperm.xlu0 %652, %v318_v20  }
  0x18   :  { %375 = vperm.xlu1 %653, %v321_v21   ;;  %370 = vperm.xlu0 %652, %v320_v22  }
  0x1a   :  { %632 = vmatmul.mubr.msk.bf16.gmra.mxu0 %vm139_vm0, %v664_v17  ;;  %640 = vmatmul.mubr.msk.bf16.gmra.mxu1 %vm139_vm0, %v665_v18 }
  0x1c   :  { %385 = vperm.xlu1 %653, %v323_v23   ;;  %380 = vperm.xlu0 %652, %v322_v24  }
  0x20   :  { %395 = vperm.xlu1 %653, %v325_v25   ;;  %390 = vperm.xlu0 %652, %v324_v26  }
  0x24   :  { %405 = vperm.xlu1 %653, %v327_v27   ;;  %400 = vperm.xlu0 %652, %v326_v28  }
  0x81   :  { %v341_v29 = vpop.permute.xlu1 %340  ;;  %v331_v30 = vpop.permute.xlu0 %330 }
  0x85   :  { %v346_v31 = vpop.permute.xlu1 %345  ;;  %v336_v32 = vpop.permute.xlu0 %335 }
  0x89   :  { %v356_v33 = vpop.permute.xlu1 %355  ;;  %v351_v34 = vpop.permute.xlu0 %350 }
  0x8f   :  { %v366_v35 = vpop.permute.xlu1 %365  ;;  %v361_v36 = vpop.permute.xlu0 %360 }
  0x93   :  { %v376_v37 = vpop.permute.xlu1 %375  ;;  %v371_v38 = vpop.permute.xlu0 %370 }
  0x97   :  { %v386_v39 = vpop.permute.xlu1 %385  ;;  %v381_v40 = vpop.permute.xlu0 %380 }
  0x9b   :  { %v396_v47 = vpop.permute.xlu1 %395  ;;  %v391_v48 = vpop.permute.xlu0 %390 }
  0x9f   :  { %v406_v3 = vpop.permute.xlu1 %405  ;;  %v401_v4 = vpop.permute.xlu0 %400 }
  0xd2   :  { %v629_v41 = vpop.f32.mrf.mxu0  ;;  %v637_v42 = vpop.f32.mrf.mxu1 }
  0xd3   :  { %v410_v49 = vadd.f32 %v629_v41, %v341_v29  ;;  %v418_v50 = vadd.f32 %v637_v42, %v381_v40 }
  0xd4   :  { %v198_v43 = vpop.f32.mrf.mxu0  ;;  %v230_v44 = vpop.f32.mrf.mxu1 }
  0xd5   :  { %v408_v53 = vadd.f32 %v331_v30, %v198_v43  ;;  %v416_v54 = vadd.f32 %v371_v38, %v230_v44 }
  0xd6   :  { %v630_v45 = vpop.f32.mrf.mxu0  ;;  %v638_v46 = vpop.f32.mrf.mxu1 }
  0xd7   :  { %v411_v51 = vadd.f32 %v630_v45, %v346_v31  ;;  %v419_v52 = vadd.f32 %v638_v46, %v386_v39 }
  0xd8   :  { %v201_v55 = vpop.f32.mrf.mxu0  ;;  %v233_v56 = vpop.f32.mrf.mxu1 }
  0xd9   :  { %v568_v57 = vpack.c.bf16 %v411_v51, %v410_v49  ;;  %v588_v58 = vpack.c.bf16 %v419_v52, %v418_v50  ;;  %v409_v59 = vadd.f32 %v336_v32, %v201_v55  ;;  %v417_v60 = vadd.f32 %v376_v37, %v233_v56 }
  0xda   :  { %v633_v61 = vpop.f32.mrf.mxu0  ;;  %v641_v62 = vpop.f32.mrf.mxu1 }
  0xdb   :  { %600 = vst [vmem:[%s806_s3 + $0x8] sm:$0xff] %v568_v57   ;;  %604 = vst [vmem:[%s806_s3 + $0x28] sm:$0xff] %v588_v58   ;;  %v563_v63 = vpack.c.bf16 %v409_v59, %v408_v53  ;;  %v583_v0 = vpack.c.bf16 %v417_v60, %v416_v54  ;;  %v414_v7 = vadd.f32 %v633_v61, %v361_v36 }
  0xdc   :  { %v214_v1 = vpop.f32.mrf.mxu0  ;;  %v246_v2 = vpop.f32.mrf.mxu1  ;;  %v422_v8 = vadd.f32 %v641_v62, %v401_v4 }
  0xdd   :  { %564 = vst [vmem:[%s806_s3] sm:$0xff] %v563_v63   ;;  %603 = vst [vmem:[%s806_s3 + $0x20] sm:$0xff] %v583_v0   ;;  %v412_v11 = vadd.f32 %v351_v34, %v214_v1  ;;  %v420_v12 = vadd.f32 %v391_v48, %v246_v2 }
  0xde   :  { %v634_v5 = vpop.f32.mrf.mxu0  ;;  %v642_v6 = vpop.f32.mrf.mxu1 }
  0xdf   :  { %v415_v9 = vadd.f32 %v634_v5, %v366_v35  ;;  %v423_v10 = vadd.f32 %v642_v6, %v406_v3 }
  0xe0   :  { %v217_v13 = vpop.f32.mrf.mxu0  ;;  %v249_v14 = vpop.f32.mrf.mxu1 }
  0xe1   :  { %v578_v15 = vpack.c.bf16 %v415_v9, %v414_v7  ;;  %v598_v16 = vpack.c.bf16 %v423_v10, %v422_v8  ;;  %v413_v17 = vadd.f32 %v356_v33, %v217_v13  ;;  %v421_v18 = vadd.f32 %v396_v47, %v249_v14 }
  0xe3   :  { %602 = vst [vmem:[%s806_s3 + $0x18] sm:$0xff] %v578_v15   ;;  %606 = vst [vmem:[%s806_s3 + $0x38] sm:$0xff] %v598_v16   ;;  %v573_v19 = vpack.c.bf16 %v413_v17, %v412_v11  ;;  %v593_v20 = vpack.c.bf16 %v421_v18, %v420_v12 }
  0xe5   :  { %601 = vst [vmem:[%s806_s3 + $0x10] sm:$0xff] %v573_v19   ;;  %605 = vst [vmem:[%s806_s3 + $0x30] sm:$0xff] %v593_v20  }

// kernel: _lambda_.211
= control target key start
LH: loop header
LB: loop body
LE: loop exit
PB: predicated region body
PF: predicated region fallthrough
CT: control target
= control target key end

     0   :  { %v449_v1 = vmov 0   ;;  %s542_s1 = inlined_call_operand.vmem [shape: bf16[128,128], index: 1, kind: input, shape index: {}]   ;;  %s543_s0 = inlined_call_operand.vmem [shape: bf16[64,128], index: 0, kind: input, shape index: {}]   ;;  %s544_s2 = inlined_call_operand.vmem [shape: f32[64,1], index: 2, kind: input, shape index: {}]   ;;  %s545_s3 = inlined_call_operand.vmem [shape: bf16[64,128], index: 3, kind: output, shape index: {}]  }
   0x1   :  { %v437_v0 = vld [vmem:[%s542_s1 + $0x38] sm:$0xff]   ;;  %436 = vset.pattern.permute.xlu1 %v449_v1  ;;  %435 = vset.pattern.permute.xlu0 %v449_v1  ;;  %v438_v2 = vld [vmem:[%s542_s1 + $0x30] sm:$0xff]   ;;  %v439_v3 = vld [vmem:[%s542_s1 + $0x28] sm:$0xff]  }
   0x2   :  { %394 = vmatprep.subr.bf16.mxu0 %v437_v0  ;;  %418 = vmatprep.subr.bf16.mxu1 %v437_v0  ;;  %v440_v4 = vld [vmem:[%s542_s1 + $0x20] sm:$0xff]   ;;  %v446_v6 = vld [vmem:[%s543_s0 + $0x10] sm:$0xff]   ;;  %v441_v7 = vld [vmem:[%s542_s1 + $0x18] sm:$0xff]  }
   0x3   :  { %395 = vmatpush3.bf16.msra.mxu0 %v437_v0  ;;  %426 = vmatpush3.bf16.msra.mxu1 %v437_v0  ;;  %v445_v5 = vld [vmem:[%s543_s0] sm:$0xff]   ;;  %v225_v8 = vld [vmem:[%s544_s2 + $0x10] sm:$0xff]  ;;  %v226_v10 = vld [vmem:[%s544_s2 + $0x18] sm:$0xff] }
   0x4   :  { %396 = vmatprep.subr.bf16.mxu0 %v438_v2  ;;  %419 = vmatprep.subr.bf16.mxu1 %v438_v2  ;;  %v223_v9 = vld [vmem:[%s544_s2] sm:$0xff]  ;;  %v224_v11 = vld [vmem:[%s544_s2 + $0x8] sm:$0xff]  ;;  %v442_v12 = vld [vmem:[%s542_s1 + $0x10] sm:$0xff]  }
   0x5   :  { %410 = vmatprep.mubr.bf16.mxu0 %v445_v5  ;;  %414 = vmatprep.mubr.bf16.mxu1 %v446_v6  ;;  %v228_v13 = vld [vmem:[%s544_s2 + $0x28] sm:$0xff]  ;;  %v227_v14 = vld [vmem:[%s544_s2 + $0x20] sm:$0xff]  ;;  %v230_v16 = vld [vmem:[%s544_s2 + $0x38] sm:$0xff] }
   0x6   :  { %243 = vperm.xlu1 %436, %v225_v8   ;;  %233 = vperm.xlu0 %435, %v223_v9   ;;  %v443_v15 = vld [vmem:[%s542_s1 + $0x8] sm:$0xff]   ;;  %v229_v17 = vld [vmem:[%s544_s2 + $0x30] sm:$0xff]  ;;  %v444_v18 = vld [vmem:[%s542_s1] sm:$0xff]  }
   0x7   :  { %397 = vmatpush3.bf16.msra.mxu0 %v438_v2  ;;  %427 = vmatpush3.bf16.msra.mxu1 %v438_v2  ;;  %v447_v19 = vld [vmem:[%s543_s0 + $0x8] sm:$0xff]   ;;  %v448_v20 = vld [vmem:[%s543_s0 + $0x18] sm:$0xff]  }
   0x8   :  { %398 = vmatprep.subr.bf16.mxu0 %v439_v3  ;;  %420 = vmatprep.subr.bf16.mxu1 %v439_v3 }
   0xa   :  { %248 = vperm.xlu1 %436, %v226_v10   ;;  %238 = vperm.xlu0 %435, %v224_v11  }
   0xb   :  { %399 = vmatpush3.bf16.msra.mxu0 %v439_v3  ;;  %428 = vmatpush3.bf16.msra.mxu1 %v439_v3 }
   0xc   :  { %400 = vmatprep.subr.bf16.mxu0 %v440_v4  ;;  %421 = vmatprep.subr.bf16.mxu1 %v440_v4 }
   0xe   :  { %258 = vperm.xlu1 %436, %v228_v13   ;;  %253 = vperm.xlu0 %435, %v227_v14  }
   0xf   :  { %401 = vmatpush3.bf16.msra.mxu0 %v440_v4  ;;  %429 = vmatpush3.bf16.msra.mxu1 %v440_v4 }
  0x10   :  { %402 = vmatprep.subr.bf16.mxu0 %v441_v7  ;;  %422 = vmatprep.subr.bf16.mxu1 %v441_v7 }
  0x12   :  { %268 = vperm.xlu1 %436, %v230_v16   ;;  %263 = vperm.xlu0 %435, %v229_v17  }
  0x13   :  { %403 = vmatpush3.bf16.msra.mxu0 %v441_v7  ;;  %430 = vmatpush3.bf16.msra.mxu1 %v441_v7 }
  0x14   :  { %404 = vmatprep.subr.bf16.mxu0 %v442_v12  ;;  %423 = vmatprep.subr.bf16.mxu1 %v442_v12 }
  0x17   :  { %405 = vmatpush3.bf16.msra.mxu0 %v442_v12  ;;  %431 = vmatpush3.bf16.msra.mxu1 %v442_v12 }
  0x18   :  { %406 = vmatprep.subr.bf16.mxu0 %v443_v15  ;;  %424 = vmatprep.subr.bf16.mxu1 %v443_v15 }
  0x1b   :  { %407 = vmatpush3.bf16.msra.mxu0 %v443_v15  ;;  %432 = vmatpush3.bf16.msra.mxu1 %v443_v15 }
  0x1c   :  { %408 = vmatprep.subr.bf16.mxu0 %v444_v18  ;;  %425 = vmatprep.subr.bf16.mxu1 %v444_v18 }
  0x1f   :  { %409 = vmatpush3.bf16.msra.mxu0 %v444_v18  ;;  %433 = vmatpush3.bf16.msra.mxu1 %v444_v18 }
  0x22   :  { %411 = vmatmul.mubr.bf16.vlgmr.msra.gmra.mxu0 %v447_v19  ;;  %415 = vmatmul.mubr.bf16.vlgmr.msra.gmra.mxu1 %v448_v20 }
  0x81   :  { %v234_v21 = vpop.permute.xlu0 %233  ;;  %v244_v22 = vpop.permute.xlu1 %243 }
  0x85   :  { %v239_v23 = vpop.permute.xlu0 %238  ;;  %v249_v24 = vpop.permute.xlu1 %248 }
  0x89   :  { %v254_v25 = vpop.permute.xlu0 %253  ;;  %v259_v26 = vpop.permute.xlu1 %258 }
  0x8d   :  { %v264_v29 = vpop.permute.xlu0 %263  ;;  %v269_v34 = vpop.permute.xlu1 %268 }
  0xe2   :  { %v412_v27 = vpop.f32.mrf.mxu0  ;;  %v416_v28 = vpop.f32.mrf.mxu1 }
  0xe3   :  { %v273_v30 = vadd.f32 %v412_v27, %v244_v22  ;;  %v277_v31 = vadd.f32 %v416_v28, %v264_v29 }
  0xe4   :  { %v165_v32 = vpop.f32.mrf.mxu0  ;;  %v181_v33 = vpop.f32.mrf.mxu1 }
  0xe5   :  { %v271_v35 = vadd.f32 %v234_v21, %v165_v32  ;;  %v275_v36 = vadd.f32 %v254_v25, %v181_v33  ;;  %v281_v41 = vmax.f32 %v273_v30, 0.0  ;;  %v285_v42 = vmax.f32 %v277_v31, 0.0 }
  0xe6   :  { %v413_v37 = vpop.f32.mrf.mxu0  ;;  %v417_v38 = vpop.f32.mrf.mxu1 }
  0xe7   :  { %v274_v39 = vadd.f32 %v413_v37, %v249_v24  ;;  %v278_v40 = vadd.f32 %v417_v38, %v269_v34  ;;  %v279_v49 = vmax.f32 %v271_v35, 0.0  ;;  %v283_v50 = vmax.f32 %v275_v36, 0.0 }
  0xe8   :  { %v168_v43 = vpop.f32.mrf.mxu0  ;;  %v184_v44 = vpop.f32.mrf.mxu1 }
  0xe9   :  { %v282_v45 = vmax.f32 %v274_v39, 0.0  ;;  %v286_v46 = vmax.f32 %v278_v40, 0.0  ;;  %v272_v47 = vadd.f32 %v239_v23, %v168_v43  ;;  %v276_v48 = vadd.f32 %v259_v26, %v184_v44 }
  0xeb   :  { %v367_v51 = vpack.c.bf16 %v282_v45, %v281_v41  ;;  %v377_v52 = vpack.c.bf16 %v286_v46, %v285_v42  ;;  %v280_v53 = vmax.f32 %v272_v47, 0.0  ;;  %v284_v54 = vmax.f32 %v276_v48, 0.0 }
  0xed   :  { %379 = vst [vmem:[%s545_s3 + $0x8] sm:$0xff] %v367_v51   ;;  %381 = vst [vmem:[%s545_s3 + $0x18] sm:$0xff] %v377_v52   ;;  %v362_v55 = vpack.c.bf16 %v280_v53, %v279_v49  ;;  %v372_v56 = vpack.c.bf16 %v284_v54, %v283_v50 }
  0xef   :  { %363 = vst [vmem:[%s545_s3] sm:$0xff] %v362_v55   ;;  %380 = vst [vmem:[%s545_s3 + $0x10] sm:$0xff] %v372_v56  }

// kernel: _lambda_.212
= control target key start
LH: loop header
LB: loop body
LE: loop exit
PB: predicated region body
PF: predicated region fallthrough
CT: control target
= control target key end

     0   :  { %v1068_v1 = vmov 0   ;;  %vm447_vm0 = vcmask 523264   ;;  %s1297_s1 = inlined_call_operand.vmem [shape: bf16[576,128], index: 1, kind: input, shape index: {}]   ;;  %s1298_s0 = inlined_call_operand.vmem [shape: bf16[64,576], index: 0, kind: input, shape index: {}]   ;;  %s1299_s2 = inlined_call_operand.vmem [shape: f32[64,1], index: 2, kind: input, shape index: {}]   ;;  %s1300_s3 = inlined_call_operand.vmem [shape: bf16[64,128], index: 3, kind: output, shape index: {}]  }
   0x1   :  { %v1004_v0 = vld [vmem:[%s1297_s1 + $0x78] sm:$0xff]   ;;  %1003 = vset.pattern.permute.xlu1 %v1068_v1  ;;  %1002 = vset.pattern.permute.xlu0 %v1068_v1  ;;  %v1008_v5 = vld [vmem:[%s1297_s1 + $0x70] sm:$0xff]   ;;  %v1012_v9 = vld [vmem:[%s1297_s1 + $0x68] sm:$0xff]  }
   0x2   :  { %v1005_v2 = vld [vmem:[%s1297_s1 + $0xf8] sm:$0xff]   ;;  %889 = vmatprep.subr.bf16.mxu0 %v1004_v0  ;;  %v1009_v6 = vld [vmem:[%s1297_s1 + $0xf0] sm:$0xff]   ;;  %v1013_v10 = vld [vmem:[%s1297_s1 + $0xe8] sm:$0xff]  }
   0x3   :  { %v1006_v3 = vld [vmem:[%s1297_s1 + $0x38] sm:$0xff]   ;;  %929 = vmatprep.subr.bf16.mxu1 %v1005_v2  ;;  %v1010_v7 = vld [vmem:[%s1297_s1 + $0x30] sm:$0xff]   ;;  %v1014_v11 = vld [vmem:[%s1297_s1 + $0x28] sm:$0xff]  }
   0x4   :  { %v1007_v4 = vld [vmem:[%s1297_s1 + $0xb8] sm:$0xff]   ;;  %890 = vmatpush3.bf16.msra.mxu0 %v1006_v3  ;;  %v1011_v8 = vld [vmem:[%s1297_s1 + $0xb0] sm:$0xff]   ;;  %v1015_v12 = vld [vmem:[%s1297_s1 + $0xa8] sm:$0xff]  }
   0x5   :  { %930 = vmatpush3.bf16.msra.mxu1 %v1007_v4  ;;  %891 = vmatprep.subr.bf16.mxu0 %v1008_v5  ;;  %v1016_v13 = vld [vmem:[%s1297_s1 + $0x60] sm:$0xff]   ;;  %v1020_v17 = vld [vmem:[%s1297_s1 + $0x58] sm:$0xff]   ;;  %v1024_v21 = vld [vmem:[%s1297_s1 + $0x50] sm:$0xff]  }
   0x6   :  { %931 = vmatprep.subr.bf16.mxu1 %v1009_v6  ;;  %v1017_v14 = vld [vmem:[%s1297_s1 + $0xe0] sm:$0xff]   ;;  %v1021_v18 = vld [vmem:[%s1297_s1 + $0xd8] sm:$0xff]   ;;  %v1025_v22 = vld [vmem:[%s1297_s1 + $0xd0] sm:$0xff]  }
   0x7   :  { %v1018_v15 = vld [vmem:[%s1297_s1 + $0x20] sm:$0xff]   ;;  %v1022_v19 = vld [vmem:[%s1297_s1 + $0x18] sm:$0xff]   ;;  %v1026_v23 = vld [vmem:[%s1297_s1 + $0x10] sm:$0xff]  }
   0x8   :  { %892 = vmatpush3.bf16.msra.mxu0 %v1010_v7  ;;  %v1019_v16 = vld [vmem:[%s1297_s1 + $0xa0] sm:$0xff]   ;;  %v1023_v20 = vld [vmem:[%s1297_s1 + $0x98] sm:$0xff]   ;;  %v1027_v24 = vld [vmem:[%s1297_s1 + $0x90] sm:$0xff]  }
   0x9   :  { %932 = vmatpush3.bf16.msra.mxu1 %v1011_v8  ;;  %893 = vmatprep.subr.bf16.mxu0 %v1012_v9  ;;  %v1028_v25 = vld [vmem:[%s1297_s1 + $0x48] sm:$0xff]   ;;  %v1032_v29 = vld [vmem:[%s1297_s1 + $0x40] sm:$0xff]   ;;  %v1042_v37 = vld [vmem:[%s1297_s1 + $0x118] sm:$0xff]  }
   0xa   :  { %933 = vmatprep.subr.bf16.mxu1 %v1013_v10  ;;  %v1029_v26 = vld [vmem:[%s1297_s1 + $0xc8] sm:$0xff]   ;;  %v1033_v30 = vld [vmem:[%s1297_s1 + $0xc0] sm:$0xff]   ;;  %v1049_v40 = vld [vmem:[%s1297_s1 + $0x110] sm:$0xff]  }
   0xb   :  { %v1030_v27 = vld [vmem:[%s1297_s1 + $0x8] sm:$0xff]   ;;  %v1034_v31 = vld [vmem:[%s1297_s1] sm:$0xff]   ;;  %v1052_v44 = vld [vmem:[%s1298_s0 + $0x5c] ss:$20 sps:$4 sm:$0xff]  }
   0xc   :  { %894 = vmatpush3.bf16.msra.mxu0 %v1014_v11  ;;  %v1031_v28 = vld [vmem:[%s1297_s1 + $0x88] sm:$0xff]   ;;  %v1035_v32 = vld [vmem:[%s1297_s1 + $0x80] sm:$0xff]   ;;  %v1057_v49 = vld [vmem:[%s1298_s0 + $0x7c] ss:$20 sps:$4 sm:$0xff]  }
   0xd   :  { %934 = vmatpush3.bf16.msra.mxu1 %v1015_v12  ;;  %895 = vmatprep.subr.bf16.mxu0 %v1016_v13  ;;  %v1036_v33 = vld [vmem:[%s1298_s0] ss:$20 sps:$4 sm:$0xff]   ;;  %v1038_v34 = vld [vmem:[%s1298_s0 + $0x4] ss:$20 sps:$4 sm:$0xff]   ;;  %v1039_v35 = vld [vmem:[%s1298_s0 + $0x8] ss:$20 sps:$4 sm:$0xff]  }
   0xe   :  { %935 = vmatprep.subr.bf16.mxu1 %v1017_v14  ;;  %v1041_v36 = vld [vmem:[%s1298_s0 + $0xc] ss:$20 sps:$4 sm:$0xff]   ;;  %492 = vmatprep.mubr.bf16.mxu0 %v1038_v34  ;;  %v1045_v39 = vld [vmem:[%s1298_s0 + $0x34] ss:$20 sps:$4 sm:$0xff]   ;;  %v1048_v42 = vld [vmem:[%s1298_s0 + $0x30] ss:$20 sps:$4 sm:$0xff]  }
   0xf   :  { %557 = vmatprep.mubr.bf16.mxu1 %v1041_v36  ;;  %v1043_v38 = vld [vmem:[%s1298_s0 + $0x2c] ss:$20 sps:$4 sm:$0xff]   ;;  %v1047_v41 = vld [vmem:[%s1298_s0 + $0x28] ss:$20 sps:$4 sm:$0xff]   ;;  %v1054_v47 = vld [vmem:[%s1298_s0 + $0x50] ss:$20 sps:$4 sm:$0xff]  }
  0x10   :  { %896 = vmatpush3.bf16.msra.mxu0 %v1018_v15  ;;  %v1050_v43 = vld [vmem:[%s1298_s0 + $0x54] ss:$20 sps:$4 sm:$0xff]   ;;  %v1063_v46 = vld [vmem:[%s1297_s1 + $0x100] sm:$0xff]   ;;  %v1055_v48 = vld [vmem:[%s1298_s0 + $0x58] ss:$20 sps:$4 sm:$0xff]  }
  0x11   :  { %936 = vmatpush3.bf16.msra.mxu1 %v1019_v16  ;;  %897 = vmatprep.subr.bf16.mxu0 %v1020_v17  ;;  %v1056_v45 = vld [vmem:[%s1297_s1 + $0x108] sm:$0xff]   ;;  %v1059_v50 = vld [vmem:[%s1298_s0 + $0x84] ss:$20 sps:$4 sm:$0xff]   ;;  %v684_v51 = vld [vmem:[%s1299_s2 + $0x10] sm:$0xff] }
  0x12   :  { %937 = vmatprep.subr.bf16.mxu1 %v1021_v18  ;;  %v682_v52 = vld [vmem:[%s1299_s2] sm:$0xff]  ;;  %702 = vperm.xlu1 %1003, %v684_v51   ;;  %v685_v53 = vld [vmem:[%s1299_s2 + $0x18] sm:$0xff]  ;;  %v683_v54 = vld [vmem:[%s1299_s2 + $0x8] sm:$0xff] }
  0x13   :  { %692 = vperm.xlu0 %1002, %v682_v52   ;;  %v1061_v55 = vld [vmem:[%s1298_s0 + $0x78] ss:$20 sps:$4 sm:$0xff]   ;;  %v1062_v56 = vld [vmem:[%s1298_s0 + $0x80] ss:$20 sps:$4 sm:$0xff]   ;;  %v1064_v57 = vld [vmem:[%s1298_s0 + $0x10] ss:$20 sps:$4 sm:$0xff]  }
  0x14   :  { %898 = vmatpush3.bf16.msra.mxu0 %v1022_v19  ;;  %v687_v58 = vld [vmem:[%s1299_s2 + $0x28] sm:$0xff]  ;;  %v1065_v59 = vld [vmem:[%s1298_s0 + $0x60] ss:$20 sps:$4 sm:$0xff]   ;;  %v689_v61 = vld [vmem:[%s1299_s2 + $0x38] sm:$0xff] }
  0x15   :  { %938 = vmatpush3.bf16.msra.mxu1 %v1023_v20  ;;  %899 = vmatprep.subr.bf16.mxu0 %v1024_v21  ;;  %v686_v60 = vld [vmem:[%s1299_s2 + $0x20] sm:$0xff]  ;;  %v688_v62 = vld [vmem:[%s1299_s2 + $0x30] sm:$0xff]  ;;  %v1066_v63 = vld [vmem:[%s1298_s0 + $0x38] ss:$20 sps:$4 sm:$0xff]  }
  0x16   :  { %939 = vmatprep.subr.bf16.mxu1 %v1025_v22  ;;  %707 = vperm.xlu1 %1003, %v685_v53   ;;  %v1067_v0 = vld [vmem:[%s1298_s0 + $0x88] ss:$20 sps:$4 sm:$0xff]  }
  0x17   :  { %697 = vperm.xlu0 %1002, %v683_v54  }
  0x18   :  { %900 = vmatpush3.bf16.msra.mxu0 %v1026_v23 }
  0x19   :  { %940 = vmatpush3.bf16.msra.mxu1 %v1027_v24  ;;  %901 = vmatprep.subr.bf16.mxu0 %v1028_v25 }
  0x1a   :  { %941 = vmatprep.subr.bf16.mxu1 %v1029_v26  ;;  %717 = vperm.xlu1 %1003, %v687_v58  }
  0x1b   :  { %712 = vperm.xlu0 %1002, %v686_v60  }
  0x1c   :  { %902 = vmatpush3.bf16.msra.mxu0 %v1030_v27 }
  0x1d   :  { %942 = vmatpush3.bf16.msra.mxu1 %v1031_v28  ;;  %903 = vmatprep.subr.bf16.mxu0 %v1032_v29 }
  0x1e   :  { %943 = vmatprep.subr.bf16.mxu1 %v1033_v30  ;;  %727 = vperm.xlu1 %1003, %v689_v61  }
  0x1f   :  { %722 = vperm.xlu0 %1002, %v688_v62  }
  0x20   :  { %904 = vmatpush3.bf16.msra.mxu0 %v1034_v31 }
  0x21   :  { %944 = vmatpush3.bf16.msra.mxu1 %v1035_v32  ;;  %977 = vmatprep.subr.bf16.mxu0 %v1042_v37 }
  0x22   :  { %993 = vmatprep.subr.bf16.mxu1 %v1042_v37 }
  0x23   :  { %493 = vmatmul.mubr.bf16.vlgmr.msra.gmra.mxu0 %v1036_v33 }
  0x24   :  { %558 = vmatmul.mubr.bf16.vlgmr.msra.gmra.mxu1 %v1039_v35  ;;  %978 = vmatpush3.bf16.msra.mxu0 %v1042_v37 }
  0x25   :  { %997 = vmatpush3.bf16.msra.mxu1 %v1042_v37  ;;  %500 = vmatprep.mubr.bf16.mxu0 %v1043_v38 }
  0x26   :  { %565 = vmatprep.mubr.bf16.mxu1 %v1045_v39  ;;  %979 = vmatprep.subr.bf16.mxu0 %v1049_v40 }
  0x27   :  { %994 = vmatprep.subr.bf16.mxu1 %v1049_v40 }
  0x28   :  { %980 = vmatpush3.bf16.msra.mxu0 %v1049_v40 }
  0x29   :  { %998 = vmatpush3.bf16.msra.mxu1 %v1049_v40  ;;  %981 = vmatprep.subr.bf16.mxu0 %v1056_v45 }
  0x2a   :  { %995 = vmatprep.subr.bf16.mxu1 %v1056_v45 }
  0x2b   :  { %501 = vmatmul.mubr.bf16.gmra.mxu0 %v1047_v41 }
  0x2c   :  { %566 = vmatmul.mubr.bf16.gmra.mxu1 %v1048_v42  ;;  %508 = vmatprep.mubr.bf16.mxu0 %v1050_v43 }
  0x2d   :  { %573 = vmatprep.mubr.bf16.mxu1 %v1052_v44  ;;  %982 = vmatpush3.bf16.msra.mxu0 %v1056_v45 }
  0x2e   :  { %999 = vmatpush3.bf16.msra.mxu1 %v1056_v45  ;;  %983 = vmatprep.subr.bf16.mxu0 %v1063_v46 }
  0x2f   :  { %996 = vmatprep.subr.bf16.mxu1 %v1063_v46 }
  0x31   :  { %984 = vmatpush3.bf16.msra.mxu0 %v1063_v46 }
  0x32   :  { %1000 = vmatpush3.bf16.msra.mxu1 %v1063_v46 }
  0x33   :  { %509 = vmatmul.mubr.bf16.gmra.mxu0 %v1054_v47 }
  0x34   :  { %574 = vmatmul.mubr.bf16.gmra.mxu1 %v1055_v48  ;;  %516 = vmatprep.mubr.bf16.mxu0 %v1057_v49 }
  0x35   :  { %581 = vmatprep.mubr.bf16.mxu1 %v1059_v50 }
  0x3b   :  { %517 = vmatmul.mubr.bf16.gmra.mxu0 %v1061_v55 }
  0x3c   :  { %582 = vmatmul.mubr.bf16.gmra.mxu1 %v1062_v56  ;;  %985 = vmatprep.mubr.msk.bf16.mxu0 %vm447_vm0, %v1064_v57 }
  0x3d   :  { %989 = vmatprep.mubr.msk.bf16.mxu1 %vm447_vm0, %v1065_v59 }
  0x43   :  { %986 = vmatmul.mubr.msk.bf16.vlgmr.msra.gmra.mxu0 %vm447_vm0, %v1066_v63 }
  0x44   :  { %990 = vmatmul.mubr.msk.bf16.vlgmr.msra.gmra.mxu1 %vm447_vm0, %v1067_v0 }
  0x8d   :  { %v703_v23 = vpop.permute.xlu1 %702 }
  0x8e   :  { %v693_v20 = vpop.permute.xlu0 %692 }
  0x91   :  { %v708_v33 = vpop.permute.xlu1 %707 }
  0x92   :  { %v698_v28 = vpop.permute.xlu0 %697 }
  0x95   :  { %v718_v55 = vpop.permute.xlu1 %717 }
  0x96   :  { %v713_v46 = vpop.permute.xlu0 %712 }
  0xe3   :  { %v905_v1 = vpop.f32.mrf.mxu0 }
  0xe4   :  { %v945_v2 = vpop.f32.mrf.mxu1 }
  0xe5   :  { %v906_v3 = vpop.f32.mrf.mxu0 }
  0xe6   :  { %v946_v4 = vpop.f32.mrf.mxu1  ;;  %v907_v38 = vadd.f32 %v906_v3, %v905_v1 }
  0xe7   :  { %v908_v5 = vpop.f32.mrf.mxu0  ;;  %v947_v39 = vadd.f32 %v946_v4, %v945_v2 }
  0xe8   :  { %v948_v6 = vpop.f32.mrf.mxu1 }
  0xe9   :  { %v909_v7 = vpop.f32.mrf.mxu0  ;;  %v560_v58 = vadd.f32 %v947_v39, %v907_v38 }
  0xea   :  { %v949_v8 = vpop.f32.mrf.mxu1  ;;  %v910_v53 = vadd.f32 %v909_v7, %v908_v5 }
  0xeb   :  { %v911_v9 = vpop.f32.mrf.mxu0  ;;  %v950_v54 = vadd.f32 %v949_v8, %v948_v6 }
  0xec   :  { %v951_v10 = vpop.f32.mrf.mxu1 }
  0xed   :  { %v912_v11 = vpop.f32.mrf.mxu0  ;;  %v563_v6 = vadd.f32 %v950_v54, %v910_v53 }
  0xee   :  { %v952_v12 = vpop.f32.mrf.mxu1  ;;  %v913_v31 = vadd.f32 %v912_v11, %v911_v9 }
  0xef   :  { %v914_v13 = vpop.f32.mrf.mxu0  ;;  %v953_v32 = vadd.f32 %v952_v12, %v951_v10  ;;  %v723_v10 = vpop.permute.xlu0 %722 }
  0xf0   :  { %v954_v14 = vpop.f32.mrf.mxu1 }
  0xf1   :  { %v915_v15 = vpop.f32.mrf.mxu0  ;;  %v568_v48 = vadd.f32 %v953_v32, %v913_v31 }
  0xf2   :  { %v955_v16 = vpop.f32.mrf.mxu1  ;;  %v916_v44 = vadd.f32 %v915_v15, %v914_v13  ;;  %v728_v15 = vpop.permute.xlu1 %727 }
  0xf3   :  { %v917_v17 = vpop.f32.mrf.mxu0  ;;  %v956_v45 = vadd.f32 %v955_v16, %v954_v14 }
  0xf4   :  { %v957_v18 = vpop.f32.mrf.mxu1 }
  0xf5   :  { %v918_v19 = vpop.f32.mrf.mxu0  ;;  %v571_v2 = vadd.f32 %v956_v45, %v916_v44 }
  0xf6   :  { %v958_v21 = vpop.f32.mrf.mxu1  ;;  %v919_v41 = vadd.f32 %v918_v19, %v917_v17 }
  0xf7   :  { %v920_v22 = vpop.f32.mrf.mxu0  ;;  %v959_v42 = vadd.f32 %v958_v21, %v957_v18 }
  0xf8   :  { %v960_v24 = vpop.f32.mrf.mxu1 }
  0xf9   :  { %v921_v25 = vpop.f32.mrf.mxu0  ;;  %v576_v63 = vadd.f32 %v959_v42, %v919_v41 }
  0xfa   :  { %v961_v26 = vpop.f32.mrf.mxu1  ;;  %v922_v59 = vadd.f32 %v921_v25, %v920_v22 }
  0xfb   :  { %v923_v27 = vpop.f32.mrf.mxu0  ;;  %v962_v60 = vadd.f32 %v961_v26, %v960_v24 }
  0xfc   :  { %v963_v29 = vpop.f32.mrf.mxu1 }
  0xfd   :  { %v924_v30 = vpop.f32.mrf.mxu0  ;;  %v579_v14 = vadd.f32 %v962_v60, %v922_v59 }
  0xfe   :  { %v964_v34 = vpop.f32.mrf.mxu1  ;;  %v925_v35 = vadd.f32 %v924_v30, %v923_v27 }
  0xff   :  { %v965_v36 = vadd.f32 %v964_v34, %v963_v29  ;;  %v926_v37 = vpop.f32.mrf.mxu0 }
 0x100   :  { %v966_v40 = vpop.f32.mrf.mxu1 }
 0x101   :  { %v927_v43 = vpop.f32.mrf.mxu0  ;;  %v584_v52 = vadd.f32 %v965_v36, %v925_v35 }
 0x102   :  { %v967_v47 = vpop.f32.mrf.mxu1  ;;  %v928_v49 = vadd.f32 %v927_v43, %v926_v37 }
 0x103   :  { %v968_v50 = vadd.f32 %v967_v47, %v966_v40  ;;  %v987_v51 = vpop.f32.mrf.mxu0 }
 0x104   :  { %v633_v56 = vadd.f32 %v987_v51, %v568_v48  ;;  %v991_v57 = vpop.f32.mrf.mxu1 }
 0x105   :  { %v649_v61 = vadd.f32 %v991_v57, %v584_v52  ;;  %v624_v62 = vpop.f32.mrf.mxu0  ;;  %v587_v9 = vadd.f32 %v968_v50, %v928_v49 }
 0x106   :  { %v625_v0 = vadd.f32 %v624_v62, %v560_v58  ;;  %v640_v1 = vpop.f32.mrf.mxu1  ;;  %v732_v11 = vadd.f32 %v703_v23, %v633_v56 }
 0x107   :  { %v641_v3 = vadd.f32 %v640_v1, %v576_v63  ;;  %v988_v4 = vpop.f32.mrf.mxu0  ;;  %v736_v7 = vadd.f32 %v723_v10, %v649_v61 }
 0x108   :  { %v636_v12 = vadd.f32 %v988_v4, %v571_v2  ;;  %v992_v5 = vpop.f32.mrf.mxu1  ;;  %v730_v16 = vadd.f32 %v693_v20, %v625_v0  ;;  %v740_v25 = vmax.f32 %v732_v11, 0.0 }
 0x109   :  { %v652_v8 = vadd.f32 %v992_v5, %v587_v9  ;;  %v627_v13 = vpop.f32.mrf.mxu0  ;;  %v734_v21 = vadd.f32 %v713_v46, %v641_v3  ;;  %v744_v29 = vmax.f32 %v736_v7, 0.0 }
 0x10a   :  { %v733_v17 = vadd.f32 %v708_v33, %v636_v12  ;;  %v628_v18 = vadd.f32 %v627_v13, %v563_v6  ;;  %v643_v19 = vpop.f32.mrf.mxu1  ;;  %v738_v31 = vmax.f32 %v730_v16, 0.0 }
 0x10b   :  { %v737_v22 = vadd.f32 %v728_v15, %v652_v8  ;;  %v644_v24 = vadd.f32 %v643_v19, %v579_v14  ;;  %v742_v35 = vmax.f32 %v734_v21, 0.0 }
 0x10c   :  { %v741_v26 = vmax.f32 %v733_v17, 0.0  ;;  %v731_v27 = vadd.f32 %v698_v28, %v628_v18 }
 0x10d   :  { %v745_v23 = vmax.f32 %v737_v22, 0.0  ;;  %v735_v30 = vadd.f32 %v718_v55, %v644_v24 }
 0x10e   :  { %v874_v32 = vpack.c.bf16 %v741_v26, %v740_v25  ;;  %v739_v34 = vmax.f32 %v731_v27, 0.0 }
 0x10f   :  { %v884_v36 = vpack.c.bf16 %v745_v23, %v744_v29  ;;  %v743_v37 = vmax.f32 %v735_v30, 0.0 }
 0x110   :  { %886 = vst [vmem:[%s1300_s3 + $0x8] sm:$0xff] %v874_v32   ;;  %v869_v20 = vpack.c.bf16 %v739_v34, %v738_v31 }
 0x111   :  { %888 = vst [vmem:[%s1300_s3 + $0x18] sm:$0xff] %v884_v36   ;;  %v879_v33 = vpack.c.bf16 %v743_v37, %v742_v35 }
 0x112   :  { %870 = vst [vmem:[%s1300_s3] sm:$0xff] %v869_v20  }
 0x113   :  { %887 = vst [vmem:[%s1300_s3 + $0x10] sm:$0xff] %v879_v33  }

// kernel: _lambda_.210
= control target key start
LH: loop header
LB: loop body
LE: loop exit
PB: predicated region body
PF: predicated region fallthrough
CT: control target
= control target key end

     0   :  { %v1221_v1 = vmov 0   ;;  %s1485_s1 = inlined_call_operand.vmem [shape: bf16[128,128], index: 1, kind: input, shape index: {}]   ;;  %s1486_s2 = inlined_call_operand.vmem [shape: f32[256,1], index: 2, kind: input, shape index: {}]   ;;  %s1487_s0 = inlined_call_operand.vmem [shape: bf16[256,128], index: 0, kind: input, shape index: {}]   ;;  %s1488_s3 = inlined_call_operand.vmem [shape: bf16[256,128], index: 3, kind: output, shape index: {}]  }
   0x1   :  { %v1197_v0 = vld [vmem:[%s1485_s1 + $0x38] sm:$0xff]   ;;  %1196 = vset.pattern.permute.xlu1 %v1221_v1  ;;  %1195 = vset.pattern.permute.xlu0 %v1221_v1  ;;  %v1198_v2 = vld [vmem:[%s1485_s1 + $0x30] sm:$0xff]   ;;  %v535_v4 = vld [vmem:[%s1486_s2] sm:$0xff] }
   0x2   :  { %1130 = vmatprep.subr.bf16.mxu0 %v1197_v0  ;;  %1178 = vmatprep.subr.bf16.mxu1 %v1197_v0  ;;  %v537_v3 = vld [vmem:[%s1486_s2 + $0x10] sm:$0xff]  ;;  %v1199_v5 = vld [vmem:[%s1485_s1 + $0x28] sm:$0xff]   ;;  %v538_v6 = vld [vmem:[%s1486_s2 + $0x18] sm:$0xff] }
   0x3   :  { %1131 = vmatpush3.bf16.msra.mxu0 %v1197_v0  ;;  %1186 = vmatpush3.bf16.msra.mxu1 %v1197_v0  ;;  %v536_v7 = vld [vmem:[%s1486_s2 + $0x8] sm:$0xff]  ;;  %v1200_v8 = vld [vmem:[%s1485_s1 + $0x20] sm:$0xff]   ;;  %v1201_v11 = vld [vmem:[%s1485_s1 + $0x18] sm:$0xff]  }
   0x4   :  { %1132 = vmatprep.subr.bf16.mxu0 %v1198_v2  ;;  %1179 = vmatprep.subr.bf16.mxu1 %v1198_v2  ;;  %v540_v9 = vld [vmem:[%s1486_s2 + $0x28] sm:$0xff]  ;;  %v539_v10 = vld [vmem:[%s1486_s2 + $0x20] sm:$0xff]  ;;  %v542_v12 = vld [vmem:[%s1486_s2 + $0x38] sm:$0xff] }
   0x5   :  { %579 = vperm.xlu1 %1196, %v537_v3   ;;  %569 = vperm.xlu0 %1195, %v535_v4   ;;  %v1205_v13 = vld [vmem:[%s1487_s0] sm:$0xff]   ;;  %v541_v14 = vld [vmem:[%s1486_s2 + $0x30] sm:$0xff]  ;;  %v544_v17 = vld [vmem:[%s1486_s2 + $0x48] sm:$0xff] }
   0x6   :  { %1146 = vmatprep.mubr.bf16.mxu0 %v1205_v13  ;;  %v1206_v15 = vld [vmem:[%s1487_s0 + $0x40] sm:$0xff]   ;;  %v1202_v16 = vld [vmem:[%s1485_s1 + $0x10] sm:$0xff]   ;;  %v1203_v19 = vld [vmem:[%s1485_s1 + $0x8] sm:$0xff]  }
   0x7   :  { %1133 = vmatpush3.bf16.msra.mxu0 %v1198_v2  ;;  %1187 = vmatpush3.bf16.msra.mxu1 %v1198_v2  ;;  %v543_v18 = vld [vmem:[%s1486_s2 + $0x40] sm:$0xff]  ;;  %v546_v20 = vld [vmem:[%s1486_s2 + $0x58] sm:$0xff]  ;;  %v545_v21 = vld [vmem:[%s1486_s2 + $0x50] sm:$0xff] }
   0x8   :  { %1134 = vmatprep.subr.bf16.mxu0 %v1199_v5  ;;  %1180 = vmatprep.subr.bf16.mxu1 %v1199_v5  ;;  %v1204_v22 = vld [vmem:[%s1485_s1] sm:$0xff]   ;;  %v548_v23 = vld [vmem:[%s1486_s2 + $0x68] sm:$0xff]  ;;  %v550_v27 = vld [vmem:[%s1486_s2 + $0x78] sm:$0xff] }
   0x9   :  { %584 = vperm.xlu1 %1196, %v538_v6   ;;  %574 = vperm.xlu0 %1195, %v536_v7   ;;  %v547_v24 = vld [vmem:[%s1486_s2 + $0x60] sm:$0xff]  ;;  %v1207_v25 = vld [vmem:[%s1487_s0 + $0x8] sm:$0xff]   ;;  %v549_v28 = vld [vmem:[%s1486_s2 + $0x70] sm:$0xff] }
   0xa   :  { %1162 = vmatprep.mubr.bf16.mxu1 %v1206_v15  ;;  %v1208_v26 = vld [vmem:[%s1487_s0 + $0x48] sm:$0xff]   ;;  %v1209_v29 = vld [vmem:[%s1487_s0 + $0x10] sm:$0xff]   ;;  %v551_v32 = vld [vmem:[%s1486_s2 + $0x80] sm:$0xff] }
   0xb   :  { %1135 = vmatpush3.bf16.msra.mxu0 %v1199_v5  ;;  %1188 = vmatpush3.bf16.msra.mxu1 %v1199_v5  ;;  %v1210_v30 = vld [vmem:[%s1487_s0 + $0x50] sm:$0xff]   ;;  %v552_v31 = vld [vmem:[%s1486_s2 + $0x88] sm:$0xff]  ;;  %v1211_v33 = vld [vmem:[%s1487_s0 + $0x18] sm:$0xff]  }
   0xc   :  { %1136 = vmatprep.subr.bf16.mxu0 %v1200_v8  ;;  %1181 = vmatprep.subr.bf16.mxu1 %v1200_v8  ;;  %v1212_v34 = vld [vmem:[%s1487_s0 + $0x58] sm:$0xff]   ;;  %v553_v36 = vld [vmem:[%s1486_s2 + $0x90] sm:$0xff]  ;;  %v1213_v37 = vld [vmem:[%s1487_s0 + $0x20] sm:$0xff]  }
   0xd   :  { %594 = vperm.xlu1 %1196, %v540_v9   ;;  %589 = vperm.xlu0 %1195, %v539_v10   ;;  %v554_v35 = vld [vmem:[%s1486_s2 + $0x98] sm:$0xff]  ;;  %v1214_v38 = vld [vmem:[%s1487_s0 + $0x60] sm:$0xff]   ;;  %v556_v39 = vld [vmem:[%s1486_s2 + $0xa8] sm:$0xff] }
   0xe   :  { %v555_v40 = vld [vmem:[%s1486_s2 + $0xa0] sm:$0xff]  ;;  %v1215_v41 = vld [vmem:[%s1487_s0 + $0x28] sm:$0xff]   ;;  %v558_v43 = vld [vmem:[%s1486_s2 + $0xb8] sm:$0xff] }
   0xf   :  { %1137 = vmatpush3.bf16.msra.mxu0 %v1200_v8  ;;  %1189 = vmatpush3.bf16.msra.mxu1 %v1200_v8  ;;  %v1216_v42 = vld [vmem:[%s1487_s0 + $0x68] sm:$0xff]   ;;  %v557_v44 = vld [vmem:[%s1486_s2 + $0xb0] sm:$0xff]  ;;  %v559_v48 = vld [vmem:[%s1486_s2 + $0xc0] sm:$0xff] }
  0x10   :  { %1138 = vmatprep.subr.bf16.mxu0 %v1201_v11  ;;  %1182 = vmatprep.subr.bf16.mxu1 %v1201_v11  ;;  %v1217_v45 = vld [vmem:[%s1487_s0 + $0x30] sm:$0xff]   ;;  %v560_v47 = vld [vmem:[%s1486_s2 + $0xc8] sm:$0xff]  ;;  %v1219_v49 = vld [vmem:[%s1487_s0 + $0x38] sm:$0xff]  }
  0x11   :  { %604 = vperm.xlu1 %1196, %v542_v12   ;;  %599 = vperm.xlu0 %1195, %v541_v14   ;;  %v1218_v46 = vld [vmem:[%s1487_s0 + $0x70] sm:$0xff]   ;;  %v1220_v50 = vld [vmem:[%s1487_s0 + $0x78] sm:$0xff]   ;;  %v564_v53 = vld [vmem:[%s1486_s2 + $0xe8] sm:$0xff] }
  0x12   :  { %v562_v51 = vld [vmem:[%s1486_s2 + $0xd8] sm:$0xff]  ;;  %v561_v52 = vld [vmem:[%s1486_s2 + $0xd0] sm:$0xff]  ;;  %v563_v54 = vld [vmem:[%s1486_s2 + $0xe0] sm:$0xff] }
  0x13   :  { %1139 = vmatpush3.bf16.msra.mxu0 %v1201_v11  ;;  %1190 = vmatpush3.bf16.msra.mxu1 %v1201_v11  ;;  %v566_v55 = vld [vmem:[%s1486_s2 + $0xf8] sm:$0xff]  ;;  %v565_v56 = vld [vmem:[%s1486_s2 + $0xf0] sm:$0xff] }
  0x14   :  { %1140 = vmatprep.subr.bf16.mxu0 %v1202_v16  ;;  %1183 = vmatprep.subr.bf16.mxu1 %v1202_v16 }
  0x15   :  { %614 = vperm.xlu1 %1196, %v544_v17   ;;  %609 = vperm.xlu0 %1195, %v543_v18  }
  0x17   :  { %1141 = vmatpush3.bf16.msra.mxu0 %v1202_v16  ;;  %1191 = vmatpush3.bf16.msra.mxu1 %v1202_v16 }
  0x18   :  { %1142 = vmatprep.subr.bf16.mxu0 %v1203_v19  ;;  %1184 = vmatprep.subr.bf16.mxu1 %v1203_v19 }
  0x19   :  { %624 = vperm.xlu1 %1196, %v546_v20   ;;  %619 = vperm.xlu0 %1195, %v545_v21  }
  0x1b   :  { %1143 = vmatpush3.bf16.msra.mxu0 %v1203_v19  ;;  %1192 = vmatpush3.bf16.msra.mxu1 %v1203_v19 }
  0x1c   :  { %1144 = vmatprep.subr.bf16.mxu0 %v1204_v22  ;;  %1185 = vmatprep.subr.bf16.mxu1 %v1204_v22 }
  0x1d   :  { %634 = vperm.xlu1 %1196, %v548_v23   ;;  %629 = vperm.xlu0 %1195, %v547_v24  }
  0x1f   :  { %1145 = vmatpush3.bf16.msra.mxu0 %v1204_v22  ;;  %1193 = vmatpush3.bf16.msra.mxu1 %v1204_v22 }
  0x21   :  { %644 = vperm.xlu1 %1196, %v550_v27   ;;  %639 = vperm.xlu0 %1195, %v549_v28  }
  0x22   :  { %1147 = vmatmul.mubr.bf16.vlgmr.msra.gmra.mxu0 %v1207_v25  ;;  %1163 = vmatmul.mubr.bf16.vlgmr.msra.gmra.mxu1 %v1208_v26 }
  0x23   :  { %1150 = vmatprep.mubr.bf16.mxu0 %v1209_v29  ;;  %1166 = vmatprep.mubr.bf16.mxu1 %v1210_v30 }
  0x25   :  { %654 = vperm.xlu1 %1196, %v552_v31   ;;  %649 = vperm.xlu0 %1195, %v551_v32  }
  0x29   :  { %664 = vperm.xlu1 %1196, %v554_v35   ;;  %659 = vperm.xlu0 %1195, %v553_v36  }
  0x2a   :  { %1151 = vmatmul.mubr.bf16.gmra.mxu0 %v1211_v33  ;;  %1167 = vmatmul.mubr.bf16.gmra.mxu1 %v1212_v34 }
  0x2b   :  { %1154 = vmatprep.mubr.bf16.mxu0 %v1213_v37  ;;  %1170 = vmatprep.mubr.bf16.mxu1 %v1214_v38 }
  0x2d   :  { %674 = vperm.xlu1 %1196, %v556_v39   ;;  %669 = vperm.xlu0 %1195, %v555_v40  }
  0x31   :  { %684 = vperm.xlu1 %1196, %v558_v43   ;;  %679 = vperm.xlu0 %1195, %v557_v44  }
  0x32   :  { %1155 = vmatmul.mubr.bf16.gmra.mxu0 %v1215_v41  ;;  %1171 = vmatmul.mubr.bf16.gmra.mxu1 %v1216_v42 }
  0x33   :  { %1158 = vmatprep.mubr.bf16.mxu0 %v1217_v45  ;;  %1174 = vmatprep.mubr.bf16.mxu1 %v1218_v46 }
  0x35   :  { %694 = vperm.xlu1 %1196, %v560_v47   ;;  %689 = vperm.xlu0 %1195, %v559_v48  }
  0x39   :  { %704 = vperm.xlu1 %1196, %v562_v51   ;;  %699 = vperm.xlu0 %1195, %v561_v52  }
  0x3a   :  { %1159 = vmatmul.mubr.bf16.gmra.mxu0 %v1219_v49  ;;  %1175 = vmatmul.mubr.bf16.gmra.mxu1 %v1220_v50 }
  0x3d   :  { %714 = vperm.xlu1 %1196, %v564_v53   ;;  %709 = vperm.xlu0 %1195, %v563_v54  }
  0x41   :  { %724 = vperm.xlu1 %1196, %v566_v55   ;;  %719 = vperm.xlu0 %1195, %v565_v56  }
  0x80   :  { %v580_v57 = vpop.permute.xlu1 %579  ;;  %v570_v58 = vpop.permute.xlu0 %569 }
  0x84   :  { %v585_v59 = vpop.permute.xlu1 %584  ;;  %v575_v60 = vpop.permute.xlu0 %574 }
  0x88   :  { %v1410_v61 = vpop.permute.xlu1 %594  ;;  %v590_v62 = vpop.permute.xlu0 %589 }
  0x8c   :  { %v605_v63 = vpop.permute.xlu1 %604  ;;  %v600_v0 = vpop.permute.xlu0 %599 }
  0x90   :  { %v1412_v1 = vpop.permute.xlu1 %614  ;;  %v1414_v2 = vpop.permute.xlu0 %609 }
  0x94   :  { %v1416_v3 = vpop.permute.xlu1 %624  ;;  %v1418_v4 = vpop.permute.xlu0 %619 }
  0x98   :  { %v1420_v5 = vpop.permute.xlu1 %634  ;;  %v1422_v6 = vpop.permute.xlu0 %629 }
  0x9c   :  { %v1424_v7 = vpop.permute.xlu1 %644  ;;  %v1426_v8 = vpop.permute.xlu0 %639 }
  0xa0   :  { %v655_v9 = vpop.permute.xlu1 %654  ;;  %v650_v10 = vpop.permute.xlu0 %649 }
  0xa4   :  { %v665_v11 = vpop.permute.xlu1 %664  ;;  %v660_v12 = vpop.permute.xlu0 %659 }
  0xa8   :  { %v675_v13 = vpop.permute.xlu1 %674  ;;  %v670_v14 = vpop.permute.xlu0 %669 }
  0xac   :  { %v685_v19 = vpop.permute.xlu1 %684  ;;  %v680_v20 = vpop.permute.xlu0 %679 }
  0xb0   :  { %v695_v37 = vpop.permute.xlu1 %694  ;;  %v690_v38 = vpop.permute.xlu0 %689 }
  0xb4   :  { %v705_v53 = vpop.permute.xlu1 %704  ;;  %v700_v54 = vpop.permute.xlu0 %699 }
  0xe2   :  { %v1148_v15 = vpop.f32.mrf.mxu0  ;;  %v1164_v16 = vpop.f32.mrf.mxu1 }
  0xe3   :  { %v729_v23 = vadd.f32 %v1148_v15, %v580_v57  ;;  %v745_v24 = vadd.f32 %v1164_v16, %v660_v12  ;;  %v710_v12 = vpop.permute.xlu0 %709 }
  0xe4   :  { %v309_v17 = vpop.f32.mrf.mxu0  ;;  %v373_v18 = vpop.f32.mrf.mxu1 }
  0xe5   :  { %v727_v27 = vadd.f32 %v570_v58, %v309_v17  ;;  %v743_v28 = vadd.f32 %v650_v10, %v373_v18 }
  0xe6   :  { %v1149_v21 = vpop.f32.mrf.mxu0  ;;  %v1165_v22 = vpop.f32.mrf.mxu1 }
  0xe7   :  { %v730_v25 = vadd.f32 %v1149_v21, %v585_v59  ;;  %v746_v26 = vadd.f32 %v1165_v22, %v665_v11  ;;  %v715_v11 = vpop.permute.xlu1 %714 }
  0xe8   :  { %v312_v29 = vpop.f32.mrf.mxu0  ;;  %v376_v30 = vpop.f32.mrf.mxu1 }
  0xe9   :  { %v1019_v31 = vpack.c.bf16 %v730_v25, %v729_v23  ;;  %v1059_v32 = vpack.c.bf16 %v746_v26, %v745_v24  ;;  %v728_v33 = vadd.f32 %v575_v60, %v312_v29  ;;  %v744_v34 = vadd.f32 %v655_v9, %v376_v30  ;;  %v720_v29 = vpop.permute.xlu0 %719 }
  0xea   :  { %v1152_v35 = vpop.f32.mrf.mxu0  ;;  %v1168_v36 = vpop.f32.mrf.mxu1 }
  0xeb   :  { %1091 = vst [vmem:[%s1488_s3 + $0x8] sm:$0xff] %v1019_v31   ;;  %1099 = vst [vmem:[%s1488_s3 + $0x48] sm:$0xff] %v1059_v32   ;;  %v1014_v39 = vpack.c.bf16 %v728_v33, %v727_v27  ;;  %v1054_v40 = vpack.c.bf16 %v744_v34, %v743_v28  ;;  %v733_v45 = vadd.f32 %v1152_v35, %v600_v0  ;;  %v725_v28 = vpop.permute.xlu1 %724 }
  0xec   :  { %v325_v41 = vpop.f32.mrf.mxu0  ;;  %v389_v42 = vpop.f32.mrf.mxu1  ;;  %v749_v46 = vadd.f32 %v1168_v36, %v680_v20 }
  0xed   :  { %1015 = vst [vmem:[%s1488_s3] sm:$0xff] %v1014_v39   ;;  %1098 = vst [vmem:[%s1488_s3 + $0x40] sm:$0xff] %v1054_v40   ;;  %v731_v49 = vadd.f32 %v590_v62, %v325_v41  ;;  %v747_v50 = vadd.f32 %v670_v14, %v389_v42 }
  0xee   :  { %v1153_v43 = vpop.f32.mrf.mxu0  ;;  %v1169_v44 = vpop.f32.mrf.mxu1 }
  0xef   :  { %v734_v47 = vadd.f32 %v1153_v43, %v605_v63  ;;  %v750_v48 = vadd.f32 %v1169_v44, %v685_v19 }
  0xf0   :  { %v328_v51 = vpop.f32.mrf.mxu0  ;;  %v392_v52 = vpop.f32.mrf.mxu1 }
  0xf1   :  { %v1029_v55 = vpack.c.bf16 %v734_v47, %v733_v45  ;;  %v1069_v56 = vpack.c.bf16 %v750_v48, %v749_v46  ;;  %v732_v57 = vadd.f32 %v1410_v61, %v328_v51  ;;  %v748_v58 = vadd.f32 %v675_v13, %v392_v52 }
  0xf2   :  { %v1156_v59 = vpop.f32.mrf.mxu0  ;;  %v1172_v60 = vpop.f32.mrf.mxu1 }
  0xf3   :  { %1093 = vst [vmem:[%s1488_s3 + $0x18] sm:$0xff] %v1029_v55   ;;  %1101 = vst [vmem:[%s1488_s3 + $0x58] sm:$0xff] %v1069_v56   ;;  %v1024_v62 = vpack.c.bf16 %v732_v57, %v731_v49  ;;  %v1064_v63 = vpack.c.bf16 %v748_v58, %v747_v50  ;;  %v737_v13 = vadd.f32 %v1156_v59, %v1418_v4 }
  0xf4   :  { %v341_v0 = vpop.f32.mrf.mxu0  ;;  %v405_v9 = vpop.f32.mrf.mxu1  ;;  %v753_v14 = vadd.f32 %v1172_v60, %v700_v54 }
  0xf5   :  { %1092 = vst [vmem:[%s1488_s3 + $0x10] sm:$0xff] %v1024_v62   ;;  %1100 = vst [vmem:[%s1488_s3 + $0x50] sm:$0xff] %v1064_v63   ;;  %v735_v17 = vadd.f32 %v1414_v2, %v341_v0  ;;  %v751_v18 = vadd.f32 %v690_v38, %v405_v9 }
  0xf6   :  { %v1157_v61 = vpop.f32.mrf.mxu0  ;;  %v1173_v10 = vpop.f32.mrf.mxu1 }
  0xf7   :  { %v738_v15 = vadd.f32 %v1157_v61, %v1416_v3  ;;  %v754_v16 = vadd.f32 %v1173_v10, %v705_v53 }
  0xf8   :  { %v344_v19 = vpop.f32.mrf.mxu0  ;;  %v408_v20 = vpop.f32.mrf.mxu1 }
  0xf9   :  { %v1039_v21 = vpack.c.bf16 %v738_v15, %v737_v13  ;;  %v1079_v22 = vpack.c.bf16 %v754_v16, %v753_v14  ;;  %v736_v23 = vadd.f32 %v1412_v1, %v344_v19  ;;  %v752_v24 = vadd.f32 %v695_v37, %v408_v20 }
  0xfa   :  { %v1160_v25 = vpop.f32.mrf.mxu0  ;;  %v1176_v26 = vpop.f32.mrf.mxu1 }
  0xfb   :  { %1095 = vst [vmem:[%s1488_s3 + $0x28] sm:$0xff] %v1039_v21   ;;  %1103 = vst [vmem:[%s1488_s3 + $0x68] sm:$0xff] %v1079_v22   ;;  %v1034_v3 = vpack.c.bf16 %v736_v23, %v735_v17  ;;  %v1074_v2 = vpack.c.bf16 %v752_v24, %v751_v18  ;;  %v741_v31 = vadd.f32 %v1160_v25, %v1426_v8 }
  0xfc   :  { %v357_v4 = vpop.f32.mrf.mxu0  ;;  %v421_v27 = vpop.f32.mrf.mxu1  ;;  %v757_v32 = vadd.f32 %v1176_v26, %v720_v29 }
  0xfd   :  { %1094 = vst [vmem:[%s1488_s3 + $0x20] sm:$0xff] %v1034_v3   ;;  %1102 = vst [vmem:[%s1488_s3 + $0x60] sm:$0xff] %v1074_v2   ;;  %v739_v35 = vadd.f32 %v1422_v6, %v357_v4  ;;  %v755_v36 = vadd.f32 %v710_v12, %v421_v27 }
  0xfe   :  { %v1161_v1 = vpop.f32.mrf.mxu0  ;;  %v1177_v30 = vpop.f32.mrf.mxu1 }
  0xff   :  { %v742_v33 = vadd.f32 %v1161_v1, %v1424_v7  ;;  %v758_v34 = vadd.f32 %v1177_v30, %v725_v28 }
 0x100   :  { %v360_v37 = vpop.f32.mrf.mxu0  ;;  %v424_v38 = vpop.f32.mrf.mxu1 }
 0x101   :  { %v1049_v39 = vpack.c.bf16 %v742_v33, %v741_v31  ;;  %v1089_v40 = vpack.c.bf16 %v758_v34, %v757_v32  ;;  %v740_v41 = vadd.f32 %v1420_v5, %v360_v37  ;;  %v756_v42 = vadd.f32 %v715_v11, %v424_v38 }
 0x103   :  { %1097 = vst [vmem:[%s1488_s3 + $0x38] sm:$0xff] %v1049_v39   ;;  %1105 = vst [vmem:[%s1488_s3 + $0x78] sm:$0xff] %v1089_v40   ;;  %v1044_v7 = vpack.c.bf16 %v740_v41, %v739_v35  ;;  %v1084_v8 = vpack.c.bf16 %v756_v42, %v755_v36 }
 0x105   :  { %1096 = vst [vmem:[%s1488_s3 + $0x30] sm:$0xff] %v1044_v7   ;;  %1104 = vst [vmem:[%s1488_s3 + $0x70] sm:$0xff] %v1084_v8  }

// kernel: _lambda_.214
= control target key start
LH: loop header
LB: loop body
LE: loop exit
PB: predicated region body
PF: predicated region fallthrough
CT: control target
= control target key end

     0   :  { %v561_v1 = vmov 0   ;;  %s690_s1 = inlined_call_operand.vmem [shape: bf16[256,128], index: 1, kind: input, shape index: {}]   ;;  %s691_s0 = inlined_call_operand.vmem [shape: bf16[64,256], index: 0, kind: input, shape index: {}]   ;;  %s692_s2 = inlined_call_operand.vmem [shape: f32[64,1], index: 2, kind: input, shape index: {}]   ;;  %s693_s3 = inlined_call_operand.vmem [shape: bf16[64,128], index: 3, kind: output, shape index: {}]  }
   0x1   :  { %v533_v0 = vld [vmem:[%s690_s1 + $0x78] sm:$0xff]   ;;  %532 = vset.pattern.permute.xlu1 %v561_v1  ;;  %531 = vset.pattern.permute.xlu0 %v561_v1  ;;  %v535_v3 = vld [vmem:[%s690_s1 + $0x70] sm:$0xff]   ;;  %v537_v5 = vld [vmem:[%s690_s1 + $0x68] sm:$0xff]  }
   0x2   :  { %v534_v2 = vld [vmem:[%s690_s1 + $0x38] sm:$0xff]   ;;  %474 = vmatprep.subr.bf16.mxu0 %v533_v0  ;;  %514 = vmatprep.subr.bf16.mxu1 %v533_v0  ;;  %v536_v4 = vld [vmem:[%s690_s1 + $0x30] sm:$0xff]   ;;  %v538_v6 = vld [vmem:[%s690_s1 + $0x28] sm:$0xff]  }
   0x3   :  { %475 = vmatpush3.bf16.msra.mxu0 %v534_v2  ;;  %522 = vmatpush3.bf16.msra.mxu1 %v534_v2  ;;  %v539_v7 = vld [vmem:[%s690_s1 + $0x60] sm:$0xff]   ;;  %v541_v9 = vld [vmem:[%s690_s1 + $0x58] sm:$0xff]   ;;  %v543_v11 = vld [vmem:[%s690_s1 + $0x50] sm:$0xff]  }
   0x4   :  { %476 = vmatprep.subr.bf16.mxu0 %v535_v3  ;;  %515 = vmatprep.subr.bf16.mxu1 %v535_v3  ;;  %v540_v8 = vld [vmem:[%s690_s1 + $0x20] sm:$0xff]   ;;  %v542_v10 = vld [vmem:[%s690_s1 + $0x18] sm:$0xff]   ;;  %v544_v14 = vld [vmem:[%s690_s1 + $0x10] sm:$0xff]  }
   0x5   :  { %v551_v12 = vld [vmem:[%s691_s0 + $0x4] ss:$8 sps:$4 sm:$0xff]   ;;  %v305_v16 = vld [vmem:[%s692_s2 + $0x10] sm:$0xff]  ;;  %v306_v19 = vld [vmem:[%s692_s2 + $0x18] sm:$0xff] }
   0x6   :  { %v554_v13 = vld [vmem:[%s691_s0 + $0x24] ss:$8 sps:$4 sm:$0xff]   ;;  %243 = vmatprep.mubr.bf16.mxu0 %v551_v12  ;;  %323 = vperm.xlu1 %532, %v305_v16   ;;  %v549_v25 = vld [vmem:[%s691_s0] ss:$8 sps:$4 sm:$0xff]   ;;  %v555_v27 = vld [vmem:[%s691_s0 + $0x14] ss:$8 sps:$4 sm:$0xff]  }
   0x7   :  { %477 = vmatpush3.bf16.msra.mxu0 %v536_v4  ;;  %523 = vmatpush3.bf16.msra.mxu1 %v536_v4  ;;  %v545_v15 = vld [vmem:[%s690_s1 + $0x48] sm:$0xff]   ;;  %v303_v17 = vld [vmem:[%s692_s2] sm:$0xff]  ;;  %v557_v28 = vld [vmem:[%s691_s0 + $0x34] ss:$8 sps:$4 sm:$0xff]  }
   0x8   :  { %478 = vmatprep.subr.bf16.mxu0 %v537_v5  ;;  %516 = vmatprep.subr.bf16.mxu1 %v537_v5  ;;  %v546_v18 = vld [vmem:[%s690_s1 + $0x8] sm:$0xff]   ;;  %v547_v21 = vld [vmem:[%s690_s1 + $0x40] sm:$0xff]   ;;  %v310_v29 = vld [vmem:[%s692_s2 + $0x38] sm:$0xff] }
   0x9   :  { %259 = vmatprep.mubr.bf16.mxu1 %v554_v13  ;;  %313 = vperm.xlu0 %531, %v303_v17   ;;  %v304_v20 = vld [vmem:[%s692_s2 + $0x8] sm:$0xff]  ;;  %v548_v22 = vld [vmem:[%s690_s1] sm:$0xff]   ;;  %v309_v30 = vld [vmem:[%s692_s2 + $0x30] sm:$0xff] }
   0xa   :  { %328 = vperm.xlu1 %532, %v306_v19   ;;  %v308_v23 = vld [vmem:[%s692_s2 + $0x28] sm:$0xff]  ;;  %v307_v24 = vld [vmem:[%s692_s2 + $0x20] sm:$0xff]  ;;  %v559_v31 = vld [vmem:[%s691_s0 + $0x10] ss:$8 sps:$4 sm:$0xff]  }
   0xb   :  { %479 = vmatpush3.bf16.msra.mxu0 %v538_v6  ;;  %524 = vmatpush3.bf16.msra.mxu1 %v538_v6  ;;  %v552_v26 = vld [vmem:[%s691_s0 + $0x20] ss:$8 sps:$4 sm:$0xff]   ;;  %v560_v32 = vld [vmem:[%s691_s0 + $0x30] ss:$8 sps:$4 sm:$0xff]  }
   0xc   :  { %480 = vmatprep.subr.bf16.mxu0 %v539_v7  ;;  %517 = vmatprep.subr.bf16.mxu1 %v539_v7 }
   0xd   :  { %318 = vperm.xlu0 %531, %v304_v20  }
   0xe   :  { %338 = vperm.xlu1 %532, %v308_v23  }
   0xf   :  { %481 = vmatpush3.bf16.msra.mxu0 %v540_v8  ;;  %525 = vmatpush3.bf16.msra.mxu1 %v540_v8 }
  0x10   :  { %482 = vmatprep.subr.bf16.mxu0 %v541_v9  ;;  %518 = vmatprep.subr.bf16.mxu1 %v541_v9 }
  0x11   :  { %333 = vperm.xlu0 %531, %v307_v24  }
  0x12   :  { %348 = vperm.xlu1 %532, %v310_v29  }
  0x13   :  { %483 = vmatpush3.bf16.msra.mxu0 %v542_v10  ;;  %526 = vmatpush3.bf16.msra.mxu1 %v542_v10 }
  0x14   :  { %484 = vmatprep.subr.bf16.mxu0 %v543_v11  ;;  %519 = vmatprep.subr.bf16.mxu1 %v543_v11 }
  0x15   :  { %343 = vperm.xlu0 %531, %v309_v30  }
  0x17   :  { %485 = vmatpush3.bf16.msra.mxu0 %v544_v14  ;;  %527 = vmatpush3.bf16.msra.mxu1 %v544_v14 }
  0x18   :  { %486 = vmatprep.subr.bf16.mxu0 %v545_v15  ;;  %520 = vmatprep.subr.bf16.mxu1 %v545_v15 }
  0x1b   :  { %487 = vmatpush3.bf16.msra.mxu0 %v546_v18  ;;  %528 = vmatpush3.bf16.msra.mxu1 %v546_v18 }
  0x1c   :  { %488 = vmatprep.subr.bf16.mxu0 %v547_v21  ;;  %521 = vmatprep.subr.bf16.mxu1 %v547_v21 }
  0x1f   :  { %489 = vmatpush3.bf16.msra.mxu0 %v548_v22  ;;  %529 = vmatpush3.bf16.msra.mxu1 %v548_v22 }
  0x22   :  { %244 = vmatmul.mubr.bf16.vlgmr.msra.gmra.mxu0 %v549_v25  ;;  %260 = vmatmul.mubr.bf16.vlgmr.msra.gmra.mxu1 %v552_v26 }
  0x23   :  { %251 = vmatprep.mubr.bf16.mxu0 %v555_v27  ;;  %267 = vmatprep.mubr.bf16.mxu1 %v557_v28 }
  0x2a   :  { %252 = vmatmul.mubr.bf16.gmra.mxu0 %v559_v31  ;;  %268 = vmatmul.mubr.bf16.gmra.mxu1 %v560_v32 }
  0x81   :  { %v324_v34 = vpop.permute.xlu1 %323 }
  0x84   :  { %v314_v33 = vpop.permute.xlu0 %313 }
  0x85   :  { %v329_v38 = vpop.permute.xlu1 %328 }
  0x88   :  { %v319_v35 = vpop.permute.xlu0 %318 }
  0x89   :  { %v339_v50 = vpop.permute.xlu1 %338 }
  0x8c   :  { %v334_v45 = vpop.permute.xlu0 %333 }
  0x8d   :  { %v349_v12 = vpop.permute.xlu1 %348 }
  0x90   :  { %v344_v3 = vpop.permute.xlu0 %343 }
  0xe2   :  { %v490_v36 = vpop.f32.mrf.mxu0  ;;  %v502_v37 = vpop.f32.mrf.mxu1 }
  0xe4   :  { %v491_v39 = vpop.f32.mrf.mxu0  ;;  %v503_v40 = vpop.f32.mrf.mxu1 }
  0xe5   :  { %v492_v41 = vadd.f32 %v491_v39, %v490_v36  ;;  %v504_v42 = vadd.f32 %v503_v40, %v502_v37 }
  0xe6   :  { %v493_v43 = vpop.f32.mrf.mxu0  ;;  %v505_v44 = vpop.f32.mrf.mxu1 }
  0xe7   :  { %v351_v46 = vadd.f32 %v492_v41, %v314_v33  ;;  %v355_v47 = vadd.f32 %v504_v42, %v334_v45 }
  0xe8   :  { %v494_v48 = vpop.f32.mrf.mxu0  ;;  %v506_v49 = vpop.f32.mrf.mxu1 }
  0xe9   :  { %v495_v51 = vadd.f32 %v494_v48, %v493_v43  ;;  %v507_v52 = vadd.f32 %v506_v49, %v505_v44  ;;  %v359_v57 = vmax.f32 %v351_v46, 0.0  ;;  %v363_v58 = vmax.f32 %v355_v47, 0.0 }
  0xea   :  { %v496_v53 = vpop.f32.mrf.mxu0  ;;  %v508_v54 = vpop.f32.mrf.mxu1 }
  0xeb   :  { %v352_v55 = vadd.f32 %v495_v51, %v319_v35  ;;  %v356_v56 = vadd.f32 %v507_v52, %v339_v50 }
  0xec   :  { %v497_v59 = vpop.f32.mrf.mxu0  ;;  %v509_v60 = vpop.f32.mrf.mxu1 }
  0xed   :  { %v360_v61 = vmax.f32 %v352_v55, 0.0  ;;  %v364_v62 = vmax.f32 %v356_v56, 0.0  ;;  %v498_v63 = vadd.f32 %v497_v59, %v496_v53  ;;  %v510_v0 = vadd.f32 %v509_v60, %v508_v54 }
  0xee   :  { %v499_v1 = vpop.f32.mrf.mxu0  ;;  %v511_v2 = vpop.f32.mrf.mxu1 }
  0xef   :  { %v454_v4 = vpack.c.bf16 %v360_v61, %v359_v57  ;;  %v464_v5 = vpack.c.bf16 %v364_v62, %v363_v58  ;;  %v353_v8 = vadd.f32 %v498_v63, %v324_v34  ;;  %v357_v9 = vadd.f32 %v510_v0, %v344_v3 }
  0xf0   :  { %v500_v6 = vpop.f32.mrf.mxu0  ;;  %v512_v7 = vpop.f32.mrf.mxu1 }
  0xf1   :  { %455 = vst [vmem:[%s693_s3] sm:$0xff] %v454_v4   ;;  %472 = vst [vmem:[%s693_s3 + $0x10] sm:$0xff] %v464_v5   ;;  %v501_v10 = vadd.f32 %v500_v6, %v499_v1  ;;  %v513_v11 = vadd.f32 %v512_v7, %v511_v2  ;;  %v361_v15 = vmax.f32 %v353_v8, 0.0  ;;  %v365_v16 = vmax.f32 %v357_v9, 0.0 }
  0xf3   :  { %v354_v13 = vadd.f32 %v501_v10, %v329_v38  ;;  %v358_v14 = vadd.f32 %v513_v11, %v349_v12 }
  0xf5   :  { %v362_v17 = vmax.f32 %v354_v13, 0.0  ;;  %v366_v18 = vmax.f32 %v358_v14, 0.0 }
  0xf7   :  { %v459_v19 = vpack.c.bf16 %v362_v17, %v361_v15  ;;  %v469_v20 = vpack.c.bf16 %v366_v18, %v365_v16 }
  0xf9   :  { %471 = vst [vmem:[%s693_s3 + $0x8] sm:$0xff] %v459_v19   ;;  %473 = vst [vmem:[%s693_s3 + $0x18] sm:$0xff] %v469_v20  }

// kernel: _lambda_.213
= control target key start
LH: loop header
LB: loop body
LE: loop exit
PB: predicated region body
PF: predicated region fallthrough
CT: control target
= control target key end

     0   :  { %v1420_v0 = vmov 0   ;;  %vm230_vm0 = vcmask 523264   ;;  %s1860_s2 = inlined_call_operand.vmem [shape: f32[256,1], index: 2, kind: input, shape index: {}]   ;;  %s1861_s1 = inlined_call_operand.vmem [shape: bf16[64,128], index: 1, kind: input, shape index: {}]   ;;  %s1862_s0 = inlined_call_operand.vmem [shape: bf16[256,64], index: 0, kind: input, shape index: {}]   ;;  %s1863_s3 = inlined_call_operand.vmem [shape: bf16[256,128], index: 3, kind: input, shape index: {}]   ;;  %s1864_s4 = inlined_call_operand.vmem [shape: bf16[256,128], index: 4, kind: output, shape index: {}]  }
   0x1   :  { %1399 = vset.pattern.permute.xlu1 %v1420_v0  ;;  %1398 = vset.pattern.permute.xlu0 %v1420_v0  ;;  %v541_v1 = vld [vmem:[%s1860_s2 + $0x10] sm:$0xff]  ;;  %v539_v2 = vld [vmem:[%s1860_s2] sm:$0xff]  ;;  %v1400_v3 = vld [vmem:[%s1861_s1 + $0x18] sm:$0xff]  }
   0x2   :  { %583 = vperm.xlu1 %1399, %v541_v1   ;;  %573 = vperm.xlu0 %1398, %v539_v2   ;;  %v542_v4 = vld [vmem:[%s1860_s2 + $0x18] sm:$0xff]  ;;  %v540_v5 = vld [vmem:[%s1860_s2 + $0x8] sm:$0xff]  ;;  %v1401_v6 = vld [vmem:[%s1861_s1 + $0x10] sm:$0xff]  }
   0x3   :  { %1349 = vmatprep.subr.bf16.mxu0 %v1400_v3  ;;  %1389 = vmatprep.subr.bf16.mxu1 %v1400_v3  ;;  %v544_v7 = vld [vmem:[%s1860_s2 + $0x28] sm:$0xff]  ;;  %v543_v8 = vld [vmem:[%s1860_s2 + $0x20] sm:$0xff]  ;;  %v546_v10 = vld [vmem:[%s1860_s2 + $0x38] sm:$0xff] }
   0x4   :  { %1350 = vmatpush3.bf16.msra.mxu0 %v1400_v3  ;;  %1393 = vmatpush3.bf16.msra.mxu1 %v1400_v3  ;;  %v1402_v9 = vld [vmem:[%s1861_s1 + $0x8] sm:$0xff]   ;;  %v545_v11 = vld [vmem:[%s1860_s2 + $0x30] sm:$0xff]  ;;  %v1404_v12 = vld [vmem:[%s1862_s0] sm:$0xff]  }
   0x5   :  { %1351 = vmatprep.subr.bf16.mxu0 %v1401_v6  ;;  %1390 = vmatprep.subr.bf16.mxu1 %v1401_v6  ;;  %v1405_v13 = vld [vmem:[%s1862_s0 + $0x40] sm:$0xff]   ;;  %v548_v15 = vld [vmem:[%s1860_s2 + $0x48] sm:$0xff]  ;;  %v1408_v19 = vld [vmem:[%s1862_s0 + $0x10] sm:$0xff]  }
   0x6   :  { %588 = vperm.xlu1 %1399, %v542_v4   ;;  %578 = vperm.xlu0 %1398, %v540_v5   ;;  %v1403_v14 = vld [vmem:[%s1861_s1] sm:$0xff]   ;;  %v1406_v17 = vld [vmem:[%s1862_s0 + $0x8] sm:$0xff]   ;;  %v1409_v20 = vld [vmem:[%s1862_s0 + $0x50] sm:$0xff]  }
   0x7   :  { %1357 = vmatprep.mubr.msk.bf16.mxu0 %vm230_vm0, %v1404_v12  ;;  %1373 = vmatprep.mubr.msk.bf16.mxu1 %vm230_vm0, %v1405_v13  ;;  %v547_v16 = vld [vmem:[%s1860_s2 + $0x40] sm:$0xff]  ;;  %v1407_v18 = vld [vmem:[%s1862_s0 + $0x48] sm:$0xff]   ;;  %v550_v21 = vld [vmem:[%s1860_s2 + $0x58] sm:$0xff] }
   0x8   :  { %1352 = vmatpush3.bf16.msra.mxu0 %v1401_v6  ;;  %1394 = vmatpush3.bf16.msra.mxu1 %v1401_v6  ;;  %v549_v22 = vld [vmem:[%s1860_s2 + $0x50] sm:$0xff]  ;;  %v552_v23 = vld [vmem:[%s1860_s2 + $0x68] sm:$0xff]  ;;  %v551_v24 = vld [vmem:[%s1860_s2 + $0x60] sm:$0xff] }
   0x9   :  { %1353 = vmatprep.subr.bf16.mxu0 %v1402_v9  ;;  %1391 = vmatprep.subr.bf16.mxu1 %v1402_v9  ;;  %v1410_v25 = vld [vmem:[%s1862_s0 + $0x18] sm:$0xff]   ;;  %v1412_v27 = vld [vmem:[%s1862_s0 + $0x20] sm:$0xff]   ;;  %v553_v30 = vld [vmem:[%s1860_s2 + $0x70] sm:$0xff] }
   0xa   :  { %598 = vperm.xlu1 %1399, %v544_v7   ;;  %593 = vperm.xlu0 %1398, %v543_v8   ;;  %v1411_v26 = vld [vmem:[%s1862_s0 + $0x58] sm:$0xff]   ;;  %v1413_v28 = vld [vmem:[%s1862_s0 + $0x60] sm:$0xff]   ;;  %v556_v31 = vld [vmem:[%s1860_s2 + $0x88] sm:$0xff] }
   0xb   :  { %v554_v29 = vld [vmem:[%s1860_s2 + $0x78] sm:$0xff]  ;;  %v555_v32 = vld [vmem:[%s1860_s2 + $0x80] sm:$0xff]  ;;  %v1414_v33 = vld [vmem:[%s1862_s0 + $0x28] sm:$0xff]  }
   0xc   :  { %1354 = vmatpush3.bf16.msra.mxu0 %v1402_v9  ;;  %1395 = vmatpush3.bf16.msra.mxu1 %v1402_v9  ;;  %v1415_v34 = vld [vmem:[%s1862_s0 + $0x68] sm:$0xff]   ;;  %v1416_v35 = vld [vmem:[%s1862_s0 + $0x30] sm:$0xff]   ;;  %v558_v37 = vld [vmem:[%s1860_s2 + $0x98] sm:$0xff] }
   0xd   :  { %1355 = vmatprep.subr.bf16.mxu0 %v1403_v14  ;;  %1392 = vmatprep.subr.bf16.mxu1 %v1403_v14  ;;  %v1417_v36 = vld [vmem:[%s1862_s0 + $0x70] sm:$0xff]   ;;  %v560_v39 = vld [vmem:[%s1860_s2 + $0xa8] sm:$0xff]  ;;  %v559_v40 = vld [vmem:[%s1860_s2 + $0xa0] sm:$0xff] }
   0xe   :  { %608 = vperm.xlu1 %1399, %v546_v10   ;;  %603 = vperm.xlu0 %1398, %v545_v11   ;;  %v557_v38 = vld [vmem:[%s1860_s2 + $0x90] sm:$0xff]  ;;  %v1418_v41 = vld [vmem:[%s1862_s0 + $0x38] sm:$0xff]   ;;  %v564_v45 = vld [vmem:[%s1860_s2 + $0xc8] sm:$0xff] }
   0xf   :  { %v1419_v42 = vld [vmem:[%s1862_s0 + $0x78] sm:$0xff]   ;;  %v561_v44 = vld [vmem:[%s1860_s2 + $0xb0] sm:$0xff]  ;;  %v563_v46 = vld [vmem:[%s1860_s2 + $0xc0] sm:$0xff] }
  0x10   :  { %1356 = vmatpush3.bf16.msra.mxu0 %v1403_v14  ;;  %1396 = vmatpush3.bf16.msra.mxu1 %v1403_v14  ;;  %v562_v43 = vld [vmem:[%s1860_s2 + $0xb8] sm:$0xff]  ;;  %v565_v48 = vld [vmem:[%s1860_s2 + $0xd0] sm:$0xff]  ;;  %v568_v49 = vld [vmem:[%s1860_s2 + $0xe8] sm:$0xff] }
  0x11   :  { %v566_v47 = vld [vmem:[%s1860_s2 + $0xd8] sm:$0xff]  ;;  %v567_v50 = vld [vmem:[%s1860_s2 + $0xe0] sm:$0xff]  ;;  %v569_v52 = vld [vmem:[%s1860_s2 + $0xf0] sm:$0xff] }
  0x12   :  { %618 = vperm.xlu1 %1399, %v548_v15   ;;  %613 = vperm.xlu0 %1398, %v547_v16   ;;  %v570_v51 = vld [vmem:[%s1860_s2 + $0xf8] sm:$0xff]  ;;  %v1299_v10 = vld [vmem:[%s1863_s3 + $0x8] sm:$0xff]   ;;  %v1657_v12 = vld [vmem:[%s1863_s3] sm:$0xff]  }
  0x13   :  { %1358 = vmatmul.mubr.msk.bf16.vlgmr.msra.gmra.mxu0 %vm230_vm0, %v1406_v17  ;;  %1374 = vmatmul.mubr.msk.bf16.vlgmr.msra.gmra.mxu1 %vm230_vm0, %v1407_v18  ;;  %v1307_v11 = vld [vmem:[%s1863_s3 + $0x48] sm:$0xff]   ;;  %v1662_v13 = vld [vmem:[%s1863_s3 + $0x40] sm:$0xff]   ;;  %v1669_v15 = vld [vmem:[%s1863_s3 + $0x18] sm:$0xff]   ;;  %v1161_v18 = vunpack.c.l.bf16 %v1299_v10 }
  0x14   :  { %1361 = vmatprep.mubr.msk.bf16.mxu0 %vm230_vm0, %v1408_v19  ;;  %1377 = vmatprep.mubr.msk.bf16.mxu1 %vm230_vm0, %v1409_v20  ;;  %v1674_v16 = vld [vmem:[%s1863_s3 + $0x58] sm:$0xff]   ;;  %v1193_v20 = vunpack.c.l.bf16 %v1307_v11 }
  0x16   :  { %628 = vperm.xlu1 %1399, %v550_v21   ;;  %623 = vperm.xlu0 %1398, %v549_v22   ;;  %v1157_v21 = vunpack.c.l.bf16 %v1657_v12  ;;  %v1189_v22 = vunpack.c.l.bf16 %v1662_v13 }
  0x1a   :  { %638 = vperm.xlu1 %1399, %v552_v23   ;;  %633 = vperm.xlu0 %1398, %v551_v24   ;;  %v1681_v23 = vld [vmem:[%s1863_s3 + $0x10] sm:$0xff]  }
  0x1b   :  { %1362 = vmatmul.mubr.msk.bf16.gmra.mxu0 %vm230_vm0, %v1410_v25  ;;  %1378 = vmatmul.mubr.msk.bf16.gmra.mxu1 %vm230_vm0, %v1411_v26  ;;  %v1686_v24 = vld [vmem:[%s1863_s3 + $0x50] sm:$0xff]  }
  0x1c   :  { %1365 = vmatprep.mubr.msk.bf16.mxu0 %vm230_vm0, %v1412_v27  ;;  %1381 = vmatprep.mubr.msk.bf16.mxu1 %vm230_vm0, %v1413_v28  ;;  %v1162_v28 = vunpack.c.h.bf16 %v1299_v10 }
  0x1e   :  { %648 = vperm.xlu1 %1399, %v554_v29   ;;  %643 = vperm.xlu0 %1398, %v553_v30   ;;  %v1194_v29 = vunpack.c.h.bf16 %v1307_v11 }
  0x22   :  { %658 = vperm.xlu1 %1399, %v556_v31   ;;  %653 = vperm.xlu0 %1398, %v555_v32   ;;  %v1158_v32 = vunpack.c.h.bf16 %v1657_v12 }
  0x23   :  { %1366 = vmatmul.mubr.msk.bf16.gmra.mxu0 %vm230_vm0, %v1414_v33  ;;  %1382 = vmatmul.mubr.msk.bf16.gmra.mxu1 %vm230_vm0, %v1415_v34  ;;  %v1190_v33 = vunpack.c.h.bf16 %v1662_v13  ;;  %v1169_v34 = vunpack.c.l.bf16 %v1669_v15 }
  0x24   :  { %1369 = vmatprep.mubr.msk.bf16.mxu0 %vm230_vm0, %v1416_v35  ;;  %1385 = vmatprep.mubr.msk.bf16.mxu1 %vm230_vm0, %v1417_v36  ;;  %v1201_v35 = vunpack.c.l.bf16 %v1674_v16  ;;  %v1695_v36 = vld [vmem:[%s1863_s3 + $0x28] sm:$0xff]  }
  0x26   :  { %668 = vperm.xlu1 %1399, %v558_v37   ;;  %663 = vperm.xlu0 %1398, %v557_v38   ;;  %v1700_v37 = vld [vmem:[%s1863_s3 + $0x68] sm:$0xff]  }
  0x2a   :  { %678 = vperm.xlu1 %1399, %v560_v39   ;;  %673 = vperm.xlu0 %1398, %v559_v40   ;;  %v1165_v40 = vunpack.c.l.bf16 %v1681_v23 }
  0x2b   :  { %1370 = vmatmul.mubr.msk.bf16.gmra.mxu0 %vm230_vm0, %v1418_v41  ;;  %1386 = vmatmul.mubr.msk.bf16.gmra.mxu1 %vm230_vm0, %v1419_v42  ;;  %v1197_v41 = vunpack.c.l.bf16 %v1686_v24  ;;  %v1707_v42 = vld [vmem:[%s1863_s3 + $0x20] sm:$0xff]  }
  0x2e   :  { %688 = vperm.xlu1 %1399, %v562_v43   ;;  %683 = vperm.xlu0 %1398, %v561_v44   ;;  %v1712_v43 = vld [vmem:[%s1863_s3 + $0x60] sm:$0xff]  }
  0x32   :  { %698 = vperm.xlu1 %1399, %v564_v45   ;;  %693 = vperm.xlu0 %1398, %v563_v46   ;;  %v1170_v46 = vunpack.c.h.bf16 %v1669_v15 }
  0x36   :  { %708 = vperm.xlu1 %1399, %v566_v47   ;;  %703 = vperm.xlu0 %1398, %v565_v48   ;;  %v1202_v47 = vunpack.c.h.bf16 %v1674_v16  ;;  %v1166_v48 = vunpack.c.h.bf16 %v1681_v23  ;;  %v1782_v23 = vld [vmem:[%s1863_s3 + $0x30] sm:$0xff]  }
  0x3a   :  { %718 = vperm.xlu1 %1399, %v568_v49   ;;  %713 = vperm.xlu0 %1398, %v567_v50  }
  0x3e   :  { %728 = vperm.xlu1 %1399, %v570_v51   ;;  %723 = vperm.xlu0 %1398, %v569_v52  }
  0x7d   :  { %v574_v53 = vpop.permute.xlu0 %573  ;;  %v584_v54 = vpop.permute.xlu1 %583 }
  0x81   :  { %v1618_v55 = vpop.permute.xlu0 %578  ;;  %v1620_v56 = vpop.permute.xlu1 %588 }
  0x85   :  { %v1622_v57 = vpop.permute.xlu0 %593  ;;  %v1624_v58 = vpop.permute.xlu1 %598 }
  0x89   :  { %v1626_v59 = vpop.permute.xlu0 %603  ;;  %v1628_v60 = vpop.permute.xlu1 %608 }
  0x8d   :  { %v1630_v61 = vpop.permute.xlu0 %613  ;;  %v1632_v62 = vpop.permute.xlu1 %618 }
  0x91   :  { %v1634_v63 = vpop.permute.xlu0 %623  ;;  %v1636_v0 = vpop.permute.xlu1 %628 }
  0x95   :  { %v1638_v1 = vpop.permute.xlu0 %633  ;;  %v1640_v2 = vpop.permute.xlu1 %638 }
  0x99   :  { %v1642_v3 = vpop.permute.xlu0 %643  ;;  %v1644_v4 = vpop.permute.xlu1 %648 }
  0x9d   :  { %v654_v5 = vpop.permute.xlu0 %653  ;;  %v659_v6 = vpop.permute.xlu1 %658 }
  0xa1   :  { %v664_v7 = vpop.permute.xlu0 %663  ;;  %v669_v8 = vpop.permute.xlu1 %668 }
  0xa5   :  { %v1646_v9 = vpop.permute.xlu0 %673  ;;  %v1664_v14 = vpop.permute.xlu1 %678 }
  0xa9   :  { %v684_v25 = vpop.permute.xlu0 %683  ;;  %v689_v50 = vpop.permute.xlu1 %688 }
  0xd3   :  { %v1359_v17 = vpop.f32.mrf.mxu0  ;;  %v1375_v19 = vpop.f32.mrf.mxu1 }
  0xd4   :  { %v733_v26 = vadd.f32 %v1359_v17, %v584_v54  ;;  %v749_v27 = vadd.f32 %v1375_v19, %v664_v7  ;;  %v1723_v17 = vpop.permute.xlu0 %693 }
  0xd5   :  { %v313_v30 = vpop.f32.mrf.mxu0  ;;  %v377_v31 = vpop.f32.mrf.mxu1 }
  0xd6   :  { %v731_v38 = vadd.f32 %v574_v53, %v313_v30  ;;  %v747_v39 = vadd.f32 %v654_v5, %v377_v31  ;;  %v829_v51 = vadd.f32 %v1161_v18, %v733_v26  ;;  %v845_v52 = vadd.f32 %v1193_v20, %v749_v27 }
  0xd7   :  { %v1360_v44 = vpop.f32.mrf.mxu0  ;;  %v1376_v45 = vpop.f32.mrf.mxu1 }
  0xd8   :  { %v734_v5 = vadd.f32 %v1360_v44, %v1620_v56  ;;  %v750_v7 = vadd.f32 %v1376_v45, %v669_v8  ;;  %v827_v19 = vadd.f32 %v1157_v21, %v731_v38  ;;  %v843_v30 = vadd.f32 %v1189_v22, %v747_v39 }
  0xd9   :  { %v316_v10 = vpop.f32.mrf.mxu0  ;;  %v380_v11 = vpop.f32.mrf.mxu1  ;;  %v1178_v56 = vunpack.c.h.bf16 %v1695_v36  ;;  %v1210_v8 = vunpack.c.h.bf16 %v1700_v37  ;;  %v861_v44 = vmax.f32 %v829_v51, 0.0  ;;  %v877_v45 = vmax.f32 %v845_v52, 0.0 }
  0xda   :  { %v732_v18 = vadd.f32 %v1618_v55, %v316_v10  ;;  %v748_v20 = vadd.f32 %v659_v6, %v380_v11  ;;  %v830_v26 = vadd.f32 %v1162_v28, %v734_v5  ;;  %v846_v27 = vadd.f32 %v1194_v29, %v750_v7  ;;  %v1729_v6 = vpop.permute.xlu1 %698  ;;  %v704_v11 = vpop.permute.xlu0 %703 }
  0xdb   :  { %v1363_v31 = vpop.f32.mrf.mxu0  ;;  %v1379_v54 = vpop.f32.mrf.mxu1  ;;  %v859_v28 = vmax.f32 %v827_v19, 0.0  ;;  %v875_v29 = vmax.f32 %v843_v30, 0.0 }
  0xdc   :  { %v828_v12 = vadd.f32 %v1158_v32, %v732_v18  ;;  %v844_v53 = vadd.f32 %v1190_v33, %v748_v20  ;;  %v862_v13 = vmax.f32 %v830_v26, 0.0  ;;  %v878_v49 = vmax.f32 %v846_v27, 0.0 }
  0xdd   :  { %v737_v21 = vadd.f32 %v1363_v31, %v1626_v59  ;;  %v753_v22 = vadd.f32 %v1379_v54, %v684_v25  ;;  %v329_v38 = vpop.f32.mrf.mxu0  ;;  %v393_v55 = vpop.f32.mrf.mxu1  ;;  %v1174_v25 = vunpack.c.h.bf16 %v1707_v42  ;;  %v1206_v54 = vunpack.c.h.bf16 %v1712_v43 }
  0xde   :  { %v860_v39 = vmax.f32 %v828_v12, 0.0  ;;  %v876_v5 = vmax.f32 %v844_v53, 0.0  ;;  %v1227_v7 = vpack.c.bf16 %v862_v13, %v861_v44  ;;  %v1267_v10 = vpack.c.bf16 %v878_v49, %v877_v45  ;;  %v1738_v12 = vld [vmem:[%s1863_s3 + $0x38] sm:$0xff]  }
  0xdf   :  { %v735_v51 = vadd.f32 %v1622_v57, %v329_v38  ;;  %v751_v32 = vadd.f32 %v1646_v9, %v393_v55  ;;  %v1364_v33 = vpop.f32.mrf.mxu0  ;;  %v1380_v52 = vpop.f32.mrf.mxu1  ;;  %v1743_v57 = vld [vmem:[%s1863_s3 + $0x78] sm:$0xff]   ;;  %v833_v9 = vadd.f32 %v1169_v34, %v737_v21  ;;  %v849_v49 = vadd.f32 %v1201_v35, %v753_v22 }
  0xe0   :  { %v1222_v18 = vpack.c.bf16 %v860_v39, %v859_v28  ;;  %v1262_v59 = vpack.c.bf16 %v876_v5, %v875_v29  ;;  %1314 = vst [vmem:[%s1864_s4 + $0x8] sm:$0xff] %v1227_v7   ;;  %1322 = vst [vmem:[%s1864_s4 + $0x48] sm:$0xff] %v1267_v10   ;;  %v738_v53 = vadd.f32 %v1364_v33, %v1628_v60  ;;  %v1185_v44 = vunpack.c.l.bf16 %v1738_v12  ;;  %v714_v28 = vpop.permute.xlu0 %713 }
  0xe1   :  { %v754_v13 = vadd.f32 %v1380_v52, %v689_v50  ;;  %v332_v19 = vpop.f32.mrf.mxu0  ;;  %v396_v30 = vpop.f32.mrf.mxu1  ;;  %v831_v20 = vadd.f32 %v1165_v40, %v735_v51  ;;  %v847_v34 = vadd.f32 %v1197_v41, %v751_v32  ;;  %v1217_v45 = vunpack.c.l.bf16 %v1743_v57 }
  0xe2   :  { %1223 = vst [vmem:[%s1864_s4] sm:$0xff] %v1222_v18   ;;  %1321 = vst [vmem:[%s1864_s4 + $0x40] sm:$0xff] %v1262_v59   ;;  %v736_v35 = vadd.f32 %v1624_v58, %v332_v19  ;;  %v752_v60 = vadd.f32 %v1664_v14, %v396_v30  ;;  %v834_v50 = vadd.f32 %v1170_v46, %v738_v53  ;;  %v709_v40 = vpop.permute.xlu1 %708  ;;  %v1865_v58 = vunpack.c.h.bf16 %v1686_v24 }
  0xe3   :  { %v850_v26 = vadd.f32 %v1202_v47, %v754_v13  ;;  %v1367_v27 = vpop.f32.mrf.mxu0  ;;  %v1383_v31 = vpop.f32.mrf.mxu1  ;;  %v865_v46 = vmax.f32 %v833_v9, 0.0  ;;  %v881_v22 = vmax.f32 %v849_v49, 0.0  ;;  %v863_v29 = vmax.f32 %v831_v20, 0.0 }
  0xe4   :  { %v832_v41 = vadd.f32 %v1166_v48, %v736_v35  ;;  %v848_v21 = vadd.f32 %v1865_v58, %v752_v60  ;;  %v741_v14 = vadd.f32 %v1367_v27, %v1634_v63  ;;  %v757_v15 = vadd.f32 %v1383_v31, %v704_v11  ;;  %v1787_v63 = vld [vmem:[%s1863_s3 + $0x70] sm:$0xff]  }
  0xe5   :  { %v866_v16 = vmax.f32 %v834_v50, 0.0  ;;  %v882_v47 = vmax.f32 %v850_v26, 0.0  ;;  %v345_v38 = vpop.f32.mrf.mxu0  ;;  %v409_v55 = vpop.f32.mrf.mxu1  ;;  %v879_v39 = vmax.f32 %v847_v34, 0.0  ;;  %v1866_v18 = vunpack.c.l.bf16 %v1695_v36 }
  0xe6   :  { %v864_v5 = vmax.f32 %v832_v41, 0.0  ;;  %v880_v7 = vmax.f32 %v848_v21, 0.0  ;;  %v739_v10 = vadd.f32 %v1630_v61, %v345_v38  ;;  %v755_v51 = vadd.f32 %v1723_v17, %v409_v55  ;;  %v719_v20 = vpop.permute.xlu1 %718 }
  0xe7   :  { %v1237_v24 = vpack.c.bf16 %v866_v16, %v865_v46  ;;  %v1277_v48 = vpack.c.bf16 %v882_v47, %v881_v22  ;;  %v1368_v32 = vpop.f32.mrf.mxu0  ;;  %v1384_v33 = vpop.f32.mrf.mxu1  ;;  %v837_v59 = vadd.f32 %v1866_v18, %v741_v14  ;;  %v1867_v9 = vunpack.c.l.bf16 %v1700_v37 }
  0xe8   :  { %v1232_v52 = vpack.c.bf16 %v864_v5, %v863_v29  ;;  %v1272_v11 = vpack.c.bf16 %v880_v7, %v879_v39  ;;  %v742_v61 = vadd.f32 %v1368_v32, %v1636_v0  ;;  %v758_v17 = vadd.f32 %v1384_v33, %v709_v40  ;;  %v724_v14 = vpop.permute.xlu0 %723 }
  0xe9   :  { %v853_v49 = vadd.f32 %v1867_v9, %v757_v15  ;;  %1316 = vst [vmem:[%s1864_s4 + $0x18] sm:$0xff] %v1237_v24   ;;  %1324 = vst [vmem:[%s1864_s4 + $0x58] sm:$0xff] %v1277_v48   ;;  %v348_v53 = vpop.f32.mrf.mxu0  ;;  %v412_v13 = vpop.f32.mrf.mxu1  ;;  %v1181_v19 = vunpack.c.l.bf16 %v1782_v23  ;;  %v1213_v30 = vunpack.c.l.bf16 %v1787_v63  ;;  %v1868_v34 = vunpack.c.l.bf16 %v1707_v42 }
  0xea   :  { %1315 = vst [vmem:[%s1864_s4 + $0x10] sm:$0xff] %v1232_v52   ;;  %1323 = vst [vmem:[%s1864_s4 + $0x50] sm:$0xff] %v1272_v11   ;;  %v1869_v0 = vunpack.c.l.bf16 %v1712_v43  ;;  %v740_v50 = vadd.f32 %v1632_v62, %v348_v53  ;;  %v756_v26 = vadd.f32 %v1729_v6, %v412_v13  ;;  %v838_v27 = vadd.f32 %v1178_v56, %v742_v61  ;;  %v729_v43 = vpop.permute.xlu1 %728 }
  0xeb   :  { %v835_v35 = vadd.f32 %v1868_v34, %v739_v10  ;;  %v854_v31 = vadd.f32 %v1210_v8, %v758_v17  ;;  %v1371_v40 = vpop.f32.mrf.mxu0  ;;  %v1387_v41 = vpop.f32.mrf.mxu1  ;;  %v1186_v58 = vunpack.c.h.bf16 %v1738_v12  ;;  %v1218_v21 = vunpack.c.h.bf16 %v1743_v57 }
  0xec   :  { %v851_v60 = vadd.f32 %v1869_v0, %v755_v51  ;;  %v869_v15 = vmax.f32 %v837_v59, 0.0  ;;  %v885_v46 = vmax.f32 %v853_v49, 0.0  ;;  %v836_v62 = vadd.f32 %v1174_v25, %v740_v50 }
  0xed   :  { %v852_v6 = vadd.f32 %v1206_v54, %v756_v26  ;;  %v870_v36 = vmax.f32 %v838_v27, 0.0  ;;  %v886_v56 = vmax.f32 %v854_v31, 0.0  ;;  %v745_v37 = vadd.f32 %v1371_v40, %v1642_v3  ;;  %v361_v22 = vpop.f32.mrf.mxu0  ;;  %v425_v16 = vpop.f32.mrf.mxu1 }
  0xee   :  { %v761_v8 = vadd.f32 %v1387_v41, %v724_v14  ;;  %v867_v47 = vmax.f32 %v835_v35, 0.0  ;;  %v883_v38 = vmax.f32 %v851_v60, 0.0  ;;  %v868_v55 = vmax.f32 %v836_v62, 0.0 }
  0xef   :  { %v884_v29 = vmax.f32 %v852_v6, 0.0  ;;  %v1247_v39 = vpack.c.bf16 %v870_v36, %v869_v15  ;;  %v1287_v5 = vpack.c.bf16 %v886_v56, %v885_v46  ;;  %v743_v7 = vadd.f32 %v1638_v1, %v361_v22  ;;  %v1372_v25 = vpop.f32.mrf.mxu0  ;;  %v1388_v24 = vpop.f32.mrf.mxu1 }
  0xf0   :  { %v759_v42 = vadd.f32 %v714_v28, %v425_v16  ;;  %v1242_v54 = vpack.c.bf16 %v868_v55, %v867_v47  ;;  %v1182_v10 = vunpack.c.h.bf16 %v1782_v23  ;;  %v1214_v3 = vunpack.c.h.bf16 %v1787_v63 }
  0xf1   :  { %v1282_v48 = vpack.c.bf16 %v884_v29, %v883_v38  ;;  %1318 = vst [vmem:[%s1864_s4 + $0x28] sm:$0xff] %v1247_v39   ;;  %1326 = vst [vmem:[%s1864_s4 + $0x68] sm:$0xff] %v1287_v5   ;;  %v841_v1 = vadd.f32 %v1185_v44, %v745_v37  ;;  %v857_v28 = vadd.f32 %v1217_v45, %v761_v8  ;;  %v364_v23 = vpop.f32.mrf.mxu0  ;;  %v428_v33 = vpop.f32.mrf.mxu1 }
  0xf2   :  { %v746_v51 = vadd.f32 %v1372_v25, %v1644_v4  ;;  %v762_v32 = vadd.f32 %v1388_v24, %v729_v43  ;;  %1317 = vst [vmem:[%s1864_s4 + $0x20] sm:$0xff] %v1242_v54   ;;  %v839_v63 = vadd.f32 %v1181_v19, %v743_v7  ;;  %v855_v52 = vadd.f32 %v1213_v30, %v759_v42 }
  0xf3   :  { %1325 = vst [vmem:[%s1864_s4 + $0x60] sm:$0xff] %v1282_v48   ;;  %v744_v12 = vadd.f32 %v1640_v2, %v364_v23  ;;  %v760_v44 = vadd.f32 %v719_v20, %v428_v33  ;;  %v873_v18 = vmax.f32 %v841_v1, 0.0  ;;  %v889_v59 = vmax.f32 %v857_v28, 0.0 }
  0xf4   :  { %v842_v57 = vadd.f32 %v1186_v58, %v746_v51  ;;  %v858_v45 = vadd.f32 %v1218_v21, %v762_v32  ;;  %v871_v61 = vmax.f32 %v839_v63, 0.0  ;;  %v887_v17 = vmax.f32 %v855_v52, 0.0 }
  0xf5   :  { %v840_v11 = vadd.f32 %v1182_v10, %v744_v12  ;;  %v856_v4 = vadd.f32 %v1214_v3, %v760_v44 }
  0xf6   :  { %v874_v9 = vmax.f32 %v842_v57, 0.0  ;;  %v890_v49 = vmax.f32 %v858_v45, 0.0 }
  0xf7   :  { %v872_v53 = vmax.f32 %v840_v11, 0.0  ;;  %v888_v13 = vmax.f32 %v856_v4, 0.0 }
  0xf8   :  { %v1257_v34 = vpack.c.bf16 %v874_v9, %v873_v18  ;;  %v1297_v35 = vpack.c.bf16 %v890_v49, %v889_v59 }
  0xf9   :  { %v1252_v0 = vpack.c.bf16 %v872_v53, %v871_v61  ;;  %v1292_v19 = vpack.c.bf16 %v888_v13, %v887_v17 }
  0xfa   :  { %1320 = vst [vmem:[%s1864_s4 + $0x38] sm:$0xff] %v1257_v34   ;;  %1328 = vst [vmem:[%s1864_s4 + $0x78] sm:$0xff] %v1297_v35  }
  0xfb   :  { %1319 = vst [vmem:[%s1864_s4 + $0x30] sm:$0xff] %v1252_v0   ;;  %1327 = vst [vmem:[%s1864_s4 + $0x70] sm:$0xff] %v1292_v19  }

// kernel: _lambda_.221
= control target key start
LH: loop header
LB: loop body
LE: loop exit
PB: predicated region body
PF: predicated region fallthrough
CT: control target
= control target key end

     0   :  { %s1093_s12 = smov 0   ;;  %s1095_s13 = smov 0   ;;  %s1222_s0 = inlined_call_operand.vmem [shape: bf16[32,2560], index: 0, kind: input, shape index: {}]   ;;  %s1223_s1 = inlined_call_operand.vmem [shape: bf16[2560,128], index: 1, kind: input, shape index: {}]   ;;  %s1224_s2 = inlined_call_operand.vmem [shape: f32[32,1], index: 2, kind: input, shape index: {}]   ;;  %s1225_s3 = inlined_call_operand.vmem [shape: bf16[32,128], index: 3, kind: output, shape index: {}]  }
   0x1   :  { %s1097_s14 = smov 0   ;;  %s1099_s15 = smov 0  }
   0x2   :  { %s1101_s16 = smov 0  }
   0x3 LB: > { %s22_s17 = sadd.s32 1, %s1065_s15  ;;  %p39_p1 = scmp.ne.s32.totalorder %s1057_s13, %s1053_s12  ;;  %s1069_s16 = sphi %s1101_s16, %s13_s16   ;;  %s1065_s15 = sphi %s1099_s15, %s1229_s15   ;;  %s1061_s14 = sphi %s1097_s14, %s1228_s14   ;;  %s1057_s13 = sphi %s1095_s13, %s1227_s13   ;;  %s1053_s12 = sphi %s1093_s12, %s1226_s12  }
   0x4   : > { %p23_p0 = scmp.ge.s32.totalorder %s22_s17, 5  ;;  %p40_p2 = scmp.eq.s32.totalorder %s1069_s16, 0 }
   0x5   : > { %s32_s19 = sadd.s32 1, %s1057_s13  ;;  %p814_p5 = scmp.ge.s32.totalorder %s1069_s16, 5 }
   0x6   : > { %s1231_s17 = smov (%p23_p0, %s22_s17), 0  ;;  %p41_p3 = por %p40_p2, %p39_p1 }
   0x7   : > { %s29_s18 = ssub.s32 %s1065_s15, %s1231_s17  ;;  %143 = sbr.rel (%p814_p5) target bundleno = 20 (0x14), region = 20 }
   0x8   : > { %p30_p4 = scmp.eq.s32.totalorder %s29_s18, 0 }
   0xa   : > { %s1128_s20 = scalar_select %p30_p4, %s1057_s13, %s32_s19  }
   0xc   : > { %146 = sbr.rel (!%p41_p3) target bundleno = 20 (0x14), region = 24  ;;  %s148_s21 = sand.u32 (%p41_p3), 1, %s1057_s13  }
   0xd   : > { %s871_s22 = sshll.u32 (%p41_p3), %s1065_s15, 4  ;;  %s815_s23 = sshll.u32 (%p41_p3), %s148_s21, 6 }
   0xe   : > { %s153_s26 = scalar_lea.vmem (%p41_p3), %s1222_s0, %s871_s22  ;;  %s150_s27 = scalar_lea.vmem (%p41_p3), [#allocation3], %s815_s23 }
   0xf   : > { %v166_v0 = vld [vmem:[%s153_s26] sm:$0xff] (%p41_p3)  ;;  %v168_v1 = vld [vmem:[%s153_s26 + $0x8] sm:$0xff] (%p41_p3)  ;;  %v170_v2 = vld [vmem:[%s153_s26 + $0x50] sm:$0xff] (%p41_p3) }
  0x10   : > { %167 = vst [vmem:[%s150_s27] sm:$0xff] (%p41_p3), %v166_v0  ;;  %169 = vst [vmem:[%s150_s27 + $0x8] sm:$0xff] (%p41_p3), %v168_v1  ;;  %v172_v3 = vld [vmem:[%s153_s26 + $0x58] sm:$0xff] (%p41_p3)  ;;  %v174_v4 = vld [vmem:[%s153_s26 + $0xa0] sm:$0xff] (%p41_p3) }
  0x11   : > { %171 = vst [vmem:[%s150_s27 + $0x10] sm:$0xff] %v170_v2  ;;  %v176_v5 = vld [vmem:[%s153_s26 + $0xa8] sm:$0xff]  ;;  %173 = vst [vmem:[%s150_s27 + $0x18] sm:$0xff] %v172_v3  ;;  %v178_v6 = vld [vmem:[%s153_s26 + $0xf0] sm:$0xff] }
  0x12   : > { %175 = vst [vmem:[%s150_s27 + $0x20] sm:$0xff] %v174_v4  ;;  %177 = vst [vmem:[%s150_s27 + $0x28] sm:$0xff] %v176_v5  ;;  %v180_v7 = vld [vmem:[%s153_s26 + $0xf8] sm:$0xff] }
  0x13   : > { %179 = vst [vmem:[%s150_s27 + $0x30] sm:$0xff] %v178_v6  ;;  %181 = vst [vmem:[%s150_s27 + $0x38] sm:$0xff] %v180_v7 }
  0x14 PF: > { %p818_p6 = scmp.ge.s32.totalorder %s1069_s16, 1  ;;  %p198_p7 = scmp.lt.s32.totalorder %s1069_s16, 6 }
  0x16   : > { %p199_p8 = pnand %p818_p6, %p198_p7 }
  0x17   : > { %s205_s28 = sand.u32 (!%p199_p8), 1, %s1053_s12   ;;  %s820_s29 = sshll.u32 (!%p199_p8), %s1061_s14, 6 }
  0x18   : > { %202 = sbr.rel (%p199_p8) target bundleno = 423 (0x1a7), region = 51  ;;  %s819_s30 = sshll.u32 (!%p199_p8), %s205_s28, 6 }
  0x19   : > { %p237_p9 = scmp.lt.s32.totalorder (!%p199_p8), %s820_s29, 319  ;;  %s1145_s8 = scalar_lea.vmem (!%p199_p8), [#allocation3], %s819_s30 }
  0x1a   : > { %p822_p10 = scmp.ne.s32.totalorder (!%p199_p8), %s1061_s14, 0 }
  0x1d   : > { %s1233_s29 = smov (!%p237_p9, %s820_s29), 319  ;;  %253 = sbr.rel (%p822_p10) target bundleno = 37 (0x25), region = 59 }
  0x1e   : > { %s821_s4 = sshll.u32 %s1233_s29, 2 }
  0x1f   : > { %s1143_s7 = scalar_lea.vmem %s1223_s1, %s821_s4 }
  0x22   : > { %v1071_v8 = vmov 0.0  }
  0x23   : > { %254 = vst [vmem:[#allocation2 + $0x10] sm:$0xff] %v1071_v8  ;;  %255 = vst [vmem:[#allocation2] sm:$0xff] %v1071_v8 }
  0x24   : > { %256 = vst [vmem:[#allocation2 + $0x18] sm:$0xff] %v1071_v8  ;;  %257 = vst [vmem:[#allocation2 + $0x8] sm:$0xff] %v1071_v8 }
  0x25 PF: > { %v985_v9 = vld [vmem:[%s1143_s7 + $0x78] sm:$0xff]   ;;  %v989_v13 = vld [vmem:[%s1143_s7 + $0x70] sm:$0xff]   ;;  %v993_v17 = vld [vmem:[%s1143_s7 + $0x68] sm:$0xff]   ;;  %p863_p11 = scmp.ne.s32.totalorder %s1061_s14, 4 }
  0x26   : > { %v986_v10 = vld [vmem:[%s1143_s7 + $0xf8] sm:$0xff]   ;;  %887 = vmatprep.subr.bf16.mxu0 %v985_v9  ;;  %v990_v14 = vld [vmem:[%s1143_s7 + $0xf0] sm:$0xff]   ;;  %v994_v18 = vld [vmem:[%s1143_s7 + $0xe8] sm:$0xff]  }
  0x27   : > { %v987_v11 = vld [vmem:[%s1143_s7 + $0x38] sm:$0xff]   ;;  %915 = vmatprep.subr.bf16.mxu1 %v986_v10  ;;  %v991_v15 = vld [vmem:[%s1143_s7 + $0x30] sm:$0xff]   ;;  %v995_v19 = vld [vmem:[%s1143_s7 + $0x28] sm:$0xff]  }
  0x28   : > { %v988_v12 = vld [vmem:[%s1143_s7 + $0xb8] sm:$0xff]   ;;  %888 = vmatpush3.bf16.msra.mxu0 %v987_v11  ;;  %v992_v16 = vld [vmem:[%s1143_s7 + $0xb0] sm:$0xff]   ;;  %v996_v20 = vld [vmem:[%s1143_s7 + $0xa8] sm:$0xff]  }
  0x29   : > { %916 = vmatpush3.bf16.msra.mxu1 %v988_v12  ;;  %889 = vmatprep.subr.bf16.mxu0 %v989_v13  ;;  %v997_v21 = vld [vmem:[%s1143_s7 + $0x60] sm:$0xff]   ;;  %v1001_v25 = vld [vmem:[%s1143_s7 + $0x58] sm:$0xff]   ;;  %v1005_v29 = vld [vmem:[%s1143_s7 + $0x50] sm:$0xff]  }
  0x2a   : > { %917 = vmatprep.subr.bf16.mxu1 %v990_v14  ;;  %v998_v22 = vld [vmem:[%s1143_s7 + $0xe0] sm:$0xff]   ;;  %v1002_v26 = vld [vmem:[%s1143_s7 + $0xd8] sm:$0xff]   ;;  %v1006_v30 = vld [vmem:[%s1143_s7 + $0xd0] sm:$0xff]  }
  0x2b   : > { %v999_v23 = vld [vmem:[%s1143_s7 + $0x20] sm:$0xff]   ;;  %v1003_v27 = vld [vmem:[%s1143_s7 + $0x18] sm:$0xff]   ;;  %v1007_v31 = vld [vmem:[%s1143_s7 + $0x10] sm:$0xff]  }
  0x2c   : > { %890 = vmatpush3.bf16.msra.mxu0 %v991_v15  ;;  %v1000_v24 = vld [vmem:[%s1143_s7 + $0xa0] sm:$0xff]   ;;  %v1004_v28 = vld [vmem:[%s1143_s7 + $0x98] sm:$0xff]   ;;  %v1008_v32 = vld [vmem:[%s1143_s7 + $0x90] sm:$0xff]  }
  0x2d   : > { %918 = vmatpush3.bf16.msra.mxu1 %v992_v16  ;;  %891 = vmatprep.subr.bf16.mxu0 %v993_v17  ;;  %v1009_v33 = vld [vmem:[%s1143_s7 + $0x48] sm:$0xff]   ;;  %v1013_v37 = vld [vmem:[%s1143_s7 + $0x40] sm:$0xff]   ;;  %v258_v56 = vld [vmem:[#allocation2 + $0x10] sm:$0xff] }
  0x2e   : > { %919 = vmatprep.subr.bf16.mxu1 %v994_v18  ;;  %v1010_v34 = vld [vmem:[%s1143_s7 + $0xc8] sm:$0xff]   ;;  %v1014_v38 = vld [vmem:[%s1143_s7 + $0xc0] sm:$0xff]   ;;  %v261_v18 = vld [vmem:[#allocation2 + $0x8] sm:$0xff] }
  0x2f   : > { %v1011_v35 = vld [vmem:[%s1143_s7 + $0x8] sm:$0xff]   ;;  %v1015_v39 = vld [vmem:[%s1143_s7] sm:$0xff]  }
  0x30   : > { %892 = vmatpush3.bf16.msra.mxu0 %v995_v19  ;;  %v1012_v36 = vld [vmem:[%s1143_s7 + $0x88] sm:$0xff]   ;;  %v1016_v40 = vld [vmem:[%s1143_s7 + $0x80] sm:$0xff]  }
  0x31   : > { %920 = vmatpush3.bf16.msra.mxu1 %v996_v20  ;;  %893 = vmatprep.subr.bf16.mxu0 %v997_v21  ;;  %v1017_v41 = vld [vmem:[%s1145_s8] ss:$16 sps:$4 sm:$0xff]   ;;  %v1019_v42 = vld [vmem:[%s1145_s8 + $0x4] ss:$16 sps:$4 sm:$0xff]   ;;  %v1020_v43 = vld [vmem:[%s1145_s8 + $0x8] ss:$16 sps:$4 sm:$0xff]  }
  0x32   : > { %921 = vmatprep.subr.bf16.mxu1 %v998_v22  ;;  %v1022_v44 = vld [vmem:[%s1145_s8 + $0xc] ss:$16 sps:$4 sm:$0xff]   ;;  %598 = vmatprep.mubr.bf16.mxu0 %v1019_v42  ;;  %v1023_v45 = vld [vmem:[%s1145_s8 + $0x24] ss:$16 sps:$4 sm:$0xff]   ;;  %v1027_v47 = vld [vmem:[%s1145_s8 + $0x20] ss:$16 sps:$4 sm:$0xff]  }
  0x33   : > { %647 = vmatprep.mubr.bf16.mxu1 %v1022_v44  ;;  %v1025_v46 = vld [vmem:[%s1145_s8 + $0x2c] ss:$16 sps:$4 sm:$0xff]   ;;  %v1028_v48 = vld [vmem:[%s1145_s8 + $0x28] ss:$16 sps:$4 sm:$0xff]   ;;  %v259_v1 = vld [vmem:[#allocation2] sm:$0xff] }
  0x34   : > { %894 = vmatpush3.bf16.msra.mxu0 %v999_v23  ;;  %v260_v10 = vld [vmem:[#allocation2 + $0x18] sm:$0xff] }
  0x35   : > { %922 = vmatpush3.bf16.msra.mxu1 %v1000_v24  ;;  %895 = vmatprep.subr.bf16.mxu0 %v1001_v25 }
  0x36   : > { %923 = vmatprep.subr.bf16.mxu1 %v1002_v26 }
  0x38   : > { %896 = vmatpush3.bf16.msra.mxu0 %v1003_v27 }
  0x39   : > { %924 = vmatpush3.bf16.msra.mxu1 %v1004_v28  ;;  %897 = vmatprep.subr.bf16.mxu0 %v1005_v29 }
  0x3a   : > { %925 = vmatprep.subr.bf16.mxu1 %v1006_v30 }
  0x3c   : > { %898 = vmatpush3.bf16.msra.mxu0 %v1007_v31 }
  0x3d   : > { %926 = vmatpush3.bf16.msra.mxu1 %v1008_v32  ;;  %899 = vmatprep.subr.bf16.mxu0 %v1009_v33 }
  0x3e   : > { %927 = vmatprep.subr.bf16.mxu1 %v1010_v34 }
  0x40   : > { %900 = vmatpush3.bf16.msra.mxu0 %v1011_v35 }
  0x41   : > { %928 = vmatpush3.bf16.msra.mxu1 %v1012_v36  ;;  %901 = vmatprep.subr.bf16.mxu0 %v1013_v37 }
  0x42   : > { %929 = vmatprep.subr.bf16.mxu1 %v1014_v38 }
  0x44   : > { %902 = vmatpush3.bf16.msra.mxu0 %v1015_v39 }
  0x45   : > { %930 = vmatpush3.bf16.msra.mxu1 %v1016_v40 }
  0x47   : > { %599 = vmatmul.mubr.bf16.vlgmr.msra.gmra.mxu0 %v1017_v41 }
  0x48   : > { %648 = vmatmul.mubr.bf16.vlgmr.msra.gmra.mxu1 %v1020_v43  ;;  %606 = vmatprep.mubr.bf16.mxu0 %v1023_v45 }
  0x49   : > { %655 = vmatprep.mubr.bf16.mxu1 %v1025_v46 }
  0x4f   : > { %607 = vmatmul.mubr.bf16.gmra.mxu0 %v1027_v47 }
  0x50   : > { %656 = vmatmul.mubr.bf16.gmra.mxu1 %v1028_v48 }
 0x107   : > { %v903_v49 = vpop.f32.mrf.mxu0 }
 0x108   : > { %v931_v50 = vpop.f32.mrf.mxu1 }
 0x109   : > { %v904_v51 = vpop.f32.mrf.mxu0 }
 0x10a   : > { %v905_v52 = vadd.f32 %v904_v51, %v903_v49  ;;  %v932_v53 = vpop.f32.mrf.mxu1 }
 0x10b   : > { %v933_v54 = vadd.f32 %v932_v53, %v931_v50  ;;  %v906_v55 = vpop.f32.mrf.mxu0 }
 0x10c   : > { %v934_v57 = vpop.f32.mrf.mxu1 }
 0x10d   : > { %v650_v58 = vadd.f32 %v933_v54, %v905_v52  ;;  %v907_v59 = vpop.f32.mrf.mxu0 }
 0x10e   : > { %v908_v60 = vadd.f32 %v907_v59, %v906_v55  ;;  %v935_v61 = vpop.f32.mrf.mxu1 }
 0x10f   : > { %v664_v62 = vadd.f32 %v650_v58, %v258_v56  ;;  %v936_v63 = vadd.f32 %v935_v61, %v934_v57  ;;  %v909_v0 = vpop.f32.mrf.mxu0 }
 0x110   : > { %v937_v2 = vpop.f32.mrf.mxu1 }
 0x111   : > { %668 = vst [vmem:[#allocation2 + $0x10] sm:$0xff] %v664_v62  ;;  %v653_v3 = vadd.f32 %v936_v63, %v908_v60  ;;  %v910_v4 = vpop.f32.mrf.mxu0 }
 0x112   : > { %v911_v5 = vadd.f32 %v910_v4, %v909_v0  ;;  %v938_v6 = vpop.f32.mrf.mxu1 }
 0x113   : > { %v665_v7 = vadd.f32 %v653_v3, %v259_v1  ;;  %v939_v8 = vadd.f32 %v938_v6, %v937_v2  ;;  %v912_v9 = vpop.f32.mrf.mxu0 }
 0x114   : > { %v940_v11 = vpop.f32.mrf.mxu1 }
 0x115   : > { %669 = vst [vmem:[#allocation2] sm:$0xff] %v665_v7  ;;  %v658_v12 = vadd.f32 %v939_v8, %v911_v5  ;;  %v913_v13 = vpop.f32.mrf.mxu0 }
 0x116   : > { %v914_v14 = vadd.f32 %v913_v13, %v912_v9  ;;  %v941_v15 = vpop.f32.mrf.mxu1 }
 0x117   : > { %v666_v16 = vadd.f32 %v658_v12, %v260_v10  ;;  %v942_v17 = vadd.f32 %v941_v15, %v940_v11 }
 0x119   : > { %670 = vst [vmem:[#allocation2 + $0x18] sm:$0xff] %v666_v16  ;;  %v661_v19 = vadd.f32 %v942_v17, %v914_v14  ;;  %675 = sbr.rel (%p863_p11) target bundleno = 423 (0x1a7), region = 63 }
 0x11b   : > { %v667_v20 = vadd.f32 %v661_v19, %v261_v18 }
 0x11d   : > { %671 = vst [vmem:[#allocation2 + $0x8] sm:$0xff] %v667_v20 }
 0x11e   : > { %v682_v21 = vld [vmem:[%s1224_s2 + $0x10] sm:$0xff]  ;;  %v680_v22 = vld [vmem:[%s1224_s2] sm:$0xff]  ;;  %v1072_v23 = vmov 0   ;;  %v683_v24 = vld [vmem:[%s1224_s2 + $0x18] sm:$0xff] }
 0x11f   : > { %1030 = vset.pattern.permute.xlu1 %v1072_v23  ;;  %1029 = vset.pattern.permute.xlu0 %v1072_v23  ;;  %v681_v25 = vld [vmem:[%s1224_s2 + $0x8] sm:$0xff]  ;;  %v676_v29 = vld [vmem:[#allocation2 + $0x10] sm:$0xff] }
 0x120   : > { %696 = vperm.xlu1 %1030, %v682_v21   ;;  %686 = vperm.xlu0 %1029, %v680_v22   ;;  %v678_v27 = vld [vmem:[#allocation2 + $0x18] sm:$0xff]  ;;  %v677_v31 = vld [vmem:[#allocation2] sm:$0xff] }
 0x124   : > { %701 = vperm.xlu1 %1030, %v683_v24   ;;  %691 = vperm.xlu0 %1029, %v681_v25   ;;  %v679_v30 = vld [vmem:[#allocation2 + $0x8] sm:$0xff] }
 0x19b   : > { %v697_v26 = vpop.permute.xlu1 %696  ;;  %v687_v28 = vpop.permute.xlu0 %686 }
 0x19c   : > { %v706_v32 = vadd.f32 %v697_v26, %v678_v27  ;;  %v704_v33 = vadd.f32 %v687_v28, %v676_v29 }
 0x19e   : > { %v710_v38 = vmax.f32 %v706_v32, 0.0  ;;  %v708_v39 = vmax.f32 %v704_v33, 0.0 }
 0x19f   : > { %v702_v34 = vpop.permute.xlu1 %701  ;;  %v692_v35 = vpop.permute.xlu0 %691 }
 0x1a0   : > { %v707_v36 = vadd.f32 %v702_v34, %v679_v30  ;;  %v705_v37 = vadd.f32 %v692_v35, %v677_v31 }
 0x1a2   : > { %v711_v40 = vmax.f32 %v707_v36, 0.0  ;;  %v709_v41 = vmax.f32 %v705_v37, 0.0 }
 0x1a4   : > { %v884_v42 = vpack.c.bf16 %v711_v40, %v710_v38  ;;  %v879_v43 = vpack.c.bf16 %v709_v41, %v708_v39 }
 0x1a6   : > { %886 = vst [vmem:[%s1225_s3 + $0x8] sm:$0xff] %v884_v42   ;;  %880 = vst [vmem:[%s1225_s3] sm:$0xff] %v879_v43  }
 0x1a7 PF: > { %s13_s16 = sadd.s32 1, %s1069_s16   ;;  %s1226_s12 = smov %s1057_s13 }
 0x1a8   : > { %p10_p12 = scmp.ge.s32.totalorder %s13_s16, 7   ;;  %s1227_s13 = smov %s1128_s20 }
 0x1a9   : > { %s1228_s14 = smov %s1065_s15  ;;  %s1229_s15 = smov %s1231_s17 }
 0x1aa   :  { %12 = sbr.rel (!%p10_p12) target bundleno = 3 (0x3), region = 101 }

// kernel: _lambda_.220
= control target key start
LH: loop header
LB: loop body
LE: loop exit
PB: predicated region body
PF: predicated region fallthrough
CT: control target
= control target key end

     0   :  { %v407_v1 = vmov 0   ;;  %s506_s1 = inlined_call_operand.vmem [shape: bf16[256,128], index: 1, kind: input, shape index: {}]   ;;  %s507_s0 = inlined_call_operand.vmem [shape: bf16[32,256], index: 0, kind: input, shape index: {}]   ;;  %s508_s2 = inlined_call_operand.vmem [shape: f32[32,1], index: 2, kind: input, shape index: {}]   ;;  %s509_s3 = inlined_call_operand.vmem [shape: bf16[32,128], index: 3, kind: output, shape index: {}]  }
   0x1   :  { %v385_v0 = vld [vmem:[%s506_s1 + $0x78] sm:$0xff]   ;;  %384 = vset.pattern.permute.xlu1 %v407_v1  ;;  %383 = vset.pattern.permute.xlu0 %v407_v1  ;;  %v387_v3 = vld [vmem:[%s506_s1 + $0x70] sm:$0xff]   ;;  %v389_v5 = vld [vmem:[%s506_s1 + $0x68] sm:$0xff]  }
   0x2   :  { %v386_v2 = vld [vmem:[%s506_s1 + $0x38] sm:$0xff]   ;;  %338 = vmatprep.subr.bf16.mxu0 %v385_v0  ;;  %366 = vmatprep.subr.bf16.mxu1 %v385_v0  ;;  %v388_v4 = vld [vmem:[%s506_s1 + $0x30] sm:$0xff]   ;;  %v390_v6 = vld [vmem:[%s506_s1 + $0x28] sm:$0xff]  }
   0x3   :  { %339 = vmatpush3.bf16.msra.mxu0 %v386_v2  ;;  %374 = vmatpush3.bf16.msra.mxu1 %v386_v2  ;;  %v391_v7 = vld [vmem:[%s506_s1 + $0x60] sm:$0xff]   ;;  %v393_v9 = vld [vmem:[%s506_s1 + $0x58] sm:$0xff]   ;;  %v395_v11 = vld [vmem:[%s506_s1 + $0x50] sm:$0xff]  }
   0x4   :  { %340 = vmatprep.subr.bf16.mxu0 %v387_v3  ;;  %367 = vmatprep.subr.bf16.mxu1 %v387_v3  ;;  %v392_v8 = vld [vmem:[%s506_s1 + $0x20] sm:$0xff]   ;;  %v394_v10 = vld [vmem:[%s506_s1 + $0x18] sm:$0xff]   ;;  %v396_v14 = vld [vmem:[%s506_s1 + $0x10] sm:$0xff]  }
   0x5   :  { %v403_v12 = vld [vmem:[%s507_s0 + $0x4] ss:$8 sps:$4 sm:$0xff]   ;;  %v406_v13 = vld [vmem:[%s507_s0 + $0x14] ss:$8 sps:$4 sm:$0xff]   ;;  %v401_v23 = vld [vmem:[%s507_s0] ss:$8 sps:$4 sm:$0xff]  }
   0x6   :  { %v245_v15 = vld [vmem:[%s508_s2 + $0x10] sm:$0xff]  ;;  %v243_v16 = vld [vmem:[%s508_s2] sm:$0xff]  ;;  %v397_v17 = vld [vmem:[%s506_s1 + $0x48] sm:$0xff]   ;;  %211 = vmatprep.mubr.bf16.mxu0 %v403_v12  ;;  %219 = vmatprep.mubr.bf16.mxu1 %v406_v13 }
   0x7   :  { %341 = vmatpush3.bf16.msra.mxu0 %v388_v4  ;;  %375 = vmatpush3.bf16.msra.mxu1 %v388_v4  ;;  %v398_v18 = vld [vmem:[%s506_s1 + $0x8] sm:$0xff]   ;;  %v246_v19 = vld [vmem:[%s508_s2 + $0x18] sm:$0xff]  ;;  %v399_v21 = vld [vmem:[%s506_s1 + $0x40] sm:$0xff]  }
   0x8   :  { %342 = vmatprep.subr.bf16.mxu0 %v389_v5  ;;  %368 = vmatprep.subr.bf16.mxu1 %v389_v5  ;;  %v244_v20 = vld [vmem:[%s508_s2 + $0x8] sm:$0xff]  ;;  %v400_v22 = vld [vmem:[%s506_s1] sm:$0xff]   ;;  %v404_v24 = vld [vmem:[%s507_s0 + $0x10] ss:$8 sps:$4 sm:$0xff]  }
   0x9   :  { %259 = vperm.xlu1 %384, %v245_v15   ;;  %249 = vperm.xlu0 %383, %v243_v16  }
   0xb   :  { %343 = vmatpush3.bf16.msra.mxu0 %v390_v6  ;;  %376 = vmatpush3.bf16.msra.mxu1 %v390_v6 }
   0xc   :  { %344 = vmatprep.subr.bf16.mxu0 %v391_v7  ;;  %369 = vmatprep.subr.bf16.mxu1 %v391_v7 }
   0xd   :  { %264 = vperm.xlu1 %384, %v246_v19   ;;  %254 = vperm.xlu0 %383, %v244_v20  }
   0xf   :  { %345 = vmatpush3.bf16.msra.mxu0 %v392_v8  ;;  %377 = vmatpush3.bf16.msra.mxu1 %v392_v8 }
  0x10   :  { %346 = vmatprep.subr.bf16.mxu0 %v393_v9  ;;  %370 = vmatprep.subr.bf16.mxu1 %v393_v9 }
  0x13   :  { %347 = vmatpush3.bf16.msra.mxu0 %v394_v10  ;;  %378 = vmatpush3.bf16.msra.mxu1 %v394_v10 }
  0x14   :  { %348 = vmatprep.subr.bf16.mxu0 %v395_v11  ;;  %371 = vmatprep.subr.bf16.mxu1 %v395_v11 }
  0x17   :  { %349 = vmatpush3.bf16.msra.mxu0 %v396_v14  ;;  %379 = vmatpush3.bf16.msra.mxu1 %v396_v14 }
  0x18   :  { %350 = vmatprep.subr.bf16.mxu0 %v397_v17  ;;  %372 = vmatprep.subr.bf16.mxu1 %v397_v17 }
  0x1b   :  { %351 = vmatpush3.bf16.msra.mxu0 %v398_v18  ;;  %380 = vmatpush3.bf16.msra.mxu1 %v398_v18 }
  0x1c   :  { %352 = vmatprep.subr.bf16.mxu0 %v399_v21  ;;  %373 = vmatprep.subr.bf16.mxu1 %v399_v21 }
  0x1f   :  { %353 = vmatpush3.bf16.msra.mxu0 %v400_v22  ;;  %381 = vmatpush3.bf16.msra.mxu1 %v400_v22 }
  0x22   :  { %212 = vmatmul.mubr.bf16.vlgmr.msra.gmra.mxu0 %v401_v23  ;;  %220 = vmatmul.mubr.bf16.vlgmr.msra.gmra.mxu1 %v404_v24 }
  0x84   :  { %v260_v27 = vpop.permute.xlu1 %259  ;;  %v250_v28 = vpop.permute.xlu0 %249 }
  0x88   :  { %v265_v41 = vpop.permute.xlu1 %264  ;;  %v255_v42 = vpop.permute.xlu0 %254 }
  0xe2   :  { %v354_v25 = vpop.f32.mrf.mxu0  ;;  %v360_v26 = vpop.f32.mrf.mxu1 }
  0xe4   :  { %v355_v29 = vpop.f32.mrf.mxu0  ;;  %v361_v30 = vpop.f32.mrf.mxu1 }
  0xe5   :  { %v356_v31 = vadd.f32 %v355_v29, %v354_v25  ;;  %v362_v32 = vadd.f32 %v361_v30, %v360_v26 }
  0xe6   :  { %v357_v33 = vpop.f32.mrf.mxu0  ;;  %v363_v34 = vpop.f32.mrf.mxu1 }
  0xe7   :  { %v267_v37 = vadd.f32 %v356_v31, %v250_v28  ;;  %v269_v38 = vadd.f32 %v362_v32, %v260_v27 }
  0xe8   :  { %v358_v35 = vpop.f32.mrf.mxu0  ;;  %v364_v36 = vpop.f32.mrf.mxu1 }
  0xe9   :  { %v359_v39 = vadd.f32 %v358_v35, %v357_v33  ;;  %v365_v40 = vadd.f32 %v364_v36, %v363_v34  ;;  %v271_v45 = vmax.f32 %v267_v37, 0.0  ;;  %v273_v46 = vmax.f32 %v269_v38, 0.0 }
  0xeb   :  { %v268_v43 = vadd.f32 %v359_v39, %v255_v42  ;;  %v270_v44 = vadd.f32 %v365_v40, %v265_v41 }
  0xed   :  { %v272_v47 = vmax.f32 %v268_v43, 0.0  ;;  %v274_v48 = vmax.f32 %v270_v44, 0.0 }
  0xef   :  { %v330_v49 = vpack.c.bf16 %v272_v47, %v271_v45  ;;  %v335_v50 = vpack.c.bf16 %v274_v48, %v273_v46 }
  0xf1   :  { %331 = vst [vmem:[%s509_s3] sm:$0xff] %v330_v49   ;;  %337 = vst [vmem:[%s509_s3 + $0x8] sm:$0xff] %v335_v50  }

// kernel: _lambda_.227
= control target key start
LH: loop header
LB: loop body
LE: loop exit
PB: predicated region body
PF: predicated region fallthrough
CT: control target
= control target key end

     0   :  { %v202_v1 = vmov 0   ;;  %v203_v2 = vmov 0.0   ;;  %vm52_vm0 = vcmask 261120   ;;  %vm155_vm1 = vcmask 1042432   ;;  %s254_s1 = inlined_call_operand.vmem [shape: bf16[32,128], index: 1, kind: input, shape index: {}]   ;;  %s255_s0 = inlined_call_operand.vmem [shape: bf16[21,32], index: 0, kind: input, shape index: {}]   ;;  %s256_s2 = inlined_call_operand.vmem [shape: f32[21,1], index: 2, kind: input, shape index: {}]   ;;  %s257_s3 = inlined_call_operand.vmem [shape: bf16[21,128], index: 3, kind: output, shape index: {}]  }
   0x1   :  { %v198_v0 = vld [vmem:[%s254_s1 + $0x8] sm:$0xff]   ;;  %196 = vset.pattern.permute.xlu0 %v202_v1  ;;  %197 = vset.pattern.permute.xlu1 %v202_v1  ;;  %21 = vst [vmem:[#allocation2 + $0x8] sm:$0x1f] %v203_v2  ;;  %v199_v3 = vld [vmem:[%s254_s1] sm:$0xff]   ;;  %v121_v5 = vld [vmem:[%s256_s2 + $0x10] sm:$0x1f] }
   0x2   :  { %186 = vmatprep.subr.bf16.mxu0 %v198_v0  ;;  %v200_v4 = vld [vmem:[%s255_s0] sm:$0xff]   ;;  %134 = vperm.xlu0 %196, %v121_v5   ;;  %v120_v6 = vld [vmem:[%s256_s2 + $0x8] sm:$0xff]  ;;  %vm156_vm2 = vsmask.f32 2304 }
   0x3   :  { %187 = vmatpush3.bf16.msra.mxu0 %v198_v0  ;;  %190 = vmatprep.mubr.msk.bf16.mxu0 %vm52_vm0, %v200_v4  ;;  %v119_v7 = vld [vmem:[%s256_s2] sm:$0xff]  ;;  %v201_v8 = vld [vmem:[%s255_s0 + $0x8] ss:$0 sps:$4 sm:$0x77]   ;;  %vm157_vm3 = vmand %vm155_vm1, %vm156_vm2 }
   0x4   :  { %188 = vmatprep.subr.bf16.mxu0 %v199_v3  ;;  %129 = vperm.xlu1 %197, %v120_v6   ;;  %v158_v23 = vld [vmem:[%s257_s3 + $0x8] sm:$0x7] }
   0x6   :  { %124 = vperm.xlu0 %196, %v119_v7  }
   0x7   :  { %189 = vmatpush3.bf16.msra.mxu0 %v199_v3 }
   0x8   :  { %v24_v9 = vld [vmem:[#allocation2 + $0x8] sm:$0x1f] }
   0xa   :  { %191 = vmatmul.mubr.msk.bf16.vlgmr.msra.gmra.mxu0 %vm52_vm0, %v201_v8 }
  0x7d   :  { %v135_v11 = vpop.permute.xlu0 %134 }
  0x7f   :  { %v130_v15 = vpop.permute.xlu1 %129 }
  0x81   :  { %v125_v17 = vpop.permute.xlu0 %124 }
  0xca   :  { %v192_v10 = vpop.f32.mrf.mxu0 }
  0xcb   :  { %v109_v12 = vadd.f32 %v192_v10, %v24_v9 }
  0xcc   :  { %v93_v13 = vpop.f32.mrf.mxu0 }
  0xcd   :  { %112 = vst [vmem:[#allocation2 + $0x8] sm:$0x1f] %v109_v12  ;;  %v137_v18 = vadd.f32 %v125_v17, %v93_v13 }
  0xce   :  { %v193_v14 = vpop.f32.mrf.mxu0 }
  0xd0   :  { %v96_v16 = vpop.f32.mrf.mxu0 }
  0xd1   :  { %v138_v19 = vadd.f32 %v130_v15, %v96_v16 }
  0xd3   :  { %v180_v22 = vpack.c.bf16 %v138_v19, %v137_v18 }
  0xd4   :  { %v118_v20 = vld [vmem:[#allocation2 + $0x8] sm:$0x1f] }
  0xd5   :  { %v139_v21 = vadd.f32 %v135_v11, %v118_v20  ;;  %181 = vst [vmem:[%s257_s3] sm:$0xff] %v180_v22  }
  0xd7   :  { %v176_v24 = vpack.c.bf16 %v139_v21, %v139_v21 }
  0xd9   :  { %v159_v25 = vsel %vm157_vm3, %v176_v24, %v158_v23 }
  0xda   :  { %160 = vst [vmem:[%s257_s3 + $0x8] sm:$0x7] %v159_v25 }

// kernel: _lambda_.225
= control target key start
LH: loop header
LB: loop body
LE: loop exit
PB: predicated region body
PF: predicated region fallthrough
CT: control target
= control target key end

     0   :  { %v330_v0 = vmov 0   ;;  %vm129_vm0 = vcmask 261120   ;;  %s433_s1 = inlined_call_operand.vmem [shape: bf16[160,128], index: 1, kind: input, shape index: {}]   ;;  %s434_s0 = inlined_call_operand.vmem [shape: bf16[32,160], index: 0, kind: input, shape index: {}]   ;;  %s435_s2 = inlined_call_operand.vmem [shape: f32[32,1], index: 2, kind: input, shape index: {}]   ;;  %s436_s3 = inlined_call_operand.vmem [shape: bf16[32,128], index: 3, kind: output, shape index: {}]  }
   0x1   :  { %136 = vmatprep.subr.bf16.mxu0 %v330_v0  ;;  %291 = vmatprep.subr.bf16.mxu1 %v330_v0  ;;  %v314_v1 = vld [vmem:[%s433_s1 + $0x38] sm:$0xff]   ;;  %v315_v2 = vld [vmem:[%s433_s1 + $0x30] sm:$0xff]   ;;  %v316_v3 = vld [vmem:[%s433_s1 + $0x28] sm:$0xff]  }
   0x2   :  { %313 = vset.pattern.permute.xlu1 %v330_v0  ;;  %312 = vset.pattern.permute.xlu0 %v330_v0  ;;  %v317_v4 = vld [vmem:[%s433_s1 + $0x20] sm:$0xff]   ;;  %v329_v6 = vld [vmem:[%s434_s0 + $0x14] ss:$8 sps:$4 sm:$0xff]   ;;  %v201_v11 = vld [vmem:[%s435_s2 + $0x8] sm:$0xff] }
   0x3   :  { %137 = vmatpush1.bf16.msra.mxu0 %v314_v1  ;;  %301 = vmatpush1.bf16.msra.mxu1 %v314_v1  ;;  %v326_v5 = vld [vmem:[%s434_s0 + $0x4] ss:$8 sps:$4 sm:$0xff]   ;;  %v202_v7 = vld [vmem:[%s435_s2 + $0x10] sm:$0xff]  ;;  %v318_v9 = vld [vmem:[%s433_s1 + $0x18] sm:$0xff]  }
   0x4   :  { %138 = vmatprep.subr.bf16.mxu0 %v330_v0  ;;  %292 = vmatprep.subr.bf16.mxu1 %v330_v0  ;;  %v200_v8 = vld [vmem:[%s435_s2] sm:$0xff]  ;;  %v203_v10 = vld [vmem:[%s435_s2 + $0x18] sm:$0xff]  ;;  %v319_v12 = vld [vmem:[%s433_s1 + $0x10] sm:$0xff]  }
   0x5   :  { %270 = vmatprep.mubr.msk.bf16.mxu0 %vm129_vm0, %v326_v5  ;;  %216 = vperm.xlu1 %313, %v202_v7   ;;  %v320_v13 = vld [vmem:[%s433_s1 + $0x8] sm:$0xff]   ;;  %v321_v14 = vld [vmem:[%s433_s1] sm:$0xff]   ;;  %v327_v18 = vld [vmem:[%s434_s0 + $0x10] ss:$8 sps:$4 sm:$0xff]  }
   0x6   :  { %271 = vmatprep.mubr.msk.bf16.mxu1 %vm129_vm0, %v329_v6  ;;  %206 = vperm.xlu0 %312, %v200_v8   ;;  %v322_v15 = vld [vmem:[%s433_s1 + $0x48] sm:$0xff]   ;;  %v323_v16 = vld [vmem:[%s433_s1 + $0x40] sm:$0xff]  }
   0x7   :  { %139 = vmatpush1.bf16.msra.mxu0 %v315_v2  ;;  %302 = vmatpush1.bf16.msra.mxu1 %v315_v2  ;;  %v324_v17 = vld [vmem:[%s434_s0] ss:$8 sps:$4 sm:$0xff]  }
   0x8   :  { %140 = vmatprep.subr.bf16.mxu0 %v330_v0  ;;  %293 = vmatprep.subr.bf16.mxu1 %v330_v0 }
   0x9   :  { %221 = vperm.xlu1 %313, %v203_v10  }
   0xa   :  { %211 = vperm.xlu0 %312, %v201_v11  }
   0xb   :  { %141 = vmatpush1.bf16.msra.mxu0 %v316_v3  ;;  %303 = vmatpush1.bf16.msra.mxu1 %v316_v3 }
   0xc   :  { %142 = vmatprep.subr.bf16.mxu0 %v330_v0  ;;  %294 = vmatprep.subr.bf16.mxu1 %v330_v0 }
   0xf   :  { %143 = vmatpush1.bf16.msra.mxu0 %v317_v4  ;;  %304 = vmatpush1.bf16.msra.mxu1 %v317_v4 }
  0x10   :  { %144 = vmatprep.subr.bf16.mxu0 %v330_v0  ;;  %295 = vmatprep.subr.bf16.mxu1 %v330_v0 }
  0x13   :  { %145 = vmatpush1.bf16.msra.mxu0 %v318_v9  ;;  %305 = vmatpush1.bf16.msra.mxu1 %v318_v9 }
  0x14   :  { %146 = vmatprep.subr.bf16.mxu0 %v330_v0  ;;  %296 = vmatprep.subr.bf16.mxu1 %v330_v0 }
  0x17   :  { %147 = vmatpush1.bf16.msra.mxu0 %v319_v12  ;;  %306 = vmatpush1.bf16.msra.mxu1 %v319_v12 }
  0x18   :  { %148 = vmatprep.subr.bf16.mxu0 %v330_v0  ;;  %297 = vmatprep.subr.bf16.mxu1 %v330_v0 }
  0x1b   :  { %149 = vmatpush1.bf16.msra.mxu0 %v320_v13  ;;  %307 = vmatpush1.bf16.msra.mxu1 %v320_v13 }
  0x1c   :  { %150 = vmatprep.subr.bf16.mxu0 %v330_v0  ;;  %298 = vmatprep.subr.bf16.mxu1 %v330_v0 }
  0x1f   :  { %151 = vmatpush1.bf16.msra.mxu0 %v321_v14  ;;  %308 = vmatpush1.bf16.msra.mxu1 %v321_v14 }
  0x20   :  { %164 = vmatprep.subr.bf16.mxu0 %v330_v0  ;;  %299 = vmatprep.subr.bf16.mxu1 %v330_v0 }
  0x23   :  { %165 = vmatpush2.bf16.msra.mxu0 %v322_v15  ;;  %309 = vmatpush2.bf16.msra.mxu1 %v322_v15 }
  0x24   :  { %166 = vmatprep.subr.bf16.mxu0 %v330_v0  ;;  %300 = vmatprep.subr.bf16.mxu1 %v330_v0 }
  0x27   :  { %167 = vmatpush2.bf16.msra.mxu0 %v323_v16  ;;  %310 = vmatpush2.bf16.msra.mxu1 %v323_v16 }
  0x2a   :  { %169 = vmatmul.mubr.bf16.vlgmr.msra.gmra.mxu0 %v324_v17  ;;  %177 = vmatmul.mubr.bf16.vlgmr.msra.gmra.mxu1 %v327_v18 }
  0x80   :  { %v217_v19 = vpop.permute.xlu1 %216 }
  0x81   :  { %v207_v20 = vpop.permute.xlu0 %206 }
  0x84   :  { %v222_v25 = vpop.permute.xlu1 %221 }
  0x85   :  { %v212_v26 = vpop.permute.xlu0 %211 }
  0xea   :  { %v170_v21 = vpop.f32.mrf.mxu0  ;;  %v178_v22 = vpop.f32.mrf.mxu1 }
  0xeb   :  { %v224_v27 = vadd.f32 %v207_v20, %v170_v21  ;;  %v226_v28 = vadd.f32 %v217_v19, %v178_v22 }
  0xec   :  { %v172_v23 = vpop.f32.mrf.mxu0  ;;  %v180_v24 = vpop.f32.mrf.mxu1 }
  0xed   :  { %v228_v35 = vmax.f32 %v224_v27, 0.0  ;;  %v230_v36 = vmax.f32 %v226_v28, 0.0 }
  0xee   :  { %v173_v29 = vpop.f32.mrf.mxu0  ;;  %v181_v30 = vpop.f32.mrf.mxu1 }
  0xef   :  { %v225_v31 = vadd.f32 %v212_v26, %v173_v29  ;;  %v227_v32 = vadd.f32 %v222_v25, %v181_v30 }
  0xf0   :  { %v175_v33 = vpop.f32.mrf.mxu0  ;;  %v183_v34 = vpop.f32.mrf.mxu1 }
  0xf1   :  { %v229_v37 = vmax.f32 %v225_v31, 0.0  ;;  %v231_v38 = vmax.f32 %v227_v32, 0.0 }
  0xf3   :  { %v283_v39 = vpack.c.bf16 %v229_v37, %v228_v35  ;;  %v288_v40 = vpack.c.bf16 %v231_v38, %v230_v36 }
  0xf5   :  { %284 = vst [vmem:[%s436_s3] sm:$0xff] %v283_v39   ;;  %290 = vst [vmem:[%s436_s3 + $0x8] sm:$0xff] %v288_v40  }

// kernel: _lambda_.228
= control target key start
LH: loop header
LB: loop body
LE: loop exit
PB: predicated region body
PF: predicated region fallthrough
CT: control target
= control target key end

     0   :  { %vm63_vm0 = vcmask 1041408   ;;  %v201_v1 = vmov 0   ;;  %vm56_vm1 = vcmask 31744   ;;  %s238_s1 = inlined_call_operand.vmem [shape: bf16[4,256], index: 1, kind: input, shape index: {}]   ;;  %s239_s0 = inlined_call_operand.vmem [shape: bf16[32,4], index: 0, kind: input, shape index: {}]   ;;  %s240_s2 = inlined_call_operand.vmem [shape: bf16[32,256], index: 2, kind: output, shape index: {}]  }
   0x1   :  { %v184_v0 = vld.sshfl [vmem:[%s238_s1] sm:$0x33 pattern:$0x76325410]  ;;  %102 = vmatprep.mubr.bf16.mxu0 %v201_v1  ;;  %112 = vmatprep.mubr.bf16.mxu1 %v201_v1  ;;  %v200_v5 = vld [vmem:[%s239_s0 + $0x8] sm:$0xff]  }
   0x2   :  { %v55_v2 = vcombine.high %v184_v0, %v184_v0  ;;  %v65_v3 = vsel %vm63_vm0, %v184_v0, 0  ;;  %v199_v4 = vld [vmem:[%s239_s0] sm:$0xff]  }
   0x4   :  { %185 = vmatprep.subr.msk.bf16.mxu0 %vm63_vm0, %v55_v2  ;;  %196 = vmatprep.subr.msk.bf16.mxu1 %vm63_vm0, %v55_v2 }
   0x5   :  { %85 = vmatpush1.bf16.msra.mxu0 %v65_v3  ;;  %197 = vmatpush1.bf16.msra.mxu1 %v65_v3 }
   0x8   :  { %186 = vmatmul.mubr.msk.bf16.vlgmr.msra.gmra.mxu0 %vm56_vm1, %v199_v4  ;;  %187 = vmatmul.mubr.msk.bf16.vlgmr.msra.gmra.mxu1 %vm56_vm1, %v200_v5 }
  0xc8   :  { %v104_v6 = vpop.f32.mrf.mxu0  ;;  %v114_v7 = vpop.f32.mrf.mxu1 }
  0xca   :  { %v106_v8 = vpop.f32.mrf.mxu0  ;;  %v116_v9 = vpop.f32.mrf.mxu1 }
  0xcb   :  { %v192_v10 = vpack.c.bf16 %v106_v8, %v104_v6  ;;  %v194_v11 = vpack.c.bf16 %v116_v9, %v114_v7 }
  0xcc   :  { %v108_v12 = vpop.f32.mrf.mxu0  ;;  %v118_v13 = vpop.f32.mrf.mxu1 }
  0xcd   :  { %174 = vst [vmem:[%s240_s2] sm:$0xff] %v192_v10  ;;  %176 = vst [vmem:[%s240_s2 + $0x10] sm:$0xff] %v194_v11 }
  0xce   :  { %v110_v14 = vpop.f32.mrf.mxu0  ;;  %v120_v15 = vpop.f32.mrf.mxu1 }
  0xcf   :  { %v193_v16 = vpack.c.bf16 %v110_v14, %v108_v12  ;;  %v195_v17 = vpack.c.bf16 %v120_v15, %v118_v13 }
  0xd1   :  { %175 = vst [vmem:[%s240_s2 + $0x8] sm:$0xff] %v193_v16  ;;  %177 = vst [vmem:[%s240_s2 + $0x18] sm:$0xff] %v195_v17 }

// kernel: _lambda_.229
= control target key start
LH: loop header
LB: loop body
LE: loop exit
PB: predicated region body
PF: predicated region fallthrough
CT: control target
= control target key end

     0   :  { %s749_s9 = smov 0   ;;  %s751_s10 = smov 0   ;;  %s842_s0 = inlined_call_operand.vmem [shape: bf16[32,4], index: 0, kind: input, shape index: {}]   ;;  %s843_s1 = inlined_call_operand.vmem [shape: bf16[4,1536], index: 1, kind: input, shape index: {}]   ;;  %s844_s2 = inlined_call_operand.vmem [shape: bf16[32,1536], index: 2, kind: output, shape index: {}]  }
   0x1   :  { %s753_s11 = smov 0   ;;  %s755_s12 = smov 0  }
   0x2   :  { %s757_s13 = smov 0  }
   0x3 LB: > { %s608_s14 = sadd.s32 4294967295, %s730_s13   ;;  %s24_s15 = sadd.s32 1, %s726_s12  ;;  %s730_s13 = sphi %s757_s13, %s12_s13   ;;  %s726_s12 = sphi %s755_s12, %s849_s12   ;;  %s722_s11 = sphi %s753_s11, %s848_s11   ;;  %s718_s10 = sphi %s751_s10, %s847_s10   ;;  %s714_s9 = sphi %s749_s9, %s846_s9  }
   0x4   : > { %p26_p0 = scmp.ge.s32.totalorder %s24_s15, 3  ;;  %s85_s16 = sadd.s32 1, %s718_s10 }
   0x5   : > { %p95_p1 = scmp.ne.s32.totalorder %s718_s10, %s714_s9  ;;  %p96_p2 = scmp.eq.s32.totalorder %s608_s14, 2 }
   0x6   : > { %s851_s15 = smov (%p26_p0, %s24_s15), 0  ;;  %p613_p4 = scmp.ge.s32.totalorder %s730_s13, 1 }
   0x7   : > { %p781_p3 = por %p96_p2, %p95_p1  ;;  %s82_s18 = ssub.s32 %s726_s12, %s851_s15 }
   0x8   : > { %p140_p5 = scmp.lt.s32.totalorder %s730_s13, 4  ;;  %p83_p6 = scmp.eq.s32.totalorder %s82_s18, 0 }
   0xa   : > { %p141_p7 = pnand %p613_p4, %p140_p5 }
   0xb   : > { %s790_s19 = scalar_select %p83_p6, %s718_s10, %s85_s16  }
   0xc   : > { %144 = sbr.rel (%p141_p7) target bundleno = 250 (0xfa), region = 28  ;;  %s615_s20 = sshll.u32 (!%p141_p7), %s722_s11, 2 }
   0xd   : > { %p176_p8 = scmp.lt.s32.totalorder (!%p141_p7), %s615_s20, 11  ;;  %s166_s29 = sand.u32 (!%p141_p7), 1, %s714_s9  }
   0xe   : > { %s614_s30 = sshll.u32 (!%p141_p7), %s166_s29, 6 }
   0xf   : > { %s803_s3 = scalar_lea.vmem (!%p141_p7), [#allocation3], %s614_s30 }
  0x11   : > { %v241_v0 = vlaneseq  ;;  %v732_v1 = vmov 1983009808   ;;  %v733_v3 = vmov 0   ;;  %s853_s20 = smov (!%p176_p8, %s615_s20), 11  ;;  %vm261_vm0 = vcmask 1041408   ;;  %v690_v15 = vld [vmem:[%s842_s0] sm:$0xff]  }
  0x12   : > { %v239_v2 = vunpack.c.l.s4 %v732_v1  ;;  %306 = vmatprep.mubr.bf16.mxu0 %v733_v3  ;;  %359 = vmatprep.mubr.bf16.mxu1 %v733_v3  ;;  %s616_s21 = sshll.u32 %s853_s20, 1  ;;  %vm254_vm1 = vcmask 31744   ;;  %v691_v16 = vld [vmem:[%s842_s0 + $0x8] sm:$0xff]   ;;  %s646_s4 = sshll.u32 (%p781_p3), %s722_s11, 4 }
  0x13   : > { %v242_v4 = vshrl.u32 %v241_v0, 7  ;;  %s181_s24 = scalar_lea.vmem %s843_s1, %s616_s21  ;;  %s496_s7 = scalar_lea.vmem (%p781_p3), %s844_s2, %s646_s4 }
  0x14   : > { %v240_v5 = vunpack.c.0.s8 %v239_v2  ;;  %v225_v7 = vld [vmem:[%s181_s24] sm:$0xff] }
  0x15   : > { %v237_v9 = vcombine.high %v225_v7, %v225_v7 }
  0x16   : > { %v243_v6 = vsub.s32 %v240_v5, %v242_v4 }
  0x18   : > { %v244_v8 = vrot.slane %v225_v7, %v243_v6  ;;  %v251_v12 = vrot.slane %v237_v9, %v243_v6 }
  0x1a   : > { %v252_v10 = vcombine.high %v244_v8, %v244_v8  ;;  %v263_v11 = vsel %vm261_vm0, %v244_v8, 0  ;;  %v253_v13 = vcombine.high %v251_v12, %v251_v12  ;;  %v269_v14 = vsel %vm261_vm0, %v251_v12, 0 }
  0x1c   : > { %619 = vmatprep.subr.msk.bf16.mxu0 %vm261_vm0, %v252_v10  ;;  %622 = vmatprep.subr.msk.bf16.mxu1 %vm261_vm0, %v253_v13 }
  0x1d   : > { %289 = vmatpush1.bf16.msra.mxu0 %v263_v11  ;;  %342 = vmatpush1.bf16.msra.mxu1 %v269_v14 }
  0x20   : > { %620 = vmatmul.mubr.msk.bf16.vlgmr.msra.gmra.mxu0 %vm254_vm1, %v690_v15  ;;  %623 = vmatmul.mubr.msk.bf16.vlgmr.msra.gmra.mxu1 %vm254_vm1, %v690_v15 }
  0x21   : > { %316 = vmatprep.mubr.bf16.mxu0 %v733_v3  ;;  %369 = vmatprep.mubr.bf16.mxu1 %v733_v3 }
  0x28   : > { %621 = vmatmul.mubr.msk.bf16.gmra.mxu0 %vm254_vm1, %v691_v16  ;;  %624 = vmatmul.mubr.msk.bf16.gmra.mxu1 %vm254_vm1, %v691_v16 }
  0xe0   : > { %v308_v17 = vpop.f32.mrf.mxu0  ;;  %v361_v19 = vpop.f32.mrf.mxu1 }
  0xe2   : > { %v310_v18 = vpop.f32.mrf.mxu0  ;;  %v363_v22 = vpop.f32.mrf.mxu1 }
  0xe3   : > { %v638_v20 = vpack.c.bf16 %v310_v18, %v308_v17  ;;  %v639_v23 = vpack.c.bf16 %v363_v22, %v361_v19 }
  0xe4   : > { %v312_v21 = vpop.f32.mrf.mxu0  ;;  %v365_v25 = vpop.f32.mrf.mxu1 }
  0xe5   : > { %479 = vst [vmem:[%s803_s3] sm:$0xff] %v638_v20  ;;  %480 = vst [vmem:[%s803_s3 + $0x8] sm:$0xff] %v639_v23 }
  0xe6   : > { %v314_v24 = vpop.f32.mrf.mxu0  ;;  %v367_v28 = vpop.f32.mrf.mxu1 }
  0xe7   : > { %v640_v26 = vpack.c.bf16 %v314_v24, %v312_v21  ;;  %v641_v29 = vpack.c.bf16 %v367_v28, %v365_v25 }
  0xe8   : > { %v318_v27 = vpop.f32.mrf.mxu0  ;;  %v371_v31 = vpop.f32.mrf.mxu1 }
  0xe9   : > { %481 = vst [vmem:[%s803_s3 + $0x10] sm:$0xff] %v640_v26  ;;  %482 = vst [vmem:[%s803_s3 + $0x18] sm:$0xff] %v641_v29 }
  0xea   : > { %v320_v30 = vpop.f32.mrf.mxu0  ;;  %v373_v34 = vpop.f32.mrf.mxu1 }
  0xeb   : > { %v642_v32 = vpack.c.bf16 %v320_v30, %v318_v27  ;;  %v643_v35 = vpack.c.bf16 %v373_v34, %v371_v31 }
  0xec   : > { %v322_v33 = vpop.f32.mrf.mxu0  ;;  %v375_v37 = vpop.f32.mrf.mxu1  ;;  %v509_v41 = vld [vmem:[%s803_s3] sm:$0xff] (%p781_p3)  ;;  %v511_v42 = vld [vmem:[%s803_s3 + $0x8] sm:$0xff] (%p781_p3) }
  0xed   : > { %483 = vst [vmem:[%s803_s3 + $0x20] sm:$0xff] %v642_v32  ;;  %484 = vst [vmem:[%s803_s3 + $0x28] sm:$0xff] %v643_v35  ;;  %493 = sbr.rel (!%p781_p3) target bundleno = 250 (0xfa), region = 40 }
  0xee   : > { %v324_v36 = vpop.f32.mrf.mxu0  ;;  %v377_v39 = vpop.f32.mrf.mxu1  ;;  %510 = vst [vmem:[%s496_s7] sm:$0xff] (%p781_p3), %v509_v41  ;;  %512 = vst [vmem:[%s496_s7 + $0x8] sm:$0xff] (%p781_p3), %v511_v42 }
  0xef   : > { %v644_v38 = vpack.c.bf16 %v324_v36, %v322_v33  ;;  %v645_v40 = vpack.c.bf16 %v377_v39, %v375_v37 }
  0xf0   : > { %v513_v43 = vld [vmem:[%s803_s3 + $0x10] sm:$0xff] (%p781_p3)  ;;  %v515_v44 = vld [vmem:[%s803_s3 + $0x18] sm:$0xff] (%p781_p3) }
  0xf1   : > { %485 = vst [vmem:[%s803_s3 + $0x30] sm:$0xff] %v644_v38  ;;  %486 = vst [vmem:[%s803_s3 + $0x38] sm:$0xff] %v645_v40 }
  0xf2   : > { %514 = vst [vmem:[%s496_s7 + $0x30] sm:$0xff] %v513_v43  ;;  %516 = vst [vmem:[%s496_s7 + $0x38] sm:$0xff] %v515_v44 }
  0xf4   : > { %v517_v45 = vld [vmem:[%s803_s3 + $0x20] sm:$0xff]  ;;  %v519_v46 = vld [vmem:[%s803_s3 + $0x28] sm:$0xff] }
  0xf5   : > { %518 = vst [vmem:[%s496_s7 + $0x60] sm:$0xff] %v517_v45  ;;  %520 = vst [vmem:[%s496_s7 + $0x68] sm:$0xff] %v519_v46 }
  0xf8   : > { %v521_v47 = vld [vmem:[%s803_s3 + $0x30] sm:$0xff]  ;;  %v523_v48 = vld [vmem:[%s803_s3 + $0x38] sm:$0xff] }
  0xf9   : > { %522 = vst [vmem:[%s496_s7 + $0x90] sm:$0xff] %v521_v47  ;;  %524 = vst [vmem:[%s496_s7 + $0x98] sm:$0xff] %v523_v48 }
  0xfa PF: > { %s12_s13 = sadd.s32 1, %s730_s13   ;;  %s846_s9 = smov %s718_s10 }
  0xfb   : > { %p9_p9 = scmp.ge.s32.totalorder %s12_s13, 5   ;;  %s847_s10 = smov %s790_s19 }
  0xfc   : > { %s848_s11 = smov %s726_s12  ;;  %s849_s12 = smov %s851_s15 }
  0xfd   :  { %11 = sbr.rel (!%p9_p9) target bundleno = 3 (0x3), region = 92 }

// kernel: _lambda_.224
= control target key start
LH: loop header
LB: loop body
LE: loop exit
PB: predicated region body
PF: predicated region fallthrough
CT: control target
= control target key end

     0   :  { %vm595_vm0 = vcmask 1041408   ;;  %vm18_vm1 = vcmask 15360   ;;  %vm2646_vm2 = vcmask 1041409   ;;  %vm2648_vm3 = vcmask 1042434   ;;  %s5197_s0 = inlined_call_operand.vmem [shape: bf16[256,2,128], index: 0, kind: input, shape index: {}]   ;;  %s5198_s1 = inlined_call_operand.vmem [shape: bf16[32,256], index: 1, kind: input, shape index: {}]   ;;  %s5199_s2 = inlined_call_operand.vmem [shape: f32[32,1], index: 2, kind: input, shape index: {}]   ;;  %s5200_s3 = inlined_call_operand.vmem [shape: bf16[32,2], index: 3, kind: output, shape index: {}]  }
   0x1   :  { %v85_v0 = vld [vmem:[%s5197_s0 + $0x2] sm:$0x1]  ;;  %v83_v1 = vld [vmem:[%s5197_s0] sm:$0x1]  ;;  %v86_v2 = vld [vmem:[%s5197_s0 + $0x3] sm:$0x1] }
   0x2   :  { %v341_v3 = vunpack.c.l.bf16 %v85_v0  ;;  %v339_v4 = vunpack.c.l.bf16 %v83_v1  ;;  %v342_v5 = vunpack.c.l.bf16 %v86_v2  ;;  %v84_v6 = vld [vmem:[%s5197_s0 + $0x1] sm:$0x1]  ;;  %v88_v8 = vld [vmem:[%s5197_s0 + $0x5] sm:$0x1]  ;;  %v87_v9 = vld [vmem:[%s5197_s0 + $0x4] sm:$0x1] }
   0x3   :  { %v340_v7 = vunpack.c.l.bf16 %v84_v6  ;;  %v344_v14 = vunpack.c.l.bf16 %v88_v8  ;;  %v343_v15 = vunpack.c.l.bf16 %v87_v9  ;;  %v90_v16 = vld [vmem:[%s5197_s0 + $0x7] sm:$0x1]  ;;  %v89_v17 = vld [vmem:[%s5197_s0 + $0x6] sm:$0x1]  ;;  %v92_v22 = vld [vmem:[%s5197_s0 + $0x9] sm:$0x1] }
   0x4   :  { %v602_v10 = vsel %vm595_vm0, %v341_v3, 0.0  ;;  %v596_v11 = vsel %vm595_vm0, %v339_v4, 0.0  ;;  %v605_v12 = vsel %vm595_vm0, %v342_v5, 0.0  ;;  %v346_v20 = vunpack.c.l.bf16 %v90_v16  ;;  %v91_v23 = vld [vmem:[%s5197_s0 + $0x8] sm:$0x1] }
   0x5   :  { %603 = vadd.xlane.f32.xlu1 %v602_v10  ;;  %597 = vadd.xlane.f32.xlu0 %v596_v11  ;;  %v599_v13 = vsel %vm595_vm0, %v340_v7, 0.0  ;;  %v611_v18 = vsel %vm595_vm0, %v344_v14, 0.0  ;;  %v608_v19 = vsel %vm595_vm0, %v343_v15, 0.0  ;;  %v345_v21 = vunpack.c.l.bf16 %v89_v17  ;;  %v94_v28 = vld [vmem:[%s5197_s0 + $0xb] sm:$0x1] }
   0x6   :  { %v617_v24 = vsel %vm595_vm0, %v346_v20, 0.0  ;;  %v348_v26 = vunpack.c.l.bf16 %v92_v22  ;;  %v347_v27 = vunpack.c.l.bf16 %v91_v23  ;;  %v93_v29 = vld [vmem:[%s5197_s0 + $0xa] sm:$0x1]  ;;  %v350_v32 = vunpack.c.l.bf16 %v94_v28  ;;  %v96_v34 = vld [vmem:[%s5197_s0 + $0xd] sm:$0x1] }
   0x7   :  { %v614_v25 = vsel %vm595_vm0, %v345_v21, 0.0  ;;  %v349_v33 = vunpack.c.l.bf16 %v93_v29  ;;  %v95_v35 = vld [vmem:[%s5197_s0 + $0xc] sm:$0x1]  ;;  %v352_v38 = vunpack.c.l.bf16 %v96_v34  ;;  %v98_v40 = vld [vmem:[%s5197_s0 + $0xf] sm:$0x1]  ;;  %v3279_v8 = vmov 0.0  }
   0x8   :  { %v623_v30 = vsel %vm595_vm0, %v348_v26, 0.0  ;;  %v620_v31 = vsel %vm595_vm0, %v347_v27, 0.0  ;;  %v629_v36 = vsel %vm595_vm0, %v350_v32, 0.0  ;;  %v351_v39 = vunpack.c.l.bf16 %v95_v35  ;;  %v97_v41 = vld [vmem:[%s5197_s0 + $0xe] sm:$0x1]  ;;  %19 = vst.msk [vmem:[#allocation2] sm:$0xff] %vm18_vm1, %v3279_v8 }
   0x9   :  { %606 = vadd.xlane.f32.xlu1 %v605_v12  ;;  %600 = vadd.xlane.f32.xlu0 %v599_v13  ;;  %v626_v37 = vsel %vm595_vm0, %v349_v33, 0.0  ;;  %v635_v42 = vsel %vm595_vm0, %v352_v38, 0.0  ;;  %v354_v44 = vunpack.c.l.bf16 %v98_v40  ;;  %v353_v45 = vunpack.c.l.bf16 %v97_v41  ;;  %v100_v46 = vld [vmem:[%s5197_s0 + $0x11] sm:$0x1]  ;;  %v99_v47 = vld [vmem:[%s5197_s0 + $0x10] sm:$0x1] }
   0xa   :  { %v632_v43 = vsel %vm595_vm0, %v351_v39, 0.0  ;;  %v356_v50 = vunpack.c.l.bf16 %v100_v46  ;;  %v355_v51 = vunpack.c.l.bf16 %v99_v47  ;;  %v102_v52 = vld [vmem:[%s5197_s0 + $0x13] sm:$0x1]  ;;  %v101_v53 = vld [vmem:[%s5197_s0 + $0x12] sm:$0x1]  ;;  %20 = vst.msk [vmem:[#allocation2 + $0x8] sm:$0xff] %vm18_vm1, %v3279_v8 }
   0xb   :  { %v641_v48 = vsel %vm595_vm0, %v354_v44, 0.0  ;;  %v638_v49 = vsel %vm595_vm0, %v353_v45, 0.0  ;;  %v358_v56 = vunpack.c.l.bf16 %v102_v52  ;;  %v357_v57 = vunpack.c.l.bf16 %v101_v53  ;;  %v104_v58 = vld [vmem:[%s5197_s0 + $0x15] sm:$0x1]  ;;  %v103_v59 = vld [vmem:[%s5197_s0 + $0x14] sm:$0x1] }
   0xc   :  { %v647_v54 = vsel %vm595_vm0, %v356_v50, 0.0  ;;  %v644_v55 = vsel %vm595_vm0, %v355_v51, 0.0  ;;  %v360_v62 = vunpack.c.l.bf16 %v104_v58  ;;  %v359_v63 = vunpack.c.l.bf16 %v103_v59  ;;  %v106_v0 = vld [vmem:[%s5197_s0 + $0x17] sm:$0x1]  ;;  %v105_v1 = vld [vmem:[%s5197_s0 + $0x16] sm:$0x1] }
   0xd   :  { %612 = vadd.xlane.f32.xlu1 %v611_v18  ;;  %609 = vadd.xlane.f32.xlu0 %v608_v19  ;;  %v653_v60 = vsel %vm595_vm0, %v358_v56, 0.0  ;;  %v650_v61 = vsel %vm595_vm0, %v357_v57, 0.0  ;;  %v362_v2 = vunpack.c.l.bf16 %v106_v0  ;;  %v361_v3 = vunpack.c.l.bf16 %v105_v1  ;;  %v108_v6 = vld [vmem:[%s5197_s0 + $0x19] sm:$0x1]  ;;  %v107_v7 = vld [vmem:[%s5197_s0 + $0x18] sm:$0x1] }
   0xe   :  { %v659_v4 = vsel %vm595_vm0, %v360_v62, 0.0  ;;  %v656_v5 = vsel %vm595_vm0, %v359_v63, 0.0  ;;  %21 = vst.msk [vmem:[#allocation2 + $0x10] sm:$0xff] %vm18_vm1, %v3279_v8  ;;  %22 = vst.msk [vmem:[#allocation2 + $0x18] sm:$0xff] %vm18_vm1, %v3279_v8  ;;  %v364_v11 = vunpack.c.l.bf16 %v108_v6  ;;  %v363_v12 = vunpack.c.l.bf16 %v107_v7  ;;  %v110_v13 = vld [vmem:[%s5197_s0 + $0x1b] sm:$0x1] }
   0xf   :  { %23 = vst.msk [vmem:[#allocation2 + $0x20] sm:$0xff] %vm18_vm1, %v3279_v8  ;;  %24 = vst.msk [vmem:[#allocation2 + $0x28] sm:$0xff] %vm18_vm1, %v3279_v8  ;;  %v665_v9 = vsel %vm595_vm0, %v362_v2, 0.0  ;;  %v662_v10 = vsel %vm595_vm0, %v361_v3, 0.0  ;;  %v109_v14 = vld [vmem:[%s5197_s0 + $0x1a] sm:$0x1]  ;;  %v366_v17 = vunpack.c.l.bf16 %v110_v13 }
  0x10   :  { %25 = vst.msk [vmem:[#allocation2 + $0x30] sm:$0xff] %vm18_vm1, %v3279_v8  ;;  %26 = vst.msk [vmem:[#allocation2 + $0x38] sm:$0xff] %vm18_vm1, %v3279_v8  ;;  %v671_v15 = vsel %vm595_vm0, %v364_v11, 0.0  ;;  %v668_v16 = vsel %vm595_vm0, %v363_v12, 0.0  ;;  %v365_v18 = vunpack.c.l.bf16 %v109_v14  ;;  %v112_v19 = vld [vmem:[%s5197_s0 + $0x1d] sm:$0x1] }
  0x11   :  { %618 = vadd.xlane.f32.xlu1 %v617_v24  ;;  %615 = vadd.xlane.f32.xlu0 %v614_v25  ;;  %27 = vst.msk [vmem:[#allocation2 + $0x40] sm:$0xff] %vm18_vm1, %v3279_v8  ;;  %28 = vst.msk [vmem:[#allocation2 + $0x48] sm:$0xff] %vm18_vm1, %v3279_v8  ;;  %v111_v20 = vld [vmem:[%s5197_s0 + $0x1c] sm:$0x1]  ;;  %v677_v21 = vsel %vm595_vm0, %v366_v17, 0.0  ;;  %v368_v23 = vunpack.c.l.bf16 %v112_v19  ;;  %vm2650_vm4 = vcmask 1043459  }
  0x12   :  { %29 = vst.msk [vmem:[#allocation2 + $0x50] sm:$0xff] %vm18_vm1, %v3279_v8  ;;  %30 = vst.msk [vmem:[#allocation2 + $0x58] sm:$0xff] %vm18_vm1, %v3279_v8  ;;  %v674_v22 = vsel %vm595_vm0, %v365_v18, 0.0  ;;  %v367_v24 = vunpack.c.l.bf16 %v111_v20  ;;  %v114_v25 = vld [vmem:[%s5197_s0 + $0x1f] sm:$0x1]  ;;  %vm2652_vm5 = vcmask 1044484  }
  0x13   :  { %31 = vst.msk [vmem:[#allocation2 + $0x60] sm:$0xff] %vm18_vm1, %v3279_v8  ;;  %32 = vst.msk [vmem:[#allocation2 + $0x68] sm:$0xff] %vm18_vm1, %v3279_v8  ;;  %v113_v26 = vld [vmem:[%s5197_s0 + $0x1e] sm:$0x1]  ;;  %v683_v27 = vsel %vm595_vm0, %v368_v23, 0.0  ;;  %v370_v29 = vunpack.c.l.bf16 %v114_v25  ;;  %vm2654_vm6 = vcmask 1045509  }
  0x14   :  { %33 = vst.msk [vmem:[#allocation2 + $0x70] sm:$0xff] %vm18_vm1, %v3279_v8  ;;  %34 = vst.msk [vmem:[#allocation2 + $0x78] sm:$0xff] %vm18_vm1, %v3279_v8  ;;  %v680_v28 = vsel %vm595_vm0, %v367_v24, 0.0  ;;  %v115_v32 = vld [vmem:[%s5197_s0 + $0x20] sm:$0x1]  ;;  %vm2656_vm7 = vcmask 1046534  }
  0x15   :  { %624 = vadd.xlane.f32.xlu1 %v623_v30  ;;  %621 = vadd.xlane.f32.xlu0 %v620_v31  ;;  %35 = vst.msk [vmem:[#allocation2 + $0x80] sm:$0xff] %vm18_vm1, %v3279_v8  ;;  %36 = vst.msk [vmem:[#allocation2 + $0x88] sm:$0xff] %vm18_vm1, %v3279_v8  ;;  %v369_v30 = vunpack.c.l.bf16 %v113_v26  ;;  %v116_v31 = vld [vmem:[%s5197_s0 + $0x21] sm:$0x1]  ;;  %v689_v33 = vsel %vm595_vm0, %v370_v29, 0.0  ;;  %vm2658_vm8 = vcmask 1047559  }
  0x16   :  { %37 = vst.msk [vmem:[#allocation2 + $0x90] sm:$0xff] %vm18_vm1, %v3279_v8  ;;  %38 = vst.msk [vmem:[#allocation2 + $0x98] sm:$0xff] %vm18_vm1, %v3279_v8  ;;  %v372_v35 = vunpack.c.l.bf16 %v116_v31  ;;  %v117_v38 = vld [vmem:[%s5197_s0 + $0x22] sm:$0x1]  ;;  %v119_v44 = vld [vmem:[%s5197_s0 + $0x24] sm:$0x1] }
  0x17   :  { %39 = vst.msk [vmem:[#allocation2 + $0xa0] sm:$0xff] %vm18_vm1, %v3279_v8  ;;  %40 = vst.msk [vmem:[#allocation2 + $0xa8] sm:$0xff] %vm18_vm1, %v3279_v8  ;;  %v686_v34 = vsel %vm595_vm0, %v369_v30, 0.0  ;;  %v121_v50 = vld [vmem:[%s5197_s0 + $0x26] sm:$0x1]  ;;  %vm3182_vm9 = vcmask 11264  }
  0x18   :  { %41 = vst.msk [vmem:[#allocation2 + $0xb0] sm:$0xff] %vm18_vm1, %v3279_v8  ;;  %42 = vst.msk [vmem:[#allocation2 + $0xb8] sm:$0xff] %vm18_vm1, %v3279_v8  ;;  %v695_v39 = vsel %vm595_vm0, %v372_v35, 0.0  ;;  %v123_v56 = vld [vmem:[%s5197_s0 + $0x28] sm:$0x1] }
  0x19   :  { %630 = vadd.xlane.f32.xlu1 %v629_v36  ;;  %627 = vadd.xlane.f32.xlu0 %v626_v37  ;;  %43 = vst.msk [vmem:[#allocation2 + $0xc0] sm:$0xff] %vm18_vm1, %v3279_v8  ;;  %44 = vst.msk [vmem:[#allocation2 + $0xc8] sm:$0xff] %vm18_vm1, %v3279_v8  ;;  %v371_v36 = vunpack.c.l.bf16 %v115_v32  ;;  %v118_v37 = vld [vmem:[%s5197_s0 + $0x23] sm:$0x1]  ;;  %v125_v62 = vld [vmem:[%s5197_s0 + $0x2a] sm:$0x1] }
  0x1a   :  { %45 = vst.msk [vmem:[#allocation2 + $0xd0] sm:$0xff] %vm18_vm1, %v3279_v8  ;;  %46 = vst.msk [vmem:[#allocation2 + $0xd8] sm:$0xff] %vm18_vm1, %v3279_v8  ;;  %v374_v41 = vunpack.c.l.bf16 %v118_v37  ;;  %v381_v2 = vunpack.c.l.bf16 %v125_v62  ;;  %v128_v3 = vld [vmem:[%s5197_s0 + $0x2d] sm:$0x1] }
  0x1b   :  { %47 = vst.msk [vmem:[#allocation2 + $0xe0] sm:$0xff] %vm18_vm1, %v3279_v8  ;;  %48 = vst.msk [vmem:[#allocation2 + $0xe8] sm:$0xff] %vm18_vm1, %v3279_v8  ;;  %v692_v40 = vsel %vm595_vm0, %v371_v36, 0.0  ;;  %v384_v7 = vunpack.c.l.bf16 %v128_v3 }
  0x1c   :  { %49 = vst.msk [vmem:[#allocation2 + $0xf0] sm:$0xff] %vm18_vm1, %v3279_v8  ;;  %50 = vst.msk [vmem:[#allocation2 + $0xf8] sm:$0xff] %vm18_vm1, %v3279_v8  ;;  %v701_v45 = vsel %vm595_vm0, %v374_v41, 0.0  ;;  %v722_v6 = vsel %vm595_vm0, %v381_v2, 0.0 }
  0x1d   :  { %636 = vadd.xlane.f32.xlu1 %v635_v42  ;;  %633 = vadd.xlane.f32.xlu0 %v632_v43  ;;  %v373_v42 = vunpack.c.l.bf16 %v117_v38  ;;  %v120_v43 = vld [vmem:[%s5197_s0 + $0x25] sm:$0x1]  ;;  %v731_v11 = vsel %vm595_vm0, %v384_v7, 0.0 }
  0x1e   :  { %v376_v47 = vunpack.c.l.bf16 %v120_v43 }
  0x1f   :  { %v698_v46 = vsel %vm595_vm0, %v373_v42, 0.0 }
  0x20   :  { %v707_v51 = vsel %vm595_vm0, %v376_v47, 0.0 }
  0x21   :  { %642 = vadd.xlane.f32.xlu1 %v641_v48  ;;  %639 = vadd.xlane.f32.xlu0 %v638_v49  ;;  %v375_v48 = vunpack.c.l.bf16 %v119_v44  ;;  %v122_v49 = vld [vmem:[%s5197_s0 + $0x27] sm:$0x1] }
  0x22   :  { %v378_v53 = vunpack.c.l.bf16 %v122_v49 }
  0x23   :  { %v704_v52 = vsel %vm595_vm0, %v375_v48, 0.0 }
  0x24   :  { %v713_v57 = vsel %vm595_vm0, %v378_v53, 0.0 }
  0x25   :  { %648 = vadd.xlane.f32.xlu1 %v647_v54  ;;  %645 = vadd.xlane.f32.xlu0 %v644_v55  ;;  %v377_v54 = vunpack.c.l.bf16 %v121_v50  ;;  %v124_v55 = vld [vmem:[%s5197_s0 + $0x29] sm:$0x1] }
  0x26   :  { %v380_v59 = vunpack.c.l.bf16 %v124_v55 }
  0x27   :  { %v710_v58 = vsel %vm595_vm0, %v377_v54, 0.0 }
  0x28   :  { %v719_v63 = vsel %vm595_vm0, %v380_v59, 0.0 }
  0x29   :  { %654 = vadd.xlane.f32.xlu1 %v653_v60  ;;  %651 = vadd.xlane.f32.xlu0 %v650_v61  ;;  %v379_v60 = vunpack.c.l.bf16 %v123_v56  ;;  %v126_v61 = vld [vmem:[%s5197_s0 + $0x2b] sm:$0x1] }
  0x2a   :  { %v382_v1 = vunpack.c.l.bf16 %v126_v61 }
  0x2b   :  { %v716_v0 = vsel %vm595_vm0, %v379_v60, 0.0 }
  0x2d   :  { %660 = vadd.xlane.f32.xlu1 %v659_v4  ;;  %657 = vadd.xlane.f32.xlu0 %v656_v5  ;;  %v127_v4 = vld [vmem:[%s5197_s0 + $0x2c] sm:$0x1]  ;;  %v725_v5 = vsel %vm595_vm0, %v382_v1, 0.0 }
  0x2e   :  { %v383_v8 = vunpack.c.l.bf16 %v127_v4 }
  0x30   :  { %v728_v12 = vsel %vm595_vm0, %v383_v8, 0.0 }
  0x31   :  { %666 = vadd.xlane.f32.xlu1 %v665_v9  ;;  %663 = vadd.xlane.f32.xlu0 %v662_v10  ;;  %v130_v9 = vld [vmem:[%s5197_s0 + $0x2f] sm:$0x1]  ;;  %v129_v10 = vld [vmem:[%s5197_s0 + $0x2e] sm:$0x1] }
  0x32   :  { %v386_v13 = vunpack.c.l.bf16 %v130_v9  ;;  %v385_v14 = vunpack.c.l.bf16 %v129_v10 }
  0x34   :  { %v737_v17 = vsel %vm595_vm0, %v386_v13, 0.0  ;;  %v734_v18 = vsel %vm595_vm0, %v385_v14, 0.0 }
  0x35   :  { %672 = vadd.xlane.f32.xlu1 %v671_v15  ;;  %669 = vadd.xlane.f32.xlu0 %v668_v16  ;;  %v132_v15 = vld [vmem:[%s5197_s0 + $0x31] sm:$0x1]  ;;  %v131_v16 = vld [vmem:[%s5197_s0 + $0x30] sm:$0x1] }
  0x36   :  { %v388_v19 = vunpack.c.l.bf16 %v132_v15  ;;  %v387_v20 = vunpack.c.l.bf16 %v131_v16 }
  0x38   :  { %v743_v23 = vsel %vm595_vm0, %v388_v19, 0.0  ;;  %v740_v24 = vsel %vm595_vm0, %v387_v20, 0.0  ;;  %v153_v19 = vld [vmem:[%s5197_s0 + $0x46] sm:$0x1] }
  0x39   :  { %678 = vadd.xlane.f32.xlu1 %v677_v21  ;;  %675 = vadd.xlane.f32.xlu0 %v674_v22  ;;  %v134_v21 = vld [vmem:[%s5197_s0 + $0x33] sm:$0x1]  ;;  %v133_v22 = vld [vmem:[%s5197_s0 + $0x32] sm:$0x1] }
  0x3a   :  { %v390_v25 = vunpack.c.l.bf16 %v134_v21  ;;  %v389_v26 = vunpack.c.l.bf16 %v133_v22 }
  0x3c   :  { %v749_v29 = vsel %vm595_vm0, %v390_v25, 0.0  ;;  %v746_v30 = vsel %vm595_vm0, %v389_v26, 0.0  ;;  %v156_v26 = vld [vmem:[%s5197_s0 + $0x49] sm:$0x1] }
  0x3d   :  { %684 = vadd.xlane.f32.xlu1 %v683_v27  ;;  %681 = vadd.xlane.f32.xlu0 %v680_v28  ;;  %v136_v27 = vld [vmem:[%s5197_s0 + $0x35] sm:$0x1]  ;;  %v135_v28 = vld [vmem:[%s5197_s0 + $0x34] sm:$0x1] }
  0x3e   :  { %v392_v31 = vunpack.c.l.bf16 %v136_v27  ;;  %v391_v32 = vunpack.c.l.bf16 %v135_v28  ;;  %v155_v27 = vld [vmem:[%s5197_s0 + $0x48] sm:$0x1] }
  0x40   :  { %v755_v35 = vsel %vm595_vm0, %v392_v31, 0.0  ;;  %v752_v36 = vsel %vm595_vm0, %v391_v32, 0.0  ;;  %v412_v32 = vunpack.c.l.bf16 %v156_v26 }
  0x41   :  { %690 = vadd.xlane.f32.xlu1 %v689_v33  ;;  %687 = vadd.xlane.f32.xlu0 %v686_v34  ;;  %v138_v33 = vld [vmem:[%s5197_s0 + $0x37] sm:$0x1]  ;;  %v137_v34 = vld [vmem:[%s5197_s0 + $0x36] sm:$0x1] }
  0x42   :  { %v394_v37 = vunpack.c.l.bf16 %v138_v33  ;;  %v393_v38 = vunpack.c.l.bf16 %v137_v34  ;;  %v411_v33 = vunpack.c.l.bf16 %v155_v27  ;;  %v158_v34 = vld [vmem:[%s5197_s0 + $0x4b] sm:$0x1] }
  0x44   :  { %v761_v41 = vsel %vm595_vm0, %v394_v37, 0.0  ;;  %v758_v42 = vsel %vm595_vm0, %v393_v38, 0.0  ;;  %v414_v37 = vunpack.c.l.bf16 %v158_v34 }
  0x45   :  { %696 = vadd.xlane.f32.xlu1 %v695_v39  ;;  %693 = vadd.xlane.f32.xlu0 %v692_v40  ;;  %v140_v39 = vld [vmem:[%s5197_s0 + $0x39] sm:$0x1]  ;;  %v139_v40 = vld [vmem:[%s5197_s0 + $0x38] sm:$0x1] }
  0x46   :  { %v396_v43 = vunpack.c.l.bf16 %v140_v39  ;;  %v395_v44 = vunpack.c.l.bf16 %v139_v40  ;;  %v815_v40 = vsel %vm595_vm0, %v412_v32, 0.0  ;;  %v167_v32 = vld [vmem:[%s5197_s0 + $0x54] sm:$0x1] }
  0x48   :  { %v767_v47 = vsel %vm595_vm0, %v396_v43, 0.0  ;;  %v764_v48 = vsel %vm595_vm0, %v395_v44, 0.0 }
  0x49   :  { %702 = vadd.xlane.f32.xlu1 %v701_v45  ;;  %699 = vadd.xlane.f32.xlu0 %v698_v46  ;;  %v142_v45 = vld [vmem:[%s5197_s0 + $0x3b] sm:$0x1]  ;;  %v141_v46 = vld [vmem:[%s5197_s0 + $0x3a] sm:$0x1] }
  0x4a   :  { %v398_v49 = vunpack.c.l.bf16 %v142_v45  ;;  %v397_v50 = vunpack.c.l.bf16 %v141_v46  ;;  %v160_v46 = vld [vmem:[%s5197_s0 + $0x4d] sm:$0x1] }
  0x4c   :  { %v773_v53 = vsel %vm595_vm0, %v398_v49, 0.0  ;;  %v770_v54 = vsel %vm595_vm0, %v397_v50, 0.0  ;;  %v821_v50 = vsel %vm595_vm0, %v414_v37, 0.0 }
  0x4d   :  { %708 = vadd.xlane.f32.xlu1 %v707_v51  ;;  %705 = vadd.xlane.f32.xlu0 %v704_v52  ;;  %v144_v51 = vld [vmem:[%s5197_s0 + $0x3d] sm:$0x1]  ;;  %v143_v52 = vld [vmem:[%s5197_s0 + $0x3c] sm:$0x1] }
  0x4e   :  { %v400_v55 = vunpack.c.l.bf16 %v144_v51  ;;  %v399_v56 = vunpack.c.l.bf16 %v143_v52 }
  0x50   :  { %v779_v59 = vsel %vm595_vm0, %v400_v55, 0.0  ;;  %v776_v60 = vsel %vm595_vm0, %v399_v56, 0.0  ;;  %v416_v55 = vunpack.c.l.bf16 %v160_v46 }
  0x51   :  { %714 = vadd.xlane.f32.xlu1 %v713_v57  ;;  %711 = vadd.xlane.f32.xlu0 %v710_v58  ;;  %v146_v57 = vld [vmem:[%s5197_s0 + $0x3f] sm:$0x1]  ;;  %v145_v58 = vld [vmem:[%s5197_s0 + $0x3e] sm:$0x1] }
  0x52   :  { %v402_v61 = vunpack.c.l.bf16 %v146_v57  ;;  %v401_v62 = vunpack.c.l.bf16 %v145_v58 }
  0x54   :  { %v785_v1 = vsel %vm595_vm0, %v402_v61, 0.0  ;;  %v782_v2 = vsel %vm595_vm0, %v401_v62, 0.0 }
  0x55   :  { %720 = vadd.xlane.f32.xlu1 %v719_v63  ;;  %717 = vadd.xlane.f32.xlu0 %v716_v0  ;;  %v148_v63 = vld [vmem:[%s5197_s0 + $0x41] sm:$0x1]  ;;  %v147_v0 = vld [vmem:[%s5197_s0 + $0x40] sm:$0x1] }
  0x56   :  { %v404_v3 = vunpack.c.l.bf16 %v148_v63  ;;  %v403_v4 = vunpack.c.l.bf16 %v147_v0 }
  0x58   :  { %v791_v7 = vsel %vm595_vm0, %v404_v3, 0.0  ;;  %v788_v8 = vsel %vm595_vm0, %v403_v4, 0.0 }
  0x59   :  { %726 = vadd.xlane.f32.xlu1 %v725_v5  ;;  %723 = vadd.xlane.f32.xlu0 %v722_v6  ;;  %v150_v5 = vld [vmem:[%s5197_s0 + $0x43] sm:$0x1]  ;;  %v149_v6 = vld [vmem:[%s5197_s0 + $0x42] sm:$0x1] }
  0x5a   :  { %v406_v9 = vunpack.c.l.bf16 %v150_v5  ;;  %v405_v10 = vunpack.c.l.bf16 %v149_v6  ;;  %v164_v5 = vld [vmem:[%s5197_s0 + $0x51] sm:$0x1] }
  0x5c   :  { %v797_v13 = vsel %vm595_vm0, %v406_v9, 0.0  ;;  %v794_v14 = vsel %vm595_vm0, %v405_v10, 0.0  ;;  %v51_v9 = vld [vmem:[#allocation2] sm:$0xff] }
  0x5d   :  { %732 = vadd.xlane.f32.xlu1 %v731_v11  ;;  %729 = vadd.xlane.f32.xlu0 %v728_v12  ;;  %v152_v11 = vld [vmem:[%s5197_s0 + $0x45] sm:$0x1]  ;;  %v151_v12 = vld [vmem:[%s5197_s0 + $0x44] sm:$0x1] }
  0x5e   :  { %v408_v15 = vunpack.c.l.bf16 %v152_v11  ;;  %v407_v16 = vunpack.c.l.bf16 %v151_v12  ;;  %v420_v12 = vunpack.c.l.bf16 %v164_v5 }
  0x60   :  { %v803_v20 = vsel %vm595_vm0, %v408_v15, 0.0  ;;  %v800_v21 = vsel %vm595_vm0, %v407_v16, 0.0  ;;  %v839_v26 = vsel %vm595_vm0, %v420_v12, 0.0 }
  0x61   :  { %738 = vadd.xlane.f32.xlu1 %v737_v17  ;;  %735 = vadd.xlane.f32.xlu0 %v734_v18  ;;  %v1620_v17 = vlaneseq  ;;  %v154_v18 = vld [vmem:[%s5197_s0 + $0x47] sm:$0x1] }
  0x62   :  { %v410_v22 = vunpack.c.l.bf16 %v154_v18 }
  0x63   :  { %v1623_v25 = vshrl.u32 %v1620_v17, 7 }
  0x65   :  { %744 = vadd.xlane.f32.xlu1 %v743_v23  ;;  %741 = vadd.xlane.f32.xlu0 %v740_v24  ;;  %v409_v23 = vunpack.c.l.bf16 %v153_v19  ;;  %v1621_v24 = vand.u32 127, %v1620_v17 }
  0x67   :  { %v806_v31 = vsel %vm595_vm0, %v409_v23, 0.0 }
  0x69   :  { %750 = vadd.xlane.f32.xlu1 %v749_v29  ;;  %747 = vadd.xlane.f32.xlu0 %v746_v30  ;;  %v809_v30 = vsel %vm595_vm0, %v410_v22, 0.0 }
  0x6d   :  { %756 = vadd.xlane.f32.xlu1 %v755_v35  ;;  %753 = vadd.xlane.f32.xlu0 %v752_v36  ;;  %v3630_v35 = vsub.s32 %v1621_v24, %v1623_v25  ;;  %v157_v36 = vld [vmem:[%s5197_s0 + $0x4a] sm:$0x1] }
  0x71   :  { %762 = vadd.xlane.f32.xlu1 %v761_v41  ;;  %759 = vadd.xlane.f32.xlu0 %v758_v42  ;;  %v812_v41 = vsel %vm595_vm0, %v411_v33, 0.0  ;;  %v413_v42 = vunpack.c.l.bf16 %v157_v36 }
  0x75   :  { %768 = vadd.xlane.f32.xlu1 %v767_v47  ;;  %765 = vadd.xlane.f32.xlu0 %v764_v48  ;;  %v159_v47 = vld [vmem:[%s5197_s0 + $0x4c] sm:$0x1] }
  0x76   :  { %v415_v56 = vunpack.c.l.bf16 %v159_v47 }
  0x79   :  { %774 = vadd.xlane.f32.xlu1 %v773_v53  ;;  %771 = vadd.xlane.f32.xlu0 %v770_v54  ;;  %v818_v54 = vsel %vm595_vm0, %v413_v42, 0.0  ;;  %v423_v42 = vunpack.c.l.bf16 %v167_v32 }
  0x7d   :  { %780 = vadd.xlane.f32.xlu1 %v779_v59  ;;  %777 = vadd.xlane.f32.xlu0 %v776_v60  ;;  %v162_v59 = vld [vmem:[%s5197_s0 + $0x4f] sm:$0x1]  ;;  %v161_v60 = vld [vmem:[%s5197_s0 + $0x4e] sm:$0x1] }
  0x7e   :  { %v418_v3 = vunpack.c.l.bf16 %v162_v59  ;;  %v417_v4 = vunpack.c.l.bf16 %v161_v60  ;;  %v52_v59 = vld [vmem:[#allocation2 + $0x8] sm:$0xff] }
  0x80   :  { %v833_v16 = vsel %vm595_vm0, %v418_v3, 0.0  ;;  %v830_v17 = vsel %vm595_vm0, %v417_v4, 0.0 }
  0x81   :  { %786 = vadd.xlane.f32.xlu1 %v785_v1  ;;  %783 = vadd.xlane.f32.xlu0 %v782_v2  ;;  %v827_v1 = vsel %vm595_vm0, %v416_v55, 0.0  ;;  %v824_v2 = vsel %vm595_vm0, %v415_v56, 0.0 }
  0x85   :  { %792 = vadd.xlane.f32.xlu1 %v791_v7  ;;  %789 = vadd.xlane.f32.xlu0 %v788_v8  ;;  %v163_v8 = vld [vmem:[%s5197_s0 + $0x50] sm:$0x1] }
  0x86   :  { %v419_v18 = vunpack.c.l.bf16 %v163_v8 }
  0x88   :  { %v836_v27 = vsel %vm595_vm0, %v419_v18, 0.0  ;;  %v175_v18 = vld [vmem:[%s5197_s0 + $0x5c] sm:$0x1] }
  0x89   :  { %798 = vadd.xlane.f32.xlu1 %v797_v13  ;;  %795 = vadd.xlane.f32.xlu0 %v794_v14 }
  0x8d   :  { %804 = vadd.xlane.f32.xlu1 %v803_v20  ;;  %801 = vadd.xlane.f32.xlu0 %v800_v21  ;;  %v166_v20 = vld [vmem:[%s5197_s0 + $0x53] sm:$0x1]  ;;  %v165_v21 = vld [vmem:[%s5197_s0 + $0x52] sm:$0x1] }
  0x8e   :  { %v604_v28 = vpop.xlane.xlu1 %603  ;;  %v598_v29 = vpop.xlane.xlu0 %597 }
  0x8f   :  { %v1625_v43 = vrot.slane %v598_v29, %v3630_v35  ;;  %v1633_v48 = vrot.slane %v604_v28, %v3630_v35  ;;  %v422_v28 = vunpack.c.l.bf16 %v166_v20  ;;  %v421_v29 = vunpack.c.l.bf16 %v165_v21 }
  0x91   :  { %810 = vadd.xlane.f32.xlu1 %v809_v30  ;;  %807 = vadd.xlane.f32.xlu0 %v806_v31  ;;  %v168_v31 = vld [vmem:[%s5197_s0 + $0x55] sm:$0x1] }
  0x92   :  { %v607_v38 = vpop.xlane.xlu1 %606  ;;  %v601_v39 = vpop.xlane.xlu0 %600 }
  0x93   :  { %v1637_v44 = vrot.slane %v607_v38, %v3630_v35  ;;  %v1629_v45 = vrot.slane %v601_v39, %v3630_v35  ;;  %v845_v39 = vsel %vm595_vm0, %v422_v28, 0.0  ;;  %v178_v28 = vld [vmem:[%s5197_s0 + $0x5f] sm:$0x1] }
  0x95   :  { %v2647_v49 = vsel %vm2646_vm2, %v1629_v45, %v1625_v43  ;;  %816 = vadd.xlane.f32.xlu1 %v815_v40  ;;  %813 = vadd.xlane.f32.xlu0 %v812_v41  ;;  %v842_v40 = vsel %vm595_vm0, %v421_v29, 0.0  ;;  %v424_v41 = vunpack.c.l.bf16 %v168_v31  ;;  %v170_v43 = vld [vmem:[%s5197_s0 + $0x57] sm:$0x1]  ;;  %v169_v45 = vld [vmem:[%s5197_s0 + $0x56] sm:$0x1] }
  0x96   :  { %v2649_v51 = vsel %vm2648_vm3, %v1633_v48, %v2647_v49  ;;  %v613_v52 = vpop.xlane.xlu1 %612  ;;  %v610_v53 = vpop.xlane.xlu0 %609  ;;  %v426_v49 = vunpack.c.l.bf16 %v170_v43  ;;  %v180_v43 = vld [vmem:[%s5197_s0 + $0x61] sm:$0x1] }
  0x97   :  { %v2651_v57 = vsel %vm2650_vm4, %v1637_v44, %v2649_v51  ;;  %v1641_v58 = vrot.slane %v610_v53, %v3630_v35  ;;  %v1645_v61 = vrot.slane %v613_v52, %v3630_v35  ;;  %v851_v52 = vsel %vm595_vm0, %v424_v41, 0.0 }
  0x98   :  { %v848_v53 = vsel %vm595_vm0, %v423_v42, 0.0 }
  0x99   :  { %v2653_v62 = vsel %vm2652_vm5, %v1641_v58, %v2651_v57  ;;  %822 = vadd.xlane.f32.xlu1 %v821_v50  ;;  %819 = vadd.xlane.f32.xlu0 %v818_v54  ;;  %v425_v54 = vunpack.c.l.bf16 %v169_v45  ;;  %v172_v57 = vld [vmem:[%s5197_s0 + $0x59] sm:$0x1]  ;;  %v171_v58 = vld [vmem:[%s5197_s0 + $0x58] sm:$0x1] }
  0x9a   :  { %v619_v63 = vpop.xlane.xlu1 %618  ;;  %v616_v0 = vpop.xlane.xlu0 %615  ;;  %v2655_v10 = vsel %vm2654_vm6, %v1645_v61, %v2653_v62  ;;  %v857_v62 = vsel %vm595_vm0, %v426_v49, 0.0  ;;  %v428_v3 = vunpack.c.l.bf16 %v172_v57  ;;  %v427_v4 = vunpack.c.l.bf16 %v171_v58  ;;  %v53_v45 = vld [vmem:[#allocation2 + $0x10] sm:$0xff]  ;;  %v181_v57 = vld [vmem:[%s5197_s0 + $0x62] sm:$0x1] }
  0x9b   :  { %v1653_v6 = vrot.slane %v619_v63, %v3630_v35  ;;  %v1649_v7 = vrot.slane %v616_v0, %v3630_v35 }
  0x9c   :  { %v863_v12 = vsel %vm595_vm0, %v428_v3, 0.0  ;;  %v184_v3 = vld [vmem:[%s5197_s0 + $0x65] sm:$0x1] }
  0x9d   :  { %v2657_v11 = vsel %vm2656_vm7, %v1649_v7, %v2655_v10  ;;  %828 = vadd.xlane.f32.xlu1 %v827_v1  ;;  %825 = vadd.xlane.f32.xlu0 %v824_v2  ;;  %v854_v2 = vsel %vm595_vm0, %v425_v54, 0.0  ;;  %v173_v7 = vld [vmem:[%s5197_s0 + $0x5a] sm:$0x1] }
  0x9e   :  { %v2659_v13 = vsel %vm2658_vm8, %v1653_v6, %v2657_v11  ;;  %v625_v14 = vpop.xlane.xlu1 %624  ;;  %v622_v15 = vpop.xlane.xlu0 %621  ;;  %v174_v6 = vld [vmem:[%s5197_s0 + $0x5b] sm:$0x1] }
  0x9f   :  { %v2909_v19 = vadd.f32 %v2659_v13, %v51_v9  ;;  %v1661_v22 = vrot.slane %v625_v14, %v3630_v35  ;;  %v1657_v23 = vrot.slane %v622_v15, %v3630_v35  ;;  %v860_v13 = vsel %vm595_vm0, %v427_v4, 0.0  ;;  %v183_v4 = vld [vmem:[%s5197_s0 + $0x64] sm:$0x1] }
  0xa0   :  { %v430_v14 = vunpack.c.l.bf16 %v174_v6  ;;  %v429_v15 = vunpack.c.l.bf16 %v173_v7 }
  0xa1   :  { %2942 = vst.msk [vmem:[#allocation2] sm:$0xff] %vm18_vm1, %v2909_v19  ;;  %834 = vadd.xlane.f32.xlu1 %v833_v16  ;;  %831 = vadd.xlane.f32.xlu0 %v830_v17  ;;  %v2660_v33 = vsel %vm2646_vm2, %v1661_v22, %v1657_v23  ;;  %v176_v17 = vld [vmem:[%s5197_s0 + $0x5d] sm:$0x1] }
  0xa2   :  { %v631_v24 = vpop.xlane.xlu1 %630  ;;  %v628_v25 = vpop.xlane.xlu0 %627 }
  0xa3   :  { %v1665_v30 = vrot.slane %v628_v25, %v3630_v35  ;;  %v1669_v34 = vrot.slane %v631_v24, %v3630_v35  ;;  %v869_v24 = vsel %vm595_vm0, %v430_v14, 0.0  ;;  %v866_v25 = vsel %vm595_vm0, %v429_v15, 0.0  ;;  %v186_v14 = vld [vmem:[%s5197_s0 + $0x67] sm:$0x1] }
  0xa5   :  { %v2661_v36 = vsel %vm2648_vm3, %v1665_v30, %v2660_v33  ;;  %840 = vadd.xlane.f32.xlu1 %v839_v26  ;;  %837 = vadd.xlane.f32.xlu0 %v836_v27  ;;  %v432_v26 = vunpack.c.l.bf16 %v176_v17  ;;  %v431_v27 = vunpack.c.l.bf16 %v175_v18  ;;  %v177_v30 = vld [vmem:[%s5197_s0 + $0x5e] sm:$0x1] }
  0xa6   :  { %v637_v37 = vpop.xlane.xlu1 %636  ;;  %v634_v38 = vpop.xlane.xlu0 %633  ;;  %v2662_v47 = vsel %vm2650_vm4, %v1669_v34, %v2661_v36  ;;  %v434_v34 = vunpack.c.l.bf16 %v178_v28  ;;  %v188_v28 = vld [vmem:[%s5197_s0 + $0x69] sm:$0x1] }
  0xa7   :  { %v1673_v44 = vrot.slane %v634_v38, %v3630_v35  ;;  %v1677_v46 = vrot.slane %v637_v37, %v3630_v35  ;;  %v875_v38 = vsel %vm595_vm0, %v432_v26, 0.0 }
  0xa9   :  { %v2663_v48 = vsel %vm2652_vm5, %v1673_v44, %v2662_v47  ;;  %846 = vadd.xlane.f32.xlu1 %v845_v39  ;;  %843 = vadd.xlane.f32.xlu0 %v842_v40  ;;  %v872_v39 = vsel %vm595_vm0, %v431_v27, 0.0  ;;  %v433_v40 = vunpack.c.l.bf16 %v177_v30  ;;  %v179_v44 = vld [vmem:[%s5197_s0 + $0x60] sm:$0x1] }
  0xaa   :  { %v643_v50 = vpop.xlane.xlu1 %642  ;;  %v640_v51 = vpop.xlane.xlu0 %639  ;;  %v2664_v60 = vsel %vm2654_vm6, %v1677_v46, %v2663_v48  ;;  %v881_v48 = vsel %vm595_vm0, %v434_v34, 0.0  ;;  %v435_v54 = vunpack.c.l.bf16 %v179_v44  ;;  %v54_v30 = vld [vmem:[#allocation2 + $0x18] sm:$0xff] }
  0xab   :  { %v1685_v55 = vrot.slane %v643_v50, %v3630_v35  ;;  %v1681_v56 = vrot.slane %v640_v51, %v3630_v35 }
  0xad   :  { %v2665_v61 = vsel %vm2656_vm7, %v1681_v56, %v2664_v60  ;;  %852 = vadd.xlane.f32.xlu1 %v851_v52  ;;  %849 = vadd.xlane.f32.xlu0 %v848_v53  ;;  %v878_v52 = vsel %vm595_vm0, %v433_v40, 0.0  ;;  %v436_v53 = vunpack.c.l.bf16 %v180_v43  ;;  %v182_v56 = vld [vmem:[%s5197_s0 + $0x63] sm:$0x1]  ;;  %v189_v43 = vld [vmem:[%s5197_s0 + $0x6a] sm:$0x1] }
  0xae   :  { %v2666_v63 = vsel %vm2658_vm8, %v1685_v55, %v2665_v61  ;;  %v649_v0 = vpop.xlane.xlu1 %648  ;;  %v646_v1 = vpop.xlane.xlu0 %645 }
  0xaf   :  { %v2910_v5 = vadd.f32 %v2666_v63, %v52_v59  ;;  %v1693_v8 = vrot.slane %v649_v0, %v3630_v35  ;;  %v1689_v9 = vrot.slane %v646_v1, %v3630_v35  ;;  %v884_v63 = vsel %vm595_vm0, %v435_v54, 0.0  ;;  %v331_v54 = vld [vmem:[%s5197_s0 + $0xf8] sm:$0x1] }
  0xb0   :  { %v438_v0 = vunpack.c.l.bf16 %v182_v56  ;;  %v437_v1 = vunpack.c.l.bf16 %v181_v57 }
  0xb1   :  { %2943 = vst.msk [vmem:[#allocation2 + $0x8] sm:$0xff] %vm18_vm1, %v2910_v5  ;;  %858 = vadd.xlane.f32.xlu1 %v857_v62  ;;  %855 = vadd.xlane.f32.xlu0 %v854_v2  ;;  %v2667_v19 = vsel %vm2646_vm2, %v1693_v8, %v1689_v9  ;;  %v887_v62 = vsel %vm595_vm0, %v436_v53, 0.0  ;;  %v332_v53 = vld [vmem:[%s5197_s0 + $0xf9] sm:$0x1] }
  0xb2   :  { %v655_v10 = vpop.xlane.xlu1 %654  ;;  %v652_v11 = vpop.xlane.xlu0 %651 }
  0xb3   :  { %v1697_v16 = vrot.slane %v652_v11, %v3630_v35  ;;  %v1701_v20 = vrot.slane %v655_v10, %v3630_v35  ;;  %v893_v10 = vsel %vm595_vm0, %v438_v0, 0.0  ;;  %v890_v11 = vsel %vm595_vm0, %v437_v1, 0.0  ;;  %v204_v0 = vld [vmem:[%s5197_s0 + $0x79] sm:$0x1] }
  0xb5   :  { %v2668_v21 = vsel %vm2648_vm3, %v1697_v16, %v2667_v19  ;;  %864 = vadd.xlane.f32.xlu1 %v863_v12  ;;  %861 = vadd.xlane.f32.xlu0 %v860_v13  ;;  %v440_v12 = vunpack.c.l.bf16 %v184_v3  ;;  %v439_v13 = vunpack.c.l.bf16 %v183_v4  ;;  %v185_v16 = vld [vmem:[%s5197_s0 + $0x66] sm:$0x1] }
  0xb6   :  { %v661_v22 = vpop.xlane.xlu1 %660  ;;  %v658_v23 = vpop.xlane.xlu0 %657  ;;  %v2669_v32 = vsel %vm2650_vm4, %v1701_v20, %v2668_v21  ;;  %v442_v20 = vunpack.c.l.bf16 %v186_v14  ;;  %v205_v14 = vld [vmem:[%s5197_s0 + $0x7a] sm:$0x1] }
  0xb7   :  { %v1705_v29 = vrot.slane %v658_v23, %v3630_v35  ;;  %v1709_v31 = vrot.slane %v661_v22, %v3630_v35  ;;  %v899_v23 = vsel %vm595_vm0, %v440_v12, 0.0 }
  0xb9   :  { %v2670_v33 = vsel %vm2652_vm5, %v1705_v29, %v2669_v32  ;;  %870 = vadd.xlane.f32.xlu1 %v869_v24  ;;  %867 = vadd.xlane.f32.xlu0 %v866_v25  ;;  %v896_v24 = vsel %vm595_vm0, %v439_v13, 0.0  ;;  %v441_v25 = vunpack.c.l.bf16 %v185_v16  ;;  %v187_v29 = vld [vmem:[%s5197_s0 + $0x68] sm:$0x1] }
  0xba   :  { %v667_v36 = vpop.xlane.xlu1 %666  ;;  %v664_v37 = vpop.xlane.xlu0 %663  ;;  %v2671_v46 = vsel %vm2654_vm6, %v1709_v31, %v2670_v33  ;;  %v905_v33 = vsel %vm595_vm0, %v442_v20, 0.0  ;;  %v443_v40 = vunpack.c.l.bf16 %v187_v29  ;;  %v55_v16 = vld [vmem:[#allocation2 + $0x20] sm:$0xff] }
  0xbb   :  { %v1717_v41 = vrot.slane %v667_v36, %v3630_v35  ;;  %v1713_v42 = vrot.slane %v664_v37, %v3630_v35 }
  0xbd   :  { %v2672_v47 = vsel %vm2656_vm7, %v1713_v42, %v2671_v46  ;;  %876 = vadd.xlane.f32.xlu1 %v875_v38  ;;  %873 = vadd.xlane.f32.xlu0 %v872_v39  ;;  %v902_v38 = vsel %vm595_vm0, %v441_v25, 0.0  ;;  %v444_v39 = vunpack.c.l.bf16 %v188_v28  ;;  %v190_v42 = vld [vmem:[%s5197_s0 + $0x6b] sm:$0x1]  ;;  %v323_v28 = vld [vmem:[%s5197_s0 + $0xf0] sm:$0x1] }
  0xbe   :  { %v2673_v49 = vsel %vm2658_vm8, %v1717_v41, %v2672_v47  ;;  %v673_v50 = vpop.xlane.xlu1 %672  ;;  %v670_v51 = vpop.xlane.xlu0 %669 }
  0xbf   :  { %v2911_v55 = vadd.f32 %v2673_v49, %v53_v45  ;;  %v1725_v58 = vrot.slane %v673_v50, %v3630_v35  ;;  %v1721_v59 = vrot.slane %v670_v51, %v3630_v35  ;;  %v908_v49 = vsel %vm595_vm0, %v443_v40, 0.0  ;;  %v334_v40 = vld [vmem:[%s5197_s0 + $0xfb] sm:$0x1] }
  0xc0   :  { %v446_v50 = vunpack.c.l.bf16 %v190_v42  ;;  %v445_v51 = vunpack.c.l.bf16 %v189_v43 }
  0xc1   :  { %2944 = vst.msk [vmem:[#allocation2 + $0x10] sm:$0xff] %vm18_vm1, %v2911_v55  ;;  %882 = vadd.xlane.f32.xlu1 %v881_v48  ;;  %879 = vadd.xlane.f32.xlu0 %v878_v52  ;;  %v2674_v5 = vsel %vm2646_vm2, %v1725_v58, %v1721_v59  ;;  %v911_v48 = vsel %vm595_vm0, %v444_v39, 0.0  ;;  %v195_v39 = vld [vmem:[%s5197_s0 + $0x70] sm:$0x1] }
  0xc2   :  { %v679_v60 = vpop.xlane.xlu1 %678  ;;  %v676_v61 = vpop.xlane.xlu0 %675 }
  0xc3   :  { %v1729_v2 = vrot.slane %v676_v61, %v3630_v35  ;;  %v1733_v6 = vrot.slane %v679_v60, %v3630_v35  ;;  %v917_v60 = vsel %vm595_vm0, %v446_v50, 0.0  ;;  %v914_v61 = vsel %vm595_vm0, %v445_v51, 0.0  ;;  %v206_v50 = vld [vmem:[%s5197_s0 + $0x7b] sm:$0x1] }
  0xc5   :  { %v2675_v7 = vsel %vm2648_vm3, %v1729_v2, %v2674_v5  ;;  %888 = vadd.xlane.f32.xlu1 %v887_v62  ;;  %885 = vadd.xlane.f32.xlu0 %v884_v63  ;;  %v588_v62 = vunpack.c.l.bf16 %v332_v53  ;;  %v587_v63 = vunpack.c.l.bf16 %v331_v54  ;;  %v203_v2 = vld [vmem:[%s5197_s0 + $0x78] sm:$0x1] }
  0xc6   :  { %v685_v8 = vpop.xlane.xlu1 %684  ;;  %v682_v9 = vpop.xlane.xlu0 %681  ;;  %v2676_v18 = vsel %vm2650_vm4, %v1733_v6, %v2675_v7  ;;  %v460_v6 = vunpack.c.l.bf16 %v204_v0  ;;  %v335_v0 = vld [vmem:[%s5197_s0 + $0xfc] sm:$0x1] }
  0xc7   :  { %v1737_v15 = vrot.slane %v682_v9, %v3630_v35  ;;  %v1741_v17 = vrot.slane %v685_v8, %v3630_v35  ;;  %v1343_v9 = vsel %vm595_vm0, %v588_v62, 0.0 }
  0xc9   :  { %v2677_v19 = vsel %vm2652_vm5, %v1737_v15, %v2676_v18  ;;  %894 = vadd.xlane.f32.xlu1 %v893_v10  ;;  %891 = vadd.xlane.f32.xlu0 %v890_v11  ;;  %v1340_v10 = vsel %vm595_vm0, %v587_v63, 0.0  ;;  %v459_v11 = vunpack.c.l.bf16 %v203_v2  ;;  %v333_v15 = vld [vmem:[%s5197_s0 + $0xfa] sm:$0x1]  ;;  %v56_v2 = vld [vmem:[#allocation2 + $0x28] sm:$0xff] }
  0xca   :  { %v691_v21 = vpop.xlane.xlu1 %690  ;;  %v688_v22 = vpop.xlane.xlu0 %687  ;;  %v2678_v31 = vsel %vm2654_vm6, %v1741_v17, %v2677_v19  ;;  %v959_v19 = vsel %vm595_vm0, %v460_v6, 0.0  ;;  %v589_v25 = vunpack.c.l.bf16 %v333_v15 }
  0xcb   :  { %v1749_v26 = vrot.slane %v691_v21, %v3630_v35  ;;  %v1745_v27 = vrot.slane %v688_v22, %v3630_v35 }
  0xcd   :  { %v2679_v32 = vsel %vm2656_vm7, %v1745_v27, %v2678_v31  ;;  %900 = vadd.xlane.f32.xlu1 %v899_v23  ;;  %897 = vadd.xlane.f32.xlu0 %v896_v24  ;;  %v956_v23 = vsel %vm595_vm0, %v459_v11, 0.0  ;;  %v461_v24 = vunpack.c.l.bf16 %v205_v14  ;;  %v324_v27 = vld [vmem:[%s5197_s0 + $0xf1] sm:$0x1]  ;;  %v197_v14 = vld [vmem:[%s5197_s0 + $0x72] sm:$0x1] }
  0xce   :  { %v2680_v34 = vsel %vm2658_vm8, %v1749_v26, %v2679_v32  ;;  %v697_v36 = vpop.xlane.xlu1 %696  ;;  %v694_v37 = vpop.xlane.xlu0 %693 }
  0xcf   :  { %v2912_v41 = vadd.f32 %v2680_v34, %v54_v30  ;;  %v1757_v44 = vrot.slane %v697_v36, %v3630_v35  ;;  %v1753_v45 = vrot.slane %v694_v37, %v3630_v35  ;;  %v1346_v34 = vsel %vm595_vm0, %v589_v25, 0.0  ;;  %v315_v25 = vld [vmem:[%s5197_s0 + $0xe8] sm:$0x1] }
  0xd0   :  { %v580_v36 = vunpack.c.l.bf16 %v324_v27  ;;  %v579_v37 = vunpack.c.l.bf16 %v323_v28 }
  0xd1   :  { %2945 = vst.msk [vmem:[#allocation2 + $0x18] sm:$0xff] %vm18_vm1, %v2912_v41  ;;  %906 = vadd.xlane.f32.xlu1 %v905_v33  ;;  %903 = vadd.xlane.f32.xlu0 %v902_v38  ;;  %v2681_v55 = vsel %vm2646_vm2, %v1757_v44, %v1753_v45  ;;  %v962_v33 = vsel %vm595_vm0, %v461_v24, 0.0  ;;  %v316_v24 = vld [vmem:[%s5197_s0 + $0xe9] sm:$0x1] }
  0xd2   :  { %v703_v46 = vpop.xlane.xlu1 %702  ;;  %v700_v47 = vpop.xlane.xlu0 %699 }
  0xd3   :  { %v1761_v52 = vrot.slane %v700_v47, %v3630_v35  ;;  %v1765_v56 = vrot.slane %v703_v46, %v3630_v35  ;;  %v1319_v46 = vsel %vm595_vm0, %v580_v36, 0.0  ;;  %v1316_v47 = vsel %vm595_vm0, %v579_v37, 0.0  ;;  %v336_v36 = vld [vmem:[%s5197_s0 + $0xfd] sm:$0x1] }
  0xd5   :  { %v2682_v57 = vsel %vm2648_vm3, %v1761_v52, %v2681_v55  ;;  %912 = vadd.xlane.f32.xlu1 %v911_v48  ;;  %909 = vadd.xlane.f32.xlu0 %v908_v49  ;;  %v451_v48 = vunpack.c.l.bf16 %v195_v39  ;;  %v590_v49 = vunpack.c.l.bf16 %v334_v40  ;;  %v196_v52 = vld [vmem:[%s5197_s0 + $0x71] sm:$0x1] }
  0xd6   :  { %v709_v58 = vpop.xlane.xlu1 %708  ;;  %v706_v59 = vpop.xlane.xlu0 %705  ;;  %v2683_v4 = vsel %vm2650_vm4, %v1765_v56, %v2682_v57  ;;  %v462_v56 = vunpack.c.l.bf16 %v206_v50  ;;  %v208_v50 = vld [vmem:[%s5197_s0 + $0x7d] sm:$0x1] }
  0xd7   :  { %v1769_v1 = vrot.slane %v706_v59, %v3630_v35  ;;  %v1773_v3 = vrot.slane %v709_v58, %v3630_v35  ;;  %v932_v59 = vsel %vm595_vm0, %v451_v48, 0.0 }
  0xd9   :  { %v2684_v5 = vsel %vm2652_vm5, %v1769_v1, %v2683_v4  ;;  %918 = vadd.xlane.f32.xlu1 %v917_v60  ;;  %915 = vadd.xlane.f32.xlu0 %v914_v61  ;;  %v1349_v60 = vsel %vm595_vm0, %v590_v49, 0.0  ;;  %v452_v61 = vunpack.c.l.bf16 %v196_v52  ;;  %v325_v1 = vld [vmem:[%s5197_s0 + $0xf2] sm:$0x1]  ;;  %v57_v52 = vld [vmem:[#allocation2 + $0x30] sm:$0xff] }
  0xda   :  { %v715_v7 = vpop.xlane.xlu1 %714  ;;  %v712_v8 = vpop.xlane.xlu0 %711  ;;  %v2685_v17 = vsel %vm2654_vm6, %v1773_v3, %v2684_v5  ;;  %v965_v5 = vsel %vm595_vm0, %v462_v56, 0.0  ;;  %v581_v11 = vunpack.c.l.bf16 %v325_v1 }
  0xdb   :  { %v1781_v12 = vrot.slane %v715_v7, %v3630_v35  ;;  %v1777_v13 = vrot.slane %v712_v8, %v3630_v35 }
  0xdd   :  { %v2686_v18 = vsel %vm2656_vm7, %v1777_v13, %v2685_v17  ;;  %1344 = vadd.xlane.f32.xlu1 %v1343_v9  ;;  %1341 = vadd.xlane.f32.xlu0 %v1340_v10  ;;  %v935_v9 = vsel %vm595_vm0, %v452_v61, 0.0  ;;  %v591_v10 = vunpack.c.l.bf16 %v335_v0  ;;  %v207_v13 = vld [vmem:[%s5197_s0 + $0x7c] sm:$0x1]  ;;  %v317_v0 = vld [vmem:[%s5197_s0 + $0xea] sm:$0x1] }
  0xde   :  { %v2687_v20 = vsel %vm2658_vm8, %v1781_v12, %v2686_v18  ;;  %v721_v21 = vpop.xlane.xlu1 %720  ;;  %v718_v22 = vpop.xlane.xlu0 %717 }
  0xdf   :  { %v2913_v26 = vadd.f32 %v2687_v20, %v55_v16  ;;  %v1789_v29 = vrot.slane %v721_v21, %v3630_v35  ;;  %v1785_v30 = vrot.slane %v718_v22, %v3630_v35  ;;  %v1322_v20 = vsel %vm595_vm0, %v581_v11, 0.0  ;;  %v337_v11 = vld [vmem:[%s5197_s0 + $0xfe] sm:$0x1] }
  0xe0   :  { %v463_v21 = vunpack.c.l.bf16 %v207_v13  ;;  %v453_v22 = vunpack.c.l.bf16 %v197_v14 }
  0xe1   :  { %2946 = vst.msk [vmem:[#allocation2 + $0x20] sm:$0xff] %vm18_vm1, %v2913_v26  ;;  %960 = vadd.xlane.f32.xlu1 %v959_v19  ;;  %957 = vadd.xlane.f32.xlu0 %v956_v23  ;;  %v2688_v41 = vsel %vm2646_vm2, %v1789_v29, %v1785_v30  ;;  %v1352_v19 = vsel %vm595_vm0, %v591_v10, 0.0  ;;  %v199_v10 = vld [vmem:[%s5197_s0 + $0x74] sm:$0x1] }
  0xe2   :  { %v727_v31 = vpop.xlane.xlu1 %726  ;;  %v724_v32 = vpop.xlane.xlu0 %723 }
  0xe3   :  { %v1793_v38 = vrot.slane %v724_v32, %v3630_v35  ;;  %v1797_v42 = vrot.slane %v727_v31, %v3630_v35  ;;  %v968_v31 = vsel %vm595_vm0, %v463_v21, 0.0  ;;  %v938_v32 = vsel %vm595_vm0, %v453_v22, 0.0  ;;  %v307_v21 = vld [vmem:[%s5197_s0 + $0xe0] sm:$0x1] }
  0xe5   :  { %v2689_v43 = vsel %vm2648_vm3, %v1793_v38, %v2688_v41  ;;  %963 = vadd.xlane.f32.xlu1 %v962_v33  ;;  %1347 = vadd.xlane.f32.xlu0 %v1346_v34  ;;  %v572_v33 = vunpack.c.l.bf16 %v316_v24  ;;  %v571_v34 = vunpack.c.l.bf16 %v315_v25  ;;  %v326_v38 = vld [vmem:[%s5197_s0 + $0xf3] sm:$0x1] }
  0xe6   :  { %v733_v44 = vpop.xlane.xlu1 %732  ;;  %v730_v45 = vpop.xlane.xlu0 %729  ;;  %v2690_v54 = vsel %vm2650_vm4, %v1797_v42, %v2689_v43  ;;  %v592_v42 = vunpack.c.l.bf16 %v336_v36  ;;  %v318_v36 = vld [vmem:[%s5197_s0 + $0xeb] sm:$0x1] }
  0xe7   :  { %v1801_v51 = vrot.slane %v730_v45, %v3630_v35  ;;  %v1805_v53 = vrot.slane %v733_v44, %v3630_v35  ;;  %v1295_v45 = vsel %vm595_vm0, %v572_v33, 0.0 }
  0xe9   :  { %v2691_v55 = vsel %vm2652_vm5, %v1801_v51, %v2690_v54  ;;  %1320 = vadd.xlane.f32.xlu1 %v1319_v46  ;;  %1317 = vadd.xlane.f32.xlu0 %v1316_v47  ;;  %v1292_v46 = vsel %vm595_vm0, %v571_v34, 0.0  ;;  %v582_v47 = vunpack.c.l.bf16 %v326_v38  ;;  %v198_v51 = vld [vmem:[%s5197_s0 + $0x73] sm:$0x1]  ;;  %v58_v38 = vld [vmem:[#allocation2 + $0x38] sm:$0xff] }
  0xea   :  { %v739_v57 = vpop.xlane.xlu1 %738  ;;  %v736_v58 = vpop.xlane.xlu0 %735  ;;  %v2692_v3 = vsel %vm2654_vm6, %v1805_v53, %v2691_v55  ;;  %v1355_v55 = vsel %vm595_vm0, %v592_v42, 0.0  ;;  %v454_v61 = vunpack.c.l.bf16 %v198_v51 }
  0xeb   :  { %v1813_v62 = vrot.slane %v739_v57, %v3630_v35  ;;  %v1809_v63 = vrot.slane %v736_v58, %v3630_v35 }
  0xed   :  { %v2693_v4 = vsel %vm2656_vm7, %v1809_v63, %v2692_v3  ;;  %933 = vadd.xlane.f32.xlu1 %v932_v59  ;;  %1350 = vadd.xlane.f32.xlu0 %v1349_v60  ;;  %v1325_v59 = vsel %vm595_vm0, %v582_v47, 0.0  ;;  %v464_v60 = vunpack.c.l.bf16 %v208_v50  ;;  %v327_v63 = vld [vmem:[%s5197_s0 + $0xf4] sm:$0x1]  ;;  %v328_v50 = vld [vmem:[%s5197_s0 + $0xf5] sm:$0x1] }
  0xee   :  { %v2694_v6 = vsel %vm2658_vm8, %v1813_v62, %v2693_v4  ;;  %v745_v7 = vpop.xlane.xlu1 %744  ;;  %v742_v8 = vpop.xlane.xlu0 %741 }
  0xef   :  { %v2914_v12 = vadd.f32 %v2694_v6, %v56_v2  ;;  %v1821_v15 = vrot.slane %v745_v7, %v3630_v35  ;;  %v1817_v16 = vrot.slane %v742_v8, %v3630_v35  ;;  %v941_v6 = vsel %vm595_vm0, %v454_v61, 0.0  ;;  %v200_v61 = vld [vmem:[%s5197_s0 + $0x75] sm:$0x1] }
  0xf0   :  { %v583_v7 = vunpack.c.l.bf16 %v327_v63  ;;  %v573_v8 = vunpack.c.l.bf16 %v317_v0 }
  0xf1   :  { %2947 = vst.msk [vmem:[#allocation2 + $0x28] sm:$0xff] %vm18_vm1, %v2914_v12  ;;  %966 = vadd.xlane.f32.xlu1 %v965_v5  ;;  %936 = vadd.xlane.f32.xlu0 %v935_v9  ;;  %v2695_v26 = vsel %vm2646_vm2, %v1821_v15, %v1817_v16  ;;  %v971_v5 = vsel %vm595_vm0, %v464_v60, 0.0  ;;  %v210_v60 = vld [vmem:[%s5197_s0 + $0x7f] sm:$0x1] }
  0xf2   :  { %v751_v17 = vpop.xlane.xlu1 %750  ;;  %v748_v18 = vpop.xlane.xlu0 %747 }
  0xf3   :  { %v1825_v23 = vrot.slane %v748_v18, %v3630_v35  ;;  %v1829_v27 = vrot.slane %v751_v17, %v3630_v35  ;;  %v1328_v17 = vsel %vm595_vm0, %v583_v7, 0.0  ;;  %v1298_v18 = vsel %vm595_vm0, %v573_v8, 0.0  ;;  %v319_v7 = vld [vmem:[%s5197_s0 + $0xec] sm:$0x1] }
  0xf5   :  { %v2696_v28 = vsel %vm2648_vm3, %v1825_v23, %v2695_v26  ;;  %1353 = vadd.xlane.f32.xlu1 %v1352_v19  ;;  %1323 = vadd.xlane.f32.xlu0 %v1322_v20  ;;  %v455_v19 = vunpack.c.l.bf16 %v199_v10  ;;  %v593_v20 = vunpack.c.l.bf16 %v337_v11  ;;  %v209_v23 = vld [vmem:[%s5197_s0 + $0x7e] sm:$0x1] }
  0xf6   :  { %v757_v29 = vpop.xlane.xlu1 %756  ;;  %v754_v30 = vpop.xlane.xlu0 %753  ;;  %v2697_v40 = vsel %vm2650_vm4, %v1829_v27, %v2696_v28  ;;  %v563_v27 = vunpack.c.l.bf16 %v307_v21  ;;  %v191_v21 = vld [vmem:[%s5197_s0 + $0x6c] sm:$0x1] }
  0xf7   :  { %v1833_v37 = vrot.slane %v754_v30, %v3630_v35  ;;  %v1837_v39 = vrot.slane %v757_v29, %v3630_v35  ;;  %v944_v30 = vsel %vm595_vm0, %v455_v19, 0.0 }
  0xf9   :  { %v2698_v41 = vsel %vm2652_vm5, %v1833_v37, %v2697_v40  ;;  %969 = vadd.xlane.f32.xlu1 %v968_v31  ;;  %939 = vadd.xlane.f32.xlu0 %v938_v32  ;;  %v1358_v31 = vsel %vm595_vm0, %v593_v20, 0.0  ;;  %v465_v32 = vunpack.c.l.bf16 %v209_v23  ;;  %v308_v37 = vld [vmem:[%s5197_s0 + $0xe1] sm:$0x1]  ;;  %v59_v23 = vld [vmem:[#allocation2 + $0x40] sm:$0xff] }
  0xfa   :  { %v763_v43 = vpop.xlane.xlu1 %762  ;;  %v760_v44 = vpop.xlane.xlu0 %759  ;;  %v2699_v53 = vsel %vm2654_vm6, %v1837_v39, %v2698_v41  ;;  %v1268_v41 = vsel %vm595_vm0, %v563_v27, 0.0  ;;  %v564_v47 = vunpack.c.l.bf16 %v308_v37 }
  0xfb   :  { %v1845_v48 = vrot.slane %v763_v43, %v3630_v35  ;;  %v1841_v49 = vrot.slane %v760_v44, %v3630_v35 }
  0xfd   :  { %v2700_v54 = vsel %vm2656_vm7, %v1841_v49, %v2699_v53  ;;  %1296 = vadd.xlane.f32.xlu1 %v1295_v45  ;;  %1293 = vadd.xlane.f32.xlu0 %v1292_v46  ;;  %v974_v45 = vsel %vm595_vm0, %v465_v32, 0.0  ;;  %v574_v46 = vunpack.c.l.bf16 %v318_v36  ;;  %v338_v49 = vld [vmem:[%s5197_s0 + $0xff] sm:$0x1]  ;;  %v201_v36 = vld [vmem:[%s5197_s0 + $0x76] sm:$0x1] }
  0xfe   :  { %v2701_v56 = vsel %vm2658_vm8, %v1845_v48, %v2700_v54  ;;  %v769_v57 = vpop.xlane.xlu1 %768  ;;  %v766_v58 = vpop.xlane.xlu0 %765 }
  0xff   :  { %v2915_v62 = vadd.f32 %v2701_v56, %v57_v52  ;;  %v1853_v1 = vrot.slane %v769_v57, %v3630_v35  ;;  %v1849_v2 = vrot.slane %v766_v58, %v3630_v35  ;;  %v1271_v56 = vsel %vm595_vm0, %v564_v47, 0.0  ;;  %v300_v47 = vld [vmem:[%s5197_s0 + $0xd9] sm:$0x1] }
 0x100   :  { %v594_v57 = vunpack.c.l.bf16 %v338_v49  ;;  %v584_v58 = vunpack.c.l.bf16 %v328_v50 }
 0x101   :  { %2948 = vst.msk [vmem:[#allocation2 + $0x30] sm:$0xff] %vm18_vm1, %v2915_v62  ;;  %1356 = vadd.xlane.f32.xlu1 %v1355_v55  ;;  %1326 = vadd.xlane.f32.xlu0 %v1325_v59  ;;  %v2702_v12 = vsel %vm2646_vm2, %v1853_v1, %v1849_v2  ;;  %v1301_v55 = vsel %vm595_vm0, %v574_v46, 0.0  ;;  %v310_v46 = vld [vmem:[%s5197_s0 + $0xe3] sm:$0x1] }
 0x102   :  { %v775_v3 = vpop.xlane.xlu1 %774  ;;  %v772_v4 = vpop.xlane.xlu0 %771 }
 0x103   :  { %v1857_v9 = vrot.slane %v772_v4, %v3630_v35  ;;  %v1861_v13 = vrot.slane %v775_v3, %v3630_v35  ;;  %v1361_v3 = vsel %vm595_vm0, %v594_v57, 0.0  ;;  %v1331_v4 = vsel %vm595_vm0, %v584_v58, 0.0  ;;  %v330_v57 = vld [vmem:[%s5197_s0 + $0xf7] sm:$0x1] }
 0x105   :  { %v2703_v14 = vsel %vm2648_vm3, %v1857_v9, %v2702_v12  ;;  %972 = vadd.xlane.f32.xlu1 %v971_v5  ;;  %942 = vadd.xlane.f32.xlu0 %v941_v6  ;;  %v466_v5 = vunpack.c.l.bf16 %v210_v60  ;;  %v456_v6 = vunpack.c.l.bf16 %v200_v61  ;;  %v309_v9 = vld [vmem:[%s5197_s0 + $0xe2] sm:$0x1] }
 0x106   :  { %v781_v15 = vpop.xlane.xlu1 %780  ;;  %v778_v16 = vpop.xlane.xlu0 %777  ;;  %v2704_v25 = vsel %vm2650_vm4, %v1861_v13, %v2703_v14  ;;  %v575_v13 = vunpack.c.l.bf16 %v319_v7  ;;  %v202_v7 = vld [vmem:[%s5197_s0 + $0x77] sm:$0x1] }
 0x107   :  { %v1865_v22 = vrot.slane %v778_v16, %v3630_v35  ;;  %v1869_v24 = vrot.slane %v781_v15, %v3630_v35  ;;  %v977_v16 = vsel %vm595_vm0, %v466_v5, 0.0 }
 0x109   :  { %v2705_v26 = vsel %vm2652_vm5, %v1865_v22, %v2704_v25  ;;  %1329 = vadd.xlane.f32.xlu1 %v1328_v17  ;;  %1299 = vadd.xlane.f32.xlu0 %v1298_v18  ;;  %v947_v17 = vsel %vm595_vm0, %v456_v6, 0.0  ;;  %v565_v18 = vunpack.c.l.bf16 %v309_v9  ;;  %v329_v22 = vld [vmem:[%s5197_s0 + $0xf6] sm:$0x1] }
 0x10a   :  { %v787_v28 = vpop.xlane.xlu1 %786  ;;  %v784_v29 = vpop.xlane.xlu0 %783  ;;  %v2706_v39 = vsel %vm2654_vm6, %v1869_v24, %v2705_v26  ;;  %v1304_v26 = vsel %vm595_vm0, %v575_v13, 0.0  ;;  %v585_v32 = vunpack.c.l.bf16 %v329_v22  ;;  %v60_v9 = vld [vmem:[#allocation2 + $0x48] sm:$0xff] }
 0x10b   :  { %v1877_v33 = vrot.slane %v787_v28, %v3630_v35  ;;  %v1873_v34 = vrot.slane %v784_v29, %v3630_v35 }
 0x10d   :  { %v2707_v40 = vsel %vm2656_vm7, %v1873_v34, %v2706_v39  ;;  %945 = vadd.xlane.f32.xlu1 %v944_v30  ;;  %1359 = vadd.xlane.f32.xlu0 %v1358_v31  ;;  %v1274_v30 = vsel %vm595_vm0, %v565_v18, 0.0  ;;  %v447_v31 = vunpack.c.l.bf16 %v191_v21  ;;  %v299_v34 = vld [vmem:[%s5197_s0 + $0xd8] sm:$0x1]  ;;  %v301_v21 = vld [vmem:[%s5197_s0 + $0xda] sm:$0x1] }
 0x10e   :  { %v2708_v42 = vsel %vm2658_vm8, %v1877_v33, %v2707_v40  ;;  %v793_v43 = vpop.xlane.xlu1 %792  ;;  %v790_v44 = vpop.xlane.xlu0 %789 }
 0x10f   :  { %v2916_v48 = vadd.f32 %v2708_v42, %v58_v38  ;;  %v1885_v51 = vrot.slane %v793_v43, %v3630_v35  ;;  %v1881_v52 = vrot.slane %v790_v44, %v3630_v35  ;;  %v1334_v42 = vsel %vm595_vm0, %v585_v32, 0.0  ;;  %v321_v32 = vld [vmem:[%s5197_s0 + $0xee] sm:$0x1] }
 0x110   :  { %v555_v43 = vunpack.c.l.bf16 %v299_v34  ;;  %v457_v44 = vunpack.c.l.bf16 %v201_v36 }
 0x111   :  { %2949 = vst.msk [vmem:[#allocation2 + $0x38] sm:$0xff] %vm18_vm1, %v2916_v48  ;;  %1269 = vadd.xlane.f32.xlu1 %v1268_v41  ;;  %975 = vadd.xlane.f32.xlu0 %v974_v45  ;;  %v2709_v62 = vsel %vm2646_vm2, %v1885_v51, %v1881_v52  ;;  %v920_v41 = vsel %vm595_vm0, %v447_v31, 0.0  ;;  %v193_v31 = vld [vmem:[%s5197_s0 + $0x6e] sm:$0x1] }
 0x112   :  { %v799_v53 = vpop.xlane.xlu1 %798  ;;  %v796_v54 = vpop.xlane.xlu0 %795 }
 0x113   :  { %v1889_v59 = vrot.slane %v796_v54, %v3630_v35  ;;  %v1893_v63 = vrot.slane %v799_v53, %v3630_v35  ;;  %v1244_v53 = vsel %vm595_vm0, %v555_v43, 0.0  ;;  %v950_v54 = vsel %vm595_vm0, %v457_v44, 0.0  ;;  %v292_v43 = vld [vmem:[%s5197_s0 + $0xd1] sm:$0x1] }
 0x115   :  { %v2710_v0 = vsel %vm2648_vm3, %v1889_v59, %v2709_v62  ;;  %1302 = vadd.xlane.f32.xlu1 %v1301_v55  ;;  %1272 = vadd.xlane.f32.xlu0 %v1271_v56  ;;  %v566_v55 = vunpack.c.l.bf16 %v310_v46  ;;  %v556_v56 = vunpack.c.l.bf16 %v300_v47  ;;  %v320_v59 = vld [vmem:[%s5197_s0 + $0xed] sm:$0x1] }
 0x116   :  { %v805_v1 = vpop.xlane.xlu1 %804  ;;  %v802_v2 = vpop.xlane.xlu0 %801  ;;  %v2711_v11 = vsel %vm2650_vm4, %v1893_v63, %v2710_v0  ;;  %v586_v63 = vunpack.c.l.bf16 %v330_v57  ;;  %v312_v57 = vld [vmem:[%s5197_s0 + $0xe5] sm:$0x1] }
 0x117   :  { %v1897_v8 = vrot.slane %v802_v2, %v3630_v35  ;;  %v1901_v10 = vrot.slane %v805_v1, %v3630_v35  ;;  %v1277_v2 = vsel %vm595_vm0, %v566_v55, 0.0 }
 0x119   :  { %v2712_v12 = vsel %vm2652_vm5, %v1897_v8, %v2711_v11  ;;  %1362 = vadd.xlane.f32.xlu1 %v1361_v3  ;;  %1332 = vadd.xlane.f32.xlu0 %v1331_v4  ;;  %v1247_v3 = vsel %vm595_vm0, %v556_v56, 0.0  ;;  %v576_v4 = vunpack.c.l.bf16 %v320_v59  ;;  %v192_v8 = vld [vmem:[%s5197_s0 + $0x6d] sm:$0x1]  ;;  %v61_v59 = vld [vmem:[#allocation2 + $0x50] sm:$0xff] }
 0x11a   :  { %v811_v14 = vpop.xlane.xlu1 %810  ;;  %v808_v15 = vpop.xlane.xlu0 %807  ;;  %v2713_v24 = vsel %vm2654_vm6, %v1901_v10, %v2712_v12  ;;  %v1337_v12 = vsel %vm595_vm0, %v586_v63, 0.0  ;;  %v448_v18 = vunpack.c.l.bf16 %v192_v8 }
 0x11b   :  { %v1909_v19 = vrot.slane %v811_v14, %v3630_v35  ;;  %v1905_v20 = vrot.slane %v808_v15, %v3630_v35 }
 0x11d   :  { %v2714_v25 = vsel %vm2656_vm7, %v1905_v20, %v2713_v24  ;;  %978 = vadd.xlane.f32.xlu1 %v977_v16  ;;  %948 = vadd.xlane.f32.xlu0 %v947_v17  ;;  %v1307_v16 = vsel %vm595_vm0, %v576_v4, 0.0  ;;  %v458_v17 = vunpack.c.l.bf16 %v202_v7  ;;  %v311_v20 = vld [vmem:[%s5197_s0 + $0xe4] sm:$0x1]  ;;  %v322_v7 = vld [vmem:[%s5197_s0 + $0xef] sm:$0x1] }
 0x11e   :  { %v2715_v27 = vsel %vm2658_vm8, %v1909_v19, %v2714_v25  ;;  %v817_v28 = vpop.xlane.xlu1 %816  ;;  %v814_v29 = vpop.xlane.xlu0 %813 }
 0x11f   :  { %v2917_v33 = vadd.f32 %v2715_v27, %v59_v23  ;;  %v1917_v37 = vrot.slane %v817_v28, %v3630_v35  ;;  %v1913_v38 = vrot.slane %v814_v29, %v3630_v35  ;;  %v923_v27 = vsel %vm595_vm0, %v448_v18, 0.0  ;;  %v293_v18 = vld [vmem:[%s5197_s0 + $0xd2] sm:$0x1] }
 0x120   :  { %v567_v28 = vunpack.c.l.bf16 %v311_v20  ;;  %v557_v29 = vunpack.c.l.bf16 %v301_v21 }
 0x121   :  { %2950 = vst.msk [vmem:[#allocation2 + $0x40] sm:$0xff] %vm18_vm1, %v2917_v33  ;;  %1305 = vadd.xlane.f32.xlu1 %v1304_v26  ;;  %1275 = vadd.xlane.f32.xlu0 %v1274_v30  ;;  %v2716_v48 = vsel %vm2646_vm2, %v1917_v37, %v1913_v38  ;;  %v953_v26 = vsel %vm595_vm0, %v458_v17, 0.0  ;;  %v303_v17 = vld [vmem:[%s5197_s0 + $0xdc] sm:$0x1] }
 0x122   :  { %v823_v39 = vpop.xlane.xlu1 %822  ;;  %v820_v40 = vpop.xlane.xlu0 %819 }
 0x123   :  { %v1921_v45 = vrot.slane %v820_v40, %v3630_v35  ;;  %v1925_v49 = vrot.slane %v823_v39, %v3630_v35  ;;  %v1280_v39 = vsel %vm595_vm0, %v567_v28, 0.0  ;;  %v1250_v40 = vsel %vm595_vm0, %v557_v29, 0.0  ;;  %v283_v28 = vld [vmem:[%s5197_s0 + $0xc8] sm:$0x1] }
 0x125   :  { %v2717_v50 = vsel %vm2648_vm3, %v1921_v45, %v2716_v48  ;;  %921 = vadd.xlane.f32.xlu1 %v920_v41  ;;  %1335 = vadd.xlane.f32.xlu0 %v1334_v42  ;;  %v449_v41 = vunpack.c.l.bf16 %v193_v31  ;;  %v577_v42 = vunpack.c.l.bf16 %v321_v32  ;;  %v291_v45 = vld [vmem:[%s5197_s0 + $0xd0] sm:$0x1] }
 0x126   :  { %v829_v51 = vpop.xlane.xlu1 %828  ;;  %v826_v52 = vpop.xlane.xlu0 %825  ;;  %v2718_v61 = vsel %vm2650_vm4, %v1925_v49, %v2717_v50  ;;  %v548_v49 = vunpack.c.l.bf16 %v292_v43  ;;  %v294_v43 = vld [vmem:[%s5197_s0 + $0xd3] sm:$0x1] }
 0x127   :  { %v1929_v58 = vrot.slane %v826_v52, %v3630_v35  ;;  %v1933_v60 = vrot.slane %v829_v51, %v3630_v35  ;;  %v926_v52 = vsel %vm595_vm0, %v449_v41, 0.0 }
 0x129   :  { %v2719_v62 = vsel %vm2652_vm5, %v1929_v58, %v2718_v61  ;;  %1245 = vadd.xlane.f32.xlu1 %v1244_v53  ;;  %951 = vadd.xlane.f32.xlu0 %v950_v54  ;;  %v1310_v53 = vsel %vm595_vm0, %v577_v42, 0.0  ;;  %v547_v54 = vunpack.c.l.bf16 %v291_v45  ;;  %v302_v58 = vld [vmem:[%s5197_s0 + $0xdb] sm:$0x1]  ;;  %v62_v45 = vld [vmem:[#allocation2 + $0x58] sm:$0xff] }
 0x12a   :  { %v835_v0 = vpop.xlane.xlu1 %834  ;;  %v832_v1 = vpop.xlane.xlu0 %831  ;;  %v2720_v10 = vsel %vm2654_vm6, %v1933_v60, %v2719_v62  ;;  %v1223_v62 = vsel %vm595_vm0, %v548_v49, 0.0  ;;  %v558_v4 = vunpack.c.l.bf16 %v302_v58 }
 0x12b   :  { %v1941_v5 = vrot.slane %v835_v0, %v3630_v35  ;;  %v1937_v6 = vrot.slane %v832_v1, %v3630_v35 }
 0x12d   :  { %v2721_v11 = vsel %vm2656_vm7, %v1937_v6, %v2720_v10  ;;  %1278 = vadd.xlane.f32.xlu1 %v1277_v2  ;;  %1248 = vadd.xlane.f32.xlu0 %v1247_v3  ;;  %v1220_v2 = vsel %vm595_vm0, %v547_v54, 0.0  ;;  %v568_v3 = vunpack.c.l.bf16 %v312_v57  ;;  %v194_v6 = vld [vmem:[%s5197_s0 + $0x6f] sm:$0x1]  ;;  %v304_v57 = vld [vmem:[%s5197_s0 + $0xdd] sm:$0x1] }
 0x12e   :  { %v2722_v13 = vsel %vm2658_vm8, %v1941_v5, %v2721_v11  ;;  %v841_v14 = vpop.xlane.xlu1 %840  ;;  %v838_v15 = vpop.xlane.xlu0 %837 }
 0x12f   :  { %v2918_v19 = vadd.f32 %v2722_v13, %v60_v9  ;;  %v1949_v22 = vrot.slane %v841_v14, %v3630_v35  ;;  %v1945_v23 = vrot.slane %v838_v15, %v3630_v35  ;;  %v1253_v13 = vsel %vm595_vm0, %v558_v4, 0.0  ;;  %v285_v4 = vld [vmem:[%s5197_s0 + $0xca] sm:$0x1] }
 0x130   :  { %v450_v14 = vunpack.c.l.bf16 %v194_v6  ;;  %v578_v15 = vunpack.c.l.bf16 %v322_v7 }
 0x131   :  { %2951 = vst.msk [vmem:[#allocation2 + $0x48] sm:$0xff] %vm18_vm1, %v2918_v19  ;;  %1338 = vadd.xlane.f32.xlu1 %v1337_v12  ;;  %1308 = vadd.xlane.f32.xlu0 %v1307_v16  ;;  %v2723_v33 = vsel %vm2646_vm2, %v1949_v22, %v1945_v23  ;;  %v1283_v12 = vsel %vm595_vm0, %v568_v3, 0.0  ;;  %v295_v3 = vld [vmem:[%s5197_s0 + $0xd4] sm:$0x1] }
 0x132   :  { %v847_v24 = vpop.xlane.xlu1 %846  ;;  %v844_v25 = vpop.xlane.xlu0 %843 }
 0x133   :  { %v1953_v30 = vrot.slane %v844_v25, %v3630_v35  ;;  %v1957_v34 = vrot.slane %v847_v24, %v3630_v35  ;;  %v929_v24 = vsel %vm595_vm0, %v450_v14, 0.0  ;;  %v1313_v25 = vsel %vm595_vm0, %v578_v15, 0.0  ;;  %v275_v14 = vld [vmem:[%s5197_s0 + $0xc0] sm:$0x1] }
 0x135   :  { %v2724_v36 = vsel %vm2648_vm3, %v1953_v30, %v2723_v33  ;;  %954 = vadd.xlane.f32.xlu1 %v953_v26  ;;  %924 = vadd.xlane.f32.xlu0 %v923_v27  ;;  %v559_v26 = vunpack.c.l.bf16 %v303_v17  ;;  %v549_v27 = vunpack.c.l.bf16 %v293_v18  ;;  %v313_v30 = vld [vmem:[%s5197_s0 + $0xe6] sm:$0x1] }
 0x136   :  { %v853_v37 = vpop.xlane.xlu1 %852  ;;  %v850_v38 = vpop.xlane.xlu0 %849  ;;  %v2725_v47 = vsel %vm2650_vm4, %v1957_v34, %v2724_v36  ;;  %v539_v34 = vunpack.c.l.bf16 %v283_v28  ;;  %v286_v28 = vld [vmem:[%s5197_s0 + $0xcb] sm:$0x1] }
 0x137   :  { %v1961_v44 = vrot.slane %v850_v38, %v3630_v35  ;;  %v1965_v46 = vrot.slane %v853_v37, %v3630_v35  ;;  %v1256_v38 = vsel %vm595_vm0, %v559_v26, 0.0 }
 0x139   :  { %v2726_v48 = vsel %vm2652_vm5, %v1961_v44, %v2725_v47  ;;  %1281 = vadd.xlane.f32.xlu1 %v1280_v39  ;;  %1251 = vadd.xlane.f32.xlu0 %v1250_v40  ;;  %v1226_v39 = vsel %vm595_vm0, %v549_v27, 0.0  ;;  %v569_v40 = vunpack.c.l.bf16 %v313_v30  ;;  %v284_v44 = vld [vmem:[%s5197_s0 + $0xc9] sm:$0x1] }
 0x13a   :  { %v859_v50 = vpop.xlane.xlu1 %858  ;;  %v856_v51 = vpop.xlane.xlu0 %855  ;;  %v2727_v60 = vsel %vm2654_vm6, %v1965_v46, %v2726_v48  ;;  %v1196_v48 = vsel %vm595_vm0, %v539_v34, 0.0  ;;  %v540_v54 = vunpack.c.l.bf16 %v284_v44  ;;  %v63_v30 = vld [vmem:[#allocation2 + $0x60] sm:$0xff] }
 0x13b   :  { %v1973_v55 = vrot.slane %v859_v50, %v3630_v35  ;;  %v1969_v56 = vrot.slane %v856_v51, %v3630_v35 }
 0x13d   :  { %v2728_v61 = vsel %vm2656_vm7, %v1969_v56, %v2727_v60  ;;  %927 = vadd.xlane.f32.xlu1 %v926_v52  ;;  %1311 = vadd.xlane.f32.xlu0 %v1310_v53  ;;  %v1286_v52 = vsel %vm595_vm0, %v569_v40, 0.0  ;;  %v550_v53 = vunpack.c.l.bf16 %v294_v43  ;;  %v314_v56 = vld [vmem:[%s5197_s0 + $0xe7] sm:$0x1] }
 0x13e   :  { %v2729_v63 = vsel %vm2658_vm8, %v1973_v55, %v2728_v61  ;;  %v865_v0 = vpop.xlane.xlu1 %864  ;;  %v862_v1 = vpop.xlane.xlu0 %861 }
 0x13f   :  { %v2919_v5 = vadd.f32 %v2729_v63, %v61_v59  ;;  %v1981_v8 = vrot.slane %v865_v0, %v3630_v35  ;;  %v1977_v9 = vrot.slane %v862_v1, %v3630_v35  ;;  %v1199_v63 = vsel %vm595_vm0, %v540_v54, 0.0 }
 0x140   :  { %v570_v0 = vunpack.c.l.bf16 %v314_v56  ;;  %v560_v1 = vunpack.c.l.bf16 %v304_v57  ;;  %v277_v56 = vld [vmem:[%s5197_s0 + $0xc2] sm:$0x1] }
 0x141   :  { %2952 = vst.msk [vmem:[#allocation2 + $0x50] sm:$0xff] %vm18_vm1, %v2919_v5  ;;  %1224 = vadd.xlane.f32.xlu1 %v1223_v62  ;;  %1221 = vadd.xlane.f32.xlu0 %v1220_v2  ;;  %v2730_v19 = vsel %vm2646_vm2, %v1981_v8, %v1977_v9  ;;  %v1229_v62 = vsel %vm595_vm0, %v550_v53, 0.0 }
 0x142   :  { %v871_v10 = vpop.xlane.xlu1 %870  ;;  %v868_v11 = vpop.xlane.xlu0 %867 }
 0x143   :  { %v1985_v16 = vrot.slane %v868_v11, %v3630_v35  ;;  %v1989_v20 = vrot.slane %v871_v10, %v3630_v35  ;;  %v1289_v10 = vsel %vm595_vm0, %v570_v0, 0.0  ;;  %v1259_v11 = vsel %vm595_vm0, %v560_v1, 0.0  ;;  %v267_v1 = vld [vmem:[%s5197_s0 + $0xb8] sm:$0x1] }
 0x145   :  { %v2731_v21 = vsel %vm2648_vm3, %v1985_v16, %v2730_v19  ;;  %1284 = vadd.xlane.f32.xlu1 %v1283_v12  ;;  %1254 = vadd.xlane.f32.xlu0 %v1253_v13  ;;  %v551_v12 = vunpack.c.l.bf16 %v295_v3  ;;  %v541_v13 = vunpack.c.l.bf16 %v285_v4  ;;  %v305_v16 = vld [vmem:[%s5197_s0 + $0xde] sm:$0x1] }
 0x146   :  { %v877_v22 = vpop.xlane.xlu1 %876  ;;  %v874_v23 = vpop.xlane.xlu0 %873  ;;  %v2732_v32 = vsel %vm2650_vm4, %v1989_v20, %v2731_v21  ;;  %v531_v20 = vunpack.c.l.bf16 %v275_v14 }
 0x147   :  { %v1993_v29 = vrot.slane %v874_v23, %v3630_v35  ;;  %v1997_v31 = vrot.slane %v877_v22, %v3630_v35  ;;  %v1232_v23 = vsel %vm595_vm0, %v551_v12, 0.0 }
 0x149   :  { %v2733_v33 = vsel %vm2652_vm5, %v1993_v29, %v2732_v32  ;;  %930 = vadd.xlane.f32.xlu1 %v929_v24  ;;  %1314 = vadd.xlane.f32.xlu0 %v1313_v25  ;;  %v1202_v24 = vsel %vm595_vm0, %v541_v13, 0.0  ;;  %v561_v25 = vunpack.c.l.bf16 %v305_v16  ;;  %v276_v29 = vld [vmem:[%s5197_s0 + $0xc1] sm:$0x1] }
 0x14a   :  { %v883_v36 = vpop.xlane.xlu1 %882  ;;  %v880_v37 = vpop.xlane.xlu0 %879  ;;  %v2734_v46 = vsel %vm2654_vm6, %v1997_v31, %v2733_v33  ;;  %v1172_v33 = vsel %vm595_vm0, %v531_v20, 0.0  ;;  %v532_v40 = vunpack.c.l.bf16 %v276_v29 }
 0x14b   :  { %v2005_v41 = vrot.slane %v883_v36, %v3630_v35  ;;  %v2001_v42 = vrot.slane %v880_v37, %v3630_v35 }
 0x14d   :  { %v2735_v47 = vsel %vm2656_vm7, %v2001_v42, %v2734_v46  ;;  %1257 = vadd.xlane.f32.xlu1 %v1256_v38  ;;  %1227 = vadd.xlane.f32.xlu0 %v1226_v39  ;;  %v1262_v38 = vsel %vm595_vm0, %v561_v25, 0.0  ;;  %v542_v39 = vunpack.c.l.bf16 %v286_v28  ;;  %v269_v28 = vld [vmem:[%s5197_s0 + $0xba] sm:$0x1] }
 0x14e   :  { %v2736_v49 = vsel %vm2658_vm8, %v2005_v41, %v2735_v47  ;;  %v889_v50 = vpop.xlane.xlu1 %888  ;;  %v886_v51 = vpop.xlane.xlu0 %885  ;;  %v306_v41 = vld [vmem:[%s5197_s0 + $0xdf] sm:$0x1] }
 0x14f   :  { %v2920_v55 = vadd.f32 %v2736_v49, %v62_v45  ;;  %v2013_v58 = vrot.slane %v889_v50, %v3630_v35  ;;  %v2009_v59 = vrot.slane %v886_v51, %v3630_v35  ;;  %v296_v45 = vld [vmem:[%s5197_s0 + $0xd5] sm:$0x1]  ;;  %v562_v47 = vunpack.c.l.bf16 %v306_v41 }
 0x150   :  { %v1205_v50 = vsel %vm595_vm0, %v542_v39, 0.0  ;;  %v1175_v51 = vsel %vm595_vm0, %v532_v40, 0.0 }
 0x151   :  { %2953 = vst.msk [vmem:[#allocation2 + $0x58] sm:$0xff] %vm18_vm1, %v2920_v55  ;;  %1197 = vadd.xlane.f32.xlu1 %v1196_v48  ;;  %1287 = vadd.xlane.f32.xlu0 %v1286_v52  ;;  %v2737_v5 = vsel %vm2646_vm2, %v2013_v58, %v2009_v59  ;;  %v552_v52 = vunpack.c.l.bf16 %v296_v45  ;;  %v287_v55 = vld [vmem:[%s5197_s0 + $0xcc] sm:$0x1]  ;;  %v1265_v58 = vsel %vm595_vm0, %v562_v47, 0.0  ;;  %v270_v45 = vld [vmem:[%s5197_s0 + $0xbb] sm:$0x1] }
 0x152   :  { %v895_v60 = vpop.xlane.xlu1 %894  ;;  %v892_v61 = vpop.xlane.xlu0 %891 }
 0x153   :  { %v2017_v2 = vrot.slane %v892_v61, %v3630_v35  ;;  %v2021_v6 = vrot.slane %v895_v60, %v3630_v35  ;;  %v1235_v61 = vsel %vm595_vm0, %v552_v52, 0.0 }
 0x155   :  { %v2738_v7 = vsel %vm2648_vm3, %v2017_v2, %v2737_v5  ;;  %1230 = vadd.xlane.f32.xlu1 %v1229_v62  ;;  %1200 = vadd.xlane.f32.xlu0 %v1199_v63  ;;  %v543_v62 = vunpack.c.l.bf16 %v287_v55  ;;  %v533_v63 = vunpack.c.l.bf16 %v277_v56  ;;  %v297_v2 = vld [vmem:[%s5197_s0 + $0xd6] sm:$0x1] }
 0x156   :  { %v901_v8 = vpop.xlane.xlu1 %900  ;;  %v898_v9 = vpop.xlane.xlu0 %897  ;;  %v2739_v18 = vsel %vm2650_vm4, %v2021_v6, %v2738_v7  ;;  %v523_v7 = vunpack.c.l.bf16 %v267_v1  ;;  %v261_v1 = vld [vmem:[%s5197_s0 + $0xb2] sm:$0x1] }
 0x157   :  { %v2025_v15 = vrot.slane %v898_v9, %v3630_v35  ;;  %v2029_v17 = vrot.slane %v901_v8, %v3630_v35  ;;  %v1208_v5 = vsel %vm595_vm0, %v543_v62, 0.0  ;;  %v1178_v6 = vsel %vm595_vm0, %v533_v63, 0.0  ;;  %v278_v9 = vld [vmem:[%s5197_s0 + $0xc3] sm:$0x1]  ;;  %v271_v63 = vld [vmem:[%s5197_s0 + $0xbc] sm:$0x1] }
 0x158   :  { %v553_v8 = vunpack.c.l.bf16 %v297_v2  ;;  %v1148_v13 = vsel %vm595_vm0, %v523_v7, 0.0 }
 0x159   :  { %v2740_v19 = vsel %vm2652_vm5, %v2025_v15, %v2739_v18  ;;  %1290 = vadd.xlane.f32.xlu1 %v1289_v10  ;;  %1260 = vadd.xlane.f32.xlu0 %v1259_v11  ;;  %v268_v10 = vld [vmem:[%s5197_s0 + $0xb9] sm:$0x1]  ;;  %v534_v15 = vunpack.c.l.bf16 %v278_v9  ;;  %v288_v18 = vld [vmem:[%s5197_s0 + $0xcd] sm:$0x1]  ;;  %v517_v9 = vunpack.c.l.bf16 %v261_v1 }
 0x15a   :  { %v907_v21 = vpop.xlane.xlu1 %906  ;;  %v904_v22 = vpop.xlane.xlu0 %903  ;;  %v2741_v31 = vsel %vm2654_vm6, %v2029_v17, %v2740_v19  ;;  %v1238_v14 = vsel %vm595_vm0, %v553_v8, 0.0  ;;  %v524_v16 = vunpack.c.l.bf16 %v268_v10  ;;  %v298_v17 = vld [vmem:[%s5197_s0 + $0xd7] sm:$0x1]  ;;  %v527_v8 = vunpack.c.l.bf16 %v271_v63 }
 0x15b   :  { %v2037_v26 = vrot.slane %v907_v21, %v3630_v35  ;;  %v2033_v27 = vrot.slane %v904_v22, %v3630_v35  ;;  %v1181_v21 = vsel %vm595_vm0, %v534_v15, 0.0  ;;  %v281_v15 = vld [vmem:[%s5197_s0 + $0xc6] sm:$0x1] }
 0x15c   :  { %v1151_v22 = vsel %vm595_vm0, %v524_v16, 0.0 }
 0x15d   :  { %v2742_v32 = vsel %vm2656_vm7, %v2033_v27, %v2741_v31  ;;  %1233 = vadd.xlane.f32.xlu1 %v1232_v23  ;;  %1203 = vadd.xlane.f32.xlu0 %v1202_v24  ;;  %v554_v23 = vunpack.c.l.bf16 %v298_v17  ;;  %v544_v24 = vunpack.c.l.bf16 %v288_v18  ;;  %v279_v27 = vld [vmem:[%s5197_s0 + $0xc4] sm:$0x1] }
 0x15e   :  { %v2743_v34 = vsel %vm2658_vm8, %v2037_v26, %v2742_v32  ;;  %v913_v36 = vpop.xlane.xlu1 %912  ;;  %v910_v37 = vpop.xlane.xlu0 %909 }
 0x15f   :  { %v2921_v42 = vadd.f32 %v2743_v34, %v63_v30  ;;  %v2045_v43 = vrot.slane %v913_v36, %v3630_v35  ;;  %v2041_v44 = vrot.slane %v910_v37, %v3630_v35  ;;  %v1241_v32 = vsel %vm595_vm0, %v554_v23, 0.0  ;;  %v259_v37 = vld [vmem:[%s5197_s0 + $0xb0] sm:$0x1]  ;;  %v262_v23 = vld [vmem:[%s5197_s0 + $0xb3] sm:$0x1] }
 0x160   :  { %v535_v34 = vunpack.c.l.bf16 %v279_v27  ;;  %v525_v36 = vunpack.c.l.bf16 %v269_v28 }
 0x161   :  { %2954 = vst.msk [vmem:[#allocation2 + $0x60] sm:$0xff] %vm18_vm1, %v2921_v42  ;;  %v2744_v46 = vsel %vm2646_vm2, %v2045_v43, %v2041_v44  ;;  %1173 = vadd.xlane.f32.xlu1 %v1172_v33  ;;  %1263 = vadd.xlane.f32.xlu0 %v1262_v38  ;;  %v1211_v33 = vsel %vm595_vm0, %v544_v24, 0.0  ;;  %v289_v38 = vld [vmem:[%s5197_s0 + $0xce] sm:$0x1]  ;;  %v515_v43 = vunpack.c.l.bf16 %v259_v37  ;;  %v252_v24 = vld [vmem:[%s5197_s0 + $0xa9] sm:$0x1] }
 0x162   :  { %v919_v48 = vpop.xlane.xlu1 %918  ;;  %v916_v49 = vpop.xlane.xlu0 %915  ;;  %v1184_v41 = vsel %vm595_vm0, %v535_v34, 0.0  ;;  %v1154_v42 = vsel %vm595_vm0, %v525_v36, 0.0  ;;  %v545_v44 = vunpack.c.l.bf16 %v289_v38  ;;  %v282_v34 = vld [vmem:[%s5197_s0 + $0xc7] sm:$0x1]  ;;  %v272_v36 = vld [vmem:[%s5197_s0 + $0xbd] sm:$0x1] }
 0x163   :  { %v2053_v53 = vrot.slane %v919_v48, %v3630_v35  ;;  %v2049_v54 = vrot.slane %v916_v49, %v3630_v35  ;;  %v1124_v49 = vsel %vm595_vm0, %v515_v43, 0.0  ;;  %v538_v43 = vunpack.c.l.bf16 %v282_v34 }
 0x165   :  { %v2745_v57 = vsel %vm2648_vm3, %v2049_v54, %v2744_v46  ;;  %1206 = vadd.xlane.f32.xlu1 %v1205_v50  ;;  %1176 = vadd.xlane.f32.xlu0 %v1175_v51  ;;  %v260_v46 = vld [vmem:[%s5197_s0 + $0xb1] sm:$0x1]  ;;  %v1214_v50 = vsel %vm595_vm0, %v545_v44, 0.0  ;;  %v526_v51 = vunpack.c.l.bf16 %v270_v45  ;;  %v280_v54 = vld [vmem:[%s5197_s0 + $0xc5] sm:$0x1]  ;;  %v528_v44 = vunpack.c.l.bf16 %v272_v36 }
 0x166   :  { %v4274_v59 = vpop.xlane.xlu1 %1344  ;;  %v4276_v60 = vpop.xlane.xlu0 %1341  ;;  %v4280_v0 = vsel %vm2650_vm4, %v2053_v53, %v2745_v57  ;;  %v516_v52 = vunpack.c.l.bf16 %v260_v46  ;;  %v290_v53 = vld [vmem:[%s5197_s0 + $0xcf] sm:$0x1]  ;;  %v536_v62 = vunpack.c.l.bf16 %v280_v54  ;;  %v263_v45 = vld [vmem:[%s5197_s0 + $0xb4] sm:$0x1]  ;;  %v253_v46 = vld [vmem:[%s5197_s0 + $0xaa] sm:$0x1] }
 0x167   :  { %v1157_v57 = vsel %vm595_vm0, %v526_v51, 0.0  ;;  %v1193_v51 = vsel %vm595_vm0, %v538_v43, 0.0  ;;  %v509_v54 = vunpack.c.l.bf16 %v253_v46 }
 0x168   :  { %v1187_v7 = vsel %vm595_vm0, %v536_v62, 0.0 }
 0x169   :  { %1266 = vadd.xlane.f32.xlu1 %v1265_v58  ;;  %1236 = vadd.xlane.f32.xlu0 %v1235_v61  ;;  %v1127_v58 = vsel %vm595_vm0, %v516_v52, 0.0  ;;  %v546_v61 = vunpack.c.l.bf16 %v290_v53  ;;  %v1163_v52 = vsel %vm595_vm0, %v528_v44, 0.0  ;;  %v519_v53 = vunpack.c.l.bf16 %v263_v45 }
 0x16a   :  { %v4288_v3 = vpop.xlane.xlu1 %960  ;;  %v4290_v4 = vpop.xlane.xlu0 %957  ;;  %v1106_v1 = vsel %vm595_vm0, %v509_v54, 0.0 }
 0x16b   :  { %v1136_v63 = vsel %vm595_vm0, %v519_v53, 0.0 }
 0x16d   :  { %1209 = vadd.xlane.f32.xlu1 %v1208_v5  ;;  %1179 = vadd.xlane.f32.xlu0 %v1178_v6  ;;  %v1217_v6 = vsel %vm595_vm0, %v546_v61, 0.0 }
 0x16e   :  { %v4300_v11 = vpop.xlane.xlu1 %963  ;;  %v4302_v12 = vpop.xlane.xlu0 %1347 }
 0x171   :  { %1149 = vadd.xlane.f32.xlu1 %v1148_v13  ;;  %1239 = vadd.xlane.f32.xlu0 %v1238_v14  ;;  %v251_v14 = vld [vmem:[%s5197_s0 + $0xa8] sm:$0x1] }
 0x172   :  { %v1321_v19 = vpop.xlane.xlu1 %1320  ;;  %v1318_v20 = vpop.xlane.xlu0 %1317 }
 0x173   :  { %v2589_v25 = vrot.slane %v1321_v19, %v3630_v35  ;;  %v2585_v26 = vrot.slane %v1318_v20, %v3630_v35  ;;  %v1160_v19 = vsel %vm595_vm0, %v527_v8, 0.0  ;;  %v1130_v20 = vsel %vm595_vm0, %v517_v9, 0.0  ;;  %v244_v9 = vld [vmem:[%s5197_s0 + $0xa1] sm:$0x1] }
 0x174   :  { %v2617_v8 = vrot.slane %v4276_v60, %v3630_v35 }
 0x175   :  { %v4323_v29 = vsel %vm2646_vm2, %v2589_v25, %v2585_v26  ;;  %1182 = vadd.xlane.f32.xlu1 %v1181_v21  ;;  %1152 = vadd.xlane.f32.xlu0 %v1151_v22  ;;  %v507_v21 = vunpack.c.l.bf16 %v251_v14  ;;  %v537_v22 = vunpack.c.l.bf16 %v281_v15 }
 0x176   :  { %v4325_v30 = vpop.xlane.xlu1 %933  ;;  %v4327_v31 = vpop.xlane.xlu0 %1350 }
 0x177   :  { %v1100_v27 = vsel %vm595_vm0, %v507_v21, 0.0  ;;  %v1190_v28 = vsel %vm595_vm0, %v537_v22, 0.0  ;;  %v500_v21 = vunpack.c.l.bf16 %v244_v9  ;;  %v2109_v22 = vrot.slane %v4288_v3, %v3630_v35  ;;  %v66_v9 = vld [vmem:[#allocation2 + $0x78] sm:$0xff] }
 0x179   :  { %1242 = vadd.xlane.f32.xlu1 %v1241_v32  ;;  %1212 = vadd.xlane.f32.xlu0 %v1211_v33  ;;  %v518_v32 = vunpack.c.l.bf16 %v262_v23  ;;  %v508_v33 = vunpack.c.l.bf16 %v252_v24  ;;  %v264_v24 = vld [vmem:[%s5197_s0 + $0xb5] sm:$0x1] }
 0x17a   :  { %v4337_v39 = vpop.xlane.xlu1 %966  ;;  %v4339_v40 = vpop.xlane.xlu0 %936  ;;  %v520_v43 = vunpack.c.l.bf16 %v264_v24  ;;  %v246_v24 = vld [vmem:[%s5197_s0 + $0xa3] sm:$0x1] }
 0x17b   :  { %v2117_v3 = vrot.slane %v4337_v39, %v3630_v35  ;;  %v255_v39 = vld [vmem:[%s5197_s0 + $0xac] sm:$0x1] }
 0x17d   :  { %1185 = vadd.xlane.f32.xlu1 %v1184_v41  ;;  %1155 = vadd.xlane.f32.xlu0 %v1154_v42  ;;  %v1133_v41 = vsel %vm595_vm0, %v518_v32, 0.0  ;;  %v1103_v42 = vsel %vm595_vm0, %v508_v33, 0.0 }
 0x17e   :  { %v4349_v47 = vpop.xlane.xlu1 %1353  ;;  %v4351_v48 = vpop.xlane.xlu0 %1323 }
 0x17f   :  { %v2633_v15 = vrot.slane %v4349_v47, %v3630_v35  ;;  %v2105_v47 = vrot.slane %v4290_v4, %v3630_v35 }
 0x181   :  { %1125 = vadd.xlane.f32.xlu1 %v1124_v49  ;;  %1215 = vadd.xlane.f32.xlu0 %v1214_v50  ;;  %v2758_v44 = vsel %vm2646_vm2, %v2109_v22, %v2105_v47 }
 0x182   :  { %v4361_v55 = vpop.xlane.xlu1 %969  ;;  %v4363_v56 = vpop.xlane.xlu0 %939 }
 0x183   :  { %v2121_v36 = vrot.slane %v4361_v55, %v3630_v35 }
 0x185   :  { %1158 = vadd.xlane.f32.xlu1 %v1157_v57  ;;  %1128 = vadd.xlane.f32.xlu0 %v1127_v58  ;;  %v243_v57 = vld [vmem:[%s5197_s0 + $0xa0] sm:$0x1]  ;;  %v273_v58 = vld [vmem:[%s5197_s0 + $0xbe] sm:$0x1] }
 0x186   :  { %v1297_v2 = vpop.xlane.xlu1 %1296  ;;  %v1294_v5 = vpop.xlane.xlu0 %1293 }
 0x187   :  { %v2557_v10 = vrot.slane %v1297_v2, %v3630_v35  ;;  %v2553_v13 = vrot.slane %v1294_v5, %v3630_v35  ;;  %v499_v2 = vunpack.c.l.bf16 %v243_v57  ;;  %v529_v5 = vunpack.c.l.bf16 %v273_v58 }
 0x189   :  { %v4384_v16 = vsel %vm2646_vm2, %v2557_v10, %v2553_v13  ;;  %1218 = vadd.xlane.f32.xlu1 %v1217_v6  ;;  %1188 = vadd.xlane.f32.xlu0 %v1187_v7  ;;  %v254_v6 = vld [vmem:[%s5197_s0 + $0xab] sm:$0x1]  ;;  %v2621_v7 = vrot.slane %v4274_v59, %v3630_v35  ;;  %v2625_v10 = vrot.slane %v4302_v12, %v3630_v35  ;;  %v1076_v60 = vsel %vm595_vm0, %v499_v2, 0.0  ;;  %v274_v12 = vld [vmem:[%s5197_s0 + $0xbf] sm:$0x1] }
 0x18a   :  { %v4386_v17 = vpop.xlane.xlu1 %1356  ;;  %v4388_v18 = vpop.xlane.xlu0 %1326  ;;  %v2629_v13 = vrot.slane %v4327_v31, %v3630_v35  ;;  %v510_v14 = vunpack.c.l.bf16 %v254_v6 }
 0x18b   :  { %v2870_v31 = vsel %vm2646_vm2, %v2621_v7, %v2617_v8  ;;  %v2637_v23 = vrot.slane %v4386_v17, %v3630_v35  ;;  %v530_v17 = vunpack.c.l.bf16 %v274_v12  ;;  %v1139_v7 = vsel %vm595_vm0, %v520_v43, 0.0  ;;  %v247_v43 = vld [vmem:[%s5197_s0 + $0xa4] sm:$0x1] }
 0x18c   :  { %v1109_v4 = vsel %vm595_vm0, %v510_v14, 0.0  ;;  %v265_v14 = vld [vmem:[%s5197_s0 + $0xb6] sm:$0x1] }
 0x18d   :  { %1161 = vadd.xlane.f32.xlu1 %v1160_v19  ;;  %1131 = vadd.xlane.f32.xlu0 %v1130_v20  ;;  %v1166_v20 = vsel %vm595_vm0, %v529_v5, 0.0 }
 0x18e   :  { %v4398_v25 = vpop.xlane.xlu1 %972  ;;  %v4400_v26 = vpop.xlane.xlu0 %942 }
 0x18f   :  { %v2125_v46 = vrot.slane %v4398_v25, %v3630_v35  ;;  %v1169_v25 = vsel %vm595_vm0, %v530_v17, 0.0 }
 0x191   :  { %1101 = vadd.xlane.f32.xlu1 %v1100_v27  ;;  %1191 = vadd.xlane.f32.xlu0 %v1190_v28  ;;  %v2113_v27 = vrot.slane %v4300_v11, %v3630_v35  ;;  %v2871_v28 = vsel %vm2648_vm3, %v2625_v10, %v2870_v31 }
 0x192   :  { %v4410_v37 = vpop.xlane.xlu1 %1329  ;;  %v4412_v38 = vpop.xlane.xlu0 %1299  ;;  %v2872_v33 = vsel %vm2650_vm4, %v2629_v13, %v2871_v28  ;;  %v235_v13 = vld [vmem:[%s5197_s0 + $0x98] sm:$0x1] }
 0x193   :  { %v2873_v34 = vsel %vm2652_vm5, %v2633_v15, %v2872_v33  ;;  %v491_v47 = vunpack.c.l.bf16 %v235_v13 }
 0x194   :  { %v2874_v45 = vsel %vm2654_vm6, %v2637_v23, %v2873_v34  ;;  %v521_v23 = vunpack.c.l.bf16 %v265_v14  ;;  %v2085_v14 = vrot.slane %v4400_v26, %v3630_v35 }
 0x195   :  { %1134 = vadd.xlane.f32.xlu1 %v1133_v41  ;;  %1104 = vadd.xlane.f32.xlu0 %v1103_v42  ;;  %v1079_v42 = vsel %vm595_vm0, %v500_v21, 0.0  ;;  %v1052_v33 = vsel %vm595_vm0, %v491_v47, 0.0 }
 0x196   :  { %v4422_v49 = vpop.xlane.xlu1 %945  ;;  %v1360_v50 = vpop.xlane.xlu0 %1359 }
 0x197   :  { %v2641_v32 = vrot.slane %v1360_v50, %v3630_v35  ;;  %v82_v50 = vld [vmem:[#allocation2 + $0xf8] sm:$0xff] }
 0x199   :  { %1194 = vadd.xlane.f32.xlu1 %v1193_v51  ;;  %1164 = vadd.xlane.f32.xlu0 %v1163_v52  ;;  %v245_v51 = vld [vmem:[%s5197_s0 + $0xa2] sm:$0x1]  ;;  %v2759_v52 = vsel %vm2648_vm3, %v2113_v27, %v2758_v44  ;;  %v2875_v53 = vsel %vm2656_vm7, %v2641_v32, %v2874_v45  ;;  %v236_v27 = vld [vmem:[%s5197_s0 + $0x99] sm:$0x1] }
 0x19a   :  { %v4432_v61 = vpop.xlane.xlu1 %1269  ;;  %v4434_v62 = vpop.xlane.xlu0 %975  ;;  %v2760_v57 = vsel %vm2650_vm4, %v2117_v3, %v2759_v52  ;;  %v501_v8 = vunpack.c.l.bf16 %v245_v51  ;;  %v1142_v3 = vsel %vm595_vm0, %v521_v23, 0.0  ;;  %v492_v17 = vunpack.c.l.bf16 %v236_v27  ;;  %v237_v52 = vld [vmem:[%s5197_s0 + $0x9a] sm:$0x1]  ;;  %v228_v27 = vld [vmem:[%s5197_s0 + $0x91] sm:$0x1] }
 0x19b   :  { %v2129_v54 = vrot.slane %v4434_v62, %v3630_v35 }
 0x19c   :  { %v1082_v22 = vsel %vm595_vm0, %v501_v8, 0.0  ;;  %v257_v8 = vld [vmem:[%s5197_s0 + $0xae] sm:$0x1] }
 0x19d   :  { %1137 = vadd.xlane.f32.xlu1 %v1136_v63  ;;  %1107 = vadd.xlane.f32.xlu0 %v1106_v1  ;;  %v511_v63 = vunpack.c.l.bf16 %v255_v39  ;;  %v2761_v1 = vsel %vm2652_vm5, %v2121_v36, %v2760_v57  ;;  %v266_v36 = vld [vmem:[%s5197_s0 + $0xb7] sm:$0x1]  ;;  %v503_v57 = vunpack.c.l.bf16 %v247_v43 }
 0x19e   :  { %v4454_v59 = vpop.xlane.xlu1 %1302  ;;  %v4456_v19 = vpop.xlane.xlu0 %1272  ;;  %v2762_v62 = vsel %vm2654_vm6, %v2125_v46, %v2761_v1  ;;  %v1055_v46 = vsel %vm595_vm0, %v492_v17, 0.0 }
 0x19f   :  { %v2763_v15 = vsel %vm2656_vm7, %v2129_v54, %v2762_v62  ;;  %v1088_v13 = vsel %vm595_vm0, %v503_v57, 0.0 }
 0x1a1   :  { %1077 = vadd.xlane.f32.xlu1 %v1076_v60  ;;  %1167 = vadd.xlane.f32.xlu0 %v1166_v20  ;;  %v1112_v20 = vsel %vm595_vm0, %v511_v63, 0.0 }
 0x1a2   :  { %v1363_v11 = vpop.xlane.xlu1 %1362  ;;  %v4484_v41 = vpop.xlane.xlu0 %1332 }
 0x1a3   :  { %v2645_v55 = vrot.slane %v1363_v11, %v3630_v35  ;;  %v256_v11 = vld [vmem:[%s5197_s0 + $0xad] sm:$0x1] }
 0x1a5   :  { %v2876_v58 = vsel %vm2658_vm8, %v2645_v55, %v2875_v53  ;;  %1110 = vadd.xlane.f32.xlu1 %v1109_v4  ;;  %1080 = vadd.xlane.f32.xlu0 %v1079_v42  ;;  %v502_v4 = vunpack.c.l.bf16 %v246_v24  ;;  %v512_v55 = vunpack.c.l.bf16 %v256_v11  ;;  %v2593_v53 = vrot.slane %v4351_v48, %v3630_v35  ;;  %v81_v24 = vld [vmem:[#allocation2 + $0xf0] sm:$0xff] }
 0x1a6   :  { %v2940_v2 = vadd.f32 %v2876_v58, %v82_v50  ;;  %v979_v5 = vpop.xlane.xlu1 %978  ;;  %v4506_v6 = vpop.xlane.xlu0 %948  ;;  %v522_v50 = vunpack.c.l.bf16 %v266_v36  ;;  %v2597_v58 = vrot.slane %v4388_v18, %v3630_v35  ;;  %v227_v18 = vld [vmem:[%s5197_s0 + $0x90] sm:$0x1] }
 0x1a7   :  { %v2133_v10 = vrot.slane %v979_v5, %v3630_v35  ;;  %v1085_v45 = vsel %vm595_vm0, %v502_v4, 0.0  ;;  %v1115_v48 = vsel %vm595_vm0, %v512_v55, 0.0  ;;  %v493_v5 = vunpack.c.l.bf16 %v237_v52  ;;  %v248_v52 = vld [vmem:[%s5197_s0 + $0xa5] sm:$0x1] }
 0x1a8   :  { %2973 = vst.msk [vmem:[#allocation2 + $0xf8] sm:$0xff] %vm18_vm1, %v2940_v2  ;;  %v1145_v2 = vsel %vm595_vm0, %v522_v50, 0.0  ;;  %v2864_v62 = vsel %vm2648_vm3, %v2593_v53, %v4323_v29  ;;  %v2093_v23 = vrot.slane %v4506_v6, %v3630_v35  ;;  %v65_v50 = vld [vmem:[#allocation2 + $0x70] sm:$0xff] }
 0x1a9   :  { %v2764_v60 = vsel %vm2658_vm8, %v2133_v10, %v2763_v15  ;;  %1170 = vadd.xlane.f32.xlu1 %v1169_v25  ;;  %1140 = vadd.xlane.f32.xlu0 %v1139_v7  ;;  %v2601_v25 = vrot.slane %v4410_v37, %v3630_v35  ;;  %v2077_v7 = vrot.slane %v4339_v40, %v3630_v35  ;;  %v483_v15 = vunpack.c.l.bf16 %v227_v18 }
 0x1aa   :  { %v2924_v21 = vadd.f32 %v2764_v60, %v66_v9  ;;  %v4521_v12 = vpop.xlane.xlu1 %1305  ;;  %v4523_v31 = vpop.xlane.xlu0 %1275  ;;  %v2605_v37 = vrot.slane %v4484_v41, %v3630_v35  ;;  %v2081_v9 = vrot.slane %v4363_v56, %v3630_v35  ;;  %v2073_v40 = vrot.slane %v4325_v30, %v3630_v35  ;;  %v238_v30 = vld [vmem:[%s5197_s0 + $0x9b] sm:$0x1] }
 0x1ab   :  { %v2865_v41 = vsel %vm2650_vm4, %v2597_v58, %v2864_v62  ;;  %v2089_v56 = vrot.slane %v4422_v49, %v3630_v35  ;;  %v1028_v6 = vsel %vm595_vm0, %v483_v15, 0.0  ;;  %v504_v18 = vunpack.c.l.bf16 %v248_v52 }
 0x1ac   :  { %2957 = vst.msk [vmem:[#allocation2 + $0x78] sm:$0xff] %vm18_vm1, %v2924_v21  ;;  %v2866_v29 = vsel %vm2652_vm5, %v2601_v25, %v2865_v41  ;;  %v1058_v21 = vsel %vm595_vm0, %v493_v5, 0.0  ;;  %v2751_v26 = vsel %vm2646_vm2, %v2077_v7, %v2073_v40  ;;  %v239_v7 = vld [vmem:[%s5197_s0 + $0x9c] sm:$0x1]  ;;  %v219_v41 = vld [vmem:[%s5197_s0 + $0x88] sm:$0x1] }
 0x1ad   :  { %1113 = vadd.xlane.f32.xlu1 %v1112_v20  ;;  %1083 = vadd.xlane.f32.xlu0 %v1082_v22  ;;  %v513_v22 = vunpack.c.l.bf16 %v257_v8  ;;  %v2867_v47 = vsel %vm2654_vm6, %v2605_v37, %v2866_v29  ;;  %v229_v37 = vld [vmem:[%s5197_s0 + $0x92] sm:$0x1] }
 0x1ae   :  { %v4533_v28 = vpop.xlane.xlu1 %921  ;;  %v4535_v32 = vpop.xlane.xlu0 %1335  ;;  %v485_v40 = vunpack.c.l.bf16 %v229_v37 }
 0x1af   :  { %v3008_v34 = vld [vmem:[#allocation2 + $0xf8] sm:$0xff]  ;;  %v2609_v10 = vrot.slane %v4535_v32, %v3630_v35  ;;  %v2752_v32 = vsel %vm2648_vm3, %v2081_v9, %v2751_v26 }
 0x1b0   :  { %v3040_v42 = vmul.f32 0.0625, %v3008_v34  ;;  %v2753_v4 = vsel %vm2650_vm4, %v2085_v14, %v2752_v32  ;;  %v494_v34 = vunpack.c.l.bf16 %v238_v30  ;;  %v249_v14 = vld [vmem:[%s5197_s0 + $0xa6] sm:$0x1]  ;;  %v1034_v26 = vsel %vm595_vm0, %v485_v40, 0.0 }
 0x1b1   :  { %1053 = vadd.xlane.f32.xlu1 %v1052_v33  ;;  %1143 = vadd.xlane.f32.xlu0 %v1142_v3  ;;  %v2868_v33 = vsel %vm2656_vm7, %v2609_v10, %v2867_v47  ;;  %v2754_v36 = vsel %vm2652_vm5, %v2089_v56, %v2753_v4  ;;  %v1091_v10 = vsel %vm595_vm0, %v504_v18, 0.0  ;;  %v475_v56 = vunpack.c.l.bf16 %v219_v41 }
 0x1b2   :  { %v4548_v39 = vpop.xlane.xlu1 %1245  ;;  %3199 = vmatprep.subr.mxu0 %v3040_v42  ;;  %3243 = vmatprep.subr.mxu1 %v3040_v42  ;;  %v4550_v44 = vpop.xlane.xlu0 %951  ;;  %v1061_v57 = vsel %vm595_vm0, %v494_v34, 0.0  ;;  %v2565_v32 = vrot.slane %v4454_v59, %v3630_v35  ;;  %v2569_v4 = vrot.slane %v4521_v12, %v3630_v35 }
 0x1b3   :  { %v2992_v51 = vld [vmem:[#allocation2 + $0x78] sm:$0xff]  ;;  %v2097_v3 = vrot.slane %v4550_v44, %v3630_v35  ;;  %v2755_v44 = vsel %vm2654_vm6, %v2093_v23, %v2754_v36  ;;  %v230_v23 = vld [vmem:[%s5197_s0 + $0x93] sm:$0x1] }
 0x1b4   :  { %v3024_v54 = vmul.f32 0.0625, %v2992_v51  ;;  %v258_v51 = vld [vmem:[%s5197_s0 + $0xaf] sm:$0x1]  ;;  %v486_v34 = vunpack.c.l.bf16 %v230_v23  ;;  %v250_v36 = vld [vmem:[%s5197_s0 + $0xa7] sm:$0x1] }
 0x1b5   :  { %1086 = vadd.xlane.f32.xlu1 %v1085_v45  ;;  %1056 = vadd.xlane.f32.xlu0 %v1055_v46  ;;  %v1118_v45 = vsel %vm595_vm0, %v513_v22, 0.0  ;;  %v484_v46 = vunpack.c.l.bf16 %v228_v27  ;;  %v2756_v53 = vsel %vm2656_vm7, %v2097_v3, %v2755_v44  ;;  %v514_v5 = vunpack.c.l.bf16 %v258_v51  ;;  %v64_v51 = vld [vmem:[#allocation2 + $0x68] sm:$0xff] }
 0x1b6   :  { %v4563_v63 = vpop.xlane.xlu1 %1278  ;;  %3200 = vmatpush3.msra.mxu0 %v3024_v54  ;;  %3259 = vmatpush3.msra.mxu1 %v3024_v54  ;;  %v4565_v1 = vpop.xlane.xlu0 %1248 }
 0x1b7   :  { %v1121_v9 = vsel %vm595_vm0, %v514_v5, 0.0  ;;  %v80_v5 = vld [vmem:[#allocation2 + $0xe8] sm:$0xff] }
 0x1b9   :  { %1146 = vadd.xlane.f32.xlu1 %v1145_v2  ;;  %1116 = vadd.xlane.f32.xlu0 %v1115_v48  ;;  %v1031_v48 = vsel %vm595_vm0, %v484_v46, 0.0 }
 0x1ba   :  { %v1339_v60 = vpop.xlane.xlu1 %1338  ;;  %v4594_v20 = vpop.xlane.xlu0 %1308 }
 0x1bb   :  { %v2613_v49 = vrot.slane %v1339_v60, %v3630_v35  ;;  %v505_v60 = vunpack.c.l.bf16 %v249_v14  ;;  %v2573_v12 = vrot.slane %v4594_v20, %v3630_v35 }
 0x1bd   :  { %v2869_v17 = vsel %vm2658_vm8, %v2613_v49, %v2868_v33  ;;  %1089 = vadd.xlane.f32.xlu1 %v1088_v13  ;;  %1059 = vadd.xlane.f32.xlu0 %v1058_v21  ;;  %v495_v13 = vunpack.c.l.bf16 %v239_v7  ;;  %v2561_v49 = vrot.slane %v4412_v38, %v3630_v35  ;;  %v1004_v33 = vsel %vm595_vm0, %v475_v56, 0.0  ;;  %v221_v7 = vld [vmem:[%s5197_s0 + $0x8a] sm:$0x1] }
 0x1be   :  { %v2939_v11 = vadd.f32 %v2869_v17, %v81_v24  ;;  %v955_v42 = vpop.xlane.xlu1 %954  ;;  %v4616_v43 = vpop.xlane.xlu0 %924  ;;  %v220_v24 = vld [vmem:[%s5197_s0 + $0x89] sm:$0x1]  ;;  %v1094_v3 = vsel %vm595_vm0, %v505_v60, 0.0  ;;  %v2057_v17 = vrot.slane %v4533_v28, %v3630_v35  ;;  %v477_v56 = vunpack.c.l.bf16 %v221_v7  ;;  %v211_v60 = vld [vmem:[%s5197_s0 + $0x80] sm:$0x1] }
 0x1bf   :  { %v2101_v55 = vrot.slane %v955_v42, %v3630_v35  ;;  %v1064_v30 = vsel %vm595_vm0, %v495_v13, 0.0  ;;  %v476_v59 = vunpack.c.l.bf16 %v220_v24  ;;  %v2061_v28 = vrot.slane %v4616_v43, %v3630_v35 }
 0x1c0   :  { %2972 = vst.msk [vmem:[#allocation2 + $0xf0] sm:$0xff] %vm18_vm1, %v2939_v11  ;;  %v240_v11 = vld [vmem:[%s5197_s0 + $0x9d] sm:$0x1]  ;;  %v2857_v42 = vsel %vm2648_vm3, %v2561_v49, %v4384_v16  ;;  %v2747_v43 = vsel %vm2652_vm5, %v2057_v17, %v4280_v0  ;;  %v231_v0 = vld [vmem:[%s5197_s0 + $0x94] sm:$0x1]  ;;  %v1010_v49 = vsel %vm595_vm0, %v477_v56, 0.0  ;;  %v2521_v17 = vrot.slane %v4432_v61, %v3630_v35 }
 0x1c1   :  { %v2757_v54 = vsel %vm2658_vm8, %v2101_v55, %v2756_v53  ;;  %1029 = vadd.xlane.f32.xlu1 %v1028_v6  ;;  %1119 = vadd.xlane.f32.xlu0 %v1118_v45  ;;  %v2858_v44 = vsel %vm2650_vm4, %v2565_v32, %v2857_v42  ;;  %v496_v55 = vunpack.c.l.bf16 %v240_v11  ;;  %v1037_v53 = vsel %vm595_vm0, %v486_v34, 0.0  ;;  %v242_v61 = vld [vmem:[%s5197_s0 + $0x9f] sm:$0x1]  ;;  %v233_v56 = vld [vmem:[%s5197_s0 + $0x96] sm:$0x1] }
 0x1c2   :  { %v2923_v58 = vadd.f32 %v2757_v54, %v65_v50  ;;  %v4631_v25 = vpop.xlane.xlu1 %1281  ;;  %v4633_v2 = vpop.xlane.xlu0 %1251  ;;  %v506_v50 = vunpack.c.l.bf16 %v250_v36  ;;  %v2859_v20 = vsel %vm2652_vm5, %v2569_v4, %v2858_v44  ;;  %v1007_v54 = vsel %vm595_vm0, %v476_v59, 0.0 }
 0x1c3   :  { %v1067_v13 = vsel %vm595_vm0, %v496_v55, 0.0  ;;  %v2525_v32 = vrot.slane %v4456_v19, %v3630_v35  ;;  %v2529_v4 = vrot.slane %v4523_v31, %v3630_v35  ;;  %v2533_v34 = vrot.slane %v4563_v63, %v3630_v35 }
 0x1c4   :  { %2956 = vst.msk [vmem:[#allocation2 + $0x70] sm:$0xff] %vm18_vm1, %v2923_v58  ;;  %v2748_v58 = vsel %vm2654_vm6, %v2061_v28, %v2747_v43  ;;  %v2537_v59 = vrot.slane %v4631_v25, %v3630_v35  ;;  %v232_v25 = vld [vmem:[%s5197_s0 + $0x95] sm:$0x1] }
 0x1c5   :  { %1062 = vadd.xlane.f32.xlu1 %v1061_v57  ;;  %1032 = vadd.xlane.f32.xlu0 %v1031_v48  ;;  %v2860_v57 = vsel %vm2654_vm6, %v2573_v12, %v2859_v20  ;;  %v2849_v63 = vsel %vm2646_vm2, %v2525_v32, %v2521_v17  ;;  %v234_v32 = vld [vmem:[%s5197_s0 + $0x97] sm:$0x1] }
 0x1c6   :  { %v4643_v8 = vpop.xlane.xlu1 %927  ;;  %v4645_v62 = vpop.xlane.xlu0 %1311  ;;  %v2850_v44 = vsel %vm2648_vm3, %v2529_v4, %v2849_v63  ;;  %v2489_v4 = vrot.slane %v4548_v39, %v3630_v35  ;;  %v225_v39 = vld [vmem:[%s5197_s0 + $0x8e] sm:$0x1] }
 0x1c7   :  { %v3007_v15 = vld [vmem:[#allocation2 + $0xf0] sm:$0xff]  ;;  %v2065_v45 = vrot.slane %v4643_v8, %v3630_v35  ;;  %v2577_v46 = vrot.slane %v4645_v62, %v3630_v35  ;;  %v2851_v43 = vsel %vm2650_vm4, %v2533_v34, %v2850_v44 }
 0x1c8   :  { %v3039_v29 = vmul.f32 0.0625, %v3007_v15 }
 0x1c9   :  { %1122 = vadd.xlane.f32.xlu1 %v1121_v9  ;;  %1092 = vadd.xlane.f32.xlu0 %v1091_v10  ;;  %v2749_v37 = vsel %vm2656_vm7, %v2065_v45, %v2748_v58  ;;  %v2861_v8 = vsel %vm2656_vm7, %v2577_v46, %v2860_v57  ;;  %v1097_v10 = vsel %vm595_vm0, %v506_v50, 0.0  ;;  %v488_v57 = vunpack.c.l.bf16 %v232_v25 }
 0x1ca   :  { %v4655_v21 = vpop.xlane.xlu1 %1224  ;;  %3201 = vmatprep.subr.mxu0 %v3039_v29  ;;  %3244 = vmatprep.subr.mxu1 %v3039_v29  ;;  %v4657_v22 = vpop.xlane.xlu0 %1221  ;;  %v487_v29 = vunpack.c.l.bf16 %v231_v0  ;;  %v213_v0 = vld [vmem:[%s5197_s0 + $0x82] sm:$0x1] }
 0x1cb   :  { %v2991_v47 = vld [vmem:[#allocation2 + $0x70] sm:$0xff] }
 0x1cc   :  { %v3023_v27 = vmul.f32 0.0625, %v2991_v47  ;;  %v1040_v24 = vsel %vm595_vm0, %v487_v29, 0.0  ;;  %v214_v29 = vld [vmem:[%s5197_s0 + $0x83] sm:$0x1] }
 0x1cd   :  { %1065 = vadd.xlane.f32.xlu1 %v1064_v30  ;;  %1035 = vadd.xlane.f32.xlu0 %v1034_v26  ;;  %v241_v30 = vld [vmem:[%s5197_s0 + $0x9e] sm:$0x1]  ;;  %v467_v26 = vunpack.c.l.bf16 %v211_v60  ;;  %v470_v60 = vunpack.c.l.bf16 %v214_v29 }
 0x1ce   :  { %v4677_v6 = vpop.xlane.xlu1 %1284  ;;  %3202 = vmatpush3.msra.mxu0 %v3023_v27  ;;  %3260 = vmatpush3.msra.mxu1 %v3023_v27  ;;  %v4679_v38 = vpop.xlane.xlu0 %1254  ;;  %v497_v27 = vunpack.c.l.bf16 %v241_v30 }
 0x1cf   :  { %v980_v19 = vsel %vm595_vm0, %v467_v26, 0.0  ;;  %v2541_v42 = vrot.slane %v4677_v6, %v3630_v35  ;;  %v2501_v17 = vrot.slane %v4679_v38, %v3630_v35 }
 0x1d0   :  { %v1070_v12 = vsel %vm595_vm0, %v497_v27, 0.0  ;;  %v2493_v27 = vrot.slane %v4565_v1, %v3630_v35  ;;  %v989_v1 = vsel %vm595_vm0, %v470_v60, 0.0 }
 0x1d1   :  { %1005 = vadd.xlane.f32.xlu1 %v1004_v33  ;;  %1095 = vadd.xlane.f32.xlu0 %v1094_v3  ;;  %v222_v33 = vld [vmem:[%s5197_s0 + $0x8b] sm:$0x1]  ;;  %v212_v3 = vld [vmem:[%s5197_s0 + $0x81] sm:$0x1] }
 0x1d2   :  { %v931_v52 = vpop.xlane.xlu1 %930  ;;  %v1315_v16 = vpop.xlane.xlu0 %1314  ;;  %v478_v31 = vunpack.c.l.bf16 %v222_v33  ;;  %v468_v28 = vunpack.c.l.bf16 %v212_v3  ;;  %v224_v33 = vld [vmem:[%s5197_s0 + $0x8d] sm:$0x1]  ;;  %v2497_v3 = vrot.slane %v4633_v2, %v3630_v35  ;;  %v2842_v38 = vsel %vm2646_vm2, %v2493_v27, %v2489_v4 }
 0x1d3   :  { %v2069_v48 = vrot.slane %v931_v52, %v3630_v35  ;;  %v2581_v18 = vrot.slane %v1315_v16, %v3630_v35  ;;  %v2852_v52 = vsel %vm2652_vm5, %v2537_v59, %v2851_v43  ;;  %v2989_v2 = vld [vmem:[#allocation2 + $0x60] sm:$0xff]  ;;  %v2457_v27 = vrot.slane %v4657_v22, %v3630_v35  ;;  %v2988_v22 = vld [vmem:[#allocation2 + $0x58] sm:$0xff] }
 0x1d4   :  { %v2853_v58 = vsel %vm2654_vm6, %v2541_v42, %v2852_v52  ;;  %v2843_v42 = vsel %vm2648_vm3, %v2497_v3, %v2842_v38  ;;  %v3021_v44 = vmul.f32 0.0625, %v2989_v2 }
 0x1d5   :  { %v2750_v62 = vsel %vm2658_vm8, %v2069_v48, %v2749_v37  ;;  %v2862_v9 = vsel %vm2658_vm8, %v2581_v18, %v2861_v8  ;;  %1038 = vadd.xlane.f32.xlu1 %v1037_v53  ;;  %1008 = vadd.xlane.f32.xlu0 %v1007_v54  ;;  %v1013_v53 = vsel %vm595_vm0, %v478_v31, 0.0  ;;  %v983_v54 = vsel %vm595_vm0, %v468_v28, 0.0  ;;  %v79_v48 = vld [vmem:[#allocation2 + $0xe0] sm:$0xff] }
 0x1d6   :  { %v2922_v40 = vadd.f32 %v2750_v62, %v64_v51  ;;  %v2938_v41 = vadd.f32 %v2862_v9, %v80_v5  ;;  %v4719_v14 = vpop.xlane.xlu1 %1257  ;;  %v4721_v15 = vpop.xlane.xlu0 %1227  ;;  %v498_v51 = vunpack.c.l.bf16 %v242_v61  ;;  %v223_v18 = vld [vmem:[%s5197_s0 + $0x8c] sm:$0x1]  ;;  %v490_v31 = vunpack.c.l.bf16 %v234_v32 }
 0x1d7   :  { %v2505_v34 = vrot.slane %v4719_v14, %v3630_v35  ;;  %v480_v28 = vunpack.c.l.bf16 %v224_v33  ;;  %v215_v14 = vld [vmem:[%s5197_s0 + $0x84] sm:$0x1]  ;;  %v2844_v25 = vsel %vm2650_vm4, %v2501_v17, %v2843_v42  ;;  %v2465_v32 = vrot.slane %v4721_v15, %v3630_v35 }
 0x1d8   :  { %2955 = vst.msk [vmem:[#allocation2 + $0x68] sm:$0xff] %vm18_vm1, %v2922_v40  ;;  %2971 = vst.msk [vmem:[#allocation2 + $0xe8] sm:$0xff] %vm18_vm1, %v2938_v41  ;;  %v1073_v8 = vsel %vm595_vm0, %v498_v51, 0.0  ;;  %v479_v40 = vunpack.c.l.bf16 %v223_v18  ;;  %v469_v41 = vunpack.c.l.bf16 %v213_v0  ;;  %v1049_v51 = vsel %vm595_vm0, %v490_v31, 0.0 }
 0x1d9   :  { %1098 = vadd.xlane.f32.xlu1 %v1097_v10  ;;  %1068 = vadd.xlane.f32.xlu0 %v1067_v13  ;;  %v1043_v13 = vsel %vm595_vm0, %v488_v57, 0.0  ;;  %v1019_v52 = vsel %vm595_vm0, %v480_v28, 0.0  ;;  %v226_v57 = vld [vmem:[%s5197_s0 + $0x8f] sm:$0x1]  ;;  %v3020_v28 = vmul.f32 0.0625, %v2988_v22 }
 0x1da   :  { %v4731_v47 = vpop.xlane.xlu1 %1197  ;;  %v1288_v23 = vpop.xlane.xlu0 %1287 }
 0x1db   :  { %v2545_v50 = vrot.slane %v1288_v23, %v3630_v35  ;;  %v1016_v23 = vsel %vm595_vm0, %v479_v40, 0.0  ;;  %v217_v40 = vld [vmem:[%s5197_s0 + $0x86] sm:$0x1] }
 0x1dd   :  { %1041 = vadd.xlane.f32.xlu1 %v1040_v24  ;;  %1011 = vadd.xlane.f32.xlu0 %v1010_v49  ;;  %v2854_v7 = vsel %vm2656_vm7, %v2545_v50, %v2853_v58  ;;  %v986_v24 = vsel %vm595_vm0, %v469_v41, 0.0  ;;  %v489_v49 = vunpack.c.l.bf16 %v233_v56  ;;  %v481_v50 = vunpack.c.l.bf16 %v225_v39  ;;  %v216_v58 = vld [vmem:[%s5197_s0 + $0x85] sm:$0x1]  ;;  %v218_v41 = vld [vmem:[%s5197_s0 + $0x87] sm:$0x1] }
 0x1de   :  { %v4752_v36 = vpop.xlane.xlu1 %1230  ;;  %v4754_v11 = vpop.xlane.xlu0 %1200 }
 0x1df   :  { %v3006_v45 = vld [vmem:[#allocation2 + $0xe8] sm:$0xff]  ;;  %v1022_v18 = vsel %vm595_vm0, %v481_v50, 0.0  ;;  %v2469_v33 = vrot.slane %v4752_v36, %v3630_v35 }
 0x1e0   :  { %v2990_v46 = vld [vmem:[#allocation2 + $0x68] sm:$0xff]  ;;  %v3038_v55 = vmul.f32 0.0625, %v3006_v45 }
 0x1e1   :  { %v3022_v20 = vmul.f32 0.0625, %v2990_v46  ;;  %981 = vadd.xlane.f32.xlu1 %v980_v19  ;;  %1071 = vadd.xlane.f32.xlu0 %v1070_v12  ;;  %v1046_v12 = vsel %vm595_vm0, %v489_v49, 0.0  ;;  %v2461_v49 = vrot.slane %v4655_v21, %v3630_v35 }
 0x1e2   :  { %v1291_v6 = vpop.xlane.xlu1 %1290  ;;  %3203 = vmatprep.subr.mxu0 %v3038_v55  ;;  %3245 = vmatprep.subr.mxu1 %v3038_v55  ;;  %v4770_v16 = vpop.xlane.xlu0 %1260  ;;  %v2845_v55 = vsel %vm2652_vm5, %v2505_v34, %v2844_v25 }
 0x1e3   :  { %v2549_v5 = vrot.slane %v1291_v6, %v3630_v35  ;;  %3204 = vmatpush3.msra.mxu0 %v3022_v20  ;;  %3261 = vmatpush3.msra.mxu1 %v3022_v20  ;;  %v2509_v61 = vrot.slane %v4770_v16, %v3630_v35  ;;  %v471_v6 = vunpack.c.l.bf16 %v215_v14  ;;  %v2835_v34 = vsel %vm2646_vm2, %v2461_v49, %v2457_v27  ;;  %v77_v14 = vld [vmem:[#allocation2 + $0xd0] sm:$0xff]  ;;  %v4935_v49 = vld [vmem:[%s5198_s1 + $0x10] sm:$0xff] }
 0x1e4   :  { %v2836_v36 = vsel %vm2648_vm3, %v2465_v32, %v2835_v34 }
 0x1e5   :  { %v2855_v37 = vsel %vm2658_vm8, %v2549_v5, %v2854_v7  ;;  %1014 = vadd.xlane.f32.xlu1 %v1013_v53  ;;  %984 = vadd.xlane.f32.xlu0 %v983_v54  ;;  %v2846_v16 = vsel %vm2654_vm6, %v2509_v61, %v2845_v55  ;;  %v78_v53 = vld [vmem:[#allocation2 + $0xd8] sm:$0xff] }
 0x1e6   :  { %v2937_v62 = vadd.f32 %v2855_v37, %v79_v48  ;;  %v4785_v9 = vpop.xlane.xlu1 %1233  ;;  %v4787_v10 = vpop.xlane.xlu0 %1203 }
 0x1e7   :  { %v2473_v3 = vrot.slane %v4785_v9, %v3630_v35  ;;  %v2837_v9 = vsel %vm2650_vm4, %v2469_v33, %v2836_v36 }
 0x1e8   :  { %2970 = vst.msk [vmem:[#allocation2 + $0xe0] sm:$0xff] %vm18_vm1, %v2937_v62  ;;  %v482_v62 = vunpack.c.l.bf16 %v226_v57  ;;  %v2987_v57 = vld [vmem:[#allocation2 + $0x50] sm:$0xff] }
 0x1e9   :  { %1074 = vadd.xlane.f32.xlu1 %v1073_v8  ;;  %1044 = vadd.xlane.f32.xlu0 %v1043_v13  ;;  %v992_v8 = vsel %vm595_vm0, %v471_v6, 0.0  ;;  %v472_v13 = vunpack.c.l.bf16 %v216_v58  ;;  %v2838_v39 = vsel %vm2652_vm5, %v2473_v3, %v2837_v9  ;;  %v3050_v3 = vunpack.c.h.bf16 %v4935_v49 }
 0x1ea   :  { %v4797_v30 = vpop.xlane.xlu1 %1173  ;;  %v1264_v26 = vpop.xlane.xlu0 %1263  ;;  %v1025_v60 = vsel %vm595_vm0, %v482_v62, 0.0 }
 0x1eb   :  { %v2513_v45 = vrot.slane %v1264_v26, %v3630_v35  ;;  %v995_v26 = vsel %vm595_vm0, %v472_v13, 0.0  ;;  %v76_v13 = vld [vmem:[#allocation2 + $0xc8] sm:$0xff]  ;;  %3151 = vmatprep.mubr.f32.mxu1 %v3050_v3  ;;  %v2393_v22 = vrot.slane %v4797_v30, %v3630_v35 }
 0x1ed   :  { %1017 = vadd.xlane.f32.xlu1 %v1016_v23  ;;  %987 = vadd.xlane.f32.xlu0 %v986_v24  ;;  %v2847_v48 = vsel %vm2656_vm7, %v2513_v45, %v2846_v16  ;;  %v473_v23 = vunpack.c.l.bf16 %v217_v40  ;;  %v474_v24 = vunpack.c.l.bf16 %v218_v41 }
 0x1ee   :  { %v4818_v19 = vpop.xlane.xlu1 %1206  ;;  %v4820_v59 = vpop.xlane.xlu0 %1176 }
 0x1ef   :  { %v3005_v63 = vld [vmem:[#allocation2 + $0xe0] sm:$0xff]  ;;  %v998_v21 = vsel %vm595_vm0, %v473_v23, 0.0  ;;  %v2437_v6 = vrot.slane %v4818_v19, %v3630_v35 }
 0x1f0   :  { %v3037_v46 = vmul.f32 0.0625, %v3005_v63 }
 0x1f1   :  { %990 = vadd.xlane.f32.xlu1 %v989_v1  ;;  %1047 = vadd.xlane.f32.xlu0 %v1046_v12  ;;  %v1001_v1 = vsel %vm595_vm0, %v474_v24, 0.0  ;;  %v4930_v24 = vld [vmem:[%s5198_s1] sm:$0xff] }
 0x1f2   :  { %v1267_v20 = vpop.xlane.xlu1 %1266  ;;  %3205 = vmatprep.subr.mxu0 %v3037_v46  ;;  %3246 = vmatprep.subr.mxu1 %v3037_v46  ;;  %v1237_v43 = vpop.xlane.xlu0 %1236  ;;  %v3046_v33 = vunpack.c.h.bf16 %v4930_v24 }
 0x1f3   :  { %v2517_v54 = vrot.slane %v1267_v20, %v3630_v35  ;;  %3206 = vmatpush3.msra.mxu0 %v3021_v44  ;;  %3262 = vmatpush3.msra.mxu1 %v3021_v44  ;;  %v2477_v15 = vrot.slane %v1237_v43, %v3630_v35  ;;  %v2429_v43 = vrot.slane %v4754_v11, %v3630_v35 }
 0x1f4   :  { %3141 = vmatprep.mubr.f32.mxu0 %v3046_v33 }
 0x1f5   :  { %v2848_v5 = vsel %vm2658_vm8, %v2517_v54, %v2847_v48  ;;  %1050 = vadd.xlane.f32.xlu1 %v1049_v51  ;;  %1020 = vadd.xlane.f32.xlu0 %v1019_v52  ;;  %v2839_v63 = vsel %vm2654_vm6, %v2477_v15, %v2838_v39  ;;  %v2433_v51 = vrot.slane %v4787_v10, %v3630_v35 }
 0x1f6   :  { %v2936_v0 = vadd.f32 %v2848_v5, %v78_v53  ;;  %v4849_v7 = vpop.xlane.xlu1 %1209  ;;  %v4851_v37 = vpop.xlane.xlu0 %1179  ;;  %v2425_v52 = vrot.slane %v4731_v47, %v3630_v35 }
 0x1f7   :  { %v2441_v16 = vrot.slane %v4849_v7, %v3630_v35 }
 0x1f8   :  { %2969 = vst.msk [vmem:[#allocation2 + $0xd8] sm:$0xff] %vm18_vm1, %v2936_v0  ;;  %v2828_v58 = vsel %vm2646_vm2, %v2429_v43, %v2425_v52 }
 0x1f9   :  { %1023 = vadd.xlane.f32.xlu1 %v1022_v18  ;;  %993 = vadd.xlane.f32.xlu0 %v992_v8  ;;  %v2829_v10 = vsel %vm2648_vm3, %v2433_v51, %v2828_v58  ;;  %v3019_v18 = vmul.f32 0.0625, %v2987_v57 }
 0x1fa   :  { %v4861_v29 = vpop.xlane.xlu1 %1149  ;;  %v1240_v56 = vpop.xlane.xlu0 %1239  ;;  %v2830_v19 = vsel %vm2650_vm4, %v2437_v6, %v2829_v10 }
 0x1fb   :  { %v2481_v2 = vrot.slane %v1240_v56, %v3630_v35  ;;  %v2831_v0 = vsel %vm2652_vm5, %v2441_v16, %v2830_v19  ;;  %v3055_v16 = vld [vmem:[%s5199_s2 + $0x10] sm:$0xff] }
 0x1fd   :  { %1026 = vadd.xlane.f32.xlu1 %v1025_v60  ;;  %996 = vadd.xlane.f32.xlu0 %v995_v26  ;;  %v2840_v45 = vsel %vm2656_vm7, %v2481_v2, %v2839_v63  ;;  %v2986_v2 = vld [vmem:[#allocation2 + $0x48] sm:$0xff] }
 0x1fe   :  { %v4875_v4 = vpop.xlane.xlu1 %1182  ;;  %v4877_v17 = vpop.xlane.xlu0 %1152  ;;  %v3018_v39 = vmul.f32 0.0625, %v2986_v2 }
 0x1ff   :  { %v3004_v12 = vld [vmem:[#allocation2 + $0xd8] sm:$0xff]  ;;  %v2405_v34 = vrot.slane %v4875_v4, %v3630_v35 }
 0x200   :  { %v3036_v31 = vmul.f32 0.0625, %v3004_v12 }
 0x201   :  { %999 = vadd.xlane.f32.xlu0 %v998_v21  ;;  %1002 = vadd.xlane.f32.xlu1 %v1001_v1  ;;  %v2397_v21 = vrot.slane %v4820_v59, %v3630_v35  ;;  %v2401_v1 = vrot.slane %v4851_v37, %v3630_v35 }
 0x202   :  { %v1243_v38 = vpop.xlane.xlu1 %1242  ;;  %3207 = vmatprep.subr.mxu0 %v3036_v31  ;;  %3247 = vmatprep.subr.mxu1 %v3036_v31  ;;  %v1213_v61 = vpop.xlane.xlu0 %1212 }
 0x203   :  { %v2485_v42 = vrot.slane %v1243_v38, %v3630_v35  ;;  %3208 = vmatpush3.msra.mxu0 %v3020_v28  ;;  %3263 = vmatpush3.msra.mxu1 %v3020_v28  ;;  %v2445_v11 = vrot.slane %v1213_v61, %v3630_v35  ;;  %v2821_v59 = vsel %vm2646_vm2, %v2397_v21, %v2393_v22 }
 0x204   :  { %v2822_v9 = vsel %vm2648_vm3, %v2401_v1, %v2821_v59 }
 0x205   :  { %v2841_v46 = vsel %vm2658_vm8, %v2485_v42, %v2840_v45  ;;  %v2832_v62 = vsel %vm2654_vm6, %v2445_v11, %v2831_v0  ;;  %v2823_v4 = vsel %vm2650_vm4, %v2405_v34, %v2822_v9  ;;  %v75_v45 = vld [vmem:[#allocation2 + $0xc0] sm:$0xff]  ;;  %v3056_v11 = vld [vmem:[%s5199_s2 + $0x18] sm:$0xff] }
 0x206   :  { %v2935_v25 = vadd.f32 %v2841_v46, %v77_v14  ;;  %v4891_v44 = vpop.xlane.xlu1 %1185  ;;  %v4893_v50 = vpop.xlane.xlu0 %1155  ;;  %v3054_v14 = vld [vmem:[%s5199_s2 + $0x8] sm:$0xff] }
 0x207   :  { %v2409_v15 = vrot.slane %v4891_v44, %v3630_v35  ;;  %v2369_v10 = vrot.slane %v4893_v50, %v3630_v35 }
 0x208   :  { %2968 = vst.msk [vmem:[#allocation2 + $0xd0] sm:$0xff] %vm18_vm1, %v2935_v25  ;;  %v3053_v25 = vld [vmem:[%s5199_s2] sm:$0xff] }
 0x209   :  { %v2824_v38 = vsel %vm2652_vm5, %v2409_v15, %v2823_v4 }
 0x20a   :  { %v4896_v55 = vpop.xlane.xlu1 %1125  ;;  %v1216_v20 = vpop.xlane.xlu0 %1215 }
 0x20b   :  { %v2449_v47 = vrot.slane %v1216_v20, %v3630_v35  ;;  %v3280_v20 = vmov 0  }
 0x20c   :  { %3278 = vset.pattern.permute.xlu1 %v3280_v20  ;;  %3277 = vset.pattern.permute.xlu0 %v3280_v20 }
 0x20d   :  { %v2833_v41 = vsel %vm2656_vm7, %v2449_v47, %v2832_v62  ;;  %v2361_v47 = vrot.slane %v4861_v29, %v3630_v35 }
 0x20e   :  { %v4908_v53 = vpop.xlane.xlu1 %1158  ;;  %v4910_v54 = vpop.xlane.xlu0 %1128 }
 0x20f   :  { %v3003_v48 = vld [vmem:[#allocation2 + $0xd0] sm:$0xff]  ;;  %v2333_v59 = vrot.slane %v4910_v54, %v3630_v35 }
 0x210   :  { %v3035_v5 = vmul.f32 0.0625, %v3003_v48  ;;  %v2365_v48 = vrot.slane %v4877_v17, %v3630_v35 }
 0x212   :  { %v1219_v7 = vpop.xlane.xlu1 %1218  ;;  %3209 = vmatprep.subr.mxu0 %v3035_v5  ;;  %3248 = vmatprep.subr.mxu1 %v3035_v5  ;;  %v1189_v8 = vpop.xlane.xlu0 %1188  ;;  %v2373_v5 = vrot.slane %v4908_v53, %v3630_v35  ;;  %v2814_v17 = vsel %vm2646_vm2, %v2365_v48, %v2361_v47 }
 0x213   :  { %v2453_v40 = vrot.slane %v1219_v7, %v3630_v35  ;;  %3210 = vmatpush3.msra.mxu0 %v3019_v18  ;;  %3264 = vmatpush3.msra.mxu1 %v3019_v18  ;;  %v2413_v37 = vrot.slane %v1189_v8, %v3630_v35  ;;  %v2985_v7 = vld [vmem:[#allocation2 + $0x40] sm:$0xff]  ;;  %v2815_v62 = vsel %vm2648_vm3, %v2369_v10, %v2814_v17 }
 0x214   :  { %3064 = vperm.xlu1 %3278, %v3054_v14   ;;  %v2816_v53 = vsel %vm2650_vm4, %v2373_v5, %v2815_v62 }
 0x215   :  { %v2834_v56 = vsel %vm2658_vm8, %v2453_v40, %v2833_v41  ;;  %v2825_v42 = vsel %vm2654_vm6, %v2413_v37, %v2824_v38  ;;  %v3017_v40 = vmul.f32 0.0625, %v2985_v7 }
 0x216   :  { %v2934_v60 = vadd.f32 %v2834_v56, %v76_v13  ;;  %v4922_v26 = vpop.xlane.xlu1 %1161  ;;  %v4924_v23 = vpop.xlane.xlu0 %1131 }
 0x217   :  { %3059 = vperm.xlu0 %3277, %v3053_v25   ;;  %v2377_v19 = vrot.slane %v4922_v26, %v3630_v35  ;;  %v2337_v37 = vrot.slane %v4924_v23, %v3630_v35 }
 0x218   :  { %2967 = vst.msk [vmem:[#allocation2 + $0xc8] sm:$0xff] %vm18_vm1, %v2934_v60  ;;  %3069 = vperm.xlu1 %3278, %v3055_v16  }
 0x219   :  { %v2817_v41 = vsel %vm2652_vm5, %v2377_v19, %v2816_v53 }
 0x21a   :  { %v4937_v27 = vpop.xlane.xlu1 %1101  ;;  %v1192_v32 = vpop.xlane.xlu0 %1191 }
 0x21b   :  { %v2417_v30 = vrot.slane %v1192_v32, %v3630_v35  ;;  %v74_v32 = vld [vmem:[#allocation2 + $0xb8] sm:$0xff]  ;;  %v2297_v5 = vrot.slane %v4937_v27, %v3630_v35 }
 0x21c   :  { %3074 = vperm.xlu1 %3278, %v3056_v11  }
 0x21d   :  { %v2826_v44 = vsel %vm2656_vm7, %v2417_v30, %v2825_v42 }
 0x21e   :  { %v4951_v12 = vpop.xlane.xlu1 %1134  ;;  %v4953_v36 = vpop.xlane.xlu0 %1104 }
 0x21f   :  { %v3002_v31 = vld [vmem:[#allocation2 + $0xc8] sm:$0xff]  ;;  %v2341_v9 = vrot.slane %v4951_v12, %v3630_v35  ;;  %v2301_v10 = vrot.slane %v4953_v36, %v3630_v35 }
 0x220   :  { %v3034_v28 = vmul.f32 0.0625, %v3002_v31  ;;  %v2329_v31 = vrot.slane %v4896_v55, %v3630_v35 }
 0x221   :  { %v2800_v62 = vsel %vm2646_vm2, %v2301_v10, %v2297_v5 }
 0x222   :  { %v1195_v61 = vpop.xlane.xlu1 %1194  ;;  %3211 = vmatprep.subr.mxu0 %v3034_v28  ;;  %3249 = vmatprep.subr.mxu1 %v3034_v28  ;;  %v1165_v63 = vpop.xlane.xlu0 %1164  ;;  %v2807_v38 = vsel %vm2646_vm2, %v2333_v59, %v2329_v31 }
 0x223   :  { %v2421_v46 = vrot.slane %v1195_v61, %v3630_v35  ;;  %3212 = vmatpush3.msra.mxu0 %v3018_v39  ;;  %3265 = vmatpush3.msra.mxu1 %v3018_v39  ;;  %v2381_v8 = vrot.slane %v1165_v63, %v3630_v35  ;;  %v2984_v39 = vld [vmem:[#allocation2 + $0x38] sm:$0xff]  ;;  %v2808_v23 = vsel %vm2648_vm3, %v2337_v37, %v2807_v38 }
 0x224   :  { %v2809_v14 = vsel %vm2650_vm4, %v2341_v9, %v2808_v23  ;;  %v3016_v12 = vmul.f32 0.0625, %v2984_v39 }
 0x225   :  { %v2827_v43 = vsel %vm2658_vm8, %v2421_v46, %v2826_v44  ;;  %v2818_v26 = vsel %vm2654_vm6, %v2381_v8, %v2817_v41  ;;  %v73_v44 = vld [vmem:[#allocation2 + $0xb0] sm:$0xff] }
 0x226   :  { %v2933_v51 = vadd.f32 %v2827_v43, %v75_v45  ;;  %v1138_v52 = vpop.xlane.xlu1 %1137  ;;  %v4971_v6 = vpop.xlane.xlu0 %1107 }
 0x227   :  { %v2345_v30 = vrot.slane %v1138_v52, %v3630_v35  ;;  %v2305_v47 = vrot.slane %v4971_v6, %v3630_v35 }
 0x228   :  { %2966 = vst.msk [vmem:[#allocation2 + $0xc0] sm:$0xff] %vm18_vm1, %v2933_v51 }
 0x229   :  { %v2810_v42 = vsel %vm2652_vm5, %v2345_v30, %v2809_v14  ;;  %v2801_v6 = vsel %vm2648_vm3, %v2305_v47, %v2800_v62 }
 0x22a   :  { %v4977_v57 = vpop.xlane.xlu1 %1077  ;;  %v1168_v58 = vpop.xlane.xlu0 %1167 }
 0x22b   :  { %v2385_v29 = vrot.slane %v1168_v58, %v3630_v35  ;;  %v2265_v9 = vrot.slane %v4977_v57, %v3630_v35 }
 0x22d   :  { %v2819_v3 = vsel %vm2656_vm7, %v2385_v29, %v2818_v26  ;;  %v72_v26 = vld [vmem:[#allocation2 + $0xa8] sm:$0xff] }
 0x22e   :  { %v4992_v18 = vpop.xlane.xlu1 %1110  ;;  %v4994_v0 = vpop.xlane.xlu0 %1080 }
 0x22f   :  { %v3001_v50 = vld [vmem:[#allocation2 + $0xc0] sm:$0xff]  ;;  %v2309_v19 = vrot.slane %v4992_v18, %v3630_v35  ;;  %v2269_v37 = vrot.slane %v4994_v0, %v3630_v35 }
 0x230   :  { %v3033_v13 = vmul.f32 0.0625, %v3001_v50  ;;  %v2983_v50 = vld [vmem:[#allocation2 + $0x30] sm:$0xff] }
 0x231   :  { %v2802_v53 = vsel %vm2650_vm4, %v2309_v19, %v2801_v6  ;;  %v3015_v18 = vmul.f32 0.0625, %v2983_v50  ;;  %v2793_v23 = vsel %vm2646_vm2, %v2269_v37, %v2265_v9 }
 0x232   :  { %v1171_v56 = vpop.xlane.xlu1 %1170  ;;  %3213 = vmatprep.subr.mxu0 %v3033_v13  ;;  %3250 = vmatprep.subr.mxu1 %v3033_v13  ;;  %v1141_v60 = vpop.xlane.xlu0 %1140 }
 0x233   :  { %v2389_v33 = vrot.slane %v1171_v56, %v3630_v35  ;;  %3214 = vmatpush3.msra.mxu0 %v3017_v40  ;;  %3266 = vmatpush3.msra.mxu1 %v3017_v40  ;;  %v2349_v54 = vrot.slane %v1141_v60, %v3630_v35 }
 0x235   :  { %v2820_v21 = vsel %vm2658_vm8, %v2389_v33, %v2819_v3  ;;  %v2811_v25 = vsel %vm2654_vm6, %v2349_v54, %v2810_v42 }
 0x236   :  { %v2932_v1 = vadd.f32 %v2820_v21, %v74_v32  ;;  %v1114_v22 = vpop.xlane.xlu1 %1113  ;;  %v5006_v34 = vpop.xlane.xlu0 %1083 }
 0x237   :  { %v2313_v7 = vrot.slane %v1114_v22, %v3630_v35  ;;  %v2273_v31 = vrot.slane %v5006_v34, %v3630_v35 }
 0x238   :  { %2965 = vst.msk [vmem:[#allocation2 + $0xb8] sm:$0xff] %vm18_vm1, %v2932_v1 }
 0x239   :  { %v2803_v40 = vsel %vm2652_vm5, %v2313_v7, %v2802_v53  ;;  %v2794_v34 = vsel %vm2648_vm3, %v2273_v31, %v2793_v23 }
 0x23a   :  { %v5009_v15 = vpop.xlane.xlu1 %1053  ;;  %v1144_v2 = vpop.xlane.xlu0 %1143 }
 0x23b   :  { %v2353_v63 = vrot.slane %v1144_v2, %v3630_v35  ;;  %v2233_v19 = vrot.slane %v5009_v15, %v3630_v35 }
 0x23d   :  { %v2812_v43 = vsel %vm2656_vm7, %v2353_v63, %v2811_v25  ;;  %v71_v25 = vld [vmem:[#allocation2 + $0xa0] sm:$0xff] }
 0x23e   :  { %v5020_v28 = vpop.xlane.xlu1 %1086  ;;  %v5022_v4 = vpop.xlane.xlu0 %1056 }
 0x23f   :  { %v3000_v61 = vld [vmem:[#allocation2 + $0xb8] sm:$0xff]  ;;  %v2277_v30 = vrot.slane %v5020_v28, %v3630_v35  ;;  %v2237_v47 = vrot.slane %v5022_v4, %v3630_v35 }
 0x240   :  { %v3032_v55 = vmul.f32 0.0625, %v3000_v61  ;;  %v2982_v61 = vld [vmem:[#allocation2 + $0x28] sm:$0xff] }
 0x241   :  { %v2795_v14 = vsel %vm2650_vm4, %v2277_v30, %v2794_v34  ;;  %v3014_v28 = vmul.f32 0.0625, %v2982_v61  ;;  %v2786_v6 = vsel %vm2646_vm2, %v2237_v47, %v2233_v19 }
 0x242   :  { %v1147_v45 = vpop.xlane.xlu1 %1146  ;;  %3215 = vmatprep.subr.mxu0 %v3032_v55  ;;  %3251 = vmatprep.subr.mxu1 %v3032_v55  ;;  %v1117_v46 = vpop.xlane.xlu0 %1116 }
 0x243   :  { %v2357_v20 = vrot.slane %v1147_v45, %v3630_v35  ;;  %3216 = vmatpush3.msra.mxu0 %v3016_v12  ;;  %3267 = vmatpush3.msra.mxu1 %v3016_v12  ;;  %v2317_v36 = vrot.slane %v1117_v46, %v3630_v35 }
 0x245   :  { %v2813_v51 = vsel %vm2658_vm8, %v2357_v20, %v2812_v43  ;;  %v2804_v60 = vsel %vm2654_vm6, %v2317_v36, %v2803_v40 }
 0x246   :  { %v2931_v52 = vadd.f32 %v2813_v51, %v73_v44  ;;  %v1090_v16 = vpop.xlane.xlu1 %1089  ;;  %v5034_v58 = vpop.xlane.xlu0 %1059 }
 0x247   :  { %v2281_v39 = vrot.slane %v1090_v16, %v3630_v35  ;;  %v2241_v5 = vrot.slane %v5034_v58, %v3630_v35 }
 0x248   :  { %2964 = vst.msk [vmem:[#allocation2 + $0xb0] sm:$0xff] %vm18_vm1, %v2931_v52 }
 0x249   :  { %v2796_v12 = vsel %vm2652_vm5, %v2281_v39, %v2795_v14  ;;  %v2787_v58 = vsel %vm2648_vm3, %v2241_v5, %v2786_v6 }
 0x24a   :  { %v5037_v11 = vpop.xlane.xlu1 %1029  ;;  %v1120_v48 = vpop.xlane.xlu0 %1119 }
 0x24b   :  { %v2321_v13 = vrot.slane %v1120_v48, %v3630_v35  ;;  %v2201_v31 = vrot.slane %v5037_v11, %v3630_v35 }
 0x24d   :  { %v2805_v33 = vsel %vm2656_vm7, %v2321_v13, %v2804_v60  ;;  %v70_v60 = vld [vmem:[#allocation2 + $0x98] sm:$0xff] }
 0x24e   :  { %v5048_v17 = vpop.xlane.xlu1 %1062  ;;  %v5050_v8 = vpop.xlane.xlu0 %1032 }
 0x24f   :  { %v2999_v29 = vld [vmem:[#allocation2 + $0xb0] sm:$0xff]  ;;  %v2245_v7 = vrot.slane %v5048_v17, %v3630_v35 }
 0x250   :  { %v3031_v27 = vmul.f32 0.0625, %v2999_v29  ;;  %v2981_v29 = vld [vmem:[#allocation2 + $0x20] sm:$0xff] }
 0x251   :  { %v2788_v53 = vsel %vm2650_vm4, %v2245_v7, %v2787_v58  ;;  %v3013_v17 = vmul.f32 0.0625, %v2981_v29 }
 0x252   :  { %v1123_v41 = vpop.xlane.xlu1 %1122  ;;  %3217 = vmatprep.subr.mxu0 %v3031_v27  ;;  %3252 = vmatprep.subr.mxu1 %v3031_v27  ;;  %v1093_v56 = vpop.xlane.xlu0 %1092 }
 0x253   :  { %v2325_v32 = vrot.slane %v1123_v41, %v3630_v35  ;;  %3218 = vmatpush3.msra.mxu0 %v3015_v18  ;;  %3268 = vmatpush3.msra.mxu1 %v3015_v18  ;;  %v2285_v0 = vrot.slane %v1093_v56, %v3630_v35 }
 0x255   :  { %v2806_v3 = vsel %vm2658_vm8, %v2325_v32, %v2805_v33  ;;  %v2797_v46 = vsel %vm2654_vm6, %v2285_v0, %v2796_v12 }
 0x256   :  { %v2930_v21 = vadd.f32 %v2806_v3, %v72_v26  ;;  %v1066_v1 = vpop.xlane.xlu1 %1065  ;;  %v5062_v22 = vpop.xlane.xlu0 %1035 }
 0x257   :  { %v2249_v50 = vrot.slane %v1066_v1, %v3630_v35  ;;  %v2209_v37 = vrot.slane %v5062_v22, %v3630_v35 }
 0x258   :  { %2963 = vst.msk [vmem:[#allocation2 + $0xa8] sm:$0xff] %vm18_vm1, %v2930_v21 }
 0x259   :  { %v2789_v18 = vsel %vm2652_vm5, %v2249_v50, %v2788_v53 }
 0x25a   :  { %v5065_v2 = vpop.xlane.xlu1 %1005  ;;  %v1096_v59 = vpop.xlane.xlu0 %1095 }
 0x25b   :  { %v2289_v55 = vrot.slane %v1096_v59, %v3630_v35  ;;  %v2205_v59 = vrot.slane %v5050_v8, %v3630_v35 }
 0x25d   :  { %v2798_v20 = vsel %vm2656_vm7, %v2289_v55, %v2797_v46  ;;  %v2779_v23 = vsel %vm2646_vm2, %v2205_v59, %v2201_v31  ;;  %v67_v31 = vld [vmem:[#allocation2 + $0x80] sm:$0xff] }
 0x25e   :  { %v5076_v38 = vpop.xlane.xlu1 %1038  ;;  %v5078_v54 = vpop.xlane.xlu0 %1008  ;;  %v2780_v8 = vsel %vm2648_vm3, %v2209_v37, %v2779_v23 }
 0x25f   :  { %v2998_v63 = vld [vmem:[#allocation2 + $0xa8] sm:$0xff]  ;;  %v2213_v9 = vrot.slane %v5076_v38, %v3630_v35  ;;  %v2173_v38 = vrot.slane %v5078_v54, %v3630_v35 }
 0x260   :  { %v3030_v57 = vmul.f32 0.0625, %v2998_v63 }
 0x261   :  { %v2781_v63 = vsel %vm2650_vm4, %v2213_v9, %v2780_v8 }
 0x262   :  { %v1099_v42 = vpop.xlane.xlu1 %1098  ;;  %3219 = vmatprep.subr.mxu0 %v3030_v57  ;;  %3253 = vmatprep.subr.mxu1 %v3030_v57  ;;  %v1069_v45 = vpop.xlane.xlu0 %1068  ;;  %v2980_v57 = vld [vmem:[#allocation2 + $0x18] sm:$0xff] }
 0x263   :  { %v2293_v44 = vrot.slane %v1099_v42, %v3630_v35  ;;  %3220 = vmatpush3.msra.mxu0 %v3014_v28  ;;  %3269 = vmatpush3.msra.mxu1 %v3014_v28  ;;  %v2253_v4 = vrot.slane %v1069_v45, %v3630_v35  ;;  %v69_v28 = vld [vmem:[#allocation2 + $0x90] sm:$0xff] }
 0x265   :  { %v2799_v43 = vsel %vm2658_vm8, %v2293_v44, %v2798_v20  ;;  %v2790_v56 = vsel %vm2654_vm6, %v2253_v4, %v2789_v18  ;;  %v2169_v44 = vrot.slane %v5065_v2, %v3630_v35 }
 0x266   :  { %v2929_v51 = vadd.f32 %v2799_v43, %v71_v25  ;;  %v1042_v52 = vpop.xlane.xlu1 %1041  ;;  %v5090_v16 = vpop.xlane.xlu0 %1011  ;;  %v3012_v43 = vmul.f32 0.0625, %v2980_v57 }
 0x267   :  { %v2217_v30 = vrot.slane %v1042_v52, %v3630_v35  ;;  %v2177_v45 = vrot.slane %v5090_v16, %v3630_v35  ;;  %v2772_v16 = vsel %vm2646_vm2, %v2173_v38, %v2169_v44  ;;  %v3045_v38 = vunpack.c.l.bf16 %v4930_v24 }
 0x268   :  { %2962 = vst.msk [vmem:[#allocation2 + $0xa0] sm:$0xff] %vm18_vm1, %v2929_v51 }
 0x269   :  { %v2782_v34 = vsel %vm2652_vm5, %v2217_v30, %v2781_v63  ;;  %v2773_v2 = vsel %vm2648_vm3, %v2177_v45, %v2772_v16  ;;  %v2977_v63 = vld [vmem:[#allocation2] sm:$0xff] }
 0x26a   :  { %v5093_v48 = vpop.xlane.xlu1 %981  ;;  %v1072_v10 = vpop.xlane.xlu0 %1071 }
 0x26b   :  { %v2257_v27 = vrot.slane %v1072_v10, %v3630_v35  ;;  %v2137_v29 = vrot.slane %v5093_v48, %v3630_v35 }
 0x26d   :  { %v2791_v32 = vsel %vm2656_vm7, %v2257_v27, %v2790_v56 }
 0x26e   :  { %v5104_v62 = vpop.xlane.xlu1 %1014  ;;  %v5106_v36 = vpop.xlane.xlu0 %984 }
 0x26f   :  { %v2997_v13 = vld [vmem:[#allocation2 + $0xa0] sm:$0xff]  ;;  %v2181_v20 = vrot.slane %v5104_v62, %v3630_v35  ;;  %v2141_v19 = vrot.slane %v5106_v36, %v3630_v35 }
 0x270   :  { %v3029_v15 = vmul.f32 0.0625, %v2997_v13 }
 0x271   :  { %v2774_v50 = vsel %vm2650_vm4, %v2181_v20, %v2773_v2 }
 0x272   :  { %v1075_v40 = vpop.xlane.xlu1 %1074  ;;  %3221 = vmatprep.subr.mxu0 %v3029_v15  ;;  %3254 = vmatprep.subr.mxu1 %v3029_v15  ;;  %v1045_v41 = vpop.xlane.xlu0 %1044  ;;  %v68_v15 = vld [vmem:[#allocation2 + $0x88] sm:$0xff] }
 0x273   :  { %v2261_v26 = vrot.slane %v1075_v40, %v3630_v35  ;;  %3222 = vmatpush3.msra.mxu0 %v3013_v17  ;;  %3270 = vmatpush3.msra.mxu1 %v3013_v17  ;;  %v2221_v0 = vrot.slane %v1045_v41, %v3630_v35  ;;  %v2765_v17 = vsel %vm2646_vm2, %v2141_v19, %v2137_v29 }
 0x275   :  { %v2792_v33 = vsel %vm2658_vm8, %v2261_v26, %v2791_v32  ;;  %v2783_v14 = vsel %vm2654_vm6, %v2221_v0, %v2782_v34  ;;  %v3042_v34 = vld [vmem:[%s5198_s1 + $0x8] sm:$0xff] }
 0x276   :  { %v2928_v3 = vadd.f32 %v2792_v33, %v70_v60  ;;  %v1018_v21 = vpop.xlane.xlu1 %1017  ;;  %v988_v1 = vpop.xlane.xlu0 %987  ;;  %v2979_v33 = vld [vmem:[#allocation2 + $0x10] sm:$0xff]  ;;  %v3047_v45 = vunpack.c.l.bf16 %v3042_v34 }
 0x277   :  { %v2185_v51 = vrot.slane %v1018_v21, %v3630_v35  ;;  %v2145_v62 = vrot.slane %v988_v1, %v3630_v35 }
 0x278   :  { %2961 = vst.msk [vmem:[#allocation2 + $0x98] sm:$0xff] %vm18_vm1, %v2928_v3 }
 0x279   :  { %v2775_v6 = vsel %vm2652_vm5, %v2185_v51, %v2774_v50  ;;  %v2766_v48 = vsel %vm2648_vm3, %v2145_v62, %v2765_v17 }
 0x27a   :  { %v991_v39 = vpop.xlane.xlu1 %990  ;;  %v1048_v61 = vpop.xlane.xlu0 %1047 }
 0x27b   :  { %v2225_v22 = vrot.slane %v1048_v61, %v3630_v35  ;;  %v2149_v4 = vrot.slane %v991_v39, %v3630_v35  ;;  %v3011_v39 = vmul.f32 0.0625, %v2979_v33 }
 0x27d   :  { %v2784_v46 = vsel %vm2656_vm7, %v2225_v22, %v2783_v14  ;;  %v2767_v56 = vsel %vm2650_vm4, %v2149_v4, %v2766_v48  ;;  %v3049_v14 = vunpack.c.l.bf16 %v4935_v49 }
 0x27e   :  { %v1051_v11 = vpop.xlane.xlu1 %1050  ;;  %v1021_v55 = vpop.xlane.xlu0 %1020 }
 0x27f   :  { %v2229_v12 = vrot.slane %v1051_v11, %v3630_v35  ;;  %v2996_v42 = vld [vmem:[#allocation2 + $0x98] sm:$0xff]  ;;  %v2189_v5 = vrot.slane %v1021_v55, %v3630_v35  ;;  %v3044_v11 = vld [vmem:[%s5198_s1 + $0x18] sm:$0xff] }
 0x280   :  { %v3028_v25 = vmul.f32 0.0625, %v2996_v42  ;;  %v3052_v42 = vunpack.c.h.bf16 %v3044_v11 }
 0x281   :  { %v2785_v54 = vsel %vm2658_vm8, %v2229_v12, %v2784_v46  ;;  %v2776_v27 = vsel %vm2654_vm6, %v2189_v5, %v2775_v6  ;;  %v3048_v12 = vunpack.c.h.bf16 %v3042_v34  ;;  %v3051_v46 = vunpack.c.l.bf16 %v3044_v11 }
 0x282   :  { %v2927_v52 = vadd.f32 %v2785_v54, %v69_v28  ;;  %v1024_v10 = vpop.xlane.xlu1 %1023  ;;  %3223 = vmatprep.subr.mxu0 %v3028_v25  ;;  %3255 = vmatprep.subr.mxu1 %v3028_v25  ;;  %v994_v47 = vpop.xlane.xlu0 %993  ;;  %v3009_v28 = vmul.f32 0.0625, %v2977_v63 }
 0x283   :  { %3224 = vmatpush3.msra.mxu0 %v3012_v43  ;;  %3271 = vmatpush3.msra.mxu1 %v3012_v43  ;;  %v2193_v7 = vrot.slane %v1024_v10, %v3630_v35  ;;  %v2153_v36 = vrot.slane %v994_v47, %v3630_v35 }
 0x284   :  { %2960 = vst.msk [vmem:[#allocation2 + $0x90] sm:$0xff] %vm18_vm1, %v2927_v52 }
 0x285   :  { %v2777_v18 = vsel %vm2656_vm7, %v2193_v7, %v2776_v27  ;;  %v2768_v3 = vsel %vm2652_vm5, %v2153_v36, %v2767_v56 }
 0x286   :  { %v1027_v13 = vpop.xlane.xlu1 %1026  ;;  %v997_v58 = vpop.xlane.xlu0 %996 }
 0x287   :  { %v2197_v53 = vrot.slane %v1027_v13, %v3630_v35  ;;  %v2157_v40 = vrot.slane %v997_v58, %v3630_v35 }
 0x289   :  { %v2778_v41 = vsel %vm2658_vm8, %v2197_v53, %v2777_v18  ;;  %v2769_v37 = vsel %vm2654_vm6, %v2157_v40, %v2768_v3 }
 0x28a   :  { %v2926_v60 = vadd.f32 %v2778_v41, %v68_v15  ;;  %v1000_v26 = vpop.xlane.xlu0 %999  ;;  %v1003_v32 = vpop.xlane.xlu1 %1002 }
 0x28b   :  { %v2161_v21 = vrot.slane %v1000_v26, %v3630_v35  ;;  %v2165_v1 = vrot.slane %v1003_v32, %v3630_v35  ;;  %v2995_v59 = vld [vmem:[#allocation2 + $0x90] sm:$0xff]  ;;  %v2978_v35 = vld [vmem:[#allocation2 + $0x8] sm:$0xff] }
 0x28c   :  { %2959 = vst.msk [vmem:[#allocation2 + $0x88] sm:$0xff] %vm18_vm1, %v2926_v60  ;;  %v3027_v9 = vmul.f32 0.0625, %v2995_v59  ;;  %v3010_v22 = vmul.f32 0.0625, %v2978_v35 }
 0x28d   :  { %v2770_v30 = vsel %vm2656_vm7, %v2161_v21, %v2769_v37 }
 0x28e   :  { %v2771_v61 = vsel %vm2658_vm8, %v2165_v1, %v2770_v30  ;;  %3225 = vmatprep.subr.mxu0 %v3027_v9  ;;  %3256 = vmatprep.subr.mxu1 %v3027_v9 }
 0x28f   :  { %v2925_v23 = vadd.f32 %v2771_v61, %v67_v31  ;;  %3226 = vmatpush3.msra.mxu0 %v3011_v39  ;;  %3272 = vmatpush3.msra.mxu1 %v3011_v39  ;;  %v3065_v25 = vpop.permute.xlu1 %3064 }
 0x291   :  { %2958 = vst.msk [vmem:[#allocation2 + $0x80] sm:$0xff] %vm18_vm1, %v2925_v23 }
 0x292   :  { %v3060_v49 = vpop.permute.xlu0 %3059 }
 0x293   :  { %v2994_v0 = vld [vmem:[#allocation2 + $0x88] sm:$0xff]  ;;  %v3070_v20 = vpop.permute.xlu1 %3069 }
 0x294   :  { %v3026_v8 = vmul.f32 0.0625, %v2994_v0 }
 0x296   :  { %3227 = vmatprep.subr.mxu0 %v3026_v8  ;;  %3257 = vmatprep.subr.mxu1 %v3026_v8 }
 0x297   :  { %3228 = vmatpush3.msra.mxu0 %v3010_v22  ;;  %3273 = vmatpush3.msra.mxu1 %v3010_v22  ;;  %v3075_v6 = vpop.permute.xlu1 %3074 }
 0x298   :  { %v2993_v55 = vld [vmem:[#allocation2 + $0x80] sm:$0xff] }
 0x299   :  { %v3025_v57 = vmul.f32 0.0625, %v2993_v55 }
 0x29b   :  { %3229 = vmatprep.subr.mxu0 %v3025_v57  ;;  %3258 = vmatprep.subr.mxu1 %v3025_v57 }
 0x29c   :  { %3230 = vmatpush3.msra.mxu0 %v3009_v28  ;;  %3274 = vmatpush3.msra.mxu1 %v3009_v28 }
 0x29d   :  { %3142 = vmatmul.mubr.f32.vlgmr.msra.gmra.mxu0 %v3045_v38  ;;  %3152 = vmatmul.mubr.f32.vlgmr.msra.gmra.mxu1 %v3049_v14 }
 0x29e   :  { %3146 = vmatprep.mubr.f32.mxu0 %v3048_v12  ;;  %3156 = vmatprep.mubr.f32.mxu1 %v3052_v42 }
 0x2a1   :  { %3147 = vmatmul.mubr.f32.gmra.mxu0 %v3047_v45  ;;  %3157 = vmatmul.mubr.f32.gmra.mxu1 %v3051_v46 }
 0x35d   :  { %v3231_v44 = vpop.f32.mrf.mxu0  ;;  %v3237_v24 = vpop.f32.mrf.mxu1 }
 0x35f   :  { %v3232_v54 = vpop.f32.mrf.mxu0  ;;  %v3238_v43 = vpop.f32.mrf.mxu1 }
 0x360   :  { %v3233_v51 = vadd.f32 %v3232_v54, %v3231_v44  ;;  %v3239_v52 = vadd.f32 %v3238_v43, %v3237_v24 }
 0x361   :  { %v3234_v10 = vpop.f32.mrf.mxu0  ;;  %v3240_v47 = vpop.f32.mrf.mxu1 }
 0x362   :  { %v3154_v16 = vadd.f32 %v3239_v52, %v3070_v20  ;;  %v3144_v5 = vadd.f32 %v3233_v51, %v3060_v49 }
 0x363   :  { %v3235_v2 = vpop.f32.mrf.mxu0  ;;  %v3241_v19 = vpop.f32.mrf.mxu1 }
 0x364   :  { %v3164_v7 = vmax.f32 %v3154_v16, 0.0  ;;  %v3162_v50 = vmax.f32 %v3144_v5, 0.0  ;;  %v3236_v62 = vadd.f32 %v3235_v2, %v3234_v10  ;;  %v3242_v29 = vadd.f32 %v3241_v19, %v3240_v47 }
 0x366   :  { %v3197_v4 = vpack.c.bf16 %v3164_v7, %v3164_v7  ;;  %v3195_v13 = vpack.c.bf16 %v3162_v50, %v3162_v50  ;;  %v3149_v58 = vadd.f32 %v3236_v62, %v3065_v25  ;;  %v3159_v27 = vadd.f32 %v3242_v29, %v3075_v6 }
 0x368   :  { %3185 = vst.msk [vmem:[%s5200_s3 + $0x8] sm:$0xf] %vm3182_vm9, %v3197_v4  ;;  %3183 = vst.msk [vmem:[%s5200_s3] sm:$0xf] %vm3182_vm9, %v3195_v13  ;;  %v3163_v36 = vmax.f32 %v3149_v58, 0.0  ;;  %v3165_v15 = vmax.f32 %v3159_v27, 0.0 }
 0x36a   :  { %v3196_v53 = vpack.c.bf16 %v3163_v36, %v3163_v36  ;;  %v3198_v17 = vpack.c.bf16 %v3165_v15, %v3165_v15 }
 0x36c   :  { %3184 = vst.msk [vmem:[%s5200_s3 + $0x4] sm:$0xf] %vm3182_vm9, %v3196_v53  ;;  %3186 = vst.msk [vmem:[%s5200_s3 + $0xc] sm:$0xf] %vm3182_vm9, %v3198_v17 }

</bundles_post_ra>
